<compile_context>
chip_gen: v5e
topology: v5e:2x2
jax: 0.10.0
libtpu: 0.0.40
codegen_flags: <defaults>
</compile_context>

<pallas_src>
import functools

import numpy as np
import jax
import jax.numpy as jnp
from jax.experimental import pallas as pl
from jax.experimental.pallas import tpu as pltpu

BN_EPS = 1e-5
TM_MAX = 512                      # row-tile upper bound (sweep 256-1024)
VMEM_LIMIT = 64 * 1024 * 1024     # fits v5e/v6e (128 MiB phys) and v7x (64 MiB)


def _row_tile(m):
    """Row tile: multiple of 16 (bf16 sublanes), <= TM_MAX, >=2 grid steps if possible."""
    half = -(-m // 2)
    return int(min(TM_MAX, max(16, -(-half // 16) * 16)))


# ---------------------------------------------------------------------------
# kernel 1: h1 = conv1(relu(bn1(x)))   (+ per-tile sum / sum-of-squares of h1)
# ---------------------------------------------------------------------------
def _conv1_kernel(x_ref, s_ref, t_ref, w_ref, b_ref, h1_ref, st_ref, *, m_rows, tm):
    a = jnp.maximum(x_ref[...].astype(jnp.float32) * s_ref[...] + t_ref[...], 0.0)
    h = jnp.dot(a.astype(jnp.bfloat16), w_ref[...],
                preferred_element_type=jnp.float32) + b_ref[...]
    h1_ref[...] = h.astype(h1_ref.dtype)
    if m_rows % tm != 0:
        # mask garbage rows of the (only) partial tile so they don't pollute stats
        rows = (jax.lax.broadcasted_iota(jnp.int32, h.shape, 0)
                + pl.program_id(0) * tm)
        h = jnp.where(rows < m_rows, h, 0.0)
    c = h.shape[1]
    st_ref[0] = jnp.concatenate(
        [jnp.sum(h, axis=0, keepdims=True),
         jnp.sum(h * h, axis=0, keepdims=True),
         jnp.zeros((6, c), jnp.float32)], axis=0)


def conv1x1_bn_relu_stats(x2d, scale, shift, w, b, tm):
    m, cin = x2d.shape
    cmid = w.shape[1]
    g = (m + tm - 1) // tm
    kern = functools.partial(_conv1_kernel, m_rows=m, tm=tm)
    return pl.pallas_call(
        kern,
        out_shape=(jax.ShapeDtypeStruct((m, cmid), jnp.bfloat16),
                   jax.ShapeDtypeStruct((g, 8, cmid), jnp.float32)),
        grid_spec=pltpu.PrefetchScalarGridSpec(
            num_scalar_prefetch=0,
            grid=(g,),
            in_specs=[
                pl.BlockSpec((tm, cin), lambda i: (i, 0)),
                pl.BlockSpec((1, cin), lambda i: (0, 0)),
                pl.BlockSpec((1, cin), lambda i: (0, 0)),
                pl.BlockSpec((cin, cmid), lambda i: (0, 0)),
                pl.BlockSpec((1, cmid), lambda i: (0, 0)),
            ],
            out_specs=[
                pl.BlockSpec((tm, cmid), lambda i: (i, 0)),
                pl.BlockSpec((1, 8, cmid), lambda i: (i, 0, 0)),
            ]),
        compiler_params=pltpu.CompilerParams(
            dimension_semantics=("parallel",), vmem_limit_bytes=VMEM_LIMIT),
    )(x2d, scale, shift, w, b)


# ---------------------------------------------------------------------------
# kernel 2: h2 = conv2_3x3(relu(bn2(h1)))   (+ per-image partial stats of h2)
# 3x3 'same' conv = sum over 9 taps of (row-shifted, boundary-masked act) @ W[tap]
# done entirely on the flattened (H*W, C) view -- no im2col in HBM.
# ---------------------------------------------------------------------------
def _conv3x3_kernel(h1_ref, s_ref, t_ref, w_ref, b_ref, m_ref,
                    h2_ref, st_ref, *, h_dim, w_dim):
    hw = h_dim * w_dim
    a = jnp.maximum(h1_ref[0].astype(jnp.float32) * s_ref[...] + t_ref[...], 0.0)
    cout = w_ref.shape[2]
    acc = jnp.zeros((hw, cout), jnp.float32)
    for ky in range(3):
        for kx in range(3):
            k = ky * 3 + kx
            sp = ((ky - 1) * w_dim + (kx - 1)) % hw   # flat shift, static
            sh = a if sp == 0 else jnp.concatenate([a[sp:], a[:sp]], axis=0)
            tap = (sh * m_ref[k]).astype(jnp.bfloat16)   # zero invalid border taps
            acc = acc + jnp.dot(tap, w_ref[k], preferred_element_type=jnp.float32)
    h2 = acc + b_ref[...]
    h2_ref[0] = h2.astype(h2_ref.dtype)
    st_ref[0] = jnp.concatenate(
        [jnp.sum(h2, axis=0, keepdims=True),
         jnp.sum(h2 * h2, axis=0, keepdims=True),
         jnp.zeros((6, cout), jnp.float32)], axis=0)


def conv3x3_bn_relu_stats(h1_3d, scale, shift, w9, b, taps_mask, h_dim, w_dim):
    n, hw, cmid = h1_3d.shape
    cout = w9.shape[2]
    kern = functools.partial(_conv3x3_kernel, h_dim=h_dim, w_dim=w_dim)
    return pl.pallas_call(
        kern,
        out_shape=(jax.ShapeDtypeStruct((n, hw, cout), jnp.bfloat16),
                   jax.ShapeDtypeStruct((n, 8, cout), jnp.float32)),
        grid_spec=pltpu.PrefetchScalarGridSpec(
            num_scalar_prefetch=0,
            grid=(n,),
            in_specs=[
                pl.BlockSpec((1, hw, cmid), lambda i: (i, 0, 0)),
                pl.BlockSpec((1, cmid), lambda i: (0, 0)),
                pl.BlockSpec((1, cmid), lambda i: (0, 0)),
                pl.BlockSpec((9, cmid, cout), lambda i: (0, 0, 0)),
                pl.BlockSpec((1, cout), lambda i: (0, 0)),
                pl.BlockSpec((9, hw, 1), lambda i: (0, 0, 0)),
            ],
            out_specs=[
                pl.BlockSpec((1, hw, cout), lambda i: (i, 0, 0)),
                pl.BlockSpec((1, 8, cout), lambda i: (i, 0, 0)),
            ]),
        compiler_params=pltpu.CompilerParams(
            dimension_semantics=("parallel",), vmem_limit_bytes=VMEM_LIMIT),
    )(h1_3d, scale, shift, w9, b, taps_mask)


# ---------------------------------------------------------------------------
# kernel 3: out = conv3(relu(bn3(h2))) + shortcut(relu(bns(x)))   (UP mode)
#           out = conv3(relu(bn3(h2))) + x                        (DOWN mode)
# shortcut matmul fused -> two dots, one output; hsc never hits HBM.
# ---------------------------------------------------------------------------
def _conv3_shortcut_kernel(h2_ref, s3_ref, t3_ref, w3_ref, b3_ref,
                           x_ref, ss_ref, ts_ref, wsc_ref, o_ref):
    a3 = jnp.maximum(h2_ref[...].astype(jnp.float32) * s3_ref[...] + t3_ref[...], 0.0)
    out = jnp.dot(a3.astype(jnp.bfloat16), w3_ref[...],
                  preferred_element_type=jnp.float32) + b3_ref[...]
    sc = jnp.maximum(x_ref[...].astype(jnp.float32) * ss_ref[...] + ts_ref[...], 0.0)
    out = out + jnp.dot(sc.astype(jnp.bfloat16), wsc_ref[...],
                        preferred_element_type=jnp.float32)
    o_ref[...] = out


def _conv3_identity_kernel(h2_ref, s3_ref, t3_ref, w3_ref, b3_ref, x_ref, o_ref):
    a3 = jnp.maximum(h2_ref[...].astype(jnp.float32) * s3_ref[...] + t3_ref[...], 0.0)
    out = jnp.dot(a3.astype(jnp.bfloat16), w3_ref[...],
                  preferred_element_type=jnp.float32) + b3_ref[...]
    o_ref[...] = out + x_ref[...].astype(jnp.float32)


def conv3_plus_shortcut(h2_2d, s3, t3, w3, b3, x2d, ss, ts, wsc, tm):
    m, cmid = h2_2d.shape
    cin = x2d.shape[1]
    cout = w3.shape[1]
    g = (m + tm - 1) // tm
    return pl.pallas_call(
        _conv3_shortcut_kernel,
        out_shape=jax.ShapeDtypeStruct((m, cout), jnp.float32),
        grid_spec=pltpu.PrefetchScalarGridSpec(
            num_scalar_prefetch=0,
            grid=(g,),
            in_specs=[
                pl.BlockSpec((tm, cmid), lambda i: (i, 0)),
                pl.BlockSpec((1, cmid), lambda i: (0, 0)),
                pl.BlockSpec((1, cmid), lambda i: (0, 0)),
                pl.BlockSpec((cmid, cout), lambda i: (0, 0)),
                pl.BlockSpec((1, cout), lambda i: (0, 0)),
                pl.BlockSpec((tm, cin), lambda i: (i, 0)),
                pl.BlockSpec((1, cin), lambda i: (0, 0)),
                pl.BlockSpec((1, cin), lambda i: (0, 0)),
                pl.BlockSpec((cin, cout), lambda i: (0, 0)),
            ],
            out_specs=pl.BlockSpec((tm, cout), lambda i: (i, 0))),
        compiler_params=pltpu.CompilerParams(
            dimension_semantics=("parallel",), vmem_limit_bytes=VMEM_LIMIT),
    )(h2_2d, s3, t3, w3, b3, x2d, ss, ts, wsc)


def conv3_plus_identity(h2_2d, s3, t3, w3, b3, x2d, tm):
    m, cmid = h2_2d.shape
    cin = x2d.shape[1]
    cout = w3.shape[1]
    g = (m + tm - 1) // tm
    return pl.pallas_call(
        _conv3_identity_kernel,
        out_shape=jax.ShapeDtypeStruct((m, cout), jnp.float32),
        grid_spec=pltpu.PrefetchScalarGridSpec(
            num_scalar_prefetch=0,
            grid=(g,),
            in_specs=[
                pl.BlockSpec((tm, cmid), lambda i: (i, 0)),
                pl.BlockSpec((1, cmid), lambda i: (0, 0)),
                pl.BlockSpec((1, cmid), lambda i: (0, 0)),
                pl.BlockSpec((cmid, cout), lambda i: (0, 0)),
                pl.BlockSpec((1, cout), lambda i: (0, 0)),
                pl.BlockSpec((tm, cin), lambda i: (i, 0)),
            ],
            out_specs=pl.BlockSpec((tm, cout), lambda i: (i, 0))),
        compiler_params=pltpu.CompilerParams(
            dimension_semantics=("parallel",), vmem_limit_bytes=VMEM_LIMIT),
    )(h2_2d, s3, t3, w3, b3, x2d)


# ---------------------------------------------------------------------------
# Glue: BN affine / stats finalization, conv2 boundary masks, param init
# ---------------------------------------------------------------------------
def _bn_affine(mean, var, gamma, beta, eps=BN_EPS):
    scale = gamma / jnp.sqrt(var + eps)
    shift = beta - mean * scale
    return (scale.reshape(1, -1).astype(jnp.float32),
            shift.reshape(1, -1).astype(jnp.float32))


def _finalize_batch_stats(stats, count):
    total = jnp.sum(stats[:, 0, :], axis=0)
    total_sq = jnp.sum(stats[:, 1, :], axis=0)
    mean = total / count
    var = jnp.maximum(total_sq / count - mean * mean, 0.0)  # biased (train-mode BN)
    return mean, var


def _conv2_taps_mask(h_dim, w_dim):
    """(9, H*W, 1) f32: 1 where the tap reads a valid (non-padding) pixel."""
    yy, xx = np.meshgrid(np.arange(h_dim), np.arange(w_dim), indexing="ij")
    masks = []
    for ky in range(3):
        for kx in range(3):
            dy, dx = ky - 1, kx - 1
            valid = ((yy + dy >= 0) & (yy + dy < h_dim) &
                     (xx + dx >= 0) & (xx + dx < w_dim))
            masks.append(valid.reshape(-1, 1).astype(np.float32))
    return jnp.asarray(np.stack(masks, axis=0))


def _xavier_uniform(key, cout, cin, kh, kw):
    fan_in = cin * kh * kw
    fan_out = cout * kh * kw
    bound = (6.0 / (fan_in + fan_out)) ** 0.5
    return jax.random.uniform(key, (cout, cin, kh, kw), jnp.float32, -bound, bound)


def init_bottleneck_params(key, in_chans, k, mode="UP"):
    keys = jax.random.split(key, 4)
    if mode == "UP":
        c_in, c_mid = in_chans * k, in_chans // 2
    else:
        c_in, c_mid = in_chans, in_chans // 4
    c_out = in_chans
    p = {
        "conv1_w": _xavier_uniform(keys[0], c_mid, c_in, 1, 1),
        "conv1_b": jnp.zeros((c_mid,), jnp.float32),
        "conv2_w": _xavier_uniform(keys[1], c_mid, c_mid, 3, 3),
        "conv2_b": jnp.zeros((c_mid,), jnp.float32),
        "conv3_w": _xavier_uniform(keys[2], c_out, c_mid, 1, 1),
        "conv3_b": jnp.zeros((c_out,), jnp.float32),
        # BatchNorm affine params (PyTorch default: gamma=1, beta=0)
        "bn1_g": jnp.ones((c_in,), jnp.float32), "bn1_b": jnp.zeros((c_in,), jnp.float32),
        "bn2_g": jnp.ones((c_mid,), jnp.float32), "bn2_b": jnp.zeros((c_mid,), jnp.float32),
        "bn3_g": jnp.ones((c_mid,), jnp.float32), "bn3_b": jnp.zeros((c_mid,), jnp.float32),
    }
    if mode == "UP":
        p["bns_g"] = jnp.ones((c_in,), jnp.float32)
        p["bns_b"] = jnp.zeros((c_in,), jnp.float32)
        p["shortcut_w"] = _xavier_uniform(keys[3], c_out, c_in, 1, 1)  # bias-free
    return p


# ---------------------------------------------------------------------------
# Forward pass
# ---------------------------------------------------------------------------
def bottleneck_forward(params, x_nchw, mode="UP"):
    n, cin, h, w = x_nchw.shape
    hw, m = h * w, n * h * w
    x_nchw = x_nchw.astype(jnp.float32)

    cmid = params["conv1_w"].shape[0]
    cout = params["conv3_w"].shape[0]
    tm = _row_tile(m)

    # bn1 / bns batch statistics straight off the NCHW input (one fused XLA pass)
    mean_x = jnp.mean(x_nchw, axis=(0, 2, 3))
    var_x = jnp.var(x_nchw, axis=(0, 2, 3))
    s1, t1 = _bn_affine(mean_x, var_x, params["bn1_g"], params["bn1_b"])

    # NCHW -> flattened NHWC rows; bf16 in UP mode (x is read by conv1 + shortcut)
    x_dt = jnp.bfloat16 if mode == "UP" else jnp.float32
    x2d = jnp.transpose(x_nchw, (0, 2, 3, 1)).reshape(m, cin).astype(x_dt)

    # ---- conv1(relu(bn1(x)))  (+ fused partial stats for bn2) ----
    w1 = params["conv1_w"][:, :, 0, 0].T.astype(jnp.bfloat16)
    b1 = params["conv1_b"].reshape(1, -1).astype(jnp.float32)
    h1_2d, st1 = conv1x1_bn_relu_stats(x2d, s1, t1, w1, b1, tm)

    mean1, var1 = _finalize_batch_stats(st1, float(m))
    s2, t2 = _bn_affine(mean1, var1, params["bn2_g"], params["bn2_b"])

    # ---- conv2(relu(bn2(h1))): fused 3x3 via 9 shift+mask taps, no im2col ----
    w2 = (params["conv2_w"].transpose(2, 3, 1, 0)
          .reshape(9, cmid, cmid).astype(jnp.bfloat16))
    b2 = params["conv2_b"].reshape(1, -1).astype(jnp.float32)
    taps_mask = _conv2_taps_mask(h, w)
    h2_3d, st2 = conv3x3_bn_relu_stats(h1_2d.reshape(n, hw, cmid),
                                       s2, t2, w2, b2, taps_mask, h, w)

    mean2, var2 = _finalize_batch_stats(st2, float(m))
    s3, t3 = _bn_affine(mean2, var2, params["bn3_g"], params["bn3_b"])

    # ---- conv3(relu(bn3(h2))) + shortcut, one fused kernel ----
    w3 = params["conv3_w"][:, :, 0, 0].T.astype(jnp.bfloat16)
    b3 = params["conv3_b"].reshape(1, -1).astype(jnp.float32)
    h2_2d = h2_3d.reshape(m, cmid)
    if mode == "UP":
        ss, ts = _bn_affine(mean_x, var_x, params["bns_g"], params["bns_b"])
        wsc = params["shortcut_w"][:, :, 0, 0].T.astype(jnp.bfloat16)
        out2d = conv3_plus_shortcut(h2_2d, s3, t3, w3, b3, x2d, ss, ts, wsc, tm)
    else:
        out2d = conv3_plus_identity(h2_2d, s3, t3, w3, b3, x2d, tm)

    return out2d.reshape(n, h, w, cout).transpose(0, 3, 1, 2)  # back to NCHW


# ---------------------------------------------------------------------------
if __name__ == "__main__":
    key = jax.random.PRNGKey(0)
    k_param, k_x = jax.random.split(key)

    in_chans, k_factor, mode = 8, 2, "UP"
    n, h, w = 2, 16, 16
    c_input = in_chans * k_factor if mode == "UP" else in_chans

    params = init_bottleneck_params(k_param, in_chans, k_factor, mode=mode)
    x = jax.random.normal(k_x, (n, c_input, h, w), jnp.float32)  # NCHW like PyTorch

    fwd = jax.jit(functools.partial(bottleneck_forward, mode=mode))
    out = jax.block_until_ready(fwd(params, x))

    assert out.shape == (n, in_chans, h, w), out.shape
    assert bool(jnp.all(jnp.isfinite(out)))
    print("KERNEL_OK")
</pallas_src>

<mosaic_0001>
module attributes {stable_mosaic.version = 11 : i64} {
  func.func @_conv1_kernel(%arg0: i32, %arg1: memref<256x16xbf16, #tpu.memory_space<vmem>>, %arg2: memref<1x16xf32, #tpu.memory_space<vmem>>, %arg3: memref<1x16xf32, #tpu.memory_space<vmem>>, %arg4: memref<16x4xbf16, #tpu.memory_space<vmem>>, %arg5: memref<1x4xf32, #tpu.memory_space<vmem>>, %arg6: memref<256x4xbf16, #tpu.memory_space<vmem>>, %arg7: memref<1x8x4xf32, #tpu.memory_space<vmem>>) attributes {dimension_semantics = [#tpu.dimension_semantics<parallel>], iteration_bounds = array<i64: 2>, scalar_prefetch = 0 : i64, scratch_operands = 0 : i64, tpu.core_type = #tpu.core_type<tc>, window_params = [{transform_indices = @transform_0, window_bounds = array<i64: 256, 16>}, {pipeline_mode = #tpu.pipeline_mode<synchronous>, transform_indices = @transform_1, window_bounds = array<i64: 1, 16>}, {pipeline_mode = #tpu.pipeline_mode<synchronous>, transform_indices = @transform_2, window_bounds = array<i64: 1, 16>}, {pipeline_mode = #tpu.pipeline_mode<synchronous>, transform_indices = @transform_3, window_bounds = array<i64: 16, 4>}, {pipeline_mode = #tpu.pipeline_mode<synchronous>, transform_indices = @transform_4, window_bounds = array<i64: 1, 4>}, {transform_indices = @transform_5, window_bounds = array<i64: 256, 4>}, {transform_indices = @transform_6, window_bounds = array<i64: 1, 8, 4>}]} {
    %c0 = arith.constant 0 : index
    %c0_0 = arith.constant 0 : index
    %0 = vector.load %arg1[%c0, %c0_0] : memref<256x16xbf16, #tpu.memory_space<vmem>>, vector<256x16xbf16>
    %1 = arith.extf %0 : vector<256x16xbf16> to vector<256x16xf32>
    %c0_1 = arith.constant 0 : index
    %c0_2 = arith.constant 0 : index
    %2 = vector.load %arg2[%c0_1, %c0_2] : memref<1x16xf32, #tpu.memory_space<vmem>>, vector<1x16xf32>
    %3 = vector.broadcast %2 : vector<1x16xf32> to vector<256x16xf32>
    %4 = arith.mulf %1, %3 : vector<256x16xf32>
    %c0_3 = arith.constant 0 : index
    %c0_4 = arith.constant 0 : index
    %5 = vector.load %arg3[%c0_3, %c0_4] : memref<1x16xf32, #tpu.memory_space<vmem>>, vector<1x16xf32>
    %6 = vector.broadcast %5 : vector<1x16xf32> to vector<256x16xf32>
    %7 = arith.addf %4, %6 : vector<256x16xf32>
    %cst = arith.constant 0.000000e+00 : f32
    %8 = vector.broadcast %cst : f32 to vector<256x16xf32>
    %9 = arith.maximumf %7, %8 : vector<256x16xf32>
    %10 = arith.truncf %9 : vector<256x16xf32> to vector<256x16xbf16>
    %c0_5 = arith.constant 0 : index
    %c0_6 = arith.constant 0 : index
    %11 = vector.load %arg4[%c0_5, %c0_6] : memref<16x4xbf16, #tpu.memory_space<vmem>>, vector<16x4xbf16>
    %cst_7 = arith.constant dense<0.000000e+00> : vector<256x4xf32>
    %12 = tpu.matmul %10, %11, %cst_7 {dimension_numbers = #tpu.dot_dimension_numbers<[1], [0], [0], [1], [0, 0, 1, 1], [], []>} : vector<256x16xbf16>, vector<16x4xbf16>, vector<256x4xf32> -> vector<256x4xf32>
    %c0_8 = arith.constant 0 : index
    %c0_9 = arith.constant 0 : index
    %13 = vector.load %arg5[%c0_8, %c0_9] : memref<1x4xf32, #tpu.memory_space<vmem>>, vector<1x4xf32>
    %14 = vector.broadcast %13 : vector<1x4xf32> to vector<256x4xf32>
    %15 = arith.addf %12, %14 : vector<256x4xf32>
    %16 = arith.truncf %15 : vector<256x4xf32> to vector<256x4xbf16>
    %c0_10 = arith.constant 0 : index
    %c0_11 = arith.constant 0 : index
    %17 = vector.load %arg6[%c0_10, %c0_11] : memref<256x4xbf16, #tpu.memory_space<vmem>>, vector<256x4xbf16>
    tpu.vector_store %arg6[%c0_10, %c0_11], %16 {strides = array<i32>} : memref<256x4xbf16, #tpu.memory_space<vmem>>, vector<256x4xbf16>,
    %cst_12 = arith.constant dense<0.000000e+00> : vector<4xf32>
    %18 = vector.multi_reduction <add>, %15, %cst_12 [0] : vector<256x4xf32> to vector<4xf32>
    %19 = vector.shape_cast %18 : vector<4xf32> to vector<1x4xf32>
    %20 = arith.mulf %15, %15 : vector<256x4xf32>
    %cst_13 = arith.constant dense<0.000000e+00> : vector<4xf32>
    %21 = vector.multi_reduction <add>, %20, %cst_13 [0] : vector<256x4xf32> to vector<4xf32>
    %22 = vector.shape_cast %21 : vector<4xf32> to vector<1x4xf32>
    %cst_14 = arith.constant 0.000000e+00 : f32
    %23 = vector.broadcast %cst_14 : f32 to vector<6x4xf32>
    %24 = tpu.concatenate %19, %22, %23 in 0 : vector<1x4xf32>, vector<1x4xf32>, vector<6x4xf32> -> vector<8x4xf32>
    %c0_15 = arith.constant 0 : index
    %c0_16 = arith.constant 0 : index
    %c0_17 = arith.constant 0 : index
    %25 = vector.load %arg7[%c0_15, %c0_16, %c0_17] : memref<1x8x4xf32, #tpu.memory_space<vmem>>, vector<1x8x4xf32>
    %26 = vector.shape_cast %25 : vector<1x8x4xf32> to vector<8x4xf32>
    %27 = vector.shape_cast %24 : vector<8x4xf32> to vector<1x8x4xf32>
    tpu.vector_store %arg7[%c0_15, %c0_16, %c0_17], %27 {strides = array<i32>} : memref<1x8x4xf32, #tpu.memory_space<vmem>>, vector<1x8x4xf32>,
    return
  }
  func.func @transform_0(%arg0: i32) -> (i32, i32) {
    %c0_i32 = arith.constant 0 : i32
    %c0_i32_0 = arith.constant 0 : i32
    return %arg0, %c0_i32 : i32, i32
  }
  func.func @transform_1(%arg0: i32) -> (i32, i32) {
    %c0_i32 = arith.constant 0 : i32
    %c0_i32_0 = arith.constant 0 : i32
    %c0_i32_1 = arith.constant 0 : i32
    return %c0_i32, %c0_i32_0 : i32, i32
  }
  func.func @transform_2(%arg0: i32) -> (i32, i32) {
    %c0_i32 = arith.constant 0 : i32
    %c0_i32_0 = arith.constant 0 : i32
    %c0_i32_1 = arith.constant 0 : i32
    return %c0_i32, %c0_i32_0 : i32, i32
  }
  func.func @transform_3(%arg0: i32) -> (i32, i32) {
    %c0_i32 = arith.constant 0 : i32
    %c0_i32_0 = arith.constant 0 : i32
    %c0_i32_1 = arith.constant 0 : i32
    return %c0_i32, %c0_i32_0 : i32, i32
  }
  func.func @transform_4(%arg0: i32) -> (i32, i32) {
    %c0_i32 = arith.constant 0 : i32
    %c0_i32_0 = arith.constant 0 : i32
    %c0_i32_1 = arith.constant 0 : i32
    return %c0_i32, %c0_i32_0 : i32, i32
  }
  func.func @transform_5(%arg0: i32) -> (i32, i32) {
    %c0_i32 = arith.constant 0 : i32
    %c0_i32_0 = arith.constant 0 : i32
    return %arg0, %c0_i32 : i32, i32
  }
  func.func @transform_6(%arg0: i32) -> (i32, i32, i32) {
    %c0_i32 = arith.constant 0 : i32
    %c0_i32_0 = arith.constant 0 : i32
    %c0_i32_1 = arith.constant 0 : i32
    return %arg0, %c0_i32, %c0_i32_0 : i32, i32, i32
  }
}

module attributes {stable_mosaic.version = 11 : i64} {
  func.func @_conv3x3_kernel(%arg0: i32, %arg1: memref<1x256x4xbf16, #tpu.memory_space<vmem>>, %arg2: memref<1x4xf32, #tpu.memory_space<vmem>>, %arg3: memref<1x4xf32, #tpu.memory_space<vmem>>, %arg4: memref<9x4x4xbf16, #tpu.memory_space<vmem>>, %arg5: memref<1x4xf32, #tpu.memory_space<vmem>>, %arg6: memref<9x256x1xf32, #tpu.memory_space<vmem>>, %arg7: memref<1x256x4xbf16, #tpu.memory_space<vmem>>, %arg8: memref<1x8x4xf32, #tpu.memory_space<vmem>>) attributes {dimension_semantics = [#tpu.dimension_semantics<parallel>], iteration_bounds = array<i64: 2>, scalar_prefetch = 0 : i64, scratch_operands = 0 : i64, tpu.core_type = #tpu.core_type<tc>, window_params = [{transform_indices = @transform_0, window_bounds = array<i64: 1, 256, 4>}, {pipeline_mode = #tpu.pipeline_mode<synchronous>, transform_indices = @transform_1, window_bounds = array<i64: 1, 4>}, {pipeline_mode = #tpu.pipeline_mode<synchronous>, transform_indices = @transform_2, window_bounds = array<i64: 1, 4>}, {pipeline_mode = #tpu.pipeline_mode<synchronous>, transform_indices = @transform_3, window_bounds = array<i64: 9, 4, 4>}, {pipeline_mode = #tpu.pipeline_mode<synchronous>, transform_indices = @transform_4, window_bounds = array<i64: 1, 4>}, {pipeline_mode = #tpu.pipeline_mode<synchronous>, transform_indices = @transform_5, window_bounds = array<i64: 9, 256, 1>}, {transform_indices = @transform_6, window_bounds = array<i64: 1, 256, 4>}, {transform_indices = @transform_7, window_bounds = array<i64: 1, 8, 4>}]} {
    %c0 = arith.constant 0 : index
    %c0_0 = arith.constant 0 : index
    %c0_1 = arith.constant 0 : index
    %0 = vector.load %arg1[%c0, %c0_0, %c0_1] : memref<1x256x4xbf16, #tpu.memory_space<vmem>>, vector<1x256x4xbf16>
    %1 = vector.shape_cast %0 : vector<1x256x4xbf16> to vector<256x4xbf16>
    %2 = arith.extf %1 : vector<256x4xbf16> to vector<256x4xf32>
    %c0_2 = arith.constant 0 : index
    %c0_3 = arith.constant 0 : index
    %3 = vector.load %arg2[%c0_2, %c0_3] : memref<1x4xf32, #tpu.memory_space<vmem>>, vector<1x4xf32>
    %4 = vector.broadcast %3 : vector<1x4xf32> to vector<256x4xf32>
    %5 = arith.mulf %2, %4 : vector<256x4xf32>
    %c0_4 = arith.constant 0 : index
    %c0_5 = arith.constant 0 : index
    %6 = vector.load %arg3[%c0_4, %c0_5] : memref<1x4xf32, #tpu.memory_space<vmem>>, vector<1x4xf32>
    %7 = vector.broadcast %6 : vector<1x4xf32> to vector<256x4xf32>
    %8 = arith.addf %5, %7 : vector<256x4xf32>
    %cst = arith.constant 0.000000e+00 : f32
    %9 = vector.broadcast %cst : f32 to vector<256x4xf32>
    %10 = arith.maximumf %8, %9 : vector<256x4xf32>
    %cst_6 = arith.constant 0.000000e+00 : f32
    %11 = vector.broadcast %cst_6 : f32 to vector<256x4xf32>
    %12 = vector.extract_strided_slice %10 {offsets = [239, 0], sizes = [17, 4], strides = [1, 1]} : vector<256x4xf32> to vector<17x4xf32>
    %13 = vector.extract_strided_slice %10 {offsets = [0, 0], sizes = [239, 4], strides = [1, 1]} : vector<256x4xf32> to vector<239x4xf32>
    %14 = tpu.concatenate %12, %13 in 0 : vector<17x4xf32>, vector<239x4xf32> -> vector<256x4xf32>
    %c0_7 = arith.constant 0 : index
    %c0_8 = arith.constant 0 : index
    %c0_9 = arith.constant 0 : index
    %15 = vector.load %arg6[%c0_7, %c0_8, %c0_9] : memref<9x256x1xf32, #tpu.memory_space<vmem>>, vector<1x256x1xf32>
    %16 = vector.shape_cast %15 : vector<1x256x1xf32> to vector<256x1xf32>
    %17 = vector.broadcast %16 : vector<256x1xf32> to vector<256x4xf32>
    %18 = arith.mulf %14, %17 : vector<256x4xf32>
    %19 = arith.truncf %18 : vector<256x4xf32> to vector<256x4xbf16>
    %c0_10 = arith.constant 0 : index
    %c0_11 = arith.constant 0 : index
    %c0_12 = arith.constant 0 : index
    %20 = vector.load %arg4[%c0_10, %c0_11, %c0_12] : memref<9x4x4xbf16, #tpu.memory_space<vmem>>, vector<1x4x4xbf16>
    %21 = vector.shape_cast %20 : vector<1x4x4xbf16> to vector<4x4xbf16>
    %cst_13 = arith.constant dense<0.000000e+00> : vector<256x4xf32>
    %22 = tpu.matmul %19, %21, %cst_13 {dimension_numbers = #tpu.dot_dimension_numbers<[1], [0], [0], [1], [0, 0, 1, 1], [], []>} : vector<256x4xbf16>, vector<4x4xbf16>, vector<256x4xf32> -> vector<256x4xf32>
    %23 = arith.addf %11, %22 : vector<256x4xf32>
    %24 = vector.extract_strided_slice %10 {offsets = [240, 0], sizes = [16, 4], strides = [1, 1]} : vector<256x4xf32> to vector<16x4xf32>
    %25 = vector.extract_strided_slice %10 {offsets = [0, 0], sizes = [240, 4], strides = [1, 1]} : vector<256x4xf32> to vector<240x4xf32>
    %26 = tpu.concatenate %24, %25 in 0 : vector<16x4xf32>, vector<240x4xf32> -> vector<256x4xf32>
    %c1 = arith.constant 1 : index
    %c0_14 = arith.constant 0 : index
    %c0_15 = arith.constant 0 : index
    %27 = vector.load %arg6[%c1, %c0_14, %c0_15] : memref<9x256x1xf32, #tpu.memory_space<vmem>>, vector<1x256x1xf32>
    %28 = vector.shape_cast %27 : vector<1x256x1xf32> to vector<256x1xf32>
    %29 = vector.broadcast %28 : vector<256x1xf32> to vector<256x4xf32>
    %30 = arith.mulf %26, %29 : vector<256x4xf32>
    %31 = arith.truncf %30 : vector<256x4xf32> to vector<256x4xbf16>
    %c1_16 = arith.constant 1 : index
    %c0_17 = arith.constant 0 : index
    %c0_18 = arith.constant 0 : index
    %32 = vector.load %arg4[%c1_16, %c0_17, %c0_18] : memref<9x4x4xbf16, #tpu.memory_space<vmem>>, vector<1x4x4xbf16>
    %33 = vector.shape_cast %32 : vector<1x4x4xbf16> to vector<4x4xbf16>
    %cst_19 = arith.constant dense<0.000000e+00> : vector<256x4xf32>
    %34 = tpu.matmul %31, %33, %cst_19 {dimension_numbers = #tpu.dot_dimension_numbers<[1], [0], [0], [1], [0, 0, 1, 1], [], []>} : vector<256x4xbf16>, vector<4x4xbf16>, vector<256x4xf32> -> vector<256x4xf32>
    %35 = arith.addf %23, %34 : vector<256x4xf32>
    %36 = vector.extract_strided_slice %10 {offsets = [241, 0], sizes = [15, 4], strides = [1, 1]} : vector<256x4xf32> to vector<15x4xf32>
    %37 = vector.extract_strided_slice %10 {offsets = [0, 0], sizes = [241, 4], strides = [1, 1]} : vector<256x4xf32> to vector<241x4xf32>
    %38 = tpu.concatenate %36, %37 in 0 : vector<15x4xf32>, vector<241x4xf32> -> vector<256x4xf32>
    %c2 = arith.constant 2 : index
    %c0_20 = arith.constant 0 : index
    %c0_21 = arith.constant 0 : index
    %39 = vector.load %arg6[%c2, %c0_20, %c0_21] : memref<9x256x1xf32, #tpu.memory_space<vmem>>, vector<1x256x1xf32>
    %40 = vector.shape_cast %39 : vector<1x256x1xf32> to vector<256x1xf32>
    %41 = vector.broadcast %40 : vector<256x1xf32> to vector<256x4xf32>
    %42 = arith.mulf %38, %41 : vector<256x4xf32>
    %43 = arith.truncf %42 : vector<256x4xf32> to vector<256x4xbf16>
    %c2_22 = arith.constant 2 : index
    %c0_23 = arith.constant 0 : index
    %c0_24 = arith.constant 0 : index
    %44 = vector.load %arg4[%c2_22, %c0_23, %c0_24] : memref<9x4x4xbf16, #tpu.memory_space<vmem>>, vector<1x4x4xbf16>
    %45 = vector.shape_cast %44 : vector<1x4x4xbf16> to vector<4x4xbf16>
    %cst_25 = arith.constant dense<0.000000e+00> : vector<256x4xf32>
    %46 = tpu.matmul %43, %45, %cst_25 {dimension_numbers = #tpu.dot_dimension_numbers<[1], [0], [0], [1], [0, 0, 1, 1], [], []>} : vector<256x4xbf16>, vector<4x4xbf16>, vector<256x4xf32> -> vector<256x4xf32>
    %47 = arith.addf %35, %46 : vector<256x4xf32>
    %48 = vector.extract_strided_slice %10 {offsets = [255, 0], sizes = [1, 4], strides = [1, 1]} : vector<256x4xf32> to vector<1x4xf32>
    %49 = vector.extract_strided_slice %10 {offsets = [0, 0], sizes = [255, 4], strides = [1, 1]} : vector<256x4xf32> to vector<255x4xf32>
    %50 = tpu.concatenate %48, %49 in 0 : vector<1x4xf32>, vector<255x4xf32> -> vector<256x4xf32>
    %c3 = arith.constant 3 : index
    %c0_26 = arith.constant 0 : index
    %c0_27 = arith.constant 0 : index
    %51 = vector.load %arg6[%c3, %c0_26, %c0_27] : memref<9x256x1xf32, #tpu.memory_space<vmem>>, vector<1x256x1xf32>
    %52 = vector.shape_cast %51 : vector<1x256x1xf32> to vector<256x1xf32>
    %53 = vector.broadcast %52 : vector<256x1xf32> to vector<256x4xf32>
    %54 = arith.mulf %50, %53 : vector<256x4xf32>
    %55 = arith.truncf %54 : vector<256x4xf32> to vector<256x4xbf16>
    %c3_28 = arith.constant 3 : index
    %c0_29 = arith.constant 0 : index
    %c0_30 = arith.constant 0 : index
    %56 = vector.load %arg4[%c3_28, %c0_29, %c0_30] : memref<9x4x4xbf16, #tpu.memory_space<vmem>>, vector<1x4x4xbf16>
    %57 = vector.shape_cast %56 : vector<1x4x4xbf16> to vector<4x4xbf16>
    %cst_31 = arith.constant dense<0.000000e+00> : vector<256x4xf32>
    %58 = tpu.matmul %55, %57, %cst_31 {dimension_numbers = #tpu.dot_dimension_numbers<[1], [0], [0], [1], [0, 0, 1, 1], [], []>} : vector<256x4xbf16>, vector<4x4xbf16>, vector<256x4xf32> -> vector<256x4xf32>
    %59 = arith.addf %47, %58 : vector<256x4xf32>
    %c4 = arith.constant 4 : index
    %c0_32 = arith.constant 0 : index
    %c0_33 = arith.constant 0 : index
    %60 = vector.load %arg6[%c4, %c0_32, %c0_33] : memref<9x256x1xf32, #tpu.memory_space<vmem>>, vector<1x256x1xf32>
    %61 = vector.shape_cast %60 : vector<1x256x1xf32> to vector<256x1xf32>
    %62 = vector.broadcast %61 : vector<256x1xf32> to vector<256x4xf32>
    %63 = arith.mulf %10, %62 : vector<256x4xf32>
    %64 = arith.truncf %63 : vector<256x4xf32> to vector<256x4xbf16>
    %c4_34 = arith.constant 4 : index
    %c0_35 = arith.constant 0 : index
    %c0_36 = arith.constant 0 : index
    %65 = vector.load %arg4[%c4_34, %c0_35, %c0_36] : memref<9x4x4xbf16, #tpu.memory_space<vmem>>, vector<1x4x4xbf16>
    %66 = vector.shape_cast %65 : vector<1x4x4xbf16> to vector<4x4xbf16>
    %cst_37 = arith.constant dense<0.000000e+00> : vector<256x4xf32>
    %67 = tpu.matmul %64, %66, %cst_37 {dimension_numbers = #tpu.dot_dimension_numbers<[1], [0], [0], [1], [0, 0, 1, 1], [], []>} : vector<256x4xbf16>, vector<4x4xbf16>, vector<256x4xf32> -> vector<256x4xf32>
    %68 = arith.addf %59, %67 : vector<256x4xf32>
    %69 = vector.extract_strided_slice %10 {offsets = [1, 0], sizes = [255, 4], strides = [1, 1]} : vector<256x4xf32> to vector<255x4xf32>
    %70 = vector.extract_strided_slice %10 {offsets = [0, 0], sizes = [1, 4], strides = [1, 1]} : vector<256x4xf32> to vector<1x4xf32>
    %71 = tpu.concatenate %69, %70 in 0 : vector<255x4xf32>, vector<1x4xf32> -> vector<256x4xf32>
    %c5 = arith.constant 5 : index
    %c0_38 = arith.constant 0 : index
    %c0_39 = arith.constant 0 : index
    %72 = vector.load %arg6[%c5, %c0_38, %c0_39] : memref<9x256x1xf32, #tpu.memory_space<vmem>>, vector<1x256x1xf32>
    %73 = vector.shape_cast %72 : vector<1x256x1xf32> to vector<256x1xf32>
    %74 = vector.broadcast %73 : vector<256x1xf32> to vector<256x4xf32>
    %75 = arith.mulf %71, %74 : vector<256x4xf32>
    %76 = arith.truncf %75 : vector<256x4xf32> to vector<256x4xbf16>
    %c5_40 = arith.constant 5 : index
    %c0_41 = arith.constant 0 : index
    %c0_42 = arith.constant 0 : index
    %77 = vector.load %arg4[%c5_40, %c0_41, %c0_42] : memref<9x4x4xbf16, #tpu.memory_space<vmem>>, vector<1x4x4xbf16>
    %78 = vector.shape_cast %77 : vector<1x4x4xbf16> to vector<4x4xbf16>
    %cst_43 = arith.constant dense<0.000000e+00> : vector<256x4xf32>
    %79 = tpu.matmul %76, %78, %cst_43 {dimension_numbers = #tpu.dot_dimension_numbers<[1], [0], [0], [1], [0, 0, 1, 1], [], []>} : vector<256x4xbf16>, vector<4x4xbf16>, vector<256x4xf32> -> vector<256x4xf32>
    %80 = arith.addf %68, %79 : vector<256x4xf32>
    %81 = vector.extract_strided_slice %10 {offsets = [15, 0], sizes = [241, 4], strides = [1, 1]} : vector<256x4xf32> to vector<241x4xf32>
    %82 = vector.extract_strided_slice %10 {offsets = [0, 0], sizes = [15, 4], strides = [1, 1]} : vector<256x4xf32> to vector<15x4xf32>
    %83 = tpu.concatenate %81, %82 in 0 : vector<241x4xf32>, vector<15x4xf32> -> vector<256x4xf32>
    %c6 = arith.constant 6 : index
    %c0_44 = arith.constant 0 : index
    %c0_45 = arith.constant 0 : index
    %84 = vector.load %arg6[%c6, %c0_44, %c0_45] : memref<9x256x1xf32, #tpu.memory_space<vmem>>, vector<1x256x1xf32>
    %85 = vector.shape_cast %84 : vector<1x256x1xf32> to vector<256x1xf32>
    %86 = vector.broadcast %85 : vector<256x1xf32> to vector<256x4xf32>
    %87 = arith.mulf %83, %86 : vector<256x4xf32>
    %88 = arith.truncf %87 : vector<256x4xf32> to vector<256x4xbf16>
    %c6_46 = arith.constant 6 : index
    %c0_47 = arith.constant 0 : index
    %c0_48 = arith.constant 0 : index
    %89 = vector.load %arg4[%c6_46, %c0_47, %c0_48] : memref<9x4x4xbf16, #tpu.memory_space<vmem>>, vector<1x4x4xbf16>
    %90 = vector.shape_cast %89 : vector<1x4x4xbf16> to vector<4x4xbf16>
    %cst_49 = arith.constant dense<0.000000e+00> : vector<256x4xf32>
    %91 = tpu.matmul %88, %90, %cst_49 {dimension_numbers = #tpu.dot_dimension_numbers<[1], [0], [0], [1], [0, 0, 1, 1], [], []>} : vector<256x4xbf16>, vector<4x4xbf16>, vector<256x4xf32> -> vector<256x4xf32>
    %92 = arith.addf %80, %91 : vector<256x4xf32>
    %93 = vector.extract_strided_slice %10 {offsets = [16, 0], sizes = [240, 4], strides = [1, 1]} : vector<256x4xf32> to vector<240x4xf32>
    %94 = vector.extract_strided_slice %10 {offsets = [0, 0], sizes = [16, 4], strides = [1, 1]} : vector<256x4xf32> to vector<16x4xf32>
    %95 = tpu.concatenate %93, %94 in 0 : vector<240x4xf32>, vector<16x4xf32> -> vector<256x4xf32>
    %c7 = arith.constant 7 : index
    %c0_50 = arith.constant 0 : index
    %c0_51 = arith.constant 0 : index
    %96 = vector.load %arg6[%c7, %c0_50, %c0_51] : memref<9x256x1xf32, #tpu.memory_space<vmem>>, vector<1x256x1xf32>
    %97 = vector.shape_cast %96 : vector<1x256x1xf32> to vector<256x1xf32>
    %98 = vector.broadcast %97 : vector<256x1xf32> to vector<256x4xf32>
    %99 = arith.mulf %95, %98 : vector<256x4xf32>
    %100 = arith.truncf %99 : vector<256x4xf32> to vector<256x4xbf16>
    %c7_52 = arith.constant 7 : index
    %c0_53 = arith.constant 0 : index
    %c0_54 = arith.constant 0 : index
    %101 = vector.load %arg4[%c7_52, %c0_53, %c0_54] : memref<9x4x4xbf16, #tpu.memory_space<vmem>>, vector<1x4x4xbf16>
    %102 = vector.shape_cast %101 : vector<1x4x4xbf16> to vector<4x4xbf16>
    %cst_55 = arith.constant dense<0.000000e+00> : vector<256x4xf32>
    %103 = tpu.matmul %100, %102, %cst_55 {dimension_numbers = #tpu.dot_dimension_numbers<[1], [0], [0], [1], [0, 0, 1, 1], [], []>} : vector<256x4xbf16>, vector<4x4xbf16>, vector<256x4xf32> -> vector<256x4xf32>
    %104 = arith.addf %92, %103 : vector<256x4xf32>
    %105 = vector.extract_strided_slice %10 {offsets = [17, 0], sizes = [239, 4], strides = [1, 1]} : vector<256x4xf32> to vector<239x4xf32>
    %106 = vector.extract_strided_slice %10 {offsets = [0, 0], sizes = [17, 4], strides = [1, 1]} : vector<256x4xf32> to vector<17x4xf32>
    %107 = tpu.concatenate %105, %106 in 0 : vector<239x4xf32>, vector<17x4xf32> -> vector<256x4xf32>
    %c8 = arith.constant 8 : index
    %c0_56 = arith.constant 0 : index
    %c0_57 = arith.constant 0 : index
    %108 = vector.load %arg6[%c8, %c0_56, %c0_57] : memref<9x256x1xf32, #tpu.memory_space<vmem>>, vector<1x256x1xf32>
    %109 = vector.shape_cast %108 : vector<1x256x1xf32> to vector<256x1xf32>
    %110 = vector.broadcast %109 : vector<256x1xf32> to vector<256x4xf32>
    %111 = arith.mulf %107, %110 : vector<256x4xf32>
    %112 = arith.truncf %111 : vector<256x4xf32> to vector<256x4xbf16>
    %c8_58 = arith.constant 8 : index
    %c0_59 = arith.constant 0 : index
    %c0_60 = arith.constant 0 : index
    %113 = vector.load %arg4[%c8_58, %c0_59, %c0_60] : memref<9x4x4xbf16, #tpu.memory_space<vmem>>, vector<1x4x4xbf16>
    %114 = vector.shape_cast %113 : vector<1x4x4xbf16> to vector<4x4xbf16>
    %cst_61 = arith.constant dense<0.000000e+00> : vector<256x4xf32>
    %115 = tpu.matmul %112, %114, %cst_61 {dimension_numbers = #tpu.dot_dimension_numbers<[1], [0], [0], [1], [0, 0, 1, 1], [], []>} : vector<256x4xbf16>, vector<4x4xbf16>, vector<256x4xf32> -> vector<256x4xf32>
    %116 = arith.addf %104, %115 : vector<256x4xf32>
    %c0_62 = arith.constant 0 : index
    %c0_63 = arith.constant 0 : index
    %117 = vector.load %arg5[%c0_62, %c0_63] : memref<1x4xf32, #tpu.memory_space<vmem>>, vector<1x4xf32>
    %118 = vector.broadcast %117 : vector<1x4xf32> to vector<256x4xf32>
    %119 = arith.addf %116, %118 : vector<256x4xf32>
    %120 = arith.truncf %119 : vector<256x4xf32> to vector<256x4xbf16>
    %c0_64 = arith.constant 0 : index
    %c0_65 = arith.constant 0 : index
    %c0_66 = arith.constant 0 : index
    %121 = vector.load %arg7[%c0_64, %c0_65, %c0_66] : memref<1x256x4xbf16, #tpu.memory_space<vmem>>, vector<1x256x4xbf16>
    %122 = vector.shape_cast %121 : vector<1x256x4xbf16> to vector<256x4xbf16>
    %123 = vector.shape_cast %120 : vector<256x4xbf16> to vector<1x256x4xbf16>
    tpu.vector_store %arg7[%c0_64, %c0_65, %c0_66], %123 {strides = array<i32>} : memref<1x256x4xbf16, #tpu.memory_space<vmem>>, vector<1x256x4xbf16>,
    %cst_67 = arith.constant dense<0.000000e+00> : vector<4xf32>
    %124 = vector.multi_reduction <add>, %119, %cst_67 [0] : vector<256x4xf32> to vector<4xf32>
    %125 = vector.shape_cast %124 : vector<4xf32> to vector<1x4xf32>
    %126 = arith.mulf %119, %119 : vector<256x4xf32>
    %cst_68 = arith.constant dense<0.000000e+00> : vector<4xf32>
    %127 = vector.multi_reduction <add>, %126, %cst_68 [0] : vector<256x4xf32> to vector<4xf32>
    %128 = vector.shape_cast %127 : vector<4xf32> to vector<1x4xf32>
    %cst_69 = arith.constant 0.000000e+00 : f32
    %129 = vector.broadcast %cst_69 : f32 to vector<6x4xf32>
    %130 = tpu.concatenate %125, %128, %129 in 0 : vector<1x4xf32>, vector<1x4xf32>, vector<6x4xf32> -> vector<8x4xf32>
    %c0_70 = arith.constant 0 : index
    %c0_71 = arith.constant 0 : index
    %c0_72 = arith.constant 0 : index
    %131 = vector.load %arg8[%c0_70, %c0_71, %c0_72] : memref<1x8x4xf32, #tpu.memory_space<vmem>>, vector<1x8x4xf32>
    %132 = vector.shape_cast %131 : vector<1x8x4xf32> to vector<8x4xf32>
    %133 = vector.shape_cast %130 : vector<8x4xf32> to vector<1x8x4xf32>
    tpu.vector_store %arg8[%c0_70, %c0_71, %c0_72], %133 {strides = array<i32>} : memref<1x8x4xf32, #tpu.memory_space<vmem>>, vector<1x8x4xf32>,
    return
  }
  func.func @transform_0(%arg0: i32) -> (i32, i32, i32) {
    %c0_i32 = arith.constant 0 : i32
    %c0_i32_0 = arith.constant 0 : i32
    %c0_i32_1 = arith.constant 0 : i32
    return %arg0, %c0_i32, %c0_i32_0 : i32, i32, i32
  }
  func.func @transform_1(%arg0: i32) -> (i32, i32) {
    %c0_i32 = arith.constant 0 : i32
    %c0_i32_0 = arith.constant 0 : i32
    %c0_i32_1 = arith.constant 0 : i32
    return %c0_i32, %c0_i32_0 : i32, i32
  }
  func.func @transform_2(%arg0: i32) -> (i32, i32) {
    %c0_i32 = arith.constant 0 : i32
    %c0_i32_0 = arith.constant 0 : i32
    %c0_i32_1 = arith.constant 0 : i32
    return %c0_i32, %c0_i32_0 : i32, i32
  }
  func.func @transform_3(%arg0: i32) -> (i32, i32, i32) {
    %c0_i32 = arith.constant 0 : i32
    %c0_i32_0 = arith.constant 0 : i32
    %c0_i32_1 = arith.constant 0 : i32
    %c0_i32_2 = arith.constant 0 : i32
    return %c0_i32, %c0_i32_0, %c0_i32_1 : i32, i32, i32
  }
  func.func @transform_4(%arg0: i32) -> (i32, i32) {
    %c0_i32 = arith.constant 0 : i32
    %c0_i32_0 = arith.constant 0 : i32
    %c0_i32_1 = arith.constant 0 : i32
    return %c0_i32, %c0_i32_0 : i32, i32
  }
  func.func @transform_5(%arg0: i32) -> (i32, i32, i32) {
    %c0_i32 = arith.constant 0 : i32
    %c0_i32_0 = arith.constant 0 : i32
    %c0_i32_1 = arith.constant 0 : i32
    %c0_i32_2 = arith.constant 0 : i32
    return %c0_i32, %c0_i32_0, %c0_i32_1 : i32, i32, i32
  }
  func.func @transform_6(%arg0: i32) -> (i32, i32, i32) {
    %c0_i32 = arith.constant 0 : i32
    %c0_i32_0 = arith.constant 0 : i32
    %c0_i32_1 = arith.constant 0 : i32
    return %arg0, %c0_i32, %c0_i32_0 : i32, i32, i32
  }
  func.func @transform_7(%arg0: i32) -> (i32, i32, i32) {
    %c0_i32 = arith.constant 0 : i32
    %c0_i32_0 = arith.constant 0 : i32
    %c0_i32_1 = arith.constant 0 : i32
    return %arg0, %c0_i32, %c0_i32_0 : i32, i32, i32
  }
}

module attributes {stable_mosaic.version = 11 : i64} {
  func.func @_conv3_shortcut_kernel(%arg0: i32, %arg1: memref<256x4xbf16, #tpu.memory_space<vmem>>, %arg2: memref<1x4xf32, #tpu.memory_space<vmem>>, %arg3: memref<1x4xf32, #tpu.memory_space<vmem>>, %arg4: memref<4x8xbf16, #tpu.memory_space<vmem>>, %arg5: memref<1x8xf32, #tpu.memory_space<vmem>>, %arg6: memref<256x16xbf16, #tpu.memory_space<vmem>>, %arg7: memref<1x16xf32, #tpu.memory_space<vmem>>, %arg8: memref<1x16xf32, #tpu.memory_space<vmem>>, %arg9: memref<16x8xbf16, #tpu.memory_space<vmem>>, %arg10: memref<256x8xf32, #tpu.memory_space<vmem>>) attributes {dimension_semantics = [#tpu.dimension_semantics<parallel>], iteration_bounds = array<i64: 2>, scalar_prefetch = 0 : i64, scratch_operands = 0 : i64, tpu.core_type = #tpu.core_type<tc>, window_params = [{transform_indices = @transform_0, window_bounds = array<i64: 256, 4>}, {pipeline_mode = #tpu.pipeline_mode<synchronous>, transform_indices = @transform_1, window_bounds = array<i64: 1, 4>}, {pipeline_mode = #tpu.pipeline_mode<synchronous>, transform_indices = @transform_2, window_bounds = array<i64: 1, 4>}, {pipeline_mode = #tpu.pipeline_mode<synchronous>, transform_indices = @transform_3, window_bounds = array<i64: 4, 8>}, {pipeline_mode = #tpu.pipeline_mode<synchronous>, transform_indices = @transform_4, window_bounds = array<i64: 1, 8>}, {transform_indices = @transform_5, window_bounds = array<i64: 256, 16>}, {pipeline_mode = #tpu.pipeline_mode<synchronous>, transform_indices = @transform_6, window_bounds = array<i64: 1, 16>}, {pipeline_mode = #tpu.pipeline_mode<synchronous>, transform_indices = @transform_7, window_bounds = array<i64: 1, 16>}, {pipeline_mode = #tpu.pipeline_mode<synchronous>, transform_indices = @transform_8, window_bounds = array<i64: 16, 8>}, {transform_indices = @transform_9, window_bounds = array<i64: 256, 8>}]} {
    %c0 = arith.constant 0 : index
    %c0_0 = arith.constant 0 : index
    %0 = vector.load %arg1[%c0, %c0_0] : memref<256x4xbf16, #tpu.memory_space<vmem>>, vector<256x4xbf16>
    %1 = arith.extf %0 : vector<256x4xbf16> to vector<256x4xf32>
    %c0_1 = arith.constant 0 : index
    %c0_2 = arith.constant 0 : index
    %2 = vector.load %arg2[%c0_1, %c0_2] : memref<1x4xf32, #tpu.memory_space<vmem>>, vector<1x4xf32>
    %3 = vector.broadcast %2 : vector<1x4xf32> to vector<256x4xf32>
    %4 = arith.mulf %1, %3 : vector<256x4xf32>
    %c0_3 = arith.constant 0 : index
    %c0_4 = arith.constant 0 : index
    %5 = vector.load %arg3[%c0_3, %c0_4] : memref<1x4xf32, #tpu.memory_space<vmem>>, vector<1x4xf32>
    %6 = vector.broadcast %5 : vector<1x4xf32> to vector<256x4xf32>
    %7 = arith.addf %4, %6 : vector<256x4xf32>
    %cst = arith.constant 0.000000e+00 : f32
    %8 = vector.broadcast %cst : f32 to vector<256x4xf32>
    %9 = arith.maximumf %7, %8 : vector<256x4xf32>
    %10 = arith.truncf %9 : vector<256x4xf32> to vector<256x4xbf16>
    %c0_5 = arith.constant 0 : index
    %c0_6 = arith.constant 0 : index
    %11 = vector.load %arg4[%c0_5, %c0_6] : memref<4x8xbf16, #tpu.memory_space<vmem>>, vector<4x8xbf16>
    %cst_7 = arith.constant dense<0.000000e+00> : vector<256x8xf32>
    %12 = tpu.matmul %10, %11, %cst_7 {dimension_numbers = #tpu.dot_dimension_numbers<[1], [0], [0], [1], [0, 0, 1, 1], [], []>} : vector<256x4xbf16>, vector<4x8xbf16>, vector<256x8xf32> -> vector<256x8xf32>
    %c0_8 = arith.constant 0 : index
    %c0_9 = arith.constant 0 : index
    %13 = vector.load %arg5[%c0_8, %c0_9] : memref<1x8xf32, #tpu.memory_space<vmem>>, vector<1x8xf32>
    %14 = vector.broadcast %13 : vector<1x8xf32> to vector<256x8xf32>
    %15 = arith.addf %12, %14 : vector<256x8xf32>
    %c0_10 = arith.constant 0 : index
    %c0_11 = arith.constant 0 : index
    %16 = vector.load %arg6[%c0_10, %c0_11] : memref<256x16xbf16, #tpu.memory_space<vmem>>, vector<256x16xbf16>
    %17 = arith.extf %16 : vector<256x16xbf16> to vector<256x16xf32>
    %c0_12 = arith.constant 0 : index
    %c0_13 = arith.constant 0 : index
    %18 = vector.load %arg7[%c0_12, %c0_13] : memref<1x16xf32, #tpu.memory_space<vmem>>, vector<1x16xf32>
    %19 = vector.broadcast %18 : vector<1x16xf32> to vector<256x16xf32>
    %20 = arith.mulf %17, %19 : vector<256x16xf32>
    %c0_14 = arith.constant 0 : index
    %c0_15 = arith.constant 0 : index
    %21 = vector.load %arg8[%c0_14, %c0_15] : memref<1x16xf32, #tpu.memory_space<vmem>>, vector<1x16xf32>
    %22 = vector.broadcast %21 : vector<1x16xf32> to vector<256x16xf32>
    %23 = arith.addf %20, %22 : vector<256x16xf32>
    %cst_16 = arith.constant 0.000000e+00 : f32
    %24 = vector.broadcast %cst_16 : f32 to vector<256x16xf32>
    %25 = arith.maximumf %23, %24 : vector<256x16xf32>
    %26 = arith.truncf %25 : vector<256x16xf32> to vector<256x16xbf16>
    %c0_17 = arith.constant 0 : index
    %c0_18 = arith.constant 0 : index
    %27 = vector.load %arg9[%c0_17, %c0_18] : memref<16x8xbf16, #tpu.memory_space<vmem>>, vector<16x8xbf16>
    %cst_19 = arith.constant dense<0.000000e+00> : vector<256x8xf32>
    %28 = tpu.matmul %26, %27, %cst_19 {dimension_numbers = #tpu.dot_dimension_numbers<[1], [0], [0], [1], [0, 0, 1, 1], [], []>} : vector<256x16xbf16>, vector<16x8xbf16>, vector<256x8xf32> -> vector<256x8xf32>
    %29 = arith.addf %15, %28 : vector<256x8xf32>
    %c0_20 = arith.constant 0 : index
    %c0_21 = arith.constant 0 : index
    %30 = vector.load %arg10[%c0_20, %c0_21] : memref<256x8xf32, #tpu.memory_space<vmem>>, vector<256x8xf32>
    tpu.vector_store %arg10[%c0_20, %c0_21], %29 {strides = array<i32>} : memref<256x8xf32, #tpu.memory_space<vmem>>, vector<256x8xf32>,
    return
  }
  func.func @transform_0(%arg0: i32) -> (i32, i32) {
    %c0_i32 = arith.constant 0 : i32
    %c0_i32_0 = arith.constant 0 : i32
    return %arg0, %c0_i32 : i32, i32
  }
  func.func @transform_1(%arg0: i32) -> (i32, i32) {
    %c0_i32 = arith.constant 0 : i32
    %c0_i32_0 = arith.constant 0 : i32
    %c0_i32_1 = arith.constant 0 : i32
    return %c0_i32, %c0_i32_0 : i32, i32
  }
  func.func @transform_2(%arg0: i32) -> (i32, i32) {
    %c0_i32 = arith.constant 0 : i32
    %c0_i32_0 = arith.constant 0 : i32
    %c0_i32_1 = arith.constant 0 : i32
    return %c0_i32, %c0_i32_0 : i32, i32
  }
  func.func @transform_3(%arg0: i32) -> (i32, i32) {
    %c0_i32 = arith.constant 0 : i32
    %c0_i32_0 = arith.constant 0 : i32
    %c0_i32_1 = arith.constant 0 : i32
    return %c0_i32, %c0_i32_0 : i32, i32
  }
  func.func @transform_4(%arg0: i32) -> (i32, i32) {
    %c0_i32 = arith.constant 0 : i32
    %c0_i32_0 = arith.constant 0 : i32
    %c0_i32_1 = arith.constant 0 : i32
    return %c0_i32, %c0_i32_0 : i32, i32
  }
  func.func @transform_5(%arg0: i32) -> (i32, i32) {
    %c0_i32 = arith.constant 0 : i32
    %c0_i32_0 = arith.constant 0 : i32
    return %arg0, %c0_i32 : i32, i32
  }
  func.func @transform_6(%arg0: i32) -> (i32, i32) {
    %c0_i32 = arith.constant 0 : i32
    %c0_i32_0 = arith.constant 0 : i32
    %c0_i32_1 = arith.constant 0 : i32
    return %c0_i32, %c0_i32_0 : i32, i32
  }
  func.func @transform_7(%arg0: i32) -> (i32, i32) {
    %c0_i32 = arith.constant 0 : i32
    %c0_i32_0 = arith.constant 0 : i32
    %c0_i32_1 = arith.constant 0 : i32
    return %c0_i32, %c0_i32_0 : i32, i32
  }
  func.func @transform_8(%arg0: i32) -> (i32, i32) {
    %c0_i32 = arith.constant 0 : i32
    %c0_i32_0 = arith.constant 0 : i32
    %c0_i32_1 = arith.constant 0 : i32
    return %c0_i32, %c0_i32_0 : i32, i32
  }
  func.func @transform_9(%arg0: i32) -> (i32, i32) {
    %c0_i32 = arith.constant 0 : i32
    %c0_i32_0 = arith.constant 0 : i32
    return %arg0, %c0_i32 : i32, i32
  }
}

</mosaic_0001>

<bundles_post_ra>
// kernel: bottleneck_forward.3
= control target key start
LH: loop header
LB: loop body
LE: loop exit
PB: predicated region body
PF: predicated region fallthrough
CT: control target
= control target key end

     0   :  { %12 = vsyncpa [#allocation3], 0  ;;  %s1173_s21 = smov 0   ;;  %s1667_s0 = inlined_call_operand.vmem [shape: bf16[512,16], index: 0, kind: input, shape index: {}]   ;;  %s1668_s1 = inlined_call_operand.vmem [shape: f32[1,16], index: 1, kind: input, shape index: {}]   ;;  %s1669_s2 = inlined_call_operand.vmem [shape: f32[1,16], index: 2, kind: input, shape index: {}]   ;;  %s1670_s3 = inlined_call_operand.vmem [shape: bf16[16,4], index: 3, kind: input, shape index: {}]   ;;  %s1671_s4 = inlined_call_operand.hbm [shape: f32[1,4], index: 4, kind: input, shape index: {}]   ;;  %s1672_s5 = inlined_call_operand.vmem [shape: bf16[512,4], index: 5, kind: output, shape index: {0}]   ;;  %s1673_s6 = inlined_call_operand.vmem [shape: f32[2,8,4], index: 6, kind: output, shape index: {1}]  }
   0x1 LB: > { %s1179_s22 = sadd.s32 4294967295, %s1135_s21   ;;  %p958_p0 = scmp.ge.s32.totalorder %s1135_s21, 1  ;;  %s1135_s21 = sphi %s1173_s21, %s18_s21  }
   0x2   : > { %p185_p1 = scmp.lt.s32.totalorder %s1135_s21, 3  ;;  %s206_s25 = sshll.u32 %s1671_s4, 4  ;;  %s207_s25 = int_to_ptr.hbm [resolvable:$true] %s206_s25 }
   0x3   : > { %p1081_p3 = scmp.eq.s32.totalorder %s1179_s22, 0  ;;  %s1137_s26 = smov [#allocation2]  }
   0x4   : > { %p186_p2 = pnand %p958_p0, %p185_p1  ;;  %s208_s27 = sshll.u32 %s1137_s26, 4  ;;  %s209_s27 = int_to_ptr.vmem [resolvable:$true] %s208_s27 }
   0x6   : > { %p1077_p4 = pneg %p186_p2  ;;  %230 = sbr.rel (%p186_p2) target bundleno = 281 (0x119), region = 40 }
   0x8   : > { %p1078_p5 = pnand %p1081_p3, %p1077_p4 }
   0xa   : > { %1080 = dma.hbm_to_vmem [thread:$0]  (!%p1078_p5), %s207_s25, 16, %s209_s27, [#allocation3]  }
   0xb   : > { %1130 = dma.done.wait (%p1081_p3), [#allocation3], 16  }
   0xc   : > { %1132 = vsyncadd (%p1081_p3), [#allocation3], 4294967280  ;;  %s963_s28 = sshll.u32 %s1179_s22, 5  ;;  %v990_v0 = vld [vmem:[%s1670_s3] sm:$0xff]  ;;  %vm478_vm0 = vcmask 130048   ;;  %vm648_vm1 = vcmask 27648  }
   0xd   : > { %p266_p6 = scmp.lt.s32.totalorder %s963_s28, 63  ;;  %v1205_v4 = vld [vmem:[%s1668_s1] ss:$0 sm:$0xff]  ;;  %534 = vmatpush.bf16.msra.mxu0 %v990_v0  ;;  %1070 = vmatpush.bf16.msra.mxu1 %v990_v0  ;;  %vm681_vm2 = vcmask 31744   ;;  %p277_p7 = scmp.lt.s32.totalorder %s1179_s22, 1  ;;  %vm852_vm3 = vcmask 1040384  }
   0xe   : > { %v1210_v5 = vld [vmem:[%s1669_s2] ss:$0 sm:$0xff]  ;;  %1071 = vmatpush.bf16.msra.mxu2 %v990_v0  ;;  %1072 = vmatpush.bf16.msra.mxu3 %v990_v0  ;;  %vm854_vm4 = vcmask 1041408  }
   0xf   : > { %s1675_s28 = smov (!%p266_p6, %s963_s28), 63  ;;  %s1677_s22 = smov (!%p277_p7, %s1179_s22), 1 }
  0x10   : > { %s964_s29 = sshll.u32 %s1675_s28, 2  ;;  %s967_s18 = sshll.u32 %s1677_s22, 3 }
  0x11   : > { %s1196_s8 = scalar_lea.vmem %s1667_s0, %s964_s29  ;;  %s1317_s17 = scalar_lea.vmem %s1672_s5, %s964_s29 }
  0x12   : > { %v992_v1 = vld [vmem:[%s1196_s8] sm:$0xff]   ;;  %v1055_v12 = vld [vmem:[%s1196_s8 + $0x8] sm:$0xff]   ;;  %v1056_v63 = vld [vmem:[%s1196_s8 + $0x10] sm:$0xff]   ;;  %s280_s23 = scalar_lea.vmem %s1673_s6, %s967_s18 }
  0x13   : > { %v993_v2 = vunpack.c.l.bf16 %v992_v1  ;;  %v994_v3 = vunpack.c.h.bf16 %v992_v1  ;;  %v1058_v6 = vld [vmem:[%s1196_s8 + $0x20] sm:$0xff]   ;;  %v997_v19 = vunpack.c.l.bf16 %v1055_v12  ;;  %v998_v20 = vunpack.c.h.bf16 %v1055_v12  ;;  %v1059_v23 = vld [vmem:[%s1196_s8 + $0x28] sm:$0xff]  }
  0x14   : > { %v1062_v7 = vld [vmem:[%s1196_s8 + $0x40] sm:$0xff]   ;;  %v1009_v10 = vunpack.c.l.bf16 %v1058_v6  ;;  %v1010_v11 = vunpack.c.h.bf16 %v1058_v6  ;;  %v1013_v33 = vunpack.c.l.bf16 %v1059_v23  ;;  %v1063_v34 = vld [vmem:[%s1196_s8 + $0x48] sm:$0xff]   ;;  %v1014_v40 = vunpack.c.h.bf16 %v1059_v23 }
  0x15   : > { %v350_v8 = vmul.f32 %v1205_v4, %v993_v2  ;;  %v351_v9 = vmul.f32 %v1205_v4, %v994_v3  ;;  %v1025_v13 = vunpack.c.l.bf16 %v1062_v7  ;;  %v1026_v14 = vunpack.c.h.bf16 %v1062_v7  ;;  %v1066_v41 = vld [vmem:[%s1196_s8 + $0x60] sm:$0xff]   ;;  %v1067_v2 = vld [vmem:[%s1196_s8 + $0x68] sm:$0xff]  }
  0x16   : > { %v358_v17 = vmul.f32 %v1205_v4, %v1009_v10  ;;  %v359_v18 = vmul.f32 %v1205_v4, %v1010_v11  ;;  %v352_v38 = vmul.f32 %v1205_v4, %v997_v19  ;;  %v353_v39 = vmul.f32 %v1205_v4, %v998_v20  ;;  %v1060_v10 = vld [vmem:[%s1196_s8 + $0x30] sm:$0xff]  }
  0x17   : > { %v386_v15 = vadd.f32 %v1210_v5, %v350_v8  ;;  %v387_v16 = vadd.f32 %v1210_v5, %v351_v9  ;;  %v366_v21 = vmul.f32 %v1205_v4, %v1025_v13  ;;  %v367_v22 = vmul.f32 %v1205_v4, %v1026_v14  ;;  %v1064_v14 = vld [vmem:[%s1196_s8 + $0x50] sm:$0xff]  }
  0x18   : > { %v394_v26 = vadd.f32 %v1210_v5, %v358_v17  ;;  %v395_v27 = vadd.f32 %v1210_v5, %v359_v18  ;;  %v1029_v43 = vunpack.c.l.bf16 %v1063_v34  ;;  %v360_v44 = vmul.f32 %v1205_v4, %v1013_v33 }
  0x19   : > { %v418_v24 = vmax.f32 %v386_v15, 0.0  ;;  %v419_v25 = vmax.f32 %v387_v16, 0.0  ;;  %v402_v28 = vadd.f32 %v1210_v5, %v366_v21  ;;  %v403_v29 = vadd.f32 %v1210_v5, %v367_v22 }
  0x1a   : > { %v426_v31 = vmax.f32 %v394_v26, 0.0  ;;  %v427_v32 = vmax.f32 %v395_v27, 0.0  ;;  %v361_v45 = vmul.f32 %v1205_v4, %v1014_v40  ;;  %v1030_v46 = vunpack.c.h.bf16 %v1063_v34 }
  0x1b   : > { %v450_v30 = vpack.c.bf16 %v419_v25, %v418_v24  ;;  %v434_v35 = vmax.f32 %v402_v28, 0.0  ;;  %v435_v36 = vmax.f32 %v403_v29, 0.0  ;;  %v368_v47 = vmul.f32 %v1205_v4, %v1029_v43 }
  0x1c   : > { %v454_v37 = vpack.c.bf16 %v427_v32, %v426_v31  ;;  %v1041_v48 = vunpack.c.l.bf16 %v1066_v41  ;;  %v1042_v49 = vunpack.c.h.bf16 %v1066_v41  ;;  %v388_v50 = vadd.f32 %v1210_v5, %v352_v38 }
  0x1d   : > { %972 = vmatmul.msk.bf16.vlgmr.msra.gmra.mxu0 %vm478_vm0, %v450_v30  ;;  %v458_v42 = vpack.c.bf16 %v435_v36, %v434_v35  ;;  %v389_v51 = vadd.f32 %v1210_v5, %v353_v39  ;;  %v369_v52 = vmul.f32 %v1205_v4, %v1030_v46  ;;  %v396_v55 = vadd.f32 %v1210_v5, %v360_v44  ;;  %v1068_v39 = vld [vmem:[%s1196_s8 + $0x70] sm:$0xff]   ;;  %v1057_v44 = vld [vmem:[%s1196_s8 + $0x18] sm:$0xff]  }
  0x1e   : > { %976 = vmatmul.msk.bf16.vlgmr.msra.gmra.mxu1 %vm478_vm0, %v454_v37  ;;  %v374_v53 = vmul.f32 %v1205_v4, %v1041_v48  ;;  %v375_v54 = vmul.f32 %v1205_v4, %v1042_v49  ;;  %v397_v56 = vadd.f32 %v1210_v5, %v361_v45  ;;  %v404_v57 = vadd.f32 %v1210_v5, %v368_v47 }
  0x1f   : > { %980 = vmatmul.msk.bf16.vlgmr.msra.gmra.mxu2 %vm478_vm0, %v458_v42  ;;  %v405_v58 = vadd.f32 %v1210_v5, %v369_v52  ;;  %v420_v61 = vmax.f32 %v388_v50, 0.0  ;;  %v421_v62 = vmax.f32 %v389_v51, 0.0  ;;  %v428_v3 = vmax.f32 %v396_v55, 0.0  ;;  %v1061_v52 = vld [vmem:[%s1196_s8 + $0x38] sm:$0xff]  }
  0x20   : > { %v410_v59 = vadd.f32 %v1210_v5, %v374_v53  ;;  %v411_v60 = vadd.f32 %v1210_v5, %v375_v54  ;;  %v429_v6 = vmax.f32 %v397_v56, 0.0  ;;  %v436_v7 = vmax.f32 %v404_v57, 0.0  ;;  %v1065_v56 = vld [vmem:[%s1196_s8 + $0x58] sm:$0xff]  }
  0x21   : > { %v437_v8 = vmax.f32 %v405_v58, 0.0  ;;  %v451_v11 = vpack.c.bf16 %v421_v62, %v420_v61  ;;  %v1001_v12 = vunpack.c.l.bf16 %v1056_v63  ;;  %v1002_v13 = vunpack.c.h.bf16 %v1056_v63 }
  0x22   : > { %v442_v0 = vmax.f32 %v410_v59, 0.0  ;;  %v443_v1 = vmax.f32 %v411_v60, 0.0  ;;  %v1045_v15 = vunpack.c.l.bf16 %v1067_v2  ;;  %v1046_v16 = vunpack.c.h.bf16 %v1067_v2 }
  0x23   : > { %v455_v17 = vpack.c.bf16 %v429_v6, %v428_v3  ;;  %v1017_v18 = vunpack.c.l.bf16 %v1060_v10  ;;  %v1018_v19 = vunpack.c.h.bf16 %v1060_v10  ;;  %v459_v21 = vpack.c.bf16 %v437_v8, %v436_v7 }
  0x24   : > { %v462_v9 = vpack.c.bf16 %v443_v1, %v442_v0  ;;  %v376_v20 = vmul.f32 %v1205_v4, %v1045_v15  ;;  %v1033_v22 = vunpack.c.l.bf16 %v1064_v14  ;;  %v1034_v23 = vunpack.c.h.bf16 %v1064_v14 }
  0x25   : > { %v377_v24 = vmul.f32 %v1205_v4, %v1046_v16  ;;  %v354_v25 = vmul.f32 %v1205_v4, %v1001_v12  ;;  %v355_v26 = vmul.f32 %v1205_v4, %v1002_v13  ;;  %v362_v29 = vmul.f32 %v1205_v4, %v1017_v18 }
  0x26   : > { %984 = vmatmul.msk.bf16.vlgmr.msra.gmra.mxu3 %vm478_vm0, %v462_v9  ;;  %v412_v27 = vadd.f32 %v1210_v5, %v376_v20  ;;  %v363_v30 = vmul.f32 %v1205_v4, %v1018_v19  ;;  %v370_v31 = vmul.f32 %v1205_v4, %v1033_v22  ;;  %v371_v32 = vmul.f32 %v1205_v4, %v1034_v23 }
  0x27   : > { %v413_v28 = vadd.f32 %v1210_v5, %v377_v24  ;;  %v390_v33 = vadd.f32 %v1210_v5, %v354_v25  ;;  %v391_v34 = vadd.f32 %v1210_v5, %v355_v26  ;;  %v398_v37 = vadd.f32 %v1210_v5, %v362_v29 }
  0x28   : > { %v444_v35 = vmax.f32 %v412_v27, 0.0  ;;  %v399_v38 = vadd.f32 %v1210_v5, %v363_v30  ;;  %v406_v40 = vadd.f32 %v1210_v5, %v370_v31  ;;  %v407_v41 = vadd.f32 %v1210_v5, %v371_v32 }
  0x29   : > { %v445_v36 = vmax.f32 %v413_v28, 0.0  ;;  %v422_v42 = vmax.f32 %v390_v33, 0.0  ;;  %v423_v43 = vmax.f32 %v391_v34, 0.0  ;;  %v1049_v46 = vunpack.c.l.bf16 %v1068_v39 }
  0x2a   : > { %v1050_v47 = vunpack.c.h.bf16 %v1068_v39  ;;  %v430_v48 = vmax.f32 %v398_v37, 0.0  ;;  %v431_v49 = vmax.f32 %v399_v38, 0.0  ;;  %v438_v50 = vmax.f32 %v406_v40, 0.0  ;;  %v1307_v39 = vld [vmem:[#allocation2] ss:$0 sm:$0xff] }
  0x2b   : > { %v463_v45 = vpack.c.bf16 %v445_v36, %v444_v35  ;;  %v439_v51 = vmax.f32 %v407_v41, 0.0  ;;  %v452_v53 = vpack.c.bf16 %v423_v43, %v422_v42  ;;  %v1005_v54 = vunpack.c.l.bf16 %v1057_v44 }
  0x2c   : > { %v1006_v55 = vunpack.c.h.bf16 %v1057_v44  ;;  %v378_v57 = vmul.f32 %v1205_v4, %v1049_v46  ;;  %v379_v58 = vmul.f32 %v1205_v4, %v1050_v47  ;;  %v456_v59 = vpack.c.bf16 %v431_v49, %v430_v48 }
  0x2d   : > { %973 = vmatmul.msk.bf16.gmra.mxu0 %vm478_vm0, %v451_v11  ;;  %v1021_v60 = vunpack.c.l.bf16 %v1061_v52  ;;  %v1022_v61 = vunpack.c.h.bf16 %v1061_v52  ;;  %v460_v62 = vpack.c.bf16 %v439_v51, %v438_v50  ;;  %v1037_v63 = vunpack.c.l.bf16 %v1065_v56 }
  0x2e   : > { %977 = vmatmul.msk.bf16.gmra.mxu1 %vm478_vm0, %v455_v17  ;;  %v1038_v0 = vunpack.c.h.bf16 %v1065_v56  ;;  %v356_v1 = vmul.f32 %v1205_v4, %v1005_v54  ;;  %v357_v2 = vmul.f32 %v1205_v4, %v1006_v55  ;;  %v414_v3 = vadd.f32 %v1210_v5, %v378_v57  ;;  %v1069_v17 = vld [vmem:[%s1196_s8 + $0x78] sm:$0xff]  }
  0x2f   : > { %981 = vmatmul.msk.bf16.gmra.mxu2 %vm478_vm0, %v459_v21  ;;  %v415_v6 = vadd.f32 %v1210_v5, %v379_v58  ;;  %v364_v7 = vmul.f32 %v1205_v4, %v1021_v60  ;;  %v365_v8 = vmul.f32 %v1205_v4, %v1022_v61  ;;  %v372_v9 = vmul.f32 %v1205_v4, %v1037_v63 }
  0x30   : > { %v373_v10 = vmul.f32 %v1205_v4, %v1038_v0  ;;  %v392_v11 = vadd.f32 %v1210_v5, %v356_v1  ;;  %v393_v12 = vadd.f32 %v1210_v5, %v357_v2  ;;  %v446_v13 = vmax.f32 %v414_v3, 0.0 }
  0x31   : > { %v447_v14 = vmax.f32 %v415_v6, 0.0  ;;  %v400_v15 = vadd.f32 %v1210_v5, %v364_v7  ;;  %v401_v16 = vadd.f32 %v1210_v5, %v365_v8  ;;  %v408_v18 = vadd.f32 %v1210_v5, %v372_v9 }
  0x32   : > { %v409_v19 = vadd.f32 %v1210_v5, %v373_v10  ;;  %v424_v20 = vmax.f32 %v392_v11, 0.0  ;;  %v425_v21 = vmax.f32 %v393_v12, 0.0  ;;  %v1053_v23 = vunpack.c.l.bf16 %v1069_v17 }
  0x33   : > { %v464_v22 = vpack.c.bf16 %v447_v14, %v446_v13  ;;  %v1054_v24 = vunpack.c.h.bf16 %v1069_v17  ;;  %v432_v25 = vmax.f32 %v400_v15, 0.0  ;;  %v433_v26 = vmax.f32 %v401_v16, 0.0 }
  0x34   : > { %v440_v27 = vmax.f32 %v408_v18, 0.0  ;;  %v441_v28 = vmax.f32 %v409_v19, 0.0  ;;  %v453_v29 = vpack.c.bf16 %v425_v21, %v424_v20  ;;  %v380_v30 = vmul.f32 %v1205_v4, %v1053_v23 }
  0x35   : > { %v381_v31 = vmul.f32 %v1205_v4, %v1054_v24  ;;  %v457_v32 = vpack.c.bf16 %v433_v26, %v432_v25 }
  0x36   : > { %985 = vmatmul.msk.bf16.gmra.mxu3 %vm478_vm0, %v463_v45  ;;  %v461_v33 = vpack.c.bf16 %v441_v28, %v440_v27  ;;  %v416_v34 = vadd.f32 %v1210_v5, %v380_v30 }
  0x37   : > { %v417_v35 = vadd.f32 %v1210_v5, %v381_v31 }
  0x38   : > { %v448_v36 = vmax.f32 %v416_v34, 0.0 }
  0x39   : > { %v449_v37 = vmax.f32 %v417_v35, 0.0 }
  0x3b   : > { %v465_v38 = vpack.c.bf16 %v449_v37, %v448_v36 }
  0x3d   : > { %974 = vmatmul.msk.bf16.gmra.mxu0 %vm478_vm0, %v452_v53 }
  0x3e   : > { %978 = vmatmul.msk.bf16.gmra.mxu1 %vm478_vm0, %v456_v59 }
  0x3f   : > { %982 = vmatmul.msk.bf16.gmra.mxu2 %vm478_vm0, %v460_v62 }
  0x46   : > { %986 = vmatmul.msk.bf16.gmra.mxu3 %vm478_vm0, %v464_v22 }
  0x4d   : > { %975 = vmatmul.msk.bf16.gmra.mxu0 %vm478_vm0, %v453_v29 }
  0x4e   : > { %979 = vmatmul.msk.bf16.gmra.mxu1 %vm478_vm0, %v457_v32 }
  0x4f   : > { %983 = vmatmul.msk.bf16.gmra.mxu2 %vm478_vm0, %v461_v33 }
  0x56   : > { %987 = vmatmul.msk.bf16.gmra.mxu3 %vm478_vm0, %v465_v38 }
  0x9a   : > { %v536_v4 = vpop.f32.mrf.mxu0 }
  0x9b   : > { %v1310_v40 = vadd.f32 %v1307_v39, %v536_v4  ;;  %v556_v5 = vpop.f32.mrf.mxu1 }
  0x9c   : > { %v1322_v42 = vadd.f32 %v1307_v39, %v556_v5 }
  0x9d   : > { %v616_v41 = vpack.c.bf16 %v1310_v40, %v1310_v40  ;;  %v751_v36 = vmul.f32 %v1310_v40, %v1310_v40 }
  0x9e   : > { %v624_v43 = vpack.c.bf16 %v1322_v42, %v1322_v42 }
  0x9f   : > { %649 = vst.msk [vmem:[%s1317_s17] sm:$0xf] %vm648_vm1, %v616_v41 }
  0xa0   : > { %657 = vst.msk [vmem:[%s1317_s17 + $0x20] sm:$0xf] %vm648_vm1, %v624_v43 }
  0xa2   : > { %v538_v44 = vpop.f32.mrf.mxu0  ;;  %v576_v46 = vpop.f32.mrf.mxu2 }
  0xa3   : > { %v1331_v45 = vadd.f32 %v1307_v39, %v538_v44  ;;  %v558_v47 = vpop.f32.mrf.mxu1  ;;  %v1334_v48 = vadd.f32 %v1307_v39, %v576_v46  ;;  %v682_v44 = vsel %vm681_vm2, %v1310_v40, 0.0 }
  0xa4   : > { %v1339_v50 = vadd.f32 %v1307_v39, %v558_v47  ;;  %v783_v47 = vsel %vm681_vm2, %v751_v36, 0.0 }
  0xa5   : > { %v617_v49 = vpack.c.bf16 %v1331_v45, %v1331_v45  ;;  %v632_v51 = vpack.c.bf16 %v1334_v48, %v1334_v48  ;;  %v752_v32 = vmul.f32 %v1331_v45, %v1331_v45  ;;  %v683_v38 = vsel %vm681_vm2, %v1331_v45, 0.0 }
  0xa6   : > { %v625_v52 = vpack.c.bf16 %v1339_v50, %v1339_v50 }
  0xa7   : > { %650 = vst.msk [vmem:[%s1317_s17 + $0x4] sm:$0xf] %vm648_vm1, %v617_v49  ;;  %v784_v46 = vsel %vm681_vm2, %v752_v32, 0.0  ;;  %v684_v49 = vadd.f32 %v683_v38, %v682_v44 }
  0xa8   : > { %665 = vst.msk [vmem:[%s1317_s17 + $0x40] sm:$0xf] %vm648_vm1, %v632_v51 }
  0xa9   : > { %658 = vst.msk [vmem:[%s1317_s17 + $0x24] sm:$0xf] %vm648_vm1, %v625_v52  ;;  %v596_v60 = vpop.f32.mrf.mxu3 }
  0xaa   : > { %v541_v53 = vpop.f32.mrf.mxu0  ;;  %v578_v55 = vpop.f32.mrf.mxu2  ;;  %v1371_v63 = vadd.f32 %v1307_v39, %v596_v60  ;;  %v785_v60 = vadd.f32 %v784_v46, %v783_v47 }
  0xab   : > { %v1352_v54 = vadd.f32 %v1307_v39, %v541_v53  ;;  %v561_v56 = vpop.f32.mrf.mxu1  ;;  %v1355_v57 = vadd.f32 %v1307_v39, %v578_v55 }
  0xac   : > { %v1360_v59 = vadd.f32 %v1307_v39, %v561_v56  ;;  %v640_v1 = vpack.c.bf16 %v1371_v63, %v1371_v63 }
  0xad   : > { %v618_v58 = vpack.c.bf16 %v1352_v54, %v1352_v54  ;;  %v633_v61 = vpack.c.bf16 %v1355_v57, %v1355_v57  ;;  %v753_v4 = vmul.f32 %v1352_v54, %v1352_v54  ;;  %v685_v45 = vsel %vm681_vm2, %v1352_v54, 0.0 }
  0xae   : > { %v626_v62 = vpack.c.bf16 %v1360_v59, %v1360_v59  ;;  %673 = vst.msk [vmem:[%s1317_s17 + $0x60] sm:$0xf] %vm648_vm1, %v640_v1  ;;  %v686_v54 = vadd.f32 %v685_v45, %v684_v49 }
  0xaf   : > { %651 = vst.msk [vmem:[%s1317_s17 + $0x8] sm:$0xf] %vm648_vm1, %v618_v58  ;;  %v786_v53 = vsel %vm681_vm2, %v753_v4, 0.0 }
  0xb0   : > { %666 = vst.msk [vmem:[%s1317_s17 + $0x44] sm:$0xf] %vm648_vm1, %v633_v61 }
  0xb1   : > { %659 = vst.msk [vmem:[%s1317_s17 + $0x28] sm:$0xf] %vm648_vm1, %v626_v62  ;;  %v598_v10 = vpop.f32.mrf.mxu3 }
  0xb2   : > { %v543_v0 = vpop.f32.mrf.mxu0  ;;  %v581_v3 = vpop.f32.mrf.mxu2  ;;  %v1395_v13 = vadd.f32 %v1307_v39, %v598_v10  ;;  %v787_v10 = vadd.f32 %v786_v53, %v785_v60  ;;  %v760_v53 = vmul.f32 %v1339_v50, %v1339_v50 }
  0xb3   : > { %v544_v2 = vadd.f32 %v1307_v39, %v543_v0  ;;  %v563_v6 = vpop.f32.mrf.mxu1  ;;  %v1379_v7 = vadd.f32 %v1307_v39, %v581_v3 }
  0xb4   : > { %v1384_v9 = vadd.f32 %v1307_v39, %v563_v6  ;;  %v641_v15 = vpack.c.bf16 %v1395_v13, %v1395_v13 }
  0xb5   : > { %v619_v8 = vpack.c.bf16 %v544_v2, %v544_v2  ;;  %v634_v11 = vpack.c.bf16 %v1379_v7, %v1379_v7  ;;  %v754_v41 = vmul.f32 %v544_v2, %v544_v2  ;;  %v687_v55 = vsel %vm681_vm2, %v544_v2, 0.0 }
  0xb6   : > { %v627_v12 = vpack.c.bf16 %v1384_v9, %v1384_v9  ;;  %674 = vst.msk [vmem:[%s1317_s17 + $0x64] sm:$0xf] %vm648_vm1, %v641_v15 }
  0xb7   : > { %652 = vst.msk [vmem:[%s1317_s17 + $0xc] sm:$0xf] %vm648_vm1, %v619_v8  ;;  %v788_v61 = vsel %vm681_vm2, %v754_v41, 0.0 }
  0xb8   : > { %667 = vst.msk [vmem:[%s1317_s17 + $0x48] sm:$0xf] %vm648_vm1, %v634_v11  ;;  %v688_v11 = vadd.f32 %v687_v55, %v686_v54 }
  0xb9   : > { %660 = vst.msk [vmem:[%s1317_s17 + $0x2c] sm:$0xf] %vm648_vm1, %v627_v12  ;;  %v601_v22 = vpop.f32.mrf.mxu3 }
  0xba   : > { %v546_v14 = vpop.f32.mrf.mxu0  ;;  %v583_v17 = vpop.f32.mrf.mxu2  ;;  %v1419_v25 = vadd.f32 %v1307_v39, %v601_v22 }
  0xbb   : > { %v547_v16 = vadd.f32 %v1307_v39, %v546_v14  ;;  %v566_v18 = vpop.f32.mrf.mxu1  ;;  %v1403_v19 = vadd.f32 %v1307_v39, %v583_v17 }
  0xbc   : > { %v1408_v21 = vadd.f32 %v1307_v39, %v566_v18  ;;  %v642_v27 = vpack.c.bf16 %v1419_v25, %v1419_v25  ;;  %v789_v18 = vadd.f32 %v788_v61, %v787_v10  ;;  %v761_v61 = vmul.f32 %v1360_v59, %v1360_v59 }
  0xbd   : > { %v620_v20 = vpack.c.bf16 %v547_v16, %v547_v16  ;;  %v635_v23 = vpack.c.bf16 %v1403_v19, %v1403_v19  ;;  %v755_v40 = vmul.f32 %v547_v16, %v547_v16  ;;  %v689_v1 = vsel %vm681_vm2, %v547_v16, 0.0 }
  0xbe   : > { %v628_v24 = vpack.c.bf16 %v1408_v21, %v1408_v21  ;;  %675 = vst.msk [vmem:[%s1317_s17 + $0x68] sm:$0xf] %vm648_vm1, %v642_v27  ;;  %v762_v10 = vmul.f32 %v1384_v9, %v1384_v9 }
  0xbf   : > { %653 = vst.msk [vmem:[%s1317_s17 + $0x10] sm:$0xf] %vm648_vm1, %v620_v20  ;;  %v790_v14 = vsel %vm681_vm2, %v755_v40, 0.0  ;;  %v690_v20 = vadd.f32 %v689_v1, %v688_v11 }
  0xc0   : > { %668 = vst.msk [vmem:[%s1317_s17 + $0x4c] sm:$0xf] %vm648_vm1, %v635_v23 }
  0xc1   : > { %661 = vst.msk [vmem:[%s1317_s17 + $0x30] sm:$0xf] %vm648_vm1, %v628_v24  ;;  %v603_v35 = vpop.f32.mrf.mxu3 }
  0xc2   : > { %v548_v26 = vpop.f32.mrf.mxu0  ;;  %v586_v29 = vpop.f32.mrf.mxu2  ;;  %v1451_v43 = vadd.f32 %v1307_v39, %v603_v35  ;;  %v759_v35 = vmul.f32 %v1322_v42, %v1322_v42 }
  0xc3   : > { %v549_v28 = vadd.f32 %v1307_v39, %v548_v26  ;;  %v568_v30 = vpop.f32.mrf.mxu1  ;;  %v1427_v31 = vadd.f32 %v1307_v39, %v586_v29  ;;  %v791_v26 = vadd.f32 %v790_v14, %v789_v18 }
  0xc4   : > { %v1434_v34 = vadd.f32 %v1307_v39, %v568_v30  ;;  %v643_v52 = vpack.c.bf16 %v1451_v43, %v1451_v43  ;;  %v798_v54 = vsel %vm681_vm2, %v759_v35, 0.0 }
  0xc5   : > { %v621_v33 = vpack.c.bf16 %v549_v28, %v549_v28  ;;  %v636_v37 = vpack.c.bf16 %v1427_v31, %v1427_v31  ;;  %v756_v3 = vmul.f32 %v549_v28, %v549_v28  ;;  %v691_v15 = vsel %vm681_vm2, %v549_v28, 0.0 }
  0xc6   : > { %v629_v5 = vpack.c.bf16 %v1434_v34, %v1434_v34  ;;  %676 = vst.msk [vmem:[%s1317_s17 + $0x6c] sm:$0xf] %vm648_vm1, %v643_v52  ;;  %v692_v27 = vadd.f32 %v691_v15, %v690_v20  ;;  %v697_v52 = vsel %vm681_vm2, %v1322_v42, 0.0  ;;  %v699_v42 = vsel %vm681_vm2, %v1339_v50, 0.0 }
  0xc7   : > { %654 = vst.msk [vmem:[%s1317_s17 + $0x14] sm:$0xf] %vm648_vm1, %v621_v33  ;;  %v792_v23 = vsel %vm681_vm2, %v756_v3, 0.0  ;;  %v802_v15 = vsel %vm681_vm2, %v761_v61, 0.0 }
  0xc8   : > { %669 = vst.msk [vmem:[%s1317_s17 + $0x50] sm:$0xf] %vm648_vm1, %v636_v37  ;;  %v793_v36 = vadd.f32 %v792_v23, %v791_v26  ;;  %v705_v26 = vsel %vm681_vm2, %v1408_v21, 0.0 }
  0xc9   : > { %662 = vst.msk [vmem:[%s1317_s17 + $0x34] sm:$0xf] %vm648_vm1, %v629_v5  ;;  %v606_v8 = vpop.f32.mrf.mxu3 }
  0xca   : > { %v551_v51 = vpop.f32.mrf.mxu0  ;;  %v588_v58 = vpop.f32.mrf.mxu2  ;;  %v1487_v22 = vadd.f32 %v1307_v39, %v606_v8  ;;  %v701_v8 = vsel %vm681_vm2, %v1360_v59, 0.0  ;;  %v763_v59 = vmul.f32 %v1408_v21, %v1408_v21 }
  0xcb   : > { %v552_v56 = vadd.f32 %v1307_v39, %v551_v51  ;;  %v571_v62 = vpop.f32.mrf.mxu1  ;;  %v1468_v0 = vadd.f32 %v1307_v39, %v588_v58 }
  0xcc   : > { %v1474_v6 = vadd.f32 %v1307_v39, %v571_v62  ;;  %v644_v29 = vpack.c.bf16 %v1487_v22, %v1487_v22 }
  0xcd   : > { %v622_v2 = vpack.c.bf16 %v552_v56, %v552_v56  ;;  %v637_v12 = vpack.c.bf16 %v1468_v0, %v1468_v0  ;;  %v757_v17 = vmul.f32 %v552_v56, %v552_v56  ;;  %v693_v24 = vsel %vm681_vm2, %v552_v56, 0.0 }
  0xce   : > { %v630_v16 = vpack.c.bf16 %v1474_v6, %v1474_v6  ;;  %v694_v37 = vadd.f32 %v693_v24, %v692_v27  ;;  %677 = vst.msk [vmem:[%s1317_s17 + $0x70] sm:$0xf] %vm648_vm1, %v644_v29  ;;  %v804_v24 = vsel %vm681_vm2, %v762_v10, 0.0  ;;  %v764_v27 = vmul.f32 %v1434_v34, %v1434_v34 }
  0xcf   : > { %655 = vst.msk [vmem:[%s1317_s17 + $0x18] sm:$0xf] %vm648_vm1, %v622_v2  ;;  %v794_v30 = vsel %vm681_vm2, %v757_v17, 0.0  ;;  %v800_v2 = vsel %vm681_vm2, %v760_v53, 0.0  ;;  %v703_v17 = vsel %vm681_vm2, %v1384_v9, 0.0 }
  0xd0   : > { %670 = vst.msk [vmem:[%s1317_s17 + $0x54] sm:$0xf] %vm648_vm1, %v637_v12  ;;  %v795_v47 = vadd.f32 %v794_v30, %v793_v36  ;;  %v806_v30 = vsel %vm681_vm2, %v763_v59, 0.0 }
  0xd1   : > { %663 = vst.msk [vmem:[%s1317_s17 + $0x38] sm:$0xf] %vm648_vm1, %v630_v16  ;;  %v608_v45 = vpop.f32.mrf.mxu3 }
  0xd2   : > { %v553_v28 = vpop.f32.mrf.mxu0  ;;  %v591_v33 = vpop.f32.mrf.mxu2  ;;  %v1518_v60 = vadd.f32 %v1307_v39, %v608_v45 }
  0xd3   : > { %v554_v32 = vadd.f32 %v1307_v39, %v553_v28  ;;  %v573_v38 = vpop.f32.mrf.mxu1  ;;  %v1500_v4 = vadd.f32 %v1307_v39, %v591_v33  ;;  %v765_v33 = vmul.f32 %v1474_v6, %v1474_v6 }
  0xd4   : > { %v574_v46 = vadd.f32 %v1307_v39, %v573_v38  ;;  %v645_v3 = vpack.c.bf16 %v1518_v60, %v1518_v60  ;;  %v709_v38 = vsel %vm681_vm2, %v1474_v6, 0.0  ;;  %v713_v6 = vsel %vm681_vm2, %v1334_v48, 0.0 }
  0xd5   : > { %v623_v5 = vpack.c.bf16 %v554_v32, %v554_v32  ;;  %v695_v41 = vsel %vm681_vm2, %v554_v32, 0.0  ;;  %v758_v44 = vmul.f32 %v554_v32, %v554_v32  ;;  %v638_v51 = vpack.c.bf16 %v1500_v4, %v1500_v4 }
  0xd6   : > { %v696_v49 = vadd.f32 %v695_v41, %v694_v37  ;;  %v631_v40 = vpack.c.bf16 %v574_v46, %v574_v46  ;;  %678 = vst.msk [vmem:[%s1317_s17 + $0x74] sm:$0xf] %vm648_vm1, %v645_v3  ;;  %v707_v32 = vsel %vm681_vm2, %v1434_v34, 0.0  ;;  %v808_v37 = vsel %vm681_vm2, %v764_v27, 0.0 }
  0xd7   : > { %656 = vst.msk [vmem:[%s1317_s17 + $0x1c] sm:$0xf] %vm648_vm1, %v623_v5  ;;  %v796_v55 = vsel %vm681_vm2, %v758_v44, 0.0  ;;  %v766_v5 = vmul.f32 %v574_v46, %v574_v46  ;;  %v767_v34 = vmul.f32 %v1334_v48, %v1334_v48  ;;  %v810_v45 = vsel %vm681_vm2, %v765_v33, 0.0 }
  0xd8   : > { %v698_v56 = vadd.f32 %v697_v52, %v696_v49  ;;  %v797_v58 = vadd.f32 %v796_v55, %v795_v47  ;;  %671 = vst.msk [vmem:[%s1317_s17 + $0x58] sm:$0xf] %vm648_vm1, %v638_v51  ;;  %v711_v47 = vsel %vm681_vm2, %v574_v46, 0.0  ;;  %v768_v55 = vmul.f32 %v1355_v57, %v1355_v57 }
  0xd9   : > { %664 = vst.msk [vmem:[%s1317_s17 + $0x3c] sm:$0xf] %vm648_vm1, %v631_v40  ;;  %v611_v16 = vpop.f32.mrf.mxu3  ;;  %v812_v40 = vsel %vm681_vm2, %v766_v5, 0.0  ;;  %v770_v3 = vmul.f32 %v1403_v19, %v1403_v19 }
  0xda   : > { %v700_v62 = vadd.f32 %v699_v42, %v698_v56  ;;  %v799_v1 = vadd.f32 %v798_v54, %v797_v58  ;;  %v593_v11 = vpop.f32.mrf.mxu2  ;;  %v1552_v9 = vadd.f32 %v1307_v39, %v611_v16  ;;  %v814_v54 = vsel %vm681_vm2, %v767_v34, 0.0 }
  0xdb   : > { %v1535_v14 = vadd.f32 %v1307_v39, %v593_v11  ;;  %v715_v42 = vsel %vm681_vm2, %v1355_v57, 0.0  ;;  %v719_v57 = vsel %vm681_vm2, %v1403_v19, 0.0  ;;  %v771_v11 = vmul.f32 %v1427_v31, %v1427_v31 }
  0xdc   : > { %v702_v50 = vadd.f32 %v701_v8, %v700_v62  ;;  %v801_v12 = vadd.f32 %v800_v2, %v799_v1  ;;  %v646_v21 = vpack.c.bf16 %v1552_v9, %v1552_v9  ;;  %v816_v62 = vsel %vm681_vm2, %v768_v55, 0.0 }
  0xdd   : > { %v639_v23 = vpack.c.bf16 %v1535_v14, %v1535_v14  ;;  %v717_v1 = vsel %vm681_vm2, %v1379_v7, 0.0  ;;  %v723_v19 = vsel %vm681_vm2, %v1468_v0, 0.0  ;;  %v774_v27 = vmul.f32 %v1535_v14, %v1535_v14 }
  0xde   : > { %v803_v18 = vadd.f32 %v802_v15, %v801_v12  ;;  %v704_v20 = vadd.f32 %v703_v17, %v702_v50  ;;  %679 = vst.msk [vmem:[%s1317_s17 + $0x78] sm:$0xf] %vm648_vm1, %v646_v21  ;;  %v820_v15 = vsel %vm681_vm2, %v770_v3, 0.0  ;;  %v772_v17 = vmul.f32 %v1468_v0, %v1468_v0 }
  0xdf   : > { %672 = vst.msk [vmem:[%s1317_s17 + $0x5c] sm:$0xf] %vm648_vm1, %v639_v23 }
  0xe0   : > { %v706_v28 = vadd.f32 %v705_v26, %v704_v20  ;;  %v805_v29 = vadd.f32 %v804_v24, %v803_v18  ;;  %v822_v18 = vsel %vm681_vm2, %v771_v11, 0.0  ;;  %v773_v20 = vmul.f32 %v1500_v4, %v1500_v4 }
  0xe1   : > { %v613_v49 = vpop.f32.mrf.mxu3  ;;  %v824_v26 = vsel %vm681_vm2, %v772_v17, 0.0 }
  0xe2   : > { %v708_v35 = vadd.f32 %v707_v32, %v706_v28  ;;  %v807_v36 = vadd.f32 %v806_v30, %v805_v29  ;;  %v1573_v53 = vadd.f32 %v1307_v39, %v613_v49  ;;  %v769_v39 = vmul.f32 %v1379_v7, %v1379_v7 }
  0xe3   : > { %v721_v7 = vsel %vm681_vm2, %v1427_v31, 0.0  ;;  %v725_v31 = vsel %vm681_vm2, %v1500_v4, 0.0  ;;  %v775_v30 = vmul.f32 %v1371_v63, %v1371_v63  ;;  %v826_v0 = vsel %vm681_vm2, %v773_v20, 0.0 }
  0xe4   : > { %v710_v41 = vadd.f32 %v709_v38, %v708_v35  ;;  %v809_v44 = vadd.f32 %v808_v37, %v807_v36  ;;  %v647_v46 = vpack.c.bf16 %v1573_v53, %v1573_v53  ;;  %v818_v10 = vsel %vm681_vm2, %v769_v39, 0.0 }
  0xe5   : > { %v727_v32 = vsel %vm681_vm2, %v1535_v14, 0.0  ;;  %v729_v35 = vsel %vm681_vm2, %v1371_v63, 0.0  ;;  %v776_v4 = vmul.f32 %v1395_v13, %v1395_v13  ;;  %v828_v36 = vsel %vm681_vm2, %v774_v27, 0.0 }
  0xe6   : > { %v811_v51 = vadd.f32 %v810_v45, %v809_v44  ;;  %v712_v52 = vadd.f32 %v711_v47, %v710_v41  ;;  %680 = vst.msk [vmem:[%s1317_s17 + $0x7c] sm:$0xf] %vm648_vm1, %v647_v46  ;;  %v830_v5 = vsel %vm681_vm2, %v775_v30, 0.0  ;;  %v731_v41 = vsel %vm681_vm2, %v1395_v13, 0.0 }
  0xe7   : > { %v777_v14 = vmul.f32 %v1419_v25, %v1419_v25  ;;  %v832_v45 = vsel %vm681_vm2, %v776_v4, 0.0  ;;  %v733_v63 = vsel %vm681_vm2, %v1419_v25, 0.0  ;;  %v778_v47 = vmul.f32 %v1451_v43, %v1451_v43 }
  0xe8   : > { %v714_v56 = vadd.f32 %v713_v6, %v712_v52  ;;  %v813_v58 = vadd.f32 %v812_v40, %v811_v51  ;;  %v735_v13 = vsel %vm681_vm2, %v1451_v43, 0.0  ;;  %v779_v6 = vmul.f32 %v1487_v22, %v1487_v22 }
  0xe9   : > { %v834_v52 = vsel %vm681_vm2, %v777_v14, 0.0  ;;  %v737_v25 = vsel %vm681_vm2, %v1487_v22, 0.0  ;;  %v739_v43 = vsel %vm681_vm2, %v1518_v60, 0.0  ;;  %v781_v39 = vmul.f32 %v1552_v9, %v1552_v9 }
  0xea   : > { %v716_v61 = vadd.f32 %v715_v42, %v714_v56  ;;  %v815_v48 = vadd.f32 %v814_v54, %v813_v58  ;;  %v836_v56 = vsel %vm681_vm2, %v778_v47, 0.0  ;;  %v780_v58 = vmul.f32 %v1518_v60, %v1518_v60 }
  0xeb   : > { %v838_v42 = vsel %vm681_vm2, %v779_v6, 0.0  ;;  %v741_v22 = vsel %vm681_vm2, %v1552_v9, 0.0  ;;  %v743_v60 = vsel %vm681_vm2, %v1573_v53, 0.0 }
  0xec   : > { %v817_v2 = vadd.f32 %v816_v62, %v815_v48  ;;  %v718_v8 = vadd.f32 %v717_v1, %v716_v61  ;;  %v840_v62 = vsel %vm681_vm2, %v780_v58, 0.0  ;;  %v782_v1 = vmul.f32 %v1573_v53, %v1573_v53 }
  0xee   : > { %v720_v50 = vadd.f32 %v719_v57, %v718_v8  ;;  %v819_v12 = vadd.f32 %v818_v10, %v817_v2  ;;  %v842_v8 = vsel %vm681_vm2, %v781_v39, 0.0  ;;  %v844_v11 = vsel %vm681_vm2, %v782_v1, 0.0 }
  0xf0   : > { %v722_v59 = vadd.f32 %v721_v7, %v720_v50  ;;  %v821_v16 = vadd.f32 %v820_v15, %v819_v12 }
  0xf2   : > { %v724_v23 = vadd.f32 %v723_v19, %v722_v59  ;;  %v823_v24 = vadd.f32 %v822_v18, %v821_v16 }
  0xf4   : > { %v825_v28 = vadd.f32 %v824_v26, %v823_v24  ;;  %v726_v29 = vadd.f32 %v725_v31, %v724_v23 }
  0xf6   : > { %v827_v33 = vadd.f32 %v826_v0, %v825_v28  ;;  %v728_v21 = vadd.f32 %v727_v32, %v726_v29 }
  0xf8   : > { %v730_v37 = vadd.f32 %v729_v35, %v728_v21  ;;  %v829_v38 = vadd.f32 %v828_v36, %v827_v33 }
  0xfa   : > { %v732_v44 = vadd.f32 %v731_v41, %v730_v37  ;;  %v831_v34 = vadd.f32 %v830_v5, %v829_v38 }
  0xfc   : > { %v833_v49 = vadd.f32 %v832_v45, %v831_v34  ;;  %v734_v51 = vadd.f32 %v733_v63, %v732_v44 }
  0xfe   : > { %v736_v55 = vadd.f32 %v735_v13, %v734_v51  ;;  %v835_v40 = vadd.f32 %v834_v52, %v833_v49 }
 0x100   : > { %v738_v46 = vadd.f32 %v737_v25, %v736_v55  ;;  %v837_v54 = vadd.f32 %v836_v56, %v835_v40 }
 0x102   : > { %v740_v61 = vadd.f32 %v739_v43, %v738_v46  ;;  %v839_v48 = vadd.f32 %v838_v42, %v837_v54 }
 0x104   : > { %v841_v3 = vadd.f32 %v840_v62, %v839_v48  ;;  %v742_v2 = vadd.f32 %v741_v22, %v740_v61 }
 0x106   : > { %v843_v10 = vadd.f32 %v842_v8, %v841_v3  ;;  %v744_v57 = vadd.f32 %v743_v60, %v742_v2 }
 0x108   : > { %v745_v50 = vrot.slane %v744_v57, 4  ;;  %v845_v12 = vadd.f32 %v844_v11, %v843_v10 }
 0x10a   : > { %v746_v15 = vadd.f32 %v745_v50, %v744_v57  ;;  %v846_v9 = vrot.slane %v845_v12, 4 }
 0x10c   : > { %v747_v7 = vrot.slane %v746_v15, 2  ;;  %v847_v17 = vadd.f32 %v846_v9, %v845_v12 }
 0x10e   : > { %v748_v59 = vadd.f32 %v747_v7, %v746_v15  ;;  %v848_v16 = vrot.slane %v847_v17, 2 }
 0x110   : > { %v749_v18 = vrot.slane %v748_v59, 1  ;;  %v849_v19 = vadd.f32 %v848_v16, %v847_v17 }
 0x112   : > { %v850_v20 = vrot.slane %v849_v19, 1  ;;  %v750_v53 = vadd.f32 %v749_v18, %v748_v59 }
 0x114   : > { %v851_v23 = vadd.f32 %v850_v20, %v849_v19 }
 0x116   : > { %v853_v24 = vsel %vm852_vm3, %v750_v53, %v851_v23 }
 0x117   : > { %v855_v26 = vsel %vm854_vm4, %v853_v24, 0.0 }
 0x118   : > { %856 = vst.msk [vmem:[%s280_s23] sm:$0xff] %vm681_vm2, %v855_v26 }
 0x119 PF: > { %s18_s21 = sadd.s32 1, %s1135_s21  }
 0x11a   : > { %p15_p8 = scmp.ge.s32.totalorder %s18_s21, 4  }
 0x11c   :  { %17 = sbr.rel (!%p15_p8) target bundleno = 1 (0x1), region = 87 }
 0x121   :  { %893 = vsyncpa [#allocation3], 1 }
 0x122   :  { %895 = vsyncpa [#allocation3 + $0x1], 1 }

// kernel: bottleneck_forward.5
= control target key start
LH: loop header
LB: loop body
LE: loop exit
PB: predicated region body
PF: predicated region fallthrough
CT: control target
= control target key end

     0   :  { %14 = vsyncpa [#allocation3], 0  ;;  %s1509_s30 = smov 0   ;;  %s1858_s0 = inlined_call_operand.vmem [shape: bf16[512,4], index: 0, kind: input, shape index: {}]   ;;  %s1859_s1 = inlined_call_operand.vmem [shape: f32[1,4], index: 1, kind: input, shape index: {}]   ;;  %s1860_s2 = inlined_call_operand.vmem [shape: f32[1,4], index: 2, kind: input, shape index: {}]   ;;  %s1861_s3 = inlined_call_operand.vmem [shape: bf16[4,8], index: 3, kind: input, shape index: {}]   ;;  %s1862_s4 = inlined_call_operand.hbm [shape: f32[1,8], index: 4, kind: input, shape index: {}]   ;;  %s1863_s5 = inlined_call_operand.vmem [shape: bf16[512,16], index: 5, kind: input, shape index: {}]   ;;  %s1864_s6 = inlined_call_operand.vmem [shape: f32[1,16], index: 6, kind: input, shape index: {}]   ;;  %s1865_s7 = inlined_call_operand.vmem [shape: f32[1,16], index: 7, kind: input, shape index: {}]   ;;  %s1866_s8 = inlined_call_operand.vmem [shape: bf16[16,8], index: 8, kind: input, shape index: {}]   ;;  %s1867_s9 = inlined_call_operand.vmem [shape: f32[512,8], index: 9, kind: output, shape index: {}]  }
   0x1 LB: > { %s1180_s10 = sadd.s32 4294967295, %s1456_s30   ;;  %p1182_p0 = scmp.ge.s32.totalorder %s1456_s30, 1  ;;  %s1456_s30 = sphi %s1509_s30, %s20_s30  }
   0x2   : > { %p250_p1 = scmp.lt.s32.totalorder %s1456_s30, 3  ;;  %s271_s13 = sshll.u32 %s1862_s4, 4  ;;  %s272_s13 = int_to_ptr.hbm [resolvable:$true] %s271_s13 }
   0x3   : > { %p1400_p3 = scmp.eq.s32.totalorder %s1180_s10, 0  ;;  %s1458_s14 = smov [#allocation2]  }
   0x4   : > { %p251_p2 = pnand %p1182_p0, %p250_p1  ;;  %s273_s15 = sshll.u32 %s1458_s14, 4  ;;  %s274_s15 = int_to_ptr.vmem [resolvable:$true] %s273_s15 }
   0x6   : > { %p1396_p4 = pneg %p251_p2  ;;  %313 = sbr.rel (%p251_p2) target bundleno = 287 (0x11f), region = 56 }
   0x8   : > { %p1397_p5 = pnand %p1400_p3, %p1396_p4 }
   0xa   : > { %1399 = dma.hbm_to_vmem [thread:$0]  (!%p1397_p5), %s272_s13, 16, %s274_s15, [#allocation3]  }
   0xb   : > { %1451 = dma.done.wait (%p1400_p3), [#allocation3], 16  }
   0xc   : > { %1453 = vsyncadd (%p1400_p3), [#allocation3], 4294967280  ;;  %s1187_s16 = sshll.u32 %s1180_s10, 5  ;;  %vm612_vm0 = vcmask 1041408   ;;  %v558_v0 = vld [vmem:[%s1861_s3] sm:$0x3] }
   0xd   : > { %p356_p6 = scmp.lt.s32.totalorder %s1187_s16, 63  ;;  %v1231_v1 = vld [vmem:[%s1866_s8] sm:$0xff]  ;;  %v614_v3 = vsel %vm612_vm0, %v558_v0, 0  ;;  %vm563_vm1 = vcmask 31744   ;;  %vm897_vm2 = vcmask 130048   ;;  %vm1067_vm3 = vcmask 64512  }
   0xe   : > { %v1543_v6 = vld [vmem:[%s1859_s1] ss:$0 sm:$0xff]  ;;  %623 = vmatpush.bf16.msra.mxu0 %v614_v3  ;;  %1390 = vmatpush.bf16.msra.mxu2 %v614_v3 }
   0xf   : > { %s1869_s16 = smov (!%p356_p6, %s1187_s16), 63  ;;  %v1549_v8 = vld [vmem:[%s1860_s2] ss:$0 sm:$0xff]  ;;  %953 = vmatpush.bf16.msra.mxu1 %v1231_v1  ;;  %1391 = vmatpush.bf16.msra.mxu3 %v1231_v1 }
  0x10   : > { %s1188_s17 = sshll.u32 %s1869_s16, 2  ;;  %v1557_v16 = vld [vmem:[%s1864_s6] ss:$0 sm:$0xff] }
  0x11   : > { %s1526_s20 = scalar_lea.vmem %s1858_s0, %s1188_s17  ;;  %s1538_s27 = scalar_lea.vmem %s1863_s5, %s1188_s17  ;;  %v1564_v19 = vld [vmem:[%s1865_s7] ss:$0 sm:$0xff] }
  0x12   : > { %v1233_v2 = vld [vmem:[%s1526_s20] sm:$0xff]   ;;  %v1360_v29 = vld [vmem:[%s1526_s20 + $0x8] sm:$0xff]   ;;  %s1192_s17 = sshll.u32 %s1869_s16, 3 }
  0x13   : > { %v1234_v4 = vunpack.c.l.bf16 %v1233_v2  ;;  %v1235_v5 = vunpack.c.h.bf16 %v1233_v2  ;;  %v1367_v7 = vld [vmem:[%s1526_s20 + $0x40] sm:$0xff]   ;;  %v1368_v38 = vld [vmem:[%s1526_s20 + $0x48] sm:$0xff]   ;;  %v1238_v42 = vunpack.c.l.bf16 %v1360_v29  ;;  %v1239_v47 = vunpack.c.h.bf16 %v1360_v29 }
  0x14   : > { %v1266_v9 = vunpack.c.l.bf16 %v1367_v7  ;;  %v1267_v10 = vunpack.c.h.bf16 %v1367_v7  ;;  %v1297_v11 = vld [vmem:[%s1538_s27] sm:$0xff]   ;;  %v1375_v43 = vld [vmem:[%s1538_s27 + $0x8] sm:$0xff]   ;;  %v1270_v50 = vunpack.c.l.bf16 %v1368_v38  ;;  %v1271_v51 = vunpack.c.h.bf16 %v1368_v38 }
  0x15   : > { %v442_v12 = vmul.f32 %v1543_v6, %v1234_v4  ;;  %v443_v13 = vmul.f32 %v1543_v6, %v1235_v5  ;;  %v1298_v14 = vunpack.c.l.bf16 %v1297_v11  ;;  %v1299_v15 = vunpack.c.h.bf16 %v1297_v11  ;;  %v1382_v20 = vld [vmem:[%s1538_s27 + $0x40] sm:$0xff]   ;;  %v1383_v52 = vld [vmem:[%s1538_s27 + $0x48] sm:$0xff]  }
  0x16   : > { %v458_v17 = vmul.f32 %v1543_v6, %v1266_v9  ;;  %v459_v18 = vmul.f32 %v1543_v6, %v1267_v10  ;;  %v1330_v27 = vunpack.c.l.bf16 %v1382_v20  ;;  %v1331_v28 = vunpack.c.h.bf16 %v1382_v20  ;;  %v1369_v20 = vld [vmem:[%s1526_s20 + $0x50] sm:$0xff]  }
  0x17   : > { %v478_v21 = vadd.f32 %v1549_v8, %v442_v12  ;;  %v479_v22 = vadd.f32 %v1549_v8, %v443_v13  ;;  %v773_v23 = vmul.f32 %v1557_v16, %v1298_v14  ;;  %v774_v24 = vmul.f32 %v1557_v16, %v1299_v15 }
  0x18   : > { %v494_v25 = vadd.f32 %v1549_v8, %v458_v17  ;;  %v495_v26 = vadd.f32 %v1549_v8, %v459_v18  ;;  %v789_v36 = vmul.f32 %v1557_v16, %v1330_v27  ;;  %v790_v37 = vmul.f32 %v1557_v16, %v1331_v28  ;;  %v1361_v18 = vld [vmem:[%s1526_s20 + $0x10] sm:$0xff]  }
  0x19   : > { %v510_v30 = vmax.f32 %v478_v21, 0.0  ;;  %v511_v31 = vmax.f32 %v479_v22, 0.0  ;;  %v809_v32 = vadd.f32 %v1564_v19, %v773_v23  ;;  %v810_v33 = vadd.f32 %v1564_v19, %v774_v24  ;;  %v1376_v23 = vld [vmem:[%s1538_s27 + $0x10] sm:$0xff]  }
  0x1a   : > { %v526_v34 = vmax.f32 %v494_v25, 0.0  ;;  %v527_v35 = vmax.f32 %v495_v26, 0.0  ;;  %v825_v45 = vadd.f32 %v1564_v19, %v789_v36  ;;  %v826_v46 = vadd.f32 %v1564_v19, %v790_v37 }
  0x1b   : > { %v542_v39 = vpack.c.bf16 %v511_v31, %v510_v30  ;;  %v841_v40 = vmax.f32 %v809_v32, 0.0  ;;  %v842_v41 = vmax.f32 %v810_v33, 0.0  ;;  %v444_v49 = vmul.f32 %v1543_v6, %v1238_v42 }
  0x1c   : > { %v550_v44 = vpack.c.bf16 %v527_v35, %v526_v34  ;;  %v857_v53 = vmax.f32 %v825_v45, 0.0  ;;  %v858_v54 = vmax.f32 %v826_v46, 0.0  ;;  %v445_v55 = vmul.f32 %v1543_v6, %v1239_v47  ;;  %v1384_v35 = vld [vmem:[%s1538_s27 + $0x50] sm:$0xff]  }
  0x1d   : > { %1193 = vmatmul.msk.bf16.vlgmr.msra.gmra.mxu0 %vm563_vm1, %v542_v39  ;;  %v873_v48 = vpack.c.bf16 %v842_v41, %v841_v40  ;;  %v1302_v56 = vunpack.c.l.bf16 %v1375_v43  ;;  %v460_v57 = vmul.f32 %v1543_v6, %v1270_v50  ;;  %v461_v58 = vmul.f32 %v1543_v6, %v1271_v51 }
  0x1e   : > { %1201 = vmatmul.msk.bf16.vlgmr.msra.gmra.mxu2 %vm563_vm1, %v550_v44  ;;  %v1303_v59 = vunpack.c.h.bf16 %v1375_v43  ;;  %v881_v60 = vpack.c.bf16 %v858_v54, %v857_v53  ;;  %v1334_v62 = vunpack.c.l.bf16 %v1383_v52  ;;  %v480_v63 = vadd.f32 %v1549_v8, %v444_v49 }
  0x1f   : > { %1213 = vmatmul.msk.bf16.vlgmr.msra.gmra.mxu1 %vm897_vm2, %v873_v48  ;;  %v775_v61 = vmul.f32 %v1557_v16, %v1302_v56  ;;  %v481_v0 = vadd.f32 %v1549_v8, %v445_v55  ;;  %v496_v2 = vadd.f32 %v1549_v8, %v460_v57  ;;  %v497_v3 = vadd.f32 %v1549_v8, %v461_v58 }
  0x20   : > { %v776_v1 = vmul.f32 %v1557_v16, %v1303_v59  ;;  %1221 = vmatmul.msk.bf16.vlgmr.msra.gmra.mxu3 %vm897_vm2, %v881_v60  ;;  %v1335_v4 = vunpack.c.h.bf16 %v1383_v52  ;;  %v791_v5 = vmul.f32 %v1557_v16, %v1334_v62  ;;  %v512_v11 = vmax.f32 %v480_v63, 0.0  ;;  %v1362_v59 = vld [vmem:[%s1526_s20 + $0x18] sm:$0xff]  }
  0x21   : > { %v811_v7 = vadd.f32 %v1564_v19, %v775_v61  ;;  %v513_v12 = vmax.f32 %v481_v0, 0.0  ;;  %v528_v13 = vmax.f32 %v496_v2, 0.0  ;;  %v529_v14 = vmax.f32 %v497_v3, 0.0  ;;  %v1370_v60 = vld [vmem:[%s1526_s20 + $0x58] sm:$0xff]  }
  0x22   : > { %v812_v9 = vadd.f32 %v1564_v19, %v776_v1  ;;  %v792_v10 = vmul.f32 %v1557_v16, %v1335_v4  ;;  %v827_v15 = vadd.f32 %v1564_v19, %v791_v5  ;;  %v1242_v25 = vunpack.c.l.bf16 %v1361_v18  ;;  %v1377_v63 = vld [vmem:[%s1538_s27 + $0x18] sm:$0xff]  }
  0x23   : > { %v843_v21 = vmax.f32 %v811_v7, 0.0  ;;  %v543_v24 = vpack.c.bf16 %v513_v12, %v512_v11  ;;  %v1243_v26 = vunpack.c.h.bf16 %v1361_v18  ;;  %v1274_v27 = vunpack.c.l.bf16 %v1369_v20 }
  0x24   : > { %v828_v17 = vadd.f32 %v1564_v19, %v792_v10  ;;  %v844_v22 = vmax.f32 %v812_v9, 0.0  ;;  %v551_v28 = vpack.c.bf16 %v529_v14, %v528_v13  ;;  %v859_v29 = vmax.f32 %v827_v15, 0.0  ;;  %v1385_v13 = vld [vmem:[%s1538_s27 + $0x58] sm:$0xff]  }
  0x25   : > { %v1275_v31 = vunpack.c.h.bf16 %v1369_v20  ;;  %v1306_v33 = vunpack.c.l.bf16 %v1376_v23  ;;  %v1307_v34 = vunpack.c.h.bf16 %v1376_v23  ;;  %v446_v36 = vmul.f32 %v1543_v6, %v1242_v25 }
  0x26   : > { %v860_v30 = vmax.f32 %v828_v17, 0.0  ;;  %v874_v32 = vpack.c.bf16 %v844_v22, %v843_v21  ;;  %v447_v37 = vmul.f32 %v1543_v6, %v1243_v26  ;;  %v462_v38 = vmul.f32 %v1543_v6, %v1274_v27 }
  0x27   : > { %v463_v40 = vmul.f32 %v1543_v6, %v1275_v31  ;;  %v1338_v41 = vunpack.c.l.bf16 %v1384_v35  ;;  %v1339_v42 = vunpack.c.h.bf16 %v1384_v35  ;;  %v777_v43 = vmul.f32 %v1557_v16, %v1306_v33  ;;  %v1363_v35 = vld [vmem:[%s1526_s20 + $0x20] sm:$0xff]  }
  0x28   : > { %v882_v39 = vpack.c.bf16 %v860_v30, %v859_v29  ;;  %v778_v44 = vmul.f32 %v1557_v16, %v1307_v34  ;;  %v482_v45 = vadd.f32 %v1549_v8, %v446_v36  ;;  %v483_v46 = vadd.f32 %v1549_v8, %v447_v37 }
  0x29   : > { %v498_v47 = vadd.f32 %v1549_v8, %v462_v38  ;;  %v499_v48 = vadd.f32 %v1549_v8, %v463_v40  ;;  %v793_v49 = vmul.f32 %v1557_v16, %v1338_v41  ;;  %v794_v50 = vmul.f32 %v1557_v16, %v1339_v42  ;;  %v1371_v40 = vld [vmem:[%s1526_s20 + $0x60] sm:$0xff]  }
  0x2a   : > { %v813_v51 = vadd.f32 %v1564_v19, %v777_v43  ;;  %v814_v52 = vadd.f32 %v1564_v19, %v778_v44  ;;  %v514_v53 = vmax.f32 %v482_v45, 0.0  ;;  %v515_v54 = vmax.f32 %v483_v46, 0.0  ;;  %v1378_v44 = vld [vmem:[%s1538_s27 + $0x20] sm:$0xff]  }
  0x2b   : > { %v530_v55 = vmax.f32 %v498_v47, 0.0  ;;  %v531_v56 = vmax.f32 %v499_v48, 0.0  ;;  %v829_v57 = vadd.f32 %v1564_v19, %v793_v49  ;;  %v830_v58 = vadd.f32 %v1564_v19, %v794_v50 }
  0x2c   : > { %v845_v61 = vmax.f32 %v813_v51, 0.0  ;;  %v846_v62 = vmax.f32 %v814_v52, 0.0  ;;  %v544_v0 = vpack.c.bf16 %v515_v54, %v514_v53  ;;  %v1246_v1 = vunpack.c.l.bf16 %v1362_v59 }
  0x2d   : > { %1194 = vmatmul.msk.bf16.gmra.mxu0 %vm563_vm1, %v543_v24  ;;  %v1247_v2 = vunpack.c.h.bf16 %v1362_v59  ;;  %v1278_v3 = vunpack.c.l.bf16 %v1370_v60  ;;  %v552_v4 = vpack.c.bf16 %v531_v56, %v530_v55  ;;  %v861_v5 = vmax.f32 %v829_v57, 0.0  ;;  %v1386_v55 = vld [vmem:[%s1538_s27 + $0x60] sm:$0xff]  }
  0x2e   : > { %1202 = vmatmul.msk.bf16.gmra.mxu2 %vm563_vm1, %v551_v28  ;;  %v862_v7 = vmax.f32 %v830_v58, 0.0  ;;  %v1279_v9 = vunpack.c.h.bf16 %v1370_v60  ;;  %v875_v10 = vpack.c.bf16 %v846_v62, %v845_v61  ;;  %v1310_v11 = vunpack.c.l.bf16 %v1377_v63 }
  0x2f   : > { %1214 = vmatmul.msk.bf16.gmra.mxu1 %vm897_vm2, %v874_v32  ;;  %v1311_v12 = vunpack.c.h.bf16 %v1377_v63  ;;  %v448_v14 = vmul.f32 %v1543_v6, %v1246_v1  ;;  %v449_v15 = vmul.f32 %v1543_v6, %v1247_v2  ;;  %v464_v17 = vmul.f32 %v1543_v6, %v1278_v3 }
  0x30   : > { %1222 = vmatmul.msk.bf16.gmra.mxu3 %vm897_vm2, %v882_v39  ;;  %v883_v18 = vpack.c.bf16 %v862_v7, %v861_v5  ;;  %v465_v20 = vmul.f32 %v1543_v6, %v1279_v9  ;;  %v1342_v21 = vunpack.c.l.bf16 %v1385_v13  ;;  %v1343_v22 = vunpack.c.h.bf16 %v1385_v13 }
  0x31   : > { %v779_v23 = vmul.f32 %v1557_v16, %v1310_v11  ;;  %v780_v24 = vmul.f32 %v1557_v16, %v1311_v12  ;;  %v484_v25 = vadd.f32 %v1549_v8, %v448_v14  ;;  %v485_v26 = vadd.f32 %v1549_v8, %v449_v15 }
  0x32   : > { %v500_v27 = vadd.f32 %v1549_v8, %v464_v17  ;;  %v501_v28 = vadd.f32 %v1549_v8, %v465_v20  ;;  %v795_v29 = vmul.f32 %v1557_v16, %v1342_v21  ;;  %v796_v30 = vmul.f32 %v1557_v16, %v1343_v22  ;;  %v1372_v22 = vld [vmem:[%s1526_s20 + $0x68] sm:$0xff]  }
  0x33   : > { %v815_v31 = vadd.f32 %v1564_v19, %v779_v23  ;;  %v816_v32 = vadd.f32 %v1564_v19, %v780_v24  ;;  %v516_v33 = vmax.f32 %v484_v25, 0.0  ;;  %v517_v34 = vmax.f32 %v485_v26, 0.0  ;;  %v1379_v23 = vld [vmem:[%s1538_s27 + $0x28] sm:$0xff]  }
  0x34   : > { %v532_v36 = vmax.f32 %v500_v27, 0.0  ;;  %v533_v37 = vmax.f32 %v501_v28, 0.0  ;;  %v831_v38 = vadd.f32 %v1564_v19, %v795_v29  ;;  %v832_v39 = vadd.f32 %v1564_v19, %v796_v30 }
  0x35   : > { %v847_v41 = vmax.f32 %v815_v31, 0.0  ;;  %v848_v42 = vmax.f32 %v816_v32, 0.0  ;;  %v1250_v43 = vunpack.c.l.bf16 %v1363_v35  ;;  %v545_v45 = vpack.c.bf16 %v517_v34, %v516_v33  ;;  %v1387_v32 = vld [vmem:[%s1538_s27 + $0x68] sm:$0xff]  }
  0x36   : > { %v1251_v46 = vunpack.c.h.bf16 %v1363_v35  ;;  %v1282_v47 = vunpack.c.l.bf16 %v1371_v40  ;;  %v1283_v48 = vunpack.c.h.bf16 %v1371_v40  ;;  %v553_v49 = vpack.c.bf16 %v533_v37, %v532_v36 }
  0x37   : > { %v863_v50 = vmax.f32 %v831_v38, 0.0  ;;  %v864_v51 = vmax.f32 %v832_v39, 0.0  ;;  %v876_v52 = vpack.c.bf16 %v848_v42, %v847_v41  ;;  %v1314_v53 = vunpack.c.l.bf16 %v1378_v44 }
  0x38   : > { %v1315_v54 = vunpack.c.h.bf16 %v1378_v44  ;;  %v450_v56 = vmul.f32 %v1543_v6, %v1250_v43  ;;  %v451_v57 = vmul.f32 %v1543_v6, %v1251_v46  ;;  %v466_v58 = vmul.f32 %v1543_v6, %v1282_v47 }
  0x39   : > { %v467_v59 = vmul.f32 %v1543_v6, %v1283_v48  ;;  %v884_v60 = vpack.c.bf16 %v864_v51, %v863_v50  ;;  %v1346_v61 = vunpack.c.l.bf16 %v1386_v55  ;;  %v1347_v62 = vunpack.c.h.bf16 %v1386_v55 }
  0x3a   : > { %v781_v63 = vmul.f32 %v1557_v16, %v1314_v53  ;;  %v486_v1 = vadd.f32 %v1549_v8, %v450_v56  ;;  %v487_v2 = vadd.f32 %v1549_v8, %v451_v57  ;;  %v502_v3 = vadd.f32 %v1549_v8, %v466_v58  ;;  %v1365_v56 = vld [vmem:[%s1526_s20 + $0x30] sm:$0xff]  }
  0x3b   : > { %v797_v5 = vmul.f32 %v1557_v16, %v1346_v61  ;;  %v798_v7 = vmul.f32 %v1557_v16, %v1347_v62  ;;  %v1286_v30 = vunpack.c.l.bf16 %v1372_v22  ;;  %v1287_v31 = vunpack.c.h.bf16 %v1372_v22  ;;  %v1373_v62 = vld [vmem:[%s1526_s20 + $0x70] sm:$0xff]  }
  0x3c   : > { %v817_v9 = vadd.f32 %v1564_v19, %v781_v63  ;;  %v518_v11 = vmax.f32 %v486_v1, 0.0  ;;  %v519_v12 = vmax.f32 %v487_v2, 0.0  ;;  %v534_v13 = vmax.f32 %v502_v3, 0.0  ;;  %v1380_v1 = vld [vmem:[%s1538_s27 + $0x30] sm:$0xff]  }
  0x3d   : > { %1195 = vmatmul.msk.bf16.gmra.mxu0 %vm563_vm1, %v544_v0  ;;  %v782_v0 = vmul.f32 %v1557_v16, %v1315_v54  ;;  %v833_v15 = vadd.f32 %v1564_v19, %v797_v5  ;;  %v834_v17 = vadd.f32 %v1564_v19, %v798_v7  ;;  %v1318_v34 = vunpack.c.l.bf16 %v1379_v23 }
  0x3e   : > { %1203 = vmatmul.msk.bf16.gmra.mxu2 %vm563_vm1, %v552_v4  ;;  %v503_v4 = vadd.f32 %v1549_v8, %v467_v59  ;;  %v849_v20 = vmax.f32 %v817_v9, 0.0  ;;  %v546_v24 = vpack.c.bf16 %v519_v12, %v518_v11  ;;  %v1319_v35 = vunpack.c.h.bf16 %v1379_v23 }
  0x3f   : > { %1215 = vmatmul.msk.bf16.gmra.mxu1 %vm897_vm2, %v875_v10  ;;  %v818_v10 = vadd.f32 %v1564_v19, %v782_v0  ;;  %v865_v28 = vmax.f32 %v833_v15, 0.0  ;;  %v866_v29 = vmax.f32 %v834_v17, 0.0  ;;  %v1350_v38 = vunpack.c.l.bf16 %v1387_v32 }
  0x40   : > { %1223 = vmatmul.msk.bf16.gmra.mxu3 %vm897_vm2, %v883_v18  ;;  %v535_v14 = vmax.f32 %v503_v4, 0.0  ;;  %v1364_v18 = vld [vmem:[%s1526_s20 + $0x28] sm:$0xff]   ;;  %v468_v40 = vmul.f32 %v1543_v6, %v1286_v30  ;;  %v469_v41 = vmul.f32 %v1543_v6, %v1287_v31  ;;  %v1351_v42 = vunpack.c.h.bf16 %v1387_v32 }
  0x41   : > { %v850_v21 = vmax.f32 %v818_v10, 0.0  ;;  %v1254_v26 = vunpack.c.l.bf16 %v1364_v18  ;;  %v1255_v27 = vunpack.c.h.bf16 %v1364_v18  ;;  %v885_v39 = vpack.c.bf16 %v866_v29, %v865_v28  ;;  %v1388_v10 = vld [vmem:[%s1538_s27 + $0x70] sm:$0xff]  }
  0x42   : > { %v554_v25 = vpack.c.bf16 %v535_v14, %v534_v13  ;;  %v783_v43 = vmul.f32 %v1557_v16, %v1318_v34  ;;  %v784_v44 = vmul.f32 %v1557_v16, %v1319_v35  ;;  %v799_v47 = vmul.f32 %v1557_v16, %v1350_v38 }
  0x43   : > { %v877_v33 = vpack.c.bf16 %v850_v21, %v849_v20  ;;  %v452_v36 = vmul.f32 %v1543_v6, %v1254_v26  ;;  %v453_v37 = vmul.f32 %v1543_v6, %v1255_v27  ;;  %v504_v48 = vadd.f32 %v1549_v8, %v468_v40 }
  0x44   : > { %v800_v50 = vmul.f32 %v1557_v16, %v1351_v42  ;;  %v819_v51 = vadd.f32 %v1564_v19, %v783_v43  ;;  %v835_v55 = vadd.f32 %v1564_v19, %v799_v47  ;;  %v1258_v63 = vunpack.c.l.bf16 %v1365_v56  ;;  %v1374_v42 = vld [vmem:[%s1526_s20 + $0x78] sm:$0xff]  }
  0x45   : > { %v489_v46 = vadd.f32 %v1549_v8, %v453_v37  ;;  %v536_v57 = vmax.f32 %v504_v48, 0.0  ;;  %v1259_v0 = vunpack.c.h.bf16 %v1365_v56  ;;  %v1290_v7 = vunpack.c.l.bf16 %v1373_v62 }
  0x46   : > { %v836_v59 = vadd.f32 %v1564_v19, %v800_v50  ;;  %v867_v3 = vmax.f32 %v835_v55, 0.0  ;;  %v1291_v9 = vunpack.c.h.bf16 %v1373_v62  ;;  %v1322_v12 = vunpack.c.l.bf16 %v1380_v1  ;;  %v1389_v55 = vld [vmem:[%s1538_s27 + $0x78] sm:$0xff]  }
  0x47   : > { %v521_v54 = vmax.f32 %v489_v46, 0.0  ;;  %v1323_v13 = vunpack.c.h.bf16 %v1380_v1  ;;  %v454_v14 = vmul.f32 %v1543_v6, %v1258_v63  ;;  %v455_v15 = vmul.f32 %v1543_v6, %v1259_v0 }
  0x48   : > { %v868_v5 = vmax.f32 %v836_v59, 0.0  ;;  %v1354_v17 = vunpack.c.l.bf16 %v1388_v10  ;;  %v1355_v18 = vunpack.c.h.bf16 %v1388_v10  ;;  %v470_v21 = vmul.f32 %v1543_v6, %v1290_v7 }
  0x49   : > { %v471_v22 = vmul.f32 %v1543_v6, %v1291_v9  ;;  %v785_v23 = vmul.f32 %v1557_v16, %v1322_v12  ;;  %v491_v26 = vadd.f32 %v1549_v8, %v455_v15  ;;  %v1294_v50 = vunpack.c.l.bf16 %v1374_v42 }
  0x4a   : > { %v886_v20 = vpack.c.bf16 %v868_v5, %v867_v3  ;;  %v801_v27 = vmul.f32 %v1557_v16, %v1354_v17  ;;  %v802_v28 = vmul.f32 %v1557_v16, %v1355_v18  ;;  %v506_v29 = vadd.f32 %v1549_v8, %v470_v21 }
  0x4b   : > { %v507_v30 = vadd.f32 %v1549_v8, %v471_v22  ;;  %v821_v31 = vadd.f32 %v1564_v19, %v785_v23  ;;  %v523_v34 = vmax.f32 %v491_v26, 0.0  ;;  %v472_v59 = vmul.f32 %v1543_v6, %v1294_v50 }
  0x4c   : > { %v837_v35 = vadd.f32 %v1564_v19, %v801_v27  ;;  %v538_v37 = vmax.f32 %v506_v29, 0.0  ;;  %v1359_v62 = vunpack.c.h.bf16 %v1389_v55 }
  0x4d   : > { %1196 = vmatmul.msk.bf16.gmra.mxu0 %vm563_vm1, %v545_v45  ;;  %v488_v45 = vadd.f32 %v1549_v8, %v452_v36  ;;  %v838_v36 = vadd.f32 %v1564_v19, %v802_v28  ;;  %v539_v38 = vmax.f32 %v507_v30, 0.0  ;;  %v853_v40 = vmax.f32 %v821_v31, 0.0 }
  0x4e   : > { %1204 = vmatmul.msk.bf16.gmra.mxu2 %vm563_vm1, %v553_v49  ;;  %v505_v49 = vadd.f32 %v1549_v8, %v469_v41  ;;  %v508_v3 = vadd.f32 %v1549_v8, %v472_v59  ;;  %v804_v5 = vmul.f32 %v1557_v16, %v1359_v62 }
  0x4f   : > { %1216 = vmatmul.msk.bf16.gmra.mxu1 %vm897_vm2, %v876_v52  ;;  %v820_v52 = vadd.f32 %v1564_v19, %v784_v44  ;;  %v520_v53 = vmax.f32 %v488_v45, 0.0  ;;  %v1381_v44 = vld [vmem:[%s1538_s27 + $0x38] sm:$0xff]   ;;  %v869_v45 = vmax.f32 %v837_v35, 0.0  ;;  %v870_v46 = vmax.f32 %v838_v36, 0.0 }
  0x50   : > { %1224 = vmatmul.msk.bf16.gmra.mxu3 %vm897_vm2, %v884_v60  ;;  %v537_v58 = vmax.f32 %v505_v49, 0.0  ;;  %v851_v60 = vmax.f32 %v819_v51, 0.0  ;;  %v556_v49 = vpack.c.bf16 %v539_v38, %v538_v37  ;;  %v1295_v51 = vunpack.c.h.bf16 %v1374_v42 }
  0x51   : > { %v852_v61 = vmax.f32 %v820_v52, 0.0  ;;  %v547_v2 = vpack.c.bf16 %v521_v54, %v520_v53  ;;  %v1326_v53 = vunpack.c.l.bf16 %v1381_v44  ;;  %v1327_v54 = vunpack.c.h.bf16 %v1381_v44 }
  0x52   : > { %v555_v4 = vpack.c.bf16 %v537_v58, %v536_v57  ;;  %v887_v56 = vpack.c.bf16 %v870_v46, %v869_v45  ;;  %v540_v12 = vmax.f32 %v508_v3, 0.0  ;;  %v840_v15 = vadd.f32 %v1564_v19, %v804_v5 }
  0x53   : > { %v878_v11 = vpack.c.bf16 %v852_v61, %v851_v60  ;;  %v473_v60 = vmul.f32 %v1543_v6, %v1295_v51  ;;  %v1358_v61 = vunpack.c.l.bf16 %v1389_v55  ;;  %v787_v63 = vmul.f32 %v1557_v16, %v1326_v53 }
  0x54   : > { %v788_v0 = vmul.f32 %v1557_v16, %v1327_v54  ;;  %v872_v22 = vmax.f32 %v840_v15, 0.0 }
  0x55   : > { %v823_v7 = vadd.f32 %v1564_v19, %v787_v63 }
  0x56   : > { %v824_v9 = vadd.f32 %v1564_v19, %v788_v0 }
  0x57   : > { %v855_v17 = vmax.f32 %v823_v7, 0.0 }
  0x58   : > { %v856_v18 = vmax.f32 %v824_v9, 0.0 }
  0x5d   : > { %1197 = vmatmul.msk.bf16.gmra.mxu0 %vm563_vm1, %v546_v24  ;;  %v786_v24 = vmul.f32 %v1557_v16, %v1323_v13 }
  0x5e   : > { %1205 = vmatmul.msk.bf16.gmra.mxu2 %vm563_vm1, %v554_v25  ;;  %v490_v25 = vadd.f32 %v1549_v8, %v454_v14 }
  0x5f   : > { %1217 = vmatmul.msk.bf16.gmra.mxu1 %vm897_vm2, %v877_v33  ;;  %v822_v32 = vadd.f32 %v1564_v19, %v786_v24  ;;  %v1751_v24 = vld [vmem:[#allocation2] ss:$0 sm:$0xff] }
  0x60   : > { %1225 = vmatmul.msk.bf16.gmra.mxu3 %vm897_vm2, %v885_v39  ;;  %v522_v33 = vmax.f32 %v490_v25, 0.0  ;;  %v1366_v39 = vld [vmem:[%s1526_s20 + $0x38] sm:$0xff]   ;;  %s1758_s20 = scalar_lea.vmem %s1867_s9, %s1192_s17 }
  0x61   : > { %v854_v41 = vmax.f32 %v822_v32, 0.0  ;;  %v1262_v47 = vunpack.c.l.bf16 %v1366_v39  ;;  %v1263_v48 = vunpack.c.h.bf16 %v1366_v39 }
  0x62   : > { %v548_v43 = vpack.c.bf16 %v523_v34, %v522_v33 }
  0x63   : > { %v879_v52 = vpack.c.bf16 %v854_v41, %v853_v40  ;;  %v456_v57 = vmul.f32 %v1543_v6, %v1262_v47  ;;  %v457_v58 = vmul.f32 %v1543_v6, %v1263_v48  ;;  %v803_v6 = vmul.f32 %v1557_v16, %v1358_v61 }
  0x64   : > { %v880_v16 = vpack.c.bf16 %v856_v18, %v855_v17 }
  0x65   : > { %v492_v1 = vadd.f32 %v1549_v8, %v456_v57  ;;  %v839_v14 = vadd.f32 %v1564_v19, %v803_v6 }
  0x67   : > { %v524_v10 = vmax.f32 %v492_v1, 0.0  ;;  %v871_v21 = vmax.f32 %v839_v14, 0.0 }
  0x69   : > { %v888_v23 = vpack.c.bf16 %v872_v22, %v871_v21 }
  0x6d   : > { %1198 = vmatmul.msk.bf16.gmra.mxu0 %vm563_vm1, %v547_v2  ;;  %v493_v2 = vadd.f32 %v1549_v8, %v457_v58 }
  0x6e   : > { %1206 = vmatmul.msk.bf16.gmra.mxu2 %vm563_vm1, %v555_v4  ;;  %v509_v4 = vadd.f32 %v1549_v8, %v473_v60 }
  0x6f   : > { %1218 = vmatmul.msk.bf16.gmra.mxu1 %vm897_vm2, %v878_v11  ;;  %v525_v11 = vmax.f32 %v493_v2, 0.0 }
  0x70   : > { %1226 = vmatmul.msk.bf16.gmra.mxu3 %vm897_vm2, %v886_v20  ;;  %v541_v13 = vmax.f32 %v509_v4, 0.0 }
  0x71   : > { %v549_v8 = vpack.c.bf16 %v525_v11, %v524_v10 }
  0x72   : > { %v557_v20 = vpack.c.bf16 %v541_v13, %v540_v12 }
  0x7d   : > { %1199 = vmatmul.msk.bf16.gmra.mxu0 %vm563_vm1, %v548_v43 }
  0x7e   : > { %1207 = vmatmul.msk.bf16.gmra.mxu2 %vm563_vm1, %v556_v49 }
  0x7f   : > { %1219 = vmatmul.msk.bf16.gmra.mxu1 %vm897_vm2, %v879_v52 }
  0x80   : > { %1227 = vmatmul.msk.bf16.gmra.mxu3 %vm897_vm2, %v887_v56 }
  0x8d   : > { %1200 = vmatmul.msk.bf16.gmra.mxu0 %vm563_vm1, %v549_v8 }
  0x8e   : > { %1208 = vmatmul.msk.bf16.gmra.mxu2 %vm563_vm1, %v557_v20 }
  0x8f   : > { %1220 = vmatmul.msk.bf16.gmra.mxu1 %vm897_vm2, %v880_v16 }
  0x90   : > { %1228 = vmatmul.msk.bf16.gmra.mxu3 %vm897_vm2, %v888_v23 }
  0x9a   : > { %v625_v19 = vpop.f32.mrf.mxu0 }
  0x9b   : > { %v626_v25 = vadd.f32 %v1751_v24, %v625_v19 }
  0x9c   : > { %v955_v26 = vpop.f32.mrf.mxu1 }
  0x9d   : > { %v1035_v27 = vadd.f32 %v955_v26, %v626_v25 }
  0x9f   : > { %1068 = vst.msk [vmem:[%s1758_s20] sm:$0xff] %vm1067_vm3, %v1035_v27 }
  0xa1   : > { %v665_v28 = vpop.f32.mrf.mxu2 }
  0xa2   : > { %v666_v29 = vadd.f32 %v1751_v24, %v665_v28  ;;  %v627_v30 = vpop.f32.mrf.mxu0 }
  0xa3   : > { %v628_v31 = vadd.f32 %v1751_v24, %v627_v30  ;;  %v995_v33 = vpop.f32.mrf.mxu3 }
  0xa4   : > { %v957_v32 = vpop.f32.mrf.mxu1  ;;  %v1051_v35 = vadd.f32 %v995_v33, %v666_v29 }
  0xa5   : > { %v1036_v34 = vadd.f32 %v957_v32, %v628_v31 }
  0xa6   : > { %1084 = vst.msk [vmem:[%s1758_s20 + $0x80] sm:$0xff] %vm1067_vm3, %v1051_v35 }
  0xa7   : > { %1069 = vst.msk [vmem:[%s1758_s20 + $0x8] sm:$0xff] %vm1067_vm3, %v1036_v34 }
  0xa9   : > { %v667_v36 = vpop.f32.mrf.mxu2 }
  0xaa   : > { %v668_v37 = vadd.f32 %v1751_v24, %v667_v36  ;;  %v630_v38 = vpop.f32.mrf.mxu0 }
  0xab   : > { %v631_v39 = vadd.f32 %v1751_v24, %v630_v38  ;;  %v997_v41 = vpop.f32.mrf.mxu3 }
  0xac   : > { %v960_v40 = vpop.f32.mrf.mxu1  ;;  %v1052_v43 = vadd.f32 %v997_v41, %v668_v37 }
  0xad   : > { %v1037_v42 = vadd.f32 %v960_v40, %v631_v39 }
  0xae   : > { %1085 = vst.msk [vmem:[%s1758_s20 + $0x88] sm:$0xff] %vm1067_vm3, %v1052_v43 }
  0xaf   : > { %1070 = vst.msk [vmem:[%s1758_s20 + $0x10] sm:$0xff] %vm1067_vm3, %v1037_v42 }
  0xb1   : > { %v670_v44 = vpop.f32.mrf.mxu2 }
  0xb2   : > { %v671_v45 = vadd.f32 %v1751_v24, %v670_v44  ;;  %v632_v46 = vpop.f32.mrf.mxu0 }
  0xb3   : > { %v633_v47 = vadd.f32 %v1751_v24, %v632_v46  ;;  %v1000_v49 = vpop.f32.mrf.mxu3 }
  0xb4   : > { %v962_v48 = vpop.f32.mrf.mxu1  ;;  %v1053_v51 = vadd.f32 %v1000_v49, %v671_v45 }
  0xb5   : > { %v1038_v50 = vadd.f32 %v962_v48, %v633_v47 }
  0xb6   : > { %1086 = vst.msk [vmem:[%s1758_s20 + $0x90] sm:$0xff] %vm1067_vm3, %v1053_v51 }
  0xb7   : > { %1071 = vst.msk [vmem:[%s1758_s20 + $0x18] sm:$0xff] %vm1067_vm3, %v1038_v50 }
  0xb9   : > { %v672_v52 = vpop.f32.mrf.mxu2 }
  0xba   : > { %v673_v53 = vadd.f32 %v1751_v24, %v672_v52  ;;  %v635_v54 = vpop.f32.mrf.mxu0 }
  0xbb   : > { %v636_v55 = vadd.f32 %v1751_v24, %v635_v54  ;;  %v1002_v57 = vpop.f32.mrf.mxu3 }
  0xbc   : > { %v965_v56 = vpop.f32.mrf.mxu1  ;;  %v1054_v59 = vadd.f32 %v1002_v57, %v673_v53 }
  0xbd   : > { %v1039_v58 = vadd.f32 %v965_v56, %v636_v55 }
  0xbe   : > { %1087 = vst.msk [vmem:[%s1758_s20 + $0x98] sm:$0xff] %vm1067_vm3, %v1054_v59 }
  0xbf   : > { %1072 = vst.msk [vmem:[%s1758_s20 + $0x20] sm:$0xff] %vm1067_vm3, %v1039_v58 }
  0xc1   : > { %v675_v60 = vpop.f32.mrf.mxu2 }
  0xc2   : > { %v676_v61 = vadd.f32 %v1751_v24, %v675_v60  ;;  %v637_v62 = vpop.f32.mrf.mxu0 }
  0xc3   : > { %v638_v63 = vadd.f32 %v1751_v24, %v637_v62  ;;  %v1005_v1 = vpop.f32.mrf.mxu3 }
  0xc4   : > { %v967_v0 = vpop.f32.mrf.mxu1  ;;  %v1055_v3 = vadd.f32 %v1005_v1, %v676_v61 }
  0xc5   : > { %v1040_v2 = vadd.f32 %v967_v0, %v638_v63 }
  0xc6   : > { %1088 = vst.msk [vmem:[%s1758_s20 + $0xa0] sm:$0xff] %vm1067_vm3, %v1055_v3 }
  0xc7   : > { %1073 = vst.msk [vmem:[%s1758_s20 + $0x28] sm:$0xff] %vm1067_vm3, %v1040_v2 }
  0xc9   : > { %v677_v4 = vpop.f32.mrf.mxu2 }
  0xca   : > { %v678_v6 = vadd.f32 %v1751_v24, %v677_v4  ;;  %v640_v5 = vpop.f32.mrf.mxu0 }
  0xcb   : > { %v641_v7 = vadd.f32 %v1751_v24, %v640_v5  ;;  %v1007_v10 = vpop.f32.mrf.mxu3 }
  0xcc   : > { %v970_v9 = vpop.f32.mrf.mxu1  ;;  %v1056_v12 = vadd.f32 %v1007_v10, %v678_v6 }
  0xcd   : > { %v1041_v11 = vadd.f32 %v970_v9, %v641_v7 }
  0xce   : > { %1089 = vst.msk [vmem:[%s1758_s20 + $0xa8] sm:$0xff] %vm1067_vm3, %v1056_v12 }
  0xcf   : > { %1074 = vst.msk [vmem:[%s1758_s20 + $0x30] sm:$0xff] %vm1067_vm3, %v1041_v11 }
  0xd1   : > { %v680_v13 = vpop.f32.mrf.mxu2 }
  0xd2   : > { %v681_v14 = vadd.f32 %v1751_v24, %v680_v13  ;;  %v642_v15 = vpop.f32.mrf.mxu0 }
  0xd3   : > { %v643_v17 = vadd.f32 %v1751_v24, %v642_v15  ;;  %v1010_v8 = vpop.f32.mrf.mxu3 }
  0xd4   : > { %v972_v18 = vpop.f32.mrf.mxu1  ;;  %v1057_v21 = vadd.f32 %v1010_v8, %v681_v14 }
  0xd5   : > { %v1042_v20 = vadd.f32 %v972_v18, %v643_v17 }
  0xd6   : > { %1090 = vst.msk [vmem:[%s1758_s20 + $0xb0] sm:$0xff] %vm1067_vm3, %v1057_v21 }
  0xd7   : > { %1075 = vst.msk [vmem:[%s1758_s20 + $0x38] sm:$0xff] %vm1067_vm3, %v1042_v20 }
  0xd9   : > { %v682_v22 = vpop.f32.mrf.mxu2 }
  0xda   : > { %v683_v16 = vadd.f32 %v1751_v24, %v682_v22  ;;  %v645_v23 = vpop.f32.mrf.mxu0 }
  0xdb   : > { %v646_v19 = vadd.f32 %v1751_v24, %v645_v23  ;;  %v1012_v26 = vpop.f32.mrf.mxu3 }
  0xdc   : > { %v975_v25 = vpop.f32.mrf.mxu1  ;;  %v1058_v28 = vadd.f32 %v1012_v26, %v683_v16 }
  0xdd   : > { %v1043_v27 = vadd.f32 %v975_v25, %v646_v19 }
  0xde   : > { %1091 = vst.msk [vmem:[%s1758_s20 + $0xb8] sm:$0xff] %vm1067_vm3, %v1058_v28 }
  0xdf   : > { %1076 = vst.msk [vmem:[%s1758_s20 + $0x40] sm:$0xff] %vm1067_vm3, %v1043_v27 }
  0xe1   : > { %v685_v29 = vpop.f32.mrf.mxu2 }
  0xe2   : > { %v686_v30 = vadd.f32 %v1751_v24, %v685_v29  ;;  %v647_v31 = vpop.f32.mrf.mxu0 }
  0xe3   : > { %v648_v32 = vadd.f32 %v1751_v24, %v647_v31  ;;  %v1015_v34 = vpop.f32.mrf.mxu3 }
  0xe4   : > { %v977_v33 = vpop.f32.mrf.mxu1  ;;  %v1059_v36 = vadd.f32 %v1015_v34, %v686_v30 }
  0xe5   : > { %v1044_v35 = vadd.f32 %v977_v33, %v648_v32 }
  0xe6   : > { %1092 = vst.msk [vmem:[%s1758_s20 + $0xc0] sm:$0xff] %vm1067_vm3, %v1059_v36 }
  0xe7   : > { %1077 = vst.msk [vmem:[%s1758_s20 + $0x48] sm:$0xff] %vm1067_vm3, %v1044_v35 }
  0xe9   : > { %v687_v37 = vpop.f32.mrf.mxu2 }
  0xea   : > { %v688_v38 = vadd.f32 %v1751_v24, %v687_v37  ;;  %v650_v39 = vpop.f32.mrf.mxu0 }
  0xeb   : > { %v651_v40 = vadd.f32 %v1751_v24, %v650_v39  ;;  %v1017_v42 = vpop.f32.mrf.mxu3 }
  0xec   : > { %v980_v41 = vpop.f32.mrf.mxu1  ;;  %v1060_v44 = vadd.f32 %v1017_v42, %v688_v38 }
  0xed   : > { %v1045_v43 = vadd.f32 %v980_v41, %v651_v40 }
  0xee   : > { %1093 = vst.msk [vmem:[%s1758_s20 + $0xc8] sm:$0xff] %vm1067_vm3, %v1060_v44 }
  0xef   : > { %1078 = vst.msk [vmem:[%s1758_s20 + $0x50] sm:$0xff] %vm1067_vm3, %v1045_v43 }
  0xf1   : > { %v690_v45 = vpop.f32.mrf.mxu2 }
  0xf2   : > { %v691_v46 = vadd.f32 %v1751_v24, %v690_v45  ;;  %v652_v47 = vpop.f32.mrf.mxu0 }
  0xf3   : > { %v653_v48 = vadd.f32 %v1751_v24, %v652_v47  ;;  %v1020_v50 = vpop.f32.mrf.mxu3 }
  0xf4   : > { %v982_v49 = vpop.f32.mrf.mxu1  ;;  %v1061_v52 = vadd.f32 %v1020_v50, %v691_v46 }
  0xf5   : > { %v1046_v51 = vadd.f32 %v982_v49, %v653_v48 }
  0xf6   : > { %1094 = vst.msk [vmem:[%s1758_s20 + $0xd0] sm:$0xff] %vm1067_vm3, %v1061_v52 }
  0xf7   : > { %1079 = vst.msk [vmem:[%s1758_s20 + $0x58] sm:$0xff] %vm1067_vm3, %v1046_v51 }
  0xf9   : > { %v692_v53 = vpop.f32.mrf.mxu2 }
  0xfa   : > { %v693_v54 = vadd.f32 %v1751_v24, %v692_v53  ;;  %v655_v55 = vpop.f32.mrf.mxu0 }
  0xfb   : > { %v656_v56 = vadd.f32 %v1751_v24, %v655_v55  ;;  %v1022_v58 = vpop.f32.mrf.mxu3 }
  0xfc   : > { %v985_v57 = vpop.f32.mrf.mxu1  ;;  %v1062_v60 = vadd.f32 %v1022_v58, %v693_v54 }
  0xfd   : > { %v1047_v59 = vadd.f32 %v985_v57, %v656_v56 }
  0xfe   : > { %1095 = vst.msk [vmem:[%s1758_s20 + $0xd8] sm:$0xff] %vm1067_vm3, %v1062_v60 }
  0xff   : > { %1080 = vst.msk [vmem:[%s1758_s20 + $0x60] sm:$0xff] %vm1067_vm3, %v1047_v59 }
 0x101   : > { %v695_v61 = vpop.f32.mrf.mxu2 }
 0x102   : > { %v696_v62 = vadd.f32 %v1751_v24, %v695_v61  ;;  %v657_v63 = vpop.f32.mrf.mxu0 }
 0x103   : > { %v658_v0 = vadd.f32 %v1751_v24, %v657_v63  ;;  %v1025_v2 = vpop.f32.mrf.mxu3 }
 0x104   : > { %v987_v1 = vpop.f32.mrf.mxu1  ;;  %v1063_v4 = vadd.f32 %v1025_v2, %v696_v62 }
 0x105   : > { %v1048_v3 = vadd.f32 %v987_v1, %v658_v0 }
 0x106   : > { %1096 = vst.msk [vmem:[%s1758_s20 + $0xe0] sm:$0xff] %vm1067_vm3, %v1063_v4 }
 0x107   : > { %1081 = vst.msk [vmem:[%s1758_s20 + $0x68] sm:$0xff] %vm1067_vm3, %v1048_v3 }
 0x109   : > { %v697_v6 = vpop.f32.mrf.mxu2 }
 0x10a   : > { %v698_v5 = vadd.f32 %v1751_v24, %v697_v6  ;;  %v660_v7 = vpop.f32.mrf.mxu0 }
 0x10b   : > { %v661_v9 = vadd.f32 %v1751_v24, %v660_v7  ;;  %v1027_v11 = vpop.f32.mrf.mxu3 }
 0x10c   : > { %v990_v10 = vpop.f32.mrf.mxu1  ;;  %v1064_v13 = vadd.f32 %v1027_v11, %v698_v5 }
 0x10d   : > { %v1049_v12 = vadd.f32 %v990_v10, %v661_v9 }
 0x10e   : > { %1097 = vst.msk [vmem:[%s1758_s20 + $0xe8] sm:$0xff] %vm1067_vm3, %v1064_v13 }
 0x10f   : > { %1082 = vst.msk [vmem:[%s1758_s20 + $0x70] sm:$0xff] %vm1067_vm3, %v1049_v12 }
 0x111   : > { %v700_v14 = vpop.f32.mrf.mxu2 }
 0x112   : > { %v701_v15 = vadd.f32 %v1751_v24, %v700_v14  ;;  %v662_v17 = vpop.f32.mrf.mxu0 }
 0x113   : > { %v663_v18 = vadd.f32 %v1751_v24, %v662_v17  ;;  %v1030_v20 = vpop.f32.mrf.mxu3 }
 0x114   : > { %v992_v8 = vpop.f32.mrf.mxu1  ;;  %v1065_v22 = vadd.f32 %v1030_v20, %v701_v15 }
 0x115   : > { %v1050_v21 = vadd.f32 %v992_v8, %v663_v18 }
 0x116   : > { %1098 = vst.msk [vmem:[%s1758_s20 + $0xf0] sm:$0xff] %vm1067_vm3, %v1065_v22 }
 0x117   : > { %1083 = vst.msk [vmem:[%s1758_s20 + $0x78] sm:$0xff] %vm1067_vm3, %v1050_v21 }
 0x119   : > { %v702_v16 = vpop.f32.mrf.mxu2 }
 0x11a   : > { %v703_v23 = vadd.f32 %v1751_v24, %v702_v16 }
 0x11b   : > { %v1032_v19 = vpop.f32.mrf.mxu3 }
 0x11c   : > { %v1066_v25 = vadd.f32 %v1032_v19, %v703_v23 }
 0x11e   : > { %1099 = vst.msk [vmem:[%s1758_s20 + $0xf8] sm:$0xff] %vm1067_vm3, %v1066_v25 }
 0x11f PF: > { %s20_s30 = sadd.s32 1, %s1456_s30  }
 0x120   : > { %p17_p7 = scmp.ge.s32.totalorder %s20_s30, 4  }
 0x122   :  { %19 = sbr.rel (!%p17_p7) target bundleno = 1 (0x1), region = 94 }
 0x127   :  { %1122 = vsyncpa [#allocation3], 1 }
 0x128   :  { %1124 = vsyncpa [#allocation3 + $0x1], 1 }

// kernel: bottleneck_forward.4
= control target key start
LH: loop header
LB: loop body
LE: loop exit
PB: predicated region body
PF: predicated region fallthrough
CT: control target
= control target key end

     0   :  { %13 = vsyncpa [#allocation3], 0  ;;  %s7674_s0 = inlined_call_operand.vmem [shape: bf16[2,256,4], index: 0, kind: input, shape index: {}]   ;;  %s7675_s1 = inlined_call_operand.vmem [shape: f32[1,4], index: 1, kind: input, shape index: {}]   ;;  %s7676_s2 = inlined_call_operand.vmem [shape: f32[1,4], index: 2, kind: input, shape index: {}]   ;;  %s7677_s3 = inlined_call_operand.vmem [shape: bf16[9,4,4], index: 3, kind: input, shape index: {}]   ;;  %s7678_s4 = inlined_call_operand.hbm [shape: f32[1,4], index: 4, kind: input, shape index: {}]   ;;  %s7679_s5 = inlined_call_operand.hbm [shape: f32[9,256,1], index: 5, kind: input, shape index: {}]   ;;  %s7680_s6 = inlined_call_operand.vmem [shape: bf16[2,256,4], index: 6, kind: output, shape index: {0}]   ;;  %s7681_s7 = inlined_call_operand.vmem [shape: f32[2,8,4], index: 7, kind: output, shape index: {1}]  }
   0x1   :  { %14 = vsyncpa [#allocation5], 0  ;;  %s5184_s24 = smov 0  }
   0x2 LB: > { %s229_s27 = sshll.u32 %s7678_s4, 4  ;;  %s5193_s28 = sadd.s32 4294967295, %s5137_s24   ;;  %s5137_s24 = sphi %s5184_s24, %s20_s24   ;;  %s230_s27 = int_to_ptr.hbm [resolvable:$true] %s229_s27 }
   0x3   : > { %p4774_p0 = scmp.ge.s32.totalorder %s5137_s24, 1  ;;  %p208_p1 = scmp.lt.s32.totalorder %s5137_s24, 3 }
   0x4   : > { %p5039_p2 = scmp.eq.s32.totalorder %s5193_s28, 0  ;;  %s5139_s30 = smov [#allocation2]  }
   0x5   : > { %p5198_p3 = pnand %p4774_p0, %p208_p1  ;;  %s231_s8 = sshll.u32 %s5139_s30, 4  ;;  %s232_s8 = int_to_ptr.vmem [resolvable:$true] %s231_s8 }
   0x6   : > { %s240_s11 = sshll.u32 %s7679_s5, 4  ;;  %s5140_s12 = smov [#allocation4]   ;;  %s241_s11 = int_to_ptr.hbm [resolvable:$true] %s240_s11 }
   0x7   : > { %p5032_p4 = pneg %p5198_p3  ;;  %s242_s13 = sshll.u32 %s5140_s12, 4  ;;  %s243_s13 = int_to_ptr.vmem [resolvable:$true] %s242_s13 }
   0x8   : > { %s5141_s14 = smov 128   ;;  %s5142_s15 = smov 8  }
   0x9   : > { %p5033_p5 = pnand %p5039_p2, %p5032_p4  ;;  %266 = sbr.rel (%p5198_p3) target bundleno = 1139 (0x473), region = 44 }
   0xb   : > { %5035 = dma.hbm_to_vmem [thread:$0]  (!%p5033_p5), %s230_s27, 16, %s232_s8, [#allocation3]  }
   0xc   : > { %5038 = dma.hbm_to_vmem [thread:$0]  (!%p5033_p5), %s241_s11, 36864, %s243_s13, [#allocation5], %s5141_s14, %s5141_s14, %s5142_s15  }
   0xe   : > { %5128 = dma.done.wait (%p5039_p2), [#allocation3], 16  }
   0xf   : > { %5130 = vsyncadd (%p5039_p2), [#allocation3], 4294967280 }
  0x10   : > { %5132 = dma.done.wait (%p5039_p2), [#allocation5], 36864  }
  0x11   : > { %5134 = vsyncadd (%p5039_p2), [#allocation5], 4294930432  ;;  %v5143_v0 = vmov 0   ;;  %v625_v1 = vld [vmem:[#allocation4 + $0x20] sm:$0xff]  ;;  %v623_v2 = vld [vmem:[#allocation4 + $0x10] sm:$0xff]  ;;  %vm1154_vm0 = vcmask 1041408  }
  0x12   : > { %5058 = vset.pattern.permute.xlu2 %v5143_v0  ;;  %5057 = vset.pattern.permute.xlu1 %v5143_v0  ;;  %v621_v3 = vld [vmem:[#allocation4] sm:$0xff]  ;;  %v626_v4 = vld [vmem:[#allocation4 + $0x28] sm:$0xff]  ;;  %v624_v5 = vld [vmem:[#allocation4 + $0x18] sm:$0xff]  ;;  %p308_p6 = scmp.lt.s32.totalorder %s5193_s28, 1  ;;  %vm1105_vm1 = vcmask 31744   ;;  %vm494_vm2 = vcmask 1040384  }
  0x13   : > { %5056 = vset.pattern.permute.xlu0 %v5143_v0  ;;  %675 = vperm.xlu2 %5058, %v625_v1   ;;  %v622_v6 = vld [vmem:[#allocation4 + $0x8] sm:$0xff]  ;;  %v629_v7 = vld [vmem:[#allocation4 + $0x40] sm:$0xff]  ;;  %v628_v8 = vld [vmem:[#allocation4 + $0x38] sm:$0xff]  ;;  %vm1387_vm3 = vcmask 1046528   ;;  %vm4458_vm4 = vcmask 27648  }
  0x14   : > { %665 = vperm.xlu1 %5057, %v623_v2   ;;  %655 = vperm.xlu0 %5056, %v621_v3   ;;  %v627_v9 = vld [vmem:[#allocation4 + $0x30] sm:$0xff]  ;;  %v632_v10 = vld [vmem:[#allocation4 + $0x58] sm:$0xff]  ;;  %v630_v12 = vld [vmem:[#allocation4 + $0x48] sm:$0xff]  ;;  %s8366_s28 = smov (!%p308_p6, %s5193_s28), 1 }
  0x15   : > { %v631_v11 = vld [vmem:[#allocation4 + $0x50] sm:$0xff]  ;;  %v634_v14 = vld [vmem:[#allocation4 + $0x68] sm:$0xff]  ;;  %v633_v15 = vld [vmem:[#allocation4 + $0x60] sm:$0xff]  ;;  %s4940_s18 = sshll.u32 %s8366_s28, 7 }
  0x16   : > { %v635_v13 = vld [vmem:[#allocation4 + $0x70] sm:$0xff]  ;;  %v638_v16 = vld [vmem:[#allocation4 + $0x88] sm:$0xff]  ;;  %v637_v17 = vld [vmem:[#allocation4 + $0x80] sm:$0xff]  ;;  %s5293_s21 = scalar_lea.vmem %s7674_s0, %s4940_s18  ;;  %s7336_s25 = scalar_lea.vmem %s7680_s6, %s4940_s18 }
  0x17   : > { %v636_v18 = vld [vmem:[#allocation4 + $0x78] sm:$0xff]  ;;  %v641_v19 = vld [vmem:[#allocation4 + $0xa0] sm:$0xff]  ;;  %v639_v21 = vld [vmem:[#allocation4 + $0x90] sm:$0xff]  ;;  %s4785_s18 = sshll.u32 %s8366_s28, 3 }
  0x18   : > { %v640_v20 = vld [vmem:[#allocation4 + $0x98] sm:$0xff]  ;;  %v643_v23 = vld [vmem:[#allocation4 + $0xb0] sm:$0xff]  ;;  %v642_v24 = vld [vmem:[#allocation4 + $0xa8] sm:$0xff]  ;;  %s321_s29 = scalar_lea.vmem %s7681_s7, %s4785_s18 }
  0x19   : > { %v644_v22 = vld [vmem:[#allocation4 + $0xb8] sm:$0xff]  ;;  %v647_v25 = vld [vmem:[#allocation4 + $0xd0] sm:$0xff]  ;;  %v646_v26 = vld [vmem:[#allocation4 + $0xc8] sm:$0xff] }
  0x1a   : > { %v645_v27 = vld [vmem:[#allocation4 + $0xc0] sm:$0xff]  ;;  %v650_v28 = vld [vmem:[#allocation4 + $0xe8] sm:$0xff]  ;;  %v648_v30 = vld [vmem:[#allocation4 + $0xd8] sm:$0xff] }
  0x1b   : > { %680 = vperm.xlu2 %5058, %v626_v4   ;;  %v649_v29 = vld [vmem:[#allocation4 + $0xe0] sm:$0xff]  ;;  %v652_v32 = vld [vmem:[#allocation4 + $0xf8] sm:$0xff]  ;;  %v651_v33 = vld [vmem:[#allocation4 + $0xf0] sm:$0xff] }
  0x1c   : > { %670 = vperm.xlu1 %5057, %v624_v5   ;;  %660 = vperm.xlu0 %5056, %v622_v6   ;;  %v863_v31 = vld [vmem:[#allocation4 + $0x100] sm:$0xff]  ;;  %v866_v34 = vld [vmem:[#allocation4 + $0x118] sm:$0xff]  ;;  %v865_v35 = vld [vmem:[#allocation4 + $0x110] sm:$0xff] }
  0x1d   : > { %v864_v36 = vld [vmem:[#allocation4 + $0x108] sm:$0xff]  ;;  %v869_v38 = vld [vmem:[#allocation4 + $0x130] sm:$0xff]  ;;  %v867_v40 = vld [vmem:[#allocation4 + $0x120] sm:$0xff] }
  0x1e   : > { %v868_v39 = vld [vmem:[#allocation4 + $0x128] sm:$0xff]  ;;  %v871_v43 = vld [vmem:[#allocation4 + $0x140] sm:$0xff]  ;;  %v870_v44 = vld [vmem:[#allocation4 + $0x138] sm:$0xff] }
  0x1f   : > { %v872_v42 = vld [vmem:[#allocation4 + $0x148] sm:$0xff]  ;;  %v875_v46 = vld [vmem:[#allocation4 + $0x160] sm:$0xff]  ;;  %v874_v47 = vld [vmem:[#allocation4 + $0x158] sm:$0xff] }
  0x20   : > { %v873_v48 = vld [vmem:[#allocation4 + $0x150] sm:$0xff]  ;;  %v878_v52 = vld [vmem:[#allocation4 + $0x178] sm:$0xff]  ;;  %v876_v54 = vld [vmem:[#allocation4 + $0x168] sm:$0xff] }
  0x21   : > { %v877_v53 = vld [vmem:[#allocation4 + $0x170] sm:$0xff]  ;;  %v880_v59 = vld [vmem:[#allocation4 + $0x188] sm:$0xff]  ;;  %v879_v60 = vld [vmem:[#allocation4 + $0x180] sm:$0xff] }
  0x22   : > { %v881_v58 = vld [vmem:[#allocation4 + $0x190] sm:$0xff]  ;;  %v884_v0 = vld [vmem:[#allocation4 + $0x1a8] sm:$0xff]  ;;  %v883_v1 = vld [vmem:[#allocation4 + $0x1a0] sm:$0xff] }
  0x23   : > { %695 = vperm.xlu2 %5058, %v629_v7   ;;  %v882_v2 = vld [vmem:[#allocation4 + $0x198] sm:$0xff]  ;;  %v887_v6 = vld [vmem:[#allocation4 + $0x1c0] sm:$0xff] }
  0x24   : > { %690 = vperm.xlu1 %5057, %v628_v8   ;;  %685 = vperm.xlu0 %5056, %v627_v9   ;;  %v886_v7 = vld [vmem:[#allocation4 + $0x1b8] sm:$0xff]  ;;  %v885_v8 = vld [vmem:[#allocation4 + $0x1b0] sm:$0xff] }
  0x2b   : > { %710 = vperm.xlu2 %5058, %v632_v10  }
  0x2c   : > { %705 = vperm.xlu1 %5057, %v631_v11   ;;  %700 = vperm.xlu0 %5056, %v630_v12   ;;  %v890_v12 = vld [vmem:[#allocation4 + $0x1d8] sm:$0xff] }
  0x33   : > { %725 = vperm.xlu2 %5058, %v635_v13   ;;  %v889_v13 = vld [vmem:[#allocation4 + $0x1d0] sm:$0xff] }
  0x34   : > { %720 = vperm.xlu1 %5057, %v634_v14   ;;  %715 = vperm.xlu0 %5056, %v633_v15   ;;  %v888_v14 = vld [vmem:[#allocation4 + $0x1c8] sm:$0xff] }
  0x3b   : > { %740 = vperm.xlu2 %5058, %v638_v16  }
  0x3c   : > { %735 = vperm.xlu1 %5057, %v637_v17   ;;  %730 = vperm.xlu0 %5056, %v636_v18   ;;  %v893_v18 = vld [vmem:[#allocation4 + $0x1f0] sm:$0xff] }
  0x43   : > { %755 = vperm.xlu2 %5058, %v641_v19   ;;  %v892_v19 = vld [vmem:[#allocation4 + $0x1e8] sm:$0xff] }
  0x44   : > { %750 = vperm.xlu1 %5057, %v640_v20   ;;  %745 = vperm.xlu0 %5056, %v639_v21   ;;  %v891_v20 = vld [vmem:[#allocation4 + $0x1e0] sm:$0xff] }
  0x4b   : > { %770 = vperm.xlu2 %5058, %v644_v22  }
  0x4c   : > { %765 = vperm.xlu1 %5057, %v643_v23   ;;  %760 = vperm.xlu0 %5056, %v642_v24   ;;  %v1487_v24 = vld [vmem:[#allocation4 + $0x208] sm:$0xff] }
  0x53   : > { %785 = vperm.xlu2 %5058, %v647_v25   ;;  %v1486_v25 = vld [vmem:[#allocation4 + $0x200] sm:$0xff] }
  0x54   : > { %780 = vperm.xlu1 %5057, %v646_v26   ;;  %775 = vperm.xlu0 %5056, %v645_v27   ;;  %v894_v26 = vld [vmem:[#allocation4 + $0x1f8] sm:$0xff] }
  0x5b   : > { %800 = vperm.xlu2 %5058, %v650_v28  }
  0x5c   : > { %795 = vperm.xlu1 %5057, %v649_v29   ;;  %790 = vperm.xlu0 %5056, %v648_v30   ;;  %v4786_v30 = vld [vmem:[%s7677_s3 + $0x2] sm:$0x3] }
  0x63   : > { %897 = vperm.xlu2 %5058, %v863_v31   ;;  %v1156_v31 = vsel %vm1154_vm0, %v4786_v30, 0  ;;  %v4943_v30 = vld [vmem:[%s5293_s21] sm:$0xff]  }
  0x64   : > { %810 = vperm.xlu1 %5057, %v652_v32   ;;  %805 = vperm.xlu0 %5056, %v651_v33   ;;  %v1490_v32 = vld [vmem:[#allocation4 + $0x220] sm:$0xff]  ;;  %v1489_v33 = vld [vmem:[#allocation4 + $0x218] sm:$0xff] }
  0x65   : > { %1165 = vmatpush.bf16.msra.mxu0 %v1156_v31  ;;  %5021 = vmatpush.bf16.msra.mxu1 %v1156_v31 }
  0x66   : > { %5022 = vmatpush.bf16.msra.mxu2 %v1156_v31  ;;  %5023 = vmatpush.bf16.msra.mxu3 %v1156_v31 }
  0x6b   : > { %912 = vperm.xlu2 %5058, %v866_v34   ;;  %v1488_v34 = vld [vmem:[#allocation4 + $0x210] sm:$0xff] }
  0x6c   : > { %907 = vperm.xlu1 %5057, %v865_v35   ;;  %902 = vperm.xlu0 %5056, %v864_v36  }
  0x6d   : > { %v5219_v37 = vpop.permute.xlu2 %675 }
  0x73   : > { %927 = vperm.xlu2 %5058, %v869_v38  }
  0x74   : > { %922 = vperm.xlu1 %5057, %v868_v39   ;;  %917 = vperm.xlu0 %5056, %v867_v40   ;;  %v1493_v39 = vld [vmem:[#allocation4 + $0x238] sm:$0xff]  ;;  %v1492_v40 = vld [vmem:[#allocation4 + $0x230] sm:$0xff] }
  0x75   : > { %v5221_v41 = vpop.permute.xlu2 %680 }
  0x7b   : > { %942 = vperm.xlu2 %5058, %v872_v42   ;;  %v1491_v42 = vld [vmem:[#allocation4 + $0x228] sm:$0xff] }
  0x7c   : > { %937 = vperm.xlu1 %5057, %v871_v43   ;;  %932 = vperm.xlu0 %5056, %v870_v44  }
  0x7d   : > { %v5223_v45 = vpop.permute.xlu2 %695 }
  0x83   : > { %957 = vperm.xlu2 %5058, %v875_v46   ;;  %v5020_v46 = vld [vmem:[%s5293_s21 + $0x78] sm:$0xff]  }
  0x84   : > { %952 = vperm.xlu1 %5057, %v874_v47   ;;  %947 = vperm.xlu0 %5056, %v873_v48   ;;  %v1496_v48 = vld [vmem:[#allocation4 + $0x250] sm:$0xff] }
  0x85   : > { %v5225_v49 = vpop.permute.xlu2 %710 }
  0x86   : > { %v5227_v50 = vpop.permute.xlu1 %665  ;;  %v5229_v51 = vpop.permute.xlu0 %655 }
  0x8b   : > { %972 = vperm.xlu2 %5058, %v878_v52   ;;  %v1495_v52 = vld [vmem:[#allocation4 + $0x248] sm:$0xff] }
  0x8c   : > { %967 = vperm.xlu1 %5057, %v877_v53   ;;  %962 = vperm.xlu0 %5056, %v876_v54   ;;  %v5305_v53 = vld [vmem:[%s7675_s1] ss:$0 sm:$0xff]  ;;  %v5005_v54 = vunpack.c.h.bf16 %v5020_v46 }
  0x8d   : > { %v5231_v55 = vpop.permute.xlu2 %725 }
  0x8e   : > { %7862 = vst [vmem:[#allocation8_spill] sm:$0xff] %v5231_v55  ;;  %v5233_v56 = vpop.permute.xlu1 %670  ;;  %v5235_v57 = vpop.permute.xlu0 %660 }
  0x93   : > { %987 = vperm.xlu2 %5058, %v881_v58   ;;  %v5004_v58 = vunpack.c.l.bf16 %v5020_v46  ;;  %v4945_v46 = vunpack.c.h.bf16 %v4943_v30 }
  0x94   : > { %982 = vperm.xlu1 %5057, %v880_v59   ;;  %977 = vperm.xlu0 %5056, %v879_v60   ;;  %v1494_v59 = vld [vmem:[#allocation4 + $0x240] sm:$0xff]  ;;  %v5310_v60 = vld [vmem:[%s7676_s2] ss:$0 sm:$0xff] }
  0x95   : > { %v5237_v61 = vpop.permute.xlu2 %740 }
  0x96   : > { %7863 = vst [vmem:[#allocation9_spill] sm:$0xff] %v5237_v61  ;;  %v5239_v62 = vpop.permute.xlu1 %690  ;;  %v5241_v63 = vpop.permute.xlu0 %685 }
  0x9b   : > { %1002 = vperm.xlu2 %5058, %v884_v0   ;;  %v422_v0 = vmul.f32 %v5305_v53, %v5005_v54  ;;  %v1500_v54 = vld [vmem:[#allocation4 + $0x270] sm:$0xff] }
  0x9c   : > { %997 = vperm.xlu1 %5057, %v883_v1   ;;  %992 = vperm.xlu0 %5056, %v882_v2   ;;  %v421_v1 = vmul.f32 %v5305_v53, %v5004_v58 }
  0x9d   : > { %v5243_v3 = vpop.permute.xlu2 %755 }
  0x9e   : > { %7864 = vst [vmem:[#allocation10_spill] sm:$0xff] %v5243_v3  ;;  %v5245_v4 = vpop.permute.xlu1 %705  ;;  %v5247_v5 = vpop.permute.xlu0 %700 }
  0xa3   : > { %1017 = vperm.xlu2 %5058, %v887_v6  }
  0xa4   : > { %1012 = vperm.xlu1 %5057, %v886_v7   ;;  %1007 = vperm.xlu0 %5056, %v885_v8   ;;  %v1499_v8 = vld [vmem:[#allocation4 + $0x268] sm:$0xff] }
  0xa5   : > { %v5249_v9 = vpop.permute.xlu2 %770 }
  0xa6   : > { %7865 = vst [vmem:[#allocation11_spill] sm:$0xff] %v5249_v9  ;;  %v5251_v10 = vpop.permute.xlu1 %720  ;;  %v5253_v11 = vpop.permute.xlu0 %715  ;;  %v1512_v9 = vld [vmem:[#allocation4 + $0x2d0] sm:$0xff] }
  0xab   : > { %1032 = vperm.xlu2 %5058, %v890_v12   ;;  %v1498_v12 = vld [vmem:[#allocation4 + $0x260] sm:$0xff] }
  0xac   : > { %1027 = vperm.xlu1 %5057, %v889_v13   ;;  %1022 = vperm.xlu0 %5056, %v888_v14   ;;  %v458_v13 = vadd.f32 %v5310_v60, %v422_v0  ;;  %v457_v14 = vadd.f32 %v5310_v60, %v421_v1  ;;  %v392_v0 = vmul.f32 %v5305_v53, %v4945_v46 }
  0xad   : > { %v5255_v15 = vpop.permute.xlu2 %785 }
  0xae   : > { %7866 = vst [vmem:[#allocation12_spill] sm:$0xff] %v5255_v15  ;;  %v5257_v16 = vpop.permute.xlu1 %735  ;;  %v5259_v17 = vpop.permute.xlu0 %730 }
  0xaf   : > { %7867 = vst [vmem:[#allocation13_spill] sm:$0xff] %v5257_v16  ;;  %v1902_v16 = vld [vmem:[#allocation4 + $0x308] sm:$0xff] }
  0xb0   : > { %7868 = vst [vmem:[#allocation14_spill] sm:$0xff] %v5259_v17  ;;  %v1907_v17 = vld [vmem:[#allocation4 + $0x330] sm:$0xff] }
  0xb3   : > { %1047 = vperm.xlu2 %5058, %v893_v18   ;;  %v1497_v18 = vld [vmem:[#allocation4 + $0x258] sm:$0xff] }
  0xb4   : > { %1042 = vperm.xlu1 %5057, %v892_v19   ;;  %1037 = vperm.xlu0 %5056, %v891_v20   ;;  %v5008_v19 = vld [vmem:[%s5293_s21 + $0x18] sm:$0xff]   ;;  %v5321_v20 = vmax.f32 %v458_v13, 0.0 }
  0xb5   : > { %v5261_v21 = vpop.permute.xlu2 %800 }
  0xb6   : > { %7869 = vst [vmem:[#allocation15_spill] sm:$0xff] %v5261_v21  ;;  %v5263_v22 = vpop.permute.xlu1 %750  ;;  %v5265_v23 = vpop.permute.xlu0 %745 }
  0xb7   : > { %7870 = vst [vmem:[#allocation16_spill] sm:$0xff] %v5263_v22 }
  0xb8   : > { %7871 = vst [vmem:[#allocation17_spill] sm:$0xff] %v5265_v23 }
  0xb9   : > { %7880 = vst [vmem:[#allocation26_spill] sm:$0xff] %v5321_v20 }
  0xbb   : > { %1525 = vperm.xlu2 %5058, %v1487_v24   ;;  %v5323_v24 = vmax.f32 %v457_v14, 0.0 }
  0xbc   : > { %1520 = vperm.xlu1 %5057, %v1486_v25   ;;  %1052 = vperm.xlu0 %5056, %v894_v26  }
  0xbd   : > { %v5267_v27 = vpop.permute.xlu2 %897  ;;  %7881 = vst [vmem:[#allocation27_spill] sm:$0xff] %v5323_v24 }
  0xbe   : > { %v5269_v28 = vpop.permute.xlu1 %765  ;;  %v5271_v29 = vpop.permute.xlu0 %760 }
  0xbf   : > { %7872 = vst [vmem:[#allocation18_spill] sm:$0xff] %v5269_v28 }
  0xc0   : > { %7873 = vst [vmem:[#allocation19_spill] sm:$0xff] %v5271_v29 }
  0xc3   : > { %1540 = vperm.xlu2 %5058, %v1490_v32   ;;  %v4944_v32 = vunpack.c.l.bf16 %v4943_v30  ;;  %v428_v30 = vadd.f32 %v5310_v60, %v392_v0 }
  0xc4   : > { %1535 = vperm.xlu1 %5057, %v1489_v33   ;;  %1530 = vperm.xlu0 %5056, %v1488_v34   ;;  %v1055_v33 = vmul.f32 %v5267_v27, %v5323_v24 }
  0xc5   : > { %v5281_v35 = vpop.permute.xlu2 %912  ;;  %v391_v58 = vmul.f32 %v5305_v53, %v4944_v32  ;;  %v1503_v32 = vld [vmem:[#allocation4 + $0x288] sm:$0xff]  ;;  %v5354_v46 = vmax.f32 %v428_v30, 0.0 }
  0xc6   : > { %v5283_v36 = vpop.permute.xlu1 %780  ;;  %v5285_v38 = vpop.permute.xlu0 %775 }
  0xc7   : > { %7874 = vst [vmem:[#allocation20_spill] sm:$0xff] %v5283_v36  ;;  %v427_v13 = vadd.f32 %v5310_v60, %v391_v58  ;;  %v1513_v36 = vld [vmem:[#allocation4 + $0x2d8] sm:$0xff] }
  0xc8   : > { %7875 = vst [vmem:[#allocation21_spill] sm:$0xff] %v5285_v38 }
  0xc9   : > { %7885 = vst [vmem:[#allocation31_spill] sm:$0xff] %v5354_v46 }
  0xcb   : > { %1555 = vperm.xlu2 %5058, %v1493_v39   ;;  %v4956_v39 = vunpack.c.l.bf16 %v5008_v19 }
  0xcc   : > { %1550 = vperm.xlu1 %5057, %v1492_v40   ;;  %1545 = vperm.xlu0 %5056, %v1491_v42   ;;  %v4957_v40 = vunpack.c.h.bf16 %v5008_v19  ;;  %v1502_v42 = vld [vmem:[#allocation4 + $0x280] sm:$0xff]  ;;  %v1505_v19 = vld [vmem:[#allocation4 + $0x298] sm:$0xff] }
  0xcd   : > { %v5295_v43 = vpop.permute.xlu2 %927 }
  0xce   : > { %v5297_v44 = vpop.permute.xlu1 %795  ;;  %v5300_v47 = vpop.permute.xlu0 %790  ;;  %v398_v27 = vmul.f32 %v5305_v53, %v4957_v40 }
  0xcf   : > { %7876 = vst [vmem:[#allocation22_spill] sm:$0xff] %v5297_v44  ;;  %v5010_v44 = vld [vmem:[%s5293_s21 + $0x28] sm:$0xff]  }
  0xd0   : > { %7877 = vst [vmem:[#allocation23_spill] sm:$0xff] %v5300_v47 }
  0xd3   : > { %1570 = vperm.xlu2 %5058, %v1496_v48  }
  0xd4   : > { %1565 = vperm.xlu1 %5057, %v1495_v52   ;;  %1560 = vperm.xlu0 %5056, %v1494_v59   ;;  %v1501_v52 = vld [vmem:[#allocation4 + $0x278] sm:$0xff]  ;;  %v397_v59 = vmul.f32 %v5305_v53, %v4956_v39  ;;  %v5006_v39 = vld [vmem:[%s5293_s21 + $0x8] sm:$0xff]  }
  0xd5   : > { %v943_v2 = vpop.permute.xlu2 %942 }
  0xd6   : > { %v5314_v6 = vpop.permute.xlu1 %810  ;;  %v5316_v7 = vpop.permute.xlu0 %805  ;;  %v433_v14 = vadd.f32 %v5310_v60, %v397_v59 }
  0xd7   : > { %7878 = vst [vmem:[#allocation24_spill] sm:$0xff] %v5314_v6 }
  0xd8   : > { %7879 = vst [vmem:[#allocation25_spill] sm:$0xff] %v5316_v7  ;;  %v5350_v40 = vmax.f32 %v433_v14, 0.0  ;;  %v4948_v14 = vunpack.c.l.bf16 %v5006_v39  ;;  %v1506_v7 = vld [vmem:[#allocation4 + $0x2a0] sm:$0xff] }
  0xda   : > { %7883 = vst [vmem:[#allocation29_spill] sm:$0xff] %v5350_v40 }
  0xdb   : > { %1585 = vperm.xlu2 %5058, %v1499_v8  }
  0xdc   : > { %1580 = vperm.xlu1 %5057, %v1498_v12   ;;  %1575 = vperm.xlu0 %5056, %v1497_v18   ;;  %v434_v18 = vadd.f32 %v5310_v60, %v398_v27 }
  0xdd   : > { %v5325_v25 = vpop.permute.xlu2 %957 }
  0xde   : > { %v908_v26 = vpop.permute.xlu1 %907  ;;  %v903_v31 = vpop.permute.xlu0 %902 }
  0xdf   : > { %v1056_v34 = vmul.f32 %v903_v31, %v5321_v20  ;;  %v1504_v31 = vld [vmem:[#allocation4 + $0x290] sm:$0xff] }
  0xe1   : > { %v1087_v48 = vpack.c.bf16 %v1056_v34, %v1055_v33  ;;  %v5009_v33 = vld [vmem:[%s5293_s21 + $0x20] sm:$0xff]   ;;  %v5347_v34 = vmax.f32 %v427_v13, 0.0 }
  0xe2   : > { %v4960_v58 = vunpack.c.l.bf16 %v5009_v33  ;;  %v4961_v59 = vunpack.c.h.bf16 %v5009_v33 }
  0xe3   : > { %4787 = vmatmul.msk.bf16.vlgmr.msra.gmra.mxu0 %vm1105_vm1, %v1087_v48  ;;  %1600 = vperm.xlu2 %5058, %v1502_v42   ;;  %7882 = vst [vmem:[#allocation28_spill] sm:$0xff] %v5347_v34  ;;  %v5352_v42 = vmax.f32 %v434_v18, 0.0  ;;  %v1057_v48 = vmul.f32 %v908_v26, %v5347_v34  ;;  %v4949_v18 = vunpack.c.h.bf16 %v5006_v39 }
  0xe4   : > { %1595 = vperm.xlu1 %5057, %v1501_v52   ;;  %1590 = vperm.xlu0 %5056, %v1500_v54   ;;  %v399_v6 = vmul.f32 %v5305_v53, %v4960_v58  ;;  %v400_v33 = vmul.f32 %v5305_v53, %v4961_v59 }
  0xe5   : > { %v5336_v1 = vpop.permute.xlu2 %972  ;;  %7884 = vst [vmem:[#allocation30_spill] sm:$0xff] %v5352_v42  ;;  %v1064_v27 = vmul.f32 %v943_v2, %v5352_v42  ;;  %v393_v2 = vmul.f32 %v5305_v53, %v4948_v14 }
  0xe6   : > { %v5338_v8 = vpop.permute.xlu1 %922  ;;  %v5340_v12 = vpop.permute.xlu0 %917  ;;  %v435_v58 = vadd.f32 %v5310_v60, %v399_v6  ;;  %v436_v59 = vadd.f32 %v5310_v60, %v400_v33  ;;  %v5007_v33 = vld [vmem:[%s5293_s21 + $0x10] sm:$0xff]  }
  0xe7   : > { %v4953_v47 = vunpack.c.h.bf16 %v5007_v33  ;;  %v4952_v38 = vunpack.c.l.bf16 %v5007_v33 }
  0xe9   : > { %v396_v28 = vmul.f32 %v5305_v53, %v4953_v47 }
  0xeb   : > { %1615 = vperm.xlu2 %5058, %v1505_v19   ;;  %v1058_v19 = vmul.f32 %v5281_v35, %v5354_v46  ;;  %v5012_v35 = vld [vmem:[%s5293_s21 + $0x38] sm:$0xff]  }
  0xec   : > { %1610 = vperm.xlu1 %5057, %v1504_v31   ;;  %1605 = vperm.xlu0 %5056, %v1503_v32   ;;  %v1508_v31 = vld [vmem:[#allocation4 + $0x2b0] sm:$0xff]  ;;  %v1507_v32 = vld [vmem:[#allocation4 + $0x2a8] sm:$0xff] }
  0xed   : > { %v5357_v52 = vpop.permute.xlu2 %987  ;;  %v1088_v26 = vpack.c.bf16 %v1058_v19, %v1057_v48  ;;  %v1511_v19 = vld [vmem:[#allocation4 + $0x2c8] sm:$0xff] }
  0xee   : > { %v938_v54 = vpop.permute.xlu1 %937  ;;  %v5361_v13 = vpop.permute.xlu0 %932 }
  0xef   : > { %v1063_v0 = vmul.f32 %v938_v54, %v5350_v40  ;;  %v394_v54 = vmul.f32 %v5305_v53, %v4949_v18  ;;  %v4973_v18 = vunpack.c.h.bf16 %v5012_v35 }
  0xf1   : > { %v1091_v30 = vpack.c.bf16 %v1064_v27, %v1063_v0  ;;  %v429_v0 = vadd.f32 %v5310_v60, %v393_v2  ;;  %v430_v14 = vadd.f32 %v5310_v60, %v394_v54  ;;  %v406_v2 = vmul.f32 %v5305_v53, %v4973_v18 }
  0xf3   : > { %4791 = vmatmul.msk.bf16.vlgmr.msra.gmra.mxu1 %vm1105_vm1, %v1091_v30  ;;  %4788 = vmatmul.msk.bf16.gmra.mxu0 %vm1105_vm1, %v1088_v26  ;;  %v4972_v30 = vunpack.c.l.bf16 %v5012_v35  ;;  %v5378_v26 = vmax.f32 %v435_v58, 0.0  ;;  %v5382_v21 = vmax.f32 %v429_v0, 0.0  ;;  %v5384_v6 = vmax.f32 %v430_v14, 0.0 }
  0xf4   : > { %1630 = vperm.xlu2 %5058, %v1508_v31   ;;  %1625 = vperm.xlu1 %5057, %v1507_v32   ;;  %v1510_v31 = vld [vmem:[#allocation4 + $0x2c0] sm:$0xff]  ;;  %v5380_v32 = vmax.f32 %v436_v59, 0.0 }
  0xf5   : > { %1620 = vperm.xlu0 %5056, %v1506_v7   ;;  %v5372_v39 = vpop.permute.xlu2 %1002  ;;  %v1509_v7 = vld [vmem:[#allocation4 + $0x2b8] sm:$0xff]  ;;  %7886 = vst [vmem:[#allocation32_spill] sm:$0xff] %v5378_v26  ;;  %v405_v35 = vmul.f32 %v5305_v53, %v4972_v30  ;;  %v1060_v58 = vmul.f32 %v5338_v8, %v5384_v6  ;;  %v1059_v59 = vmul.f32 %v5340_v12, %v5382_v21 }
  0xf6   : > { %v953_v48 = vpop.permute.xlu1 %952  ;;  %v948_v27 = vpop.permute.xlu0 %947  ;;  %7887 = vst [vmem:[#allocation33_spill] sm:$0xff] %v5380_v32 }
  0xf7   : > { %7888 = vst [vmem:[#allocation34_spill] sm:$0xff] %v5382_v21  ;;  %v1066_v54 = vmul.f32 %v953_v48, %v5380_v32  ;;  %v1065_v15 = vmul.f32 %v948_v27, %v5378_v26  ;;  %v442_v48 = vadd.f32 %v5310_v60, %v406_v2  ;;  %v4964_v27 = vunpack.c.l.bf16 %v5010_v44 }
  0xf8   : > { %7889 = vst [vmem:[#allocation35_spill] sm:$0xff] %v5384_v6  ;;  %v441_v30 = vadd.f32 %v5310_v60, %v405_v35  ;;  %v1089_v8 = vpack.c.bf16 %v1060_v58, %v1059_v59  ;;  %v395_v2 = vmul.f32 %v5305_v53, %v4952_v38 }
  0xf9   : > { %v5406_v3 = vmax.f32 %v442_v48, 0.0 }
  0xfa   : > { %v5410_v33 = vmax.f32 %v441_v30, 0.0  ;;  %v1516_v30 = vld [vmem:[#allocation4 + $0x2f0] sm:$0xff] }
  0xfb   : > { %7890 = vst [vmem:[#allocation36_spill] sm:$0xff] %v5406_v3 }
  0xfc   : > { %1645 = vperm.xlu2 %5058, %v1511_v19   ;;  %1640 = vperm.xlu1 %5057, %v1510_v31   ;;  %v4965_v19 = vunpack.c.h.bf16 %v5010_v44  ;;  %v1092_v31 = vpack.c.bf16 %v1066_v54, %v1065_v15  ;;  %v5013_v44 = vld [vmem:[%s5293_s21 + $0x40] sm:$0xff]   ;;  %v401_v15 = vmul.f32 %v5305_v53, %v4964_v27  ;;  %7891 = vst [vmem:[#allocation37_spill] sm:$0xff] %v5410_v33 }
  0xfd   : > { %1635 = vperm.xlu0 %5056, %v1509_v7   ;;  %v5396_v0 = vpop.permute.xlu2 %1017  ;;  %v1514_v7 = vld [vmem:[#allocation4 + $0x2e0] sm:$0xff]  ;;  %v4977_v48 = vunpack.c.h.bf16 %v5013_v44  ;;  %v4976_v38 = vunpack.c.l.bf16 %v5013_v44 }
  0xfe   : > { %v5398_v14 = vpop.permute.xlu1 %967  ;;  %v963_v18 = vpop.permute.xlu0 %962  ;;  %v402_v12 = vmul.f32 %v5305_v53, %v4965_v19  ;;  %v432_v19 = vadd.f32 %v5310_v60, %v396_v28 }
  0xff   : > { %v408_v28 = vmul.f32 %v5305_v53, %v4977_v48 }
 0x100   : > { %v438_v47 = vadd.f32 %v5310_v60, %v402_v12  ;;  %v5423_v12 = vmax.f32 %v432_v19, 0.0 }
 0x102   : > { %v5421_v29 = vmax.f32 %v438_v47, 0.0  ;;  %7893 = vst [vmem:[#allocation39_spill] sm:$0xff] %v5423_v12  ;;  %v1062_v47 = vmul.f32 %v5361_v13, %v5423_v12 }
 0x103   : > { %4792 = vmatmul.msk.bf16.gmra.mxu1 %vm1105_vm1, %v1092_v31  ;;  %4789 = vmatmul.msk.bf16.gmra.mxu0 %vm1105_vm1, %v1089_v8  ;;  %v431_v31 = vadd.f32 %v5310_v60, %v395_v2  ;;  %v1515_v8 = vld [vmem:[#allocation4 + $0x2e8] sm:$0xff]  ;;  %v407_v2 = vmul.f32 %v5305_v53, %v4976_v38 }
 0x104   : > { %1660 = vperm.xlu2 %5058, %v1514_v7   ;;  %1655 = vperm.xlu1 %5057, %v1513_v36   ;;  %v1517_v36 = vld [vmem:[#allocation4 + $0x2f8] sm:$0xff]  ;;  %7892 = vst [vmem:[#allocation38_spill] sm:$0xff] %v5421_v29 }
 0x105   : > { %1650 = vperm.xlu0 %5056, %v1512_v9   ;;  %v5413_v54 = vpop.permute.xlu2 %1032  ;;  %v437_v9 = vadd.f32 %v5310_v60, %v401_v15  ;;  %v1068_v15 = vmul.f32 %v963_v18, %v5421_v29  ;;  %v5431_v44 = vmax.f32 %v431_v31, 0.0  ;;  %v861_v18 = vld [vmem:[%s7677_s3] sm:$0x3]  ;;  %v444_v31 = vadd.f32 %v5310_v60, %v408_v28  ;;  %v5454_v28 = vld [vmem:[%s5293_s21 + $0x70] sm:$0xff]  }
 0x106   : > { %v983_v35 = vpop.permute.xlu1 %982  ;;  %v978_v59 = vpop.permute.xlu0 %977  ;;  %v1296_v38 = vsel %vm1154_vm0, %v861_v18, 0 }
 0x107   : > { %v1072_v58 = vmul.f32 %v983_v35, %v5406_v3  ;;  %v1071_v27 = vmul.f32 %v978_v59, %v5410_v33  ;;  %v5011_v35 = vld [vmem:[%s5293_s21 + $0x30] sm:$0xff]   ;;  %v5428_v59 = vmax.f32 %v437_v9, 0.0  ;;  %7895 = vst [vmem:[#allocation41_spill] sm:$0xff] %v5431_v44  ;;  %v1061_v13 = vmul.f32 %v5295_v43, %v5431_v44  ;;  %1305 = vmatpush.bf16.msrb.mxu1 %v1296_v38  ;;  %v1901_v3 = vld [vmem:[#allocation4 + $0x300] sm:$0xff] }
 0x108   : > { %v4968_v48 = vunpack.c.l.bf16 %v5011_v35  ;;  %v5456_v43 = vmax.f32 %v444_v31, 0.0 }
 0x109   : > { %v1095_v7 = vpack.c.bf16 %v1072_v58, %v1071_v27  ;;  %7894 = vst [vmem:[#allocation40_spill] sm:$0xff] %v5428_v59  ;;  %v5016_v27 = vld [vmem:[%s5293_s21 + $0x58] sm:$0xff]   ;;  %v1067_v9 = vmul.f32 %v5325_v25, %v5428_v59  ;;  %v443_v25 = vadd.f32 %v5310_v60, %v407_v2  ;;  %v1090_v61 = vpack.c.bf16 %v1062_v47, %v1061_v13 }
 0x10a   : > { %v4989_v23 = vunpack.c.h.bf16 %v5016_v27  ;;  %v4988_v22 = vunpack.c.l.bf16 %v5016_v27  ;;  %v403_v33 = vmul.f32 %v5305_v53, %v4968_v48  ;;  %7896 = vst [vmem:[#allocation42_spill] sm:$0xff] %v5456_v43 }
 0x10b   : > { %4795 = vmatmul.msk.bf16.vlgmr.msra.gmra.mxu2 %vm1105_vm1, %v1095_v7  ;;  %v4969_v7 = vunpack.c.h.bf16 %v5011_v35  ;;  %v5014_v35 = vld [vmem:[%s5293_s21 + $0x48] sm:$0xff]   ;;  %v5462_v47 = vmax.f32 %v443_v25, 0.0  ;;  %v1904_v25 = vld [vmem:[#allocation4 + $0x318] sm:$0xff] }
 0x10c   : > { %1675 = vperm.xlu2 %5058, %v1517_v36   ;;  %1670 = vperm.xlu1 %5057, %v1516_v30   ;;  %v1093_v30 = vpack.c.bf16 %v1068_v15, %v1067_v9  ;;  %v414_v2 = vmul.f32 %v5305_v53, %v4989_v23  ;;  %v413_v48 = vmul.f32 %v5305_v53, %v4988_v22  ;;  %v1906_v22 = vld [vmem:[#allocation4 + $0x328] sm:$0xff]  ;;  %v4981_v38 = vunpack.c.h.bf16 %v5014_v35 }
 0x10d   : > { %1665 = vperm.xlu0 %5056, %v1515_v8   ;;  %v5436_v58 = vpop.permute.xlu2 %1047  ;;  %v1903_v8 = vld [vmem:[#allocation4 + $0x310] sm:$0xff]  ;;  %v404_v15 = vmul.f32 %v5305_v53, %v4969_v7  ;;  %7897 = vst [vmem:[#allocation43_spill] sm:$0xff] %v5462_v47  ;;  %v439_v31 = vadd.f32 %v5310_v60, %v403_v33 }
 0x10e   : > { %v5438_v19 = vpop.permute.xlu1 %997  ;;  %v993_v36 = vpop.permute.xlu0 %992  ;;  %v449_v7 = vadd.f32 %v5310_v60, %v413_v48  ;;  %v410_v48 = vmul.f32 %v5305_v53, %v4981_v38 }
 0x10f   : > { %v1074_v27 = vmul.f32 %v993_v36, %v5456_v43  ;;  %v440_v23 = vadd.f32 %v5310_v60, %v404_v15  ;;  %v450_v36 = vadd.f32 %v5310_v60, %v414_v2  ;;  %v5480_v43 = vmax.f32 %v439_v31, 0.0 }
 0x111   : > { %7898 = vst [vmem:[#allocation44_spill] sm:$0xff] %v5480_v43  ;;  %v5485_v15 = vmax.f32 %v440_v23, 0.0  ;;  %v5489_v2 = vmax.f32 %v450_v36, 0.0 }
 0x113   : > { %4793 = vmatmul.msk.bf16.gmra.mxu1 %vm1105_vm1, %v1093_v30  ;;  %4790 = vmatmul.msk.bf16.gmra.mxu0 %vm1105_vm1, %v1090_v61  ;;  %v5001_v61 = vunpack.c.h.bf16 %v5454_v28  ;;  %7899 = vst [vmem:[#allocation45_spill] sm:$0xff] %v5485_v15 }
 0x114   : > { %1945 = vperm.xlu2 %5058, %v1903_v8   ;;  %1940 = vperm.xlu1 %5057, %v1902_v16   ;;  %v1073_v16 = vmul.f32 %v5357_v52, %v5462_v47  ;;  %v1905_v8 = vld [vmem:[#allocation4 + $0x320] sm:$0xff]  ;;  %7900 = vst [vmem:[#allocation46_spill] sm:$0xff] %v5489_v2 }
 0x115   : > { %1935 = vperm.xlu0 %5056, %v1901_v3   ;;  %v5466_v9 = vpop.permute.xlu2 %1525  ;;  %v4980_v3 = vunpack.c.l.bf16 %v5014_v35  ;;  %v420_v33 = vmul.f32 %v5305_v53, %v5001_v61  ;;  %v5017_v52 = vld [vmem:[%s5293_s21 + $0x60] sm:$0xff]   ;;  %v1069_v35 = vmul.f32 %v5398_v14, %v5480_v43 }
 0x116   : > { %v5468_v18 = vpop.permute.xlu1 %1012  ;;  %v5472_v13 = vpop.permute.xlu0 %1007  ;;  %v1096_v30 = vpack.c.bf16 %v1074_v27, %v1073_v16  ;;  %v5492_v27 = vmax.f32 %v449_v7, 0.0  ;;  %v1070_v16 = vmul.f32 %v5336_v1, %v5485_v15 }
 0x117   : > { %v409_v55 = vmul.f32 %v5305_v53, %v4980_v3  ;;  %v456_v3 = vadd.f32 %v5310_v60, %v420_v33  ;;  %v1908_v33 = vld [vmem:[#allocation4 + $0x338] sm:$0xff] }
 0x118   : > { %7901 = vst [vmem:[#allocation47_spill] sm:$0xff] %v5492_v27  ;;  %v1079_v36 = vmul.f32 %v5396_v0, %v5492_v27  ;;  %v1094_v7 = vpack.c.bf16 %v1070_v16, %v1069_v35  ;;  %v7696_v0 = vrot.slane %v5321_v20, 7 }
 0x119   : > { %v445_v14 = vadd.f32 %v5310_v60, %v409_v55  ;;  %v5504_v43 = vmax.f32 %v456_v3, 0.0  ;;  %v5015_v55 = vld [vmem:[%s5293_s21 + $0x50] sm:$0xff]  }
 0x11b   : > { %4796 = vmatmul.msk.bf16.gmra.mxu2 %vm1105_vm1, %v1096_v30  ;;  %v1909_v30 = vld [vmem:[#allocation4 + $0x340] sm:$0xff]  ;;  %7902 = vst [vmem:[#allocation48_spill] sm:$0xff] %v5504_v43  ;;  %v5507_v1 = vmax.f32 %v445_v14, 0.0  ;;  %v4984_v14 = vunpack.c.l.bf16 %v5015_v55 }
 0x11c   : > { %1960 = vperm.xlu2 %5058, %v1906_v22   ;;  %1955 = vperm.xlu1 %5057, %v1905_v8   ;;  %v4992_v22 = vunpack.c.l.bf16 %v5017_v52  ;;  %v446_v8 = vadd.f32 %v5310_v60, %v410_v48 }
 0x11d   : > { %1950 = vperm.xlu0 %5056, %v1904_v25   ;;  %v5494_v61 = vpop.permute.xlu2 %1540  ;;  %v4993_v25 = vunpack.c.h.bf16 %v5017_v52  ;;  %7903 = vst [vmem:[#allocation49_spill] sm:$0xff] %v5507_v1  ;;  %v1075_v48 = vmul.f32 %v5438_v19, %v5507_v1 }
 0x11e   : > { %v1028_v31 = vpop.permute.xlu1 %1027  ;;  %v1023_v23 = vpop.permute.xlu0 %1022  ;;  %v415_v15 = vmul.f32 %v5305_v53, %v4992_v22  ;;  %v5513_v52 = vmax.f32 %v446_v8, 0.0 }
 0x11f   : > { %v1080_v38 = vmul.f32 %v1023_v23, %v5489_v2  ;;  %v416_v35 = vmul.f32 %v5305_v53, %v4993_v25  ;;  %v1910_v23 = vld [vmem:[#allocation4 + $0x348] sm:$0xff] }
 0x120   : > { %7904 = vst [vmem:[#allocation50_spill] sm:$0xff] %v5513_v52  ;;  %v1076_v19 = vmul.f32 %v5372_v39, %v5513_v52  ;;  %v7906_v39 = vrot.slane %v5504_v43, 7 }
 0x121   : > { %v1099_v47 = vpack.c.bf16 %v1080_v38, %v1079_v36  ;;  %v4985_v36 = vunpack.c.h.bf16 %v5015_v55  ;;  %v451_v38 = vadd.f32 %v5310_v60, %v415_v15  ;;  %v452_v25 = vadd.f32 %v5310_v60, %v416_v35  ;;  %v1911_v55 = vld [vmem:[#allocation4 + $0x350] sm:$0xff] }
 0x122   : > { %v411_v15 = vmul.f32 %v5305_v53, %v4984_v14 }
 0x123   : > { %4794 = vmatmul.msk.bf16.gmra.mxu1 %vm1105_vm1, %v1094_v7  ;;  %4799 = vmatmul.msk.bf16.vlgmr.msra.gmra.mxu3 %vm1105_vm1, %v1099_v47  ;;  %v496_v47 = vrot.slane %v5323_v24, 7  ;;  %v412_v2 = vmul.f32 %v5305_v53, %v4985_v36 }
 0x124   : > { %1975 = vperm.xlu2 %5058, %v1909_v30   ;;  %1970 = vperm.xlu1 %5057, %v1908_v33   ;;  %v1912_v30 = vld [vmem:[#allocation4 + $0x358] sm:$0xff]  ;;  %v1097_v33 = vpack.c.bf16 %v1076_v19, %v1075_v48  ;;  %v5018_v48 = vld [vmem:[%s5293_s21 + $0x68] sm:$0xff]   ;;  %v5552_v19 = vmax.f32 %v452_v25, 0.0 }
 0x125   : > { %1965 = vperm.xlu0 %5056, %v1907_v17   ;;  %v5518_v3 = vpop.permute.xlu2 %1555  ;;  %v4819_v17 = vld [vmem:[%s7677_s3 + $0x4] sm:$0x3]  ;;  %v5536_v8 = vsel %vm494_vm2, %v496_v47, %v7696_v0 }
 0x126   : > { %v5520_v16 = vpop.permute.xlu1 %1042  ;;  %v5524_v22 = vpop.permute.xlu0 %1037  ;;  %v1777_v7 = vsel %vm1154_vm0, %v4819_v17, 0  ;;  %7905 = vst [vmem:[#allocation51_spill] sm:$0xff] %v5536_v8  ;;  %v5543_v17 = vsel %vm494_vm2, %v7906_v39, %v496_v47  ;;  %v814_v35 = vmul.f32 %v5235_v57, %v5536_v8  ;;  %v448_v57 = vadd.f32 %v5310_v60, %v412_v2  ;;  %v1914_v8 = vld [vmem:[#allocation4 + $0x368] sm:$0xff] }
 0x127   : > { %1786 = vmatpush.bf16.msrb.mxu2 %v1777_v7  ;;  %7907 = vst [vmem:[#allocation52_spill] sm:$0xff] %v5543_v17  ;;  %v5546_v7 = vmax.f32 %v451_v38, 0.0  ;;  %v813_v36 = vmul.f32 %v5229_v51, %v5543_v17  ;;  %v447_v38 = vadd.f32 %v5310_v60, %v411_v15 }
 0x128   : > { %7909 = vst [vmem:[#allocation54_spill] sm:$0xff] %v5552_v19  ;;  %v5570_v51 = vmax.f32 %v448_v57, 0.0  ;;  %v533_v57 = vrot.slane %v5354_v46, 7 }
 0x129   : > { %7908 = vst [vmem:[#allocation53_spill] sm:$0xff] %v5546_v7  ;;  %v1081_v14 = vmul.f32 %v1028_v31, %v5546_v7  ;;  %v845_v25 = vpack.c.bf16 %v814_v35, %v813_v36  ;;  %v1915_v31 = vld [vmem:[#allocation4 + $0x370] sm:$0xff]  ;;  %v1913_v7 = vld [vmem:[#allocation4 + $0x360] sm:$0xff]  ;;  %v5568_v27 = vmax.f32 %v447_v38, 0.0 }
 0x12a   : > { %7911 = vst [vmem:[#allocation56_spill] sm:$0xff] %v5570_v51  ;;  %v1078_v35 = vmul.f32 %v5468_v18, %v5570_v51 }
 0x12b   : > { %4797 = vmatmul.msk.bf16.gmra.mxu2 %vm1105_vm1, %v1097_v33  ;;  %v4996_v33 = vunpack.c.l.bf16 %v5018_v48  ;;  %7910 = vst [vmem:[#allocation55_spill] sm:$0xff] %v5568_v27 }
 0x12c   : > { %1990 = vperm.xlu2 %5058, %v1912_v30   ;;  %1985 = vperm.xlu1 %5057, %v1911_v55   ;;  %v4997_v55 = vunpack.c.h.bf16 %v5018_v48  ;;  %v1077_v48 = vmul.f32 %v5472_v13, %v5568_v27 }
 0x12d   : > { %1980 = vperm.xlu0 %5056, %v1910_v23   ;;  %v5555_v0 = vpop.permute.xlu2 %1570  ;;  %v1082_v23 = vmul.f32 %v5413_v54, %v5552_v19  ;;  %v417_v15 = vmul.f32 %v5305_v53, %v4996_v33  ;;  %v532_v54 = vrot.slane %v5347_v34, 7 }
 0x12e   : > { %v5557_v47 = vpop.permute.xlu1 %1520  ;;  %v5562_v30 = vpop.permute.xlu0 %1052  ;;  %v418_v2 = vmul.f32 %v5305_v53, %v4997_v55  ;;  %v7912_v55 = vrot.slane %v5321_v20, 7 }
 0x12f   : > { %v1100_v39 = vpack.c.bf16 %v1082_v23, %v1081_v14  ;;  %v453_v33 = vadd.f32 %v5310_v60, %v417_v15  ;;  %v5595_v13 = vsel %vm494_vm2, %v532_v54, %v533_v57  ;;  %v1098_v23 = vpack.c.bf16 %v1078_v35, %v1077_v48 }
 0x130   : > { %v5592_v18 = vsel %vm494_vm2, %v7912_v55, %v532_v54  ;;  %7914 = vst [vmem:[#allocation58_spill] sm:$0xff] %v5595_v13  ;;  %v1389_v55 = vrot.slane %v5321_v20, 1 }
 0x131   : > { %7913 = vst [vmem:[#allocation57_spill] sm:$0xff] %v5592_v18  ;;  %v815_v15 = vmul.f32 %v5227_v50, %v5592_v18 }
 0x133   : > { %4803 = vmatmul.msk.bf16.vlgmr.msrb.gmra.mxu1 %vm1105_vm1, %v845_v25  ;;  %4800 = vmatmul.msk.bf16.gmra.mxu3 %vm1105_vm1, %v1100_v39  ;;  %v1917_v25 = vld [vmem:[#allocation4 + $0x380] sm:$0xff]  ;;  %v5597_v39 = vmax.f32 %v453_v33, 0.0 }
 0x134   : > { %2005 = vperm.xlu2 %5058, %v1915_v31   ;;  %2000 = vperm.xlu1 %5057, %v1914_v8   ;;  %v454_v8 = vadd.f32 %v5310_v60, %v418_v2  ;;  %v1916_v31 = vld [vmem:[#allocation4 + $0x378] sm:$0xff]  ;;  %v816_v2 = vmul.f32 %v5233_v56, %v5595_v13  ;;  %v1393_v56 = vrot.slane %v5347_v34, 1 }
 0x135   : > { %1995 = vperm.xlu0 %5056, %v1913_v7   ;;  %v5580_v14 = vpop.permute.xlu2 %1585  ;;  %v1918_v7 = vld [vmem:[#allocation4 + $0x388] sm:$0xff]  ;;  %7915 = vst [vmem:[#allocation59_spill] sm:$0xff] %v5597_v39  ;;  %v1083_v35 = vmul.f32 %v5524_v22, %v5597_v39  ;;  %v1919_v22 = vld [vmem:[#allocation4 + $0x390] sm:$0xff] }
 0x136   : > { %v5582_v36 = vpop.permute.xlu1 %1535  ;;  %v5584_v38 = vpop.permute.xlu0 %1530  ;;  %v5599_v17 = vmax.f32 %v454_v8, 0.0  ;;  %v7707_v8 = vrot.slane %v5323_v24, 1  ;;  %v846_v50 = vpack.c.bf16 %v816_v2, %v815_v15  ;;  %v5628_v15 = vsel %vm1387_vm3, %v1389_v55, %v1393_v56 }
 0x137   : > { %7918 = vst [vmem:[#allocation62_spill] sm:$0xff] %v5628_v15  ;;  %v537_v2 = vrot.slane %v5384_v6, 7 }
 0x138   : > { %7916 = vst [vmem:[#allocation60_spill] sm:$0xff] %v5599_v17  ;;  %v1084_v54 = vmul.f32 %v5520_v16, %v5599_v17  ;;  %v5623_v17 = vsel %vm1387_vm3, %v7707_v8, %v1389_v55  ;;  %v1679_v55 = vmul.f32 %v5466_v9, %v5628_v15 }
 0x139   : > { %7917 = vst [vmem:[#allocation61_spill] sm:$0xff] %v5623_v17 }
 0x13a   : > { %v1101_v16 = vpack.c.bf16 %v1084_v54, %v1083_v35  ;;  %v1678_v35 = vmul.f32 %v5557_v47, %v5623_v17  ;;  %v1923_v47 = vld [vmem:[#allocation4 + $0x3b0] sm:$0xff]  ;;  %v1922_v17 = vld [vmem:[#allocation4 + $0x3a8] sm:$0xff] }
 0x13b   : > { %4798 = vmatmul.msk.bf16.gmra.mxu2 %vm1105_vm1, %v1098_v23  ;;  %v1921_v23 = vld [vmem:[#allocation4 + $0x3a0] sm:$0xff] }
 0x13c   : > { %2020 = vperm.xlu2 %5058, %v1918_v7   ;;  %2015 = vperm.xlu1 %5057, %v1917_v25   ;;  %v5000_v25 = vunpack.c.l.bf16 %v5454_v28  ;;  %v535_v28 = vrot.slane %v5382_v21, 7 }
 0x13d   : > { %2010 = vperm.xlu0 %5056, %v1916_v31   ;;  %v5610_v48 = vpop.permute.xlu2 %1600  ;;  %v1920_v31 = vld [vmem:[#allocation4 + $0x398] sm:$0xff] }
 0x13e   : > { %v5612_v33 = vpop.permute.xlu1 %1550  ;;  %v5615_v7 = vpop.permute.xlu0 %1545  ;;  %v419_v54 = vmul.f32 %v5305_v53, %v5000_v25  ;;  %v1710_v25 = vpack.c.bf16 %v1679_v55, %v1678_v35  ;;  %v1394_v35 = vrot.slane %v5354_v46, 1 }
 0x140   : > { %v455_v53 = vadd.f32 %v5310_v60, %v419_v54  ;;  %v5673_v15 = vsel %vm1387_vm3, %v1393_v56, %v1394_v35 }
 0x141   : > { %7923 = vst [vmem:[#allocation67_spill] sm:$0xff] %v5673_v15 }
 0x143   : > { %4804 = vmatmul.msk.bf16.gmra.mxu1 %vm1105_vm1, %v846_v50  ;;  %4801 = vmatmul.msk.bf16.gmra.mxu3 %vm1105_vm1, %v1101_v16 }
 0x144   : > { %2035 = vperm.xlu2 %5058, %v1921_v23   ;;  %2030 = vperm.xlu1 %5057, %v1920_v31   ;;  %v1924_v23 = vld [vmem:[#allocation4 + $0x3b8] sm:$0xff]  ;;  %v5644_v31 = vsel %vm494_vm2, %v533_v57, %v535_v28  ;;  %v5655_v57 = vmax.f32 %v455_v53, 0.0 }
 0x145   : > { %2025 = vperm.xlu0 %5056, %v1919_v22   ;;  %v5635_v8 = vpop.permute.xlu2 %1615  ;;  %7919 = vst [vmem:[#allocation63_spill] sm:$0xff] %v5644_v31  ;;  %v5647_v22 = vsel %vm494_vm2, %v535_v28, %v537_v2  ;;  %v817_v20 = vmul.f32 %v5219_v37, %v5644_v31  ;;  %v1086_v28 = vmul.f32 %v5562_v30, %v5504_v43  ;;  %v1931_v43 = vld [vmem:[#allocation4 + $0x3f0] sm:$0xff] }
 0x146   : > { %v5637_v50 = vpop.permute.xlu1 %1565  ;;  %v5639_v16 = vpop.permute.xlu0 %1560  ;;  %7920 = vst [vmem:[#allocation64_spill] sm:$0xff] %v5647_v22  ;;  %v818_v9 = vmul.f32 %v5221_v41, %v5647_v22  ;;  %v1085_v37 = vmul.f32 %v5436_v58, %v5655_v57  ;;  %v1396_v41 = vrot.slane %v5382_v21, 1 }
 0x147   : > { %7921 = vst [vmem:[#allocation65_spill] sm:$0xff] %v5655_v57 }
 0x148   : > { %v1102_v53 = vpack.c.bf16 %v1086_v28, %v1085_v37  ;;  %v5670_v30 = vsel %vm1387_vm3, %v1394_v35, %v1396_v41  ;;  %v541_v35 = vrot.slane %v5423_v12, 7 }
 0x149   : > { %7922 = vst [vmem:[#allocation66_spill] sm:$0xff] %v5670_v30  ;;  %v1681_v58 = vmul.f32 %v5582_v36, %v5670_v30  ;;  %v1929_v36 = vld [vmem:[#allocation4 + $0x3e0] sm:$0xff]  ;;  %v1400_v30 = vrot.slane %v5431_v44, 1 }
 0x14b   : > { %4820 = vmatmul.msk.bf16.vlgmr.msrb.gmra.mxu2 %vm1105_vm1, %v1710_v25  ;;  %v1926_v25 = vld [vmem:[#allocation4 + $0x3c8] sm:$0xff] }
 0x14c   : > { %2050 = vperm.xlu2 %5058, %v1924_v23   ;;  %2045 = vperm.xlu1 %5057, %v1923_v47   ;;  %v847_v23 = vpack.c.bf16 %v818_v9, %v817_v20  ;;  %v1925_v47 = vld [vmem:[#allocation4 + $0x3c0] sm:$0xff]  ;;  %v539_v20 = vrot.slane %v5431_v44, 7  ;;  %v1680_v9 = vmul.f32 %v5584_v38, %v5673_v15 }
 0x14d   : > { %2040 = vperm.xlu0 %5056, %v1922_v17   ;;  %v1927_v17 = vld [vmem:[#allocation4 + $0x3d0] sm:$0xff] }
 0x14e   : > { %v5659_v60 = vpop.permute.xlu2 %1630  ;;  %v5661_v54 = vpop.permute.xlu1 %1580 }
 0x14f   : > { %v5664_v55 = vpop.permute.xlu0 %1575 }
 0x153   : > { %4805 = vmatmul.msk.bf16.gmra.mxu1 %vm1105_vm1, %v847_v23  ;;  %4802 = vmatmul.msk.bf16.gmra.mxu3 %vm1105_vm1, %v1102_v53  ;;  %v1930_v23 = vld [vmem:[#allocation4 + $0x3e8] sm:$0xff]  ;;  %v5693_v53 = vsel %vm494_vm2, %v537_v2, %v539_v20 }
 0x154   : > { %2065 = vperm.xlu2 %5058, %v1927_v17   ;;  %2060 = vperm.xlu1 %5057, %v1926_v25   ;;  %v5690_v17 = vsel %vm494_vm2, %v539_v20, %v541_v35  ;;  %7926 = vst [vmem:[#allocation70_spill] sm:$0xff] %v5693_v53  ;;  %v1711_v25 = vpack.c.bf16 %v1681_v58, %v1680_v9  ;;  %v1398_v9 = vrot.slane %v5384_v6, 1 }
 0x155   : > { %2055 = vperm.xlu0 %5056, %v1925_v47   ;;  %7925 = vst [vmem:[#allocation69_spill] sm:$0xff] %v5690_v17  ;;  %v1928_v47 = vld [vmem:[#allocation4 + $0x3d8] sm:$0xff]  ;;  %v820_v38 = vmul.f32 %v5239_v62, %v5690_v17  ;;  %v819_v24 = vmul.f32 %v5241_v63, %v5693_v53 }
 0x156   : > { %v5682_v28 = vpop.permute.xlu2 %1645  ;;  %v5684_v37 = vpop.permute.xlu1 %1595  ;;  %v5709_v62 = vsel %vm1387_vm3, %v1398_v9, %v1400_v30  ;;  %v5713_v63 = vsel %vm1387_vm3, %v1396_v41, %v1398_v9  ;;  %v543_v41 = vrot.slane %v5350_v40, 7 }
 0x157   : > { %7924 = vst [vmem:[#allocation68_spill] sm:$0xff] %v5682_v28  ;;  %v5686_v56 = vpop.permute.xlu0 %1590  ;;  %v848_v58 = vpack.c.bf16 %v820_v38, %v819_v24  ;;  %v1683_v24 = vmul.f32 %v5615_v7, %v5709_v62 }
 0x158   : > { %7928 = vst [vmem:[#allocation72_spill] sm:$0xff] %v5709_v62  ;;  %v2318_v62 = vld [vmem:[#allocation4 + $0x410] sm:$0xff]  ;;  %v5735_v57 = vsel %vm494_vm2, %v541_v35, %v543_v41 }
 0x159   : > { %7929 = vst [vmem:[#allocation73_spill] sm:$0xff] %v5713_v63 }
 0x15a   : > { %7932 = vst [vmem:[#allocation76_spill] sm:$0xff] %v5735_v57 }
 0x15b   : > { %4821 = vmatmul.msk.bf16.gmra.mxu2 %vm1105_vm1, %v1711_v25  ;;  %v1932_v25 = vld [vmem:[#allocation4 + $0x3f8] sm:$0xff] }
 0x15c   : > { %2080 = vperm.xlu2 %5058, %v1930_v23   ;;  %2075 = vperm.xlu1 %5057, %v1929_v36   ;;  %v2316_v23 = vld [vmem:[#allocation4 + $0x400] sm:$0xff]  ;;  %v545_v36 = vrot.slane %v5352_v42, 7 }
 0x15d   : > { %2070 = vperm.xlu0 %5056, %v1928_v47  }
 0x15e   : > { %v5700_v15 = vpop.permute.xlu2 %1660  ;;  %v5703_v2 = vpop.permute.xlu1 %1610  ;;  %v5732_v7 = vsel %vm494_vm2, %v543_v41, %v545_v36  ;;  %v1402_v41 = vrot.slane %v5423_v12, 1 }
 0x15f   : > { %7927 = vst [vmem:[#allocation71_spill] sm:$0xff] %v5700_v15  ;;  %v5705_v20 = vpop.permute.xlu0 %1605  ;;  %v822_v28 = vmul.f32 %v5247_v5, %v5732_v7  ;;  %v2321_v5 = vld [vmem:[#allocation4 + $0x428] sm:$0xff] }
 0x160   : > { %7931 = vst [vmem:[#allocation75_spill] sm:$0xff] %v5732_v7 }
 0x163   : > { %4806 = vmatmul.msk.bf16.gmra.mxu1 %vm1105_vm1, %v848_v58  ;;  %v4836_v58 = vld [vmem:[%s7677_s3 + $0x6] sm:$0x3] }
 0x164   : > { %2350 = vperm.xlu2 %5058, %v2316_v23   ;;  %2090 = vperm.xlu1 %5057, %v1932_v25   ;;  %v2192_v9 = vsel %vm1154_vm0, %v4836_v58, 0  ;;  %v2319_v23 = vld [vmem:[#allocation4 + $0x418] sm:$0xff]  ;;  %v821_v58 = vmul.f32 %v5223_v45, %v5735_v57 }
 0x165   : > { %2085 = vperm.xlu0 %5056, %v1931_v43   ;;  %v1682_v43 = vmul.f32 %v5494_v61, %v5713_v63  ;;  %2201 = vmatpush.bf16.msrb.mxu3 %v2192_v9 }
 0x166   : > { %v5718_v47 = vpop.permute.xlu2 %1675  ;;  %v5720_v38 = vpop.permute.xlu1 %1625  ;;  %v849_v35 = vpack.c.bf16 %v822_v28, %v821_v58 }
 0x167   : > { %7930 = vst [vmem:[#allocation74_spill] sm:$0xff] %v5718_v47  ;;  %v5722_v15 = vpop.permute.xlu0 %1620  ;;  %v1712_v25 = vpack.c.bf16 %v1683_v24, %v1682_v43  ;;  %v2317_v47 = vld [vmem:[#allocation4 + $0x408] sm:$0xff] }
 0x16b   : > { %4822 = vmatmul.msk.bf16.gmra.mxu2 %vm1105_vm1, %v1712_v25  ;;  %v2322_v25 = vld [vmem:[#allocation4 + $0x430] sm:$0xff] }
 0x16c   : > { %2365 = vperm.xlu2 %5058, %v2319_v23   ;;  %2360 = vperm.xlu1 %5057, %v2318_v62   ;;  %v1404_v23 = vrot.slane %v5350_v40, 1  ;;  %v2320_v62 = vld [vmem:[#allocation4 + $0x420] sm:$0xff] }
 0x16d   : > { %2355 = vperm.xlu0 %5056, %v2317_v47   ;;  %v5753_v47 = vsel %vm1387_vm3, %v1400_v30, %v1402_v41  ;;  %v547_v30 = vrot.slane %v5378_v26, 7 }
 0x16e   : > { %v5740_v61 = vpop.permute.xlu2 %1945  ;;  %v5744_v9 = vpop.permute.xlu1 %1640  ;;  %7934 = vst [vmem:[#allocation78_spill] sm:$0xff] %v5753_v47  ;;  %v5757_v45 = vsel %vm1387_vm3, %v1402_v41, %v1404_v23  ;;  %v1684_v28 = vmul.f32 %v5612_v33, %v5753_v47  ;;  %v2323_v47 = vld [vmem:[#allocation4 + $0x438] sm:$0xff] }
 0x16f   : > { %v5746_v24 = vpop.permute.xlu0 %1635  ;;  %7935 = vst [vmem:[#allocation79_spill] sm:$0xff] %v5757_v45 }
 0x170   : > { %v5748_v43 = vpop.f32.mrf.mxu1 }
 0x171   : > { %7933 = vst [vmem:[#allocation77_spill] sm:$0xff] %v5748_v43  ;;  %v549_v43 = vrot.slane %v5380_v32, 7 }
 0x173   : > { %4807 = vmatmul.msk.bf16.gmra.mxu1 %vm1105_vm1, %v849_v35  ;;  %v1685_v35 = vmul.f32 %v5518_v3, %v5757_v45  ;;  %v2328_v45 = vld [vmem:[#allocation4 + $0x460] sm:$0xff] }
 0x174   : > { %2380 = vperm.xlu2 %5058, %v2322_v25   ;;  %2375 = vperm.xlu1 %5057, %v2321_v5   ;;  %v2325_v25 = vld [vmem:[#allocation4 + $0x448] sm:$0xff]  ;;  %v5774_v5 = vsel %vm494_vm2, %v545_v36, %v547_v30 }
 0x175   : > { %2370 = vperm.xlu0 %5056, %v2320_v62   ;;  %7939 = vst [vmem:[#allocation83_spill] sm:$0xff] %v5774_v5  ;;  %v1713_v33 = vpack.c.bf16 %v1685_v35, %v1684_v28  ;;  %v2324_v62 = vld [vmem:[#allocation4 + $0x440] sm:$0xff]  ;;  %v1406_v28 = vrot.slane %v5352_v42, 1 }
 0x176   : > { %v5761_v58 = vpop.permute.xlu2 %1960  ;;  %v5763_v63 = vpop.permute.xlu1 %1655 }
 0x177   : > { %7936 = vst [vmem:[#allocation80_spill] sm:$0xff] %v5763_v63  ;;  %v5765_v40 = vpop.permute.xlu0 %1650  ;;  %v5777_v63 = vsel %vm494_vm2, %v547_v30, %v549_v43  ;;  %v5798_v39 = vsel %vm1387_vm3, %v1404_v23, %v1406_v28 }
 0x178   : > { %7937 = vst [vmem:[#allocation81_spill] sm:$0xff] %v5765_v40  ;;  %v5771_v41 = vpop.f32.mrf.mxu1  ;;  %v823_v40 = vmul.f32 %v5245_v4, %v5774_v5  ;;  %v824_v36 = vmul.f32 %v5225_v49, %v5777_v63  ;;  %v2327_v4 = vld [vmem:[#allocation4 + $0x458] sm:$0xff]  ;;  %v4853_v49 = vld [vmem:[%s7677_s3 + $0x8] sm:$0x3]  ;;  %v1686_v23 = vmul.f32 %v5639_v16, %v5798_v39 }
 0x179   : > { %7938 = vst [vmem:[#allocation82_spill] sm:$0xff] %v5771_v41 }
 0x17a   : > { %7940 = vst [vmem:[#allocation84_spill] sm:$0xff] %v5777_v63 }
 0x17b   : > { %4823 = vmatmul.msk.bf16.gmra.mxu2 %vm1105_vm1, %v1713_v33  ;;  %v850_v33 = vpack.c.bf16 %v824_v36, %v823_v40  ;;  %7945 = vst [vmem:[#allocation89_spill] sm:$0xff] %v5798_v39  ;;  %v2607_v40 = vsel %vm1154_vm0, %v4853_v49, 0  ;;  %v551_v36 = vrot.slane %v5428_v59, 7  ;;  %v2331_v39 = vld [vmem:[#allocation4 + $0x478] sm:$0xff] }
 0x17c   : > { %2395 = vperm.xlu2 %5058, %v2325_v25   ;;  %2390 = vperm.xlu1 %5057, %v2324_v62   ;;  %v1408_v25 = vrot.slane %v5378_v26, 1  ;;  %v2326_v62 = vld [vmem:[#allocation4 + $0x450] sm:$0xff]  ;;  %v2329_v26 = vld [vmem:[#allocation4 + $0x468] sm:$0xff] }
 0x17d   : > { %2385 = vperm.xlu0 %5056, %v2323_v47   ;;  %2616 = vmatpush.bf16.msrb.mxu0 %v2607_v40  ;;  %v2330_v40 = vld [vmem:[#allocation4 + $0x470] sm:$0xff] }
 0x17e   : > { %v5782_v3 = vpop.permute.xlu2 %1975  ;;  %v5787_v35 = vpop.permute.xlu1 %1670  ;;  %v5795_v47 = vsel %vm1387_vm3, %v1406_v28, %v1408_v25 }
 0x17f   : > { %7941 = vst [vmem:[#allocation85_spill] sm:$0xff] %v5787_v35  ;;  %v5789_v41 = vpop.permute.xlu0 %1665  ;;  %v1687_v35 = vmul.f32 %v5637_v50, %v5795_v47  ;;  %v5821_v50 = vsel %vm494_vm2, %v549_v43, %v551_v36 }
 0x180   : > { %7942 = vst [vmem:[#allocation86_spill] sm:$0xff] %v5789_v41  ;;  %v5791_v30 = vpop.f32.mrf.mxu1 }
 0x181   : > { %7943 = vst [vmem:[#allocation87_spill] sm:$0xff] %v5791_v30  ;;  %v553_v30 = vrot.slane %v5421_v29, 7  ;;  %v1714_v16 = vpack.c.bf16 %v1687_v35, %v1686_v23  ;;  %v1412_v35 = vrot.slane %v5428_v59, 1 }
 0x182   : > { %7944 = vst [vmem:[#allocation88_spill] sm:$0xff] %v5795_v47 }
 0x183   : > { %4808 = vmatmul.msk.bf16.gmra.mxu1 %vm1105_vm1, %v850_v33  ;;  %v5818_v49 = vsel %vm494_vm2, %v551_v36, %v553_v30  ;;  %7948 = vst [vmem:[#allocation92_spill] sm:$0xff] %v5821_v50 }
 0x184   : > { %2410 = vperm.xlu2 %5058, %v2328_v45   ;;  %2405 = vperm.xlu1 %5057, %v2327_v4   ;;  %7947 = vst [vmem:[#allocation91_spill] sm:$0xff] %v5818_v49 }
 0x185   : > { %2400 = vperm.xlu0 %5056, %v2326_v62  }
 0x186   : > { %v5810_v28 = vpop.permute.xlu2 %1990  ;;  %v1941_v33 = vpop.permute.xlu1 %1940 }
 0x187   : > { %v1936_v41 = vpop.permute.xlu0 %1935  ;;  %v2094_v45 = vmul.f32 %v1941_v33, %v5595_v13  ;;  %v825_v33 = vmul.f32 %v5253_v11, %v5821_v50 }
 0x188   : > { %v2093_v4 = vmul.f32 %v1936_v41, %v5592_v18  ;;  %v5815_v62 = vpop.f32.mrf.mxu1  ;;  %v826_v41 = vmul.f32 %v5251_v10, %v5818_v49  ;;  %v2334_v10 = vld [vmem:[#allocation4 + $0x490] sm:$0xff]  ;;  %v2333_v18 = vld [vmem:[#allocation4 + $0x488] sm:$0xff] }
 0x189   : > { %7946 = vst [vmem:[#allocation90_spill] sm:$0xff] %v5815_v62 }
 0x18a   : > { %v2125_v47 = vpack.c.bf16 %v2094_v45, %v2093_v4 }
 0x18b   : > { %4824 = vmatmul.msk.bf16.gmra.mxu2 %vm1105_vm1, %v1714_v16  ;;  %v1410_v16 = vrot.slane %v5380_v32, 1  ;;  %v2335_v32 = vld [vmem:[#allocation4 + $0x498] sm:$0xff] }
 0x18c   : > { %4837 = vmatmul.msk.bf16.vlgmr.msrb.gmra.mxu3 %vm1105_vm1, %v2125_v47  ;;  %2425 = vperm.xlu2 %5058, %v2331_v39   ;;  %v851_v47 = vpack.c.bf16 %v826_v41, %v825_v33 }
 0x18d   : > { %2420 = vperm.xlu1 %5057, %v2330_v40   ;;  %2415 = vperm.xlu0 %5056, %v2329_v26   ;;  %v5838_v11 = vsel %vm1387_vm3, %v1410_v16, %v1412_v35  ;;  %v2332_v26 = vld [vmem:[#allocation4 + $0x480] sm:$0xff]  ;;  %v5842_v39 = vsel %vm1387_vm3, %v1408_v25, %v1410_v16  ;;  %v7953_v40 = vld [vmem:[#allocation45_spill] sm:$0xff] }
 0x18e   : > { %v5829_v43 = vpop.permute.xlu2 %2005  ;;  %v1956_v36 = vpop.permute.xlu1 %1955  ;;  %7951 = vst [vmem:[#allocation95_spill] sm:$0xff] %v5838_v11  ;;  %v557_v13 = vrot.slane %v7953_v40, 7  ;;  %v1689_v41 = vmul.f32 %v5664_v55, %v5838_v11  ;;  %v1688_v25 = vmul.f32 %v5555_v0, %v5842_v39  ;;  %v2336_v11 = vld [vmem:[#allocation4 + $0x4a0] sm:$0xff]  ;;  %v7959_v0 = vld [vmem:[#allocation14_spill] sm:$0xff] }
 0x18f   : > { %v1951_v23 = vpop.permute.xlu0 %1950  ;;  %v5832_v45 = vpop.f32.mrf.mxu2  ;;  %7952 = vst [vmem:[#allocation96_spill] sm:$0xff] %v5842_v39 }
 0x190   : > { %7949 = vst [vmem:[#allocation93_spill] sm:$0xff] %v5832_v45  ;;  %v5834_v4 = vpop.f32.mrf.mxu1  ;;  %v2096_v33 = vmul.f32 %v1951_v23, %v5647_v22  ;;  %v2337_v22 = vld [vmem:[#allocation4 + $0x4a8] sm:$0xff] }
 0x191   : > { %7950 = vst [vmem:[#allocation94_spill] sm:$0xff] %v5834_v4 }
 0x193   : > { %4809 = vmatmul.msk.bf16.gmra.mxu1 %vm1105_vm1, %v851_v47  ;;  %v7954_v47 = vld [vmem:[#allocation44_spill] sm:$0xff] }
 0x194   : > { %2440 = vperm.xlu2 %5058, %v2334_v10   ;;  %v555_v59 = vrot.slane %v7954_v47, 7  ;;  %v1715_v10 = vpack.c.bf16 %v1689_v41, %v1688_v25  ;;  %v7961_v41 = vld [vmem:[#allocation8_spill] sm:$0xff] }
 0x195   : > { %2435 = vperm.xlu1 %5057, %v2333_v18   ;;  %2430 = vperm.xlu0 %5056, %v2332_v26   ;;  %v2095_v18 = vmul.f32 %v5740_v61, %v5644_v31 }
 0x196   : > { %v5848_v62 = vpop.permute.xlu2 %2020  ;;  %v5850_v45 = vpop.permute.xlu1 %1970  ;;  %v5864_v23 = vsel %vm494_vm2, %v555_v59, %v557_v13  ;;  %v5867_v42 = vsel %vm494_vm2, %v553_v30, %v555_v59 }
 0x197   : > { %v5852_v4 = vpop.permute.xlu0 %1965  ;;  %v5859_v16 = vpop.f32.mrf.mxu2  ;;  %7957 = vst [vmem:[#allocation99_spill] sm:$0xff] %v5864_v23  ;;  %v2126_v26 = vpack.c.bf16 %v2096_v33, %v2095_v18  ;;  %v828_v61 = vmul.f32 %v7959_v0, %v5864_v23  ;;  %v827_v33 = vmul.f32 %v7961_v41, %v5867_v42  ;;  %v2338_v41 = vld [vmem:[#allocation4 + $0x4b0] sm:$0xff] }
 0x198   : > { %7955 = vst [vmem:[#allocation97_spill] sm:$0xff] %v5859_v16  ;;  %v5861_v55 = vpop.f32.mrf.mxu1 }
 0x199   : > { %7956 = vst [vmem:[#allocation98_spill] sm:$0xff] %v5861_v55 }
 0x19a   : > { %7958 = vst [vmem:[#allocation100_spill] sm:$0xff] %v5867_v42 }
 0x19b   : > { %4825 = vmatmul.msk.bf16.gmra.mxu2 %vm1105_vm1, %v1715_v10  ;;  %v852_v10 = vpack.c.bf16 %v828_v61, %v827_v33  ;;  %v2097_v33 = vmul.f32 %v1956_v36, %v5693_v53 }
 0x19c   : > { %4838 = vmatmul.msk.bf16.gmra.mxu3 %vm1105_vm1, %v2126_v26  ;;  %2455 = vperm.xlu2 %5058, %v2337_v22   ;;  %v1414_v26 = vrot.slane %v5421_v29, 1  ;;  %v1416_v22 = vrot.slane %v7954_v47, 1  ;;  %v7968_v47 = vld [vmem:[#allocation36_spill] sm:$0xff]  ;;  %v2341_v29 = vld [vmem:[#allocation4 + $0x4c8] sm:$0xff] }
 0x19d   : > { %2450 = vperm.xlu1 %5057, %v2336_v11   ;;  %2445 = vperm.xlu0 %5056, %v2335_v32   ;;  %v2340_v11 = vld [vmem:[#allocation4 + $0x4c0] sm:$0xff]  ;;  %v2339_v32 = vld [vmem:[#allocation4 + $0x4b8] sm:$0xff] }
 0x19e   : > { %v5873_v16 = vpop.permute.xlu2 %2035  ;;  %v5877_v25 = vpop.permute.xlu1 %1985  ;;  %v5888_v0 = vsel %vm1387_vm3, %v1412_v35, %v1414_v26  ;;  %v5892_v55 = vsel %vm1387_vm3, %v1414_v26, %v1416_v22 }
 0x19f   : > { %7960 = vst [vmem:[#allocation14_spill] sm:$0xff] %v5873_v16  ;;  %v5879_v18 = vpop.permute.xlu0 %1980  ;;  %v5881_v59 = vpop.f32.mrf.mxu2  ;;  %v1690_v61 = vmul.f32 %v5661_v54, %v5888_v0  ;;  %v1691_v26 = vmul.f32 %v5580_v14, %v5892_v55  ;;  %v7973_v14 = vld [vmem:[#allocation13_spill] sm:$0xff] }
 0x1a0   : > { %7962 = vst [vmem:[#allocation8_spill] sm:$0xff] %v5881_v59  ;;  %v5883_v30 = vpop.f32.mrf.mxu1  ;;  %v7967_v59 = vld [vmem:[#allocation37_spill] sm:$0xff] }
 0x1a1   : > { %7963 = vst [vmem:[#allocation101_spill] sm:$0xff] %v5883_v30  ;;  %v561_v30 = vrot.slane %v7968_v47, 7 }
 0x1a2   : > { %7964 = vst [vmem:[#allocation102_spill] sm:$0xff] %v5888_v0  ;;  %v2343_v0 = vld [vmem:[#allocation4 + $0x4d8] sm:$0xff] }
 0x1a3   : > { %4810 = vmatmul.msk.bf16.gmra.mxu1 %vm1105_vm1, %v852_v10  ;;  %7965 = vst [vmem:[#allocation103_spill] sm:$0xff] %v5892_v55  ;;  %v559_v10 = vrot.slane %v7967_v59, 7 }
 0x1a4   : > { %2470 = vperm.xlu2 %5058, %v2340_v11   ;;  %v2098_v11 = vmul.f32 %v5761_v58, %v5690_v17  ;;  %v7979_v17 = vld [vmem:[#allocation43_spill] sm:$0xff] }
 0x1a5   : > { %2465 = vperm.xlu1 %5057, %v2339_v32   ;;  %2460 = vperm.xlu0 %5056, %v2338_v41   ;;  %v5914_v32 = vsel %vm494_vm2, %v557_v13, %v559_v10  ;;  %v1716_v41 = vpack.c.bf16 %v1691_v26, %v1690_v61  ;;  %v5917_v16 = vsel %vm494_vm2, %v559_v10, %v561_v30  ;;  %v7975_v61 = vld [vmem:[#allocation9_spill] sm:$0xff]  ;;  %v1418_v26 = vrot.slane %v7953_v40, 1 }
 0x1a6   : > { %v5897_v31 = vpop.permute.xlu2 %2050  ;;  %v5899_v39 = vpop.permute.xlu1 %2000  ;;  %7971 = vst [vmem:[#allocation107_spill] sm:$0xff] %v5914_v32  ;;  %v2127_v53 = vpack.c.bf16 %v2098_v11, %v2097_v33  ;;  %v829_v58 = vmul.f32 %v7973_v14, %v5914_v32  ;;  %v830_v33 = vmul.f32 %v7975_v61, %v5917_v16  ;;  %v563_v55 = vrot.slane %v7979_v17, 7 }
 0x1a7   : > { %7966 = vst [vmem:[#allocation104_spill] sm:$0xff] %v5897_v31  ;;  %v5901_v35 = vpop.permute.xlu0 %1995  ;;  %v5909_v54 = vpop.f32.mrf.mxu2  ;;  %v2342_v31 = vld [vmem:[#allocation4 + $0x4d0] sm:$0xff]  ;;  %v5941_v61 = vsel %vm1387_vm3, %v1416_v22, %v1418_v26  ;;  %v2099_v22 = vmul.f32 %v5852_v4, %v5735_v57  ;;  %v2731_v57 = vld [vmem:[#allocation4 + $0x500] sm:$0xff] }
 0x1a8   : > { %7969 = vst [vmem:[#allocation105_spill] sm:$0xff] %v5909_v54  ;;  %v5911_v36 = vpop.f32.mrf.mxu1  ;;  %v1420_v54 = vrot.slane %v7967_v59, 1 }
 0x1a9   : > { %7970 = vst [vmem:[#allocation106_spill] sm:$0xff] %v5911_v36  ;;  %v2344_v36 = vld [vmem:[#allocation4 + $0x4e0] sm:$0xff] }
 0x1aa   : > { %7972 = vst [vmem:[#allocation108_spill] sm:$0xff] %v5917_v16 }
 0x1ab   : > { %4826 = vmatmul.msk.bf16.gmra.mxu2 %vm1105_vm1, %v1716_v41  ;;  %7978 = vst [vmem:[#allocation110_spill] sm:$0xff] %v5941_v61 }
 0x1ac   : > { %4839 = vmatmul.msk.bf16.gmra.mxu3 %vm1105_vm1, %v2127_v53  ;;  %2485 = vperm.xlu2 %5058, %v2343_v0   ;;  %v853_v53 = vpack.c.bf16 %v830_v33, %v829_v58  ;;  %v5938_v0 = vsel %vm1387_vm3, %v1418_v26, %v1420_v54  ;;  %v1692_v33 = vmul.f32 %v5686_v56, %v5941_v61  ;;  %v2347_v61 = vld [vmem:[#allocation4 + $0x4f8] sm:$0xff] }
 0x1ad   : > { %2480 = vperm.xlu1 %5057, %v2342_v31   ;;  %2475 = vperm.xlu0 %5056, %v2341_v29   ;;  %v2346_v31 = vld [vmem:[#allocation4 + $0x4f0] sm:$0xff]  ;;  %v2345_v29 = vld [vmem:[#allocation4 + $0x4e8] sm:$0xff]  ;;  %7977 = vst [vmem:[#allocation109_spill] sm:$0xff] %v5938_v0  ;;  %v1693_v58 = vmul.f32 %v5684_v37, %v5938_v0 }
 0x1ae   : > { %v5923_v13 = vpop.permute.xlu2 %2065  ;;  %v5928_v11 = vpop.permute.xlu1 %2015  ;;  %v4887_v0 = vld [vmem:[%s7677_s3 + $0xc] sm:$0x3] }
 0x1af   : > { %7974 = vst [vmem:[#allocation13_spill] sm:$0xff] %v5923_v13  ;;  %v5930_v10 = vpop.permute.xlu0 %2010  ;;  %v5932_v41 = vpop.f32.mrf.mxu2  ;;  %v1717_v4 = vpack.c.bf16 %v1693_v58, %v1692_v33  ;;  %v7988_v58 = vld [vmem:[#allocation17_spill] sm:$0xff] }
 0x1b0   : > { %7976 = vst [vmem:[#allocation9_spill] sm:$0xff] %v5932_v41  ;;  %v5935_v14 = vpop.f32.mrf.mxu1  ;;  %v2100_v41 = vmul.f32 %v5850_v45, %v5732_v7  ;;  %v5970_v45 = vsel %vm494_vm2, %v561_v30, %v563_v55  ;;  %v2732_v7 = vld [vmem:[#allocation4 + $0x508] sm:$0xff]  ;;  %v7987_v30 = vld [vmem:[#allocation16_spill] sm:$0xff] }
 0x1b1   : > { %7986 = vst [vmem:[#allocation116_spill] sm:$0xff] %v5970_v45  ;;  %v831_v33 = vmul.f32 %v7988_v58, %v5970_v45  ;;  %v6002_v58 = vpop.f32.mrf.mxu3 }
 0x1b2   : > { %7992 = vst [vmem:[#allocation118_spill] sm:$0xff] %v6002_v58 }
 0x1b3   : > { %4811 = vmatmul.msk.bf16.gmra.mxu1 %vm1105_vm1, %v853_v53 }
 0x1b4   : > { %2500 = vperm.xlu2 %5058, %v2346_v31   ;;  %v7983_v31 = vld [vmem:[#allocation42_spill] sm:$0xff] }
 0x1b5   : > { %2495 = vperm.xlu1 %5057, %v2345_v29   ;;  %2490 = vperm.xlu0 %5056, %v2344_v36   ;;  %v7772_v29 = vrot.slane %v7983_v31, 7  ;;  %v2128_v36 = vpack.c.bf16 %v2100_v41, %v2099_v22 }
 0x1b6   : > { %v5953_v26 = vpop.permute.xlu2 %2080  ;;  %v5955_v53 = vpop.permute.xlu1 %2030 }
 0x1b7   : > { %7980 = vst [vmem:[#allocation111_spill] sm:$0xff] %v5953_v26  ;;  %v5957_v13 = vpop.permute.xlu0 %2025  ;;  %v5960_v40 = vpop.f32.mrf.mxu2  ;;  %v5967_v56 = vsel %vm494_vm2, %v563_v55, %v7772_v29  ;;  %v4904_v55 = vld [vmem:[%s7677_s3 + $0xe] sm:$0x3] }
 0x1b8   : > { %7981 = vst [vmem:[#allocation112_spill] sm:$0xff] %v5955_v53  ;;  %v5962_v37 = vpop.f32.mrf.mxu1  ;;  %v832_v41 = vmul.f32 %v7987_v30, %v5967_v56  ;;  %v3852_v22 = vsel %vm1154_vm0, %v4904_v55, 0  ;;  %v1167_v29 = vpop.f32.mrf.mxu0  ;;  %v1422_v55 = vrot.slane %v7968_v47, 1  ;;  %v2734_v53 = vld [vmem:[#allocation4 + $0x518] sm:$0xff] }
 0x1b9   : > { %7982 = vst [vmem:[#allocation113_spill] sm:$0xff] %v5957_v13  ;;  %3861 = vmatpush.bf16.msra.mxu3 %v3852_v22  ;;  %v2735_v13 = vld [vmem:[#allocation4 + $0x520] sm:$0xff]  ;;  %v2733_v22 = vld [vmem:[#allocation4 + $0x510] sm:$0xff] }
 0x1ba   : > { %7984 = vst [vmem:[#allocation114_spill] sm:$0xff] %v5960_v40  ;;  %v3437_v40 = vsel %vm1154_vm0, %v4887_v0, 0 }
 0x1bb   : > { %7985 = vst [vmem:[#allocation115_spill] sm:$0xff] %v5967_v56  ;;  %4827 = vmatmul.msk.bf16.gmra.mxu2 %vm1105_vm1, %v1717_v4  ;;  %v4870_v4 = vld [vmem:[%s7677_s3 + $0xa] sm:$0x3] }
 0x1bc   : > { %4840 = vmatmul.msk.bf16.gmra.mxu3 %vm1105_vm1, %v2128_v36  ;;  %2770 = vperm.xlu2 %5058, %v2732_v7   ;;  %v7773_v36 = vrot.slane %v7979_v17, 1 }
 0x1bd   : > { %2765 = vperm.xlu1 %5057, %v2731_v57   ;;  %2505 = vperm.xlu0 %5056, %v2347_v61   ;;  %v3022_v57 = vsel %vm1154_vm0, %v4870_v4, 0  ;;  %v854_v61 = vpack.c.bf16 %v832_v41, %v831_v33  ;;  %v4921_v41 = vld [vmem:[%s7677_s3 + $0x10] sm:$0x3]  ;;  %v6014_v33 = vsel %vm1387_vm3, %v1420_v54, %v1422_v55 }
 0x1be   : > { %v5986_v0 = vpop.permute.xlu2 %2350  ;;  %3446 = vmatpush.bf16.msra.mxu2 %v3437_v40  ;;  %v5992_v26 = vpop.permute.xlu1 %2045  ;;  %3031 = vmatpush.bf16.msra.mxu1 %v3022_v57  ;;  %7994 = vst [vmem:[#allocation120_spill] sm:$0xff] %v6014_v33  ;;  %v4267_v4 = vsel %vm1154_vm0, %v4921_v41, 0  ;;  %v7779_v57 = vrot.slane %v5513_v52, 7 }
 0x1bf   : > { %7989 = vst [vmem:[#allocation16_spill] sm:$0xff] %v5992_v26  ;;  %v5994_v30 = vpop.permute.xlu0 %2040  ;;  %v5997_v7 = vpop.f32.mrf.mxu2  ;;  %v6007_v26 = vsel %vm1387_vm3, %v1422_v55, %v7773_v36  ;;  %4276 = vmatpush.bf16.msra.mxu0 %v4267_v4 }
 0x1c0   : > { %7990 = vst [vmem:[#allocation17_spill] sm:$0xff] %v5994_v30  ;;  %v6000_v40 = vpop.f32.mrf.mxu1  ;;  %v1695_v36 = vmul.f32 %v5705_v20, %v6007_v26  ;;  %v1169_v55 = vpop.f32.mrf.mxu0  ;;  %v2101_v20 = vmul.f32 %v5782_v3, %v5774_v5  ;;  %v2741_v5 = vld [vmem:[#allocation4 + $0x550] sm:$0xff]  ;;  %v2740_v30 = vld [vmem:[#allocation4 + $0x548] sm:$0xff] }
 0x1c1   : > { %7991 = vst [vmem:[#allocation117_spill] sm:$0xff] %v5997_v7  ;;  %v6047_v3 = vpop.f32.mrf.mxu3 }
 0x1c2   : > { %7993 = vst [vmem:[#allocation119_spill] sm:$0xff] %v6007_v26  ;;  %v2738_v26 = vld [vmem:[#allocation4 + $0x538] sm:$0xff] }
 0x1c3   : > { %4812 = vmatmul.msk.bf16.gmra.mxu1 %vm1105_vm1, %v854_v61  ;;  %v2102_v61 = vmul.f32 %v5879_v18, %v5777_v63  ;;  %8001 = vst [vmem:[#allocation126_spill] sm:$0xff] %v6047_v3 }
 0x1c4   : > { %2785 = vperm.xlu2 %5058, %v2735_v13   ;;  %v567_v13 = vrot.slane %v5507_v1, 7 }
 0x1c5   : > { %2780 = vperm.xlu1 %5057, %v2734_v53   ;;  %2775 = vperm.xlu0 %5056, %v2733_v22   ;;  %v1694_v53 = vmul.f32 %v5610_v48, %v6014_v33  ;;  %v2129_v63 = vpack.c.bf16 %v2102_v61, %v2101_v20  ;;  %v7999_v48 = vrot.slane %v7983_v31, 7  ;;  %v8003_v61 = vld [vmem:[#allocation10_spill] sm:$0xff] }
 0x1c6   : > { %v6022_v58 = vpop.permute.xlu2 %2365  ;;  %v6024_v7 = vpop.permute.xlu1 %2060  ;;  %v6040_v22 = vsel %vm494_vm2, %v567_v13, %v7779_v57 }
 0x1c7   : > { %7995 = vst [vmem:[#allocation121_spill] sm:$0xff] %v6024_v7  ;;  %v6026_v54 = vpop.permute.xlu0 %2055  ;;  %v6033_v41 = vpop.f32.mrf.mxu2  ;;  %v1718_v4 = vpack.c.bf16 %v1695_v36, %v1694_v53  ;;  %v2736_v7 = vld [vmem:[#allocation4 + $0x528] sm:$0xff]  ;;  %v6045_v33 = vsel %vm494_vm2, %v7999_v48, %v567_v13  ;;  %v1308_v13 = vadd.f32 %v5935_v14, %v1167_v29  ;;  %v2739_v29 = vld [vmem:[#allocation4 + $0x540] sm:$0xff] }
 0x1c8   : > { %7996 = vst [vmem:[#allocation122_spill] sm:$0xff] %v6026_v54  ;;  %v6035_v18 = vpop.f32.mrf.mxu1  ;;  %v2737_v54 = vld [vmem:[#allocation4 + $0x530] sm:$0xff]  ;;  %v833_v53 = vmul.f32 %v8003_v61, %v6045_v33  ;;  %v8006_v61 = vrot.slane %v7979_v17, 1 }
 0x1c9   : > { %7997 = vst [vmem:[#allocation123_spill] sm:$0xff] %v6033_v41  ;;  %v8002_v41 = vld [vmem:[#allocation19_spill] sm:$0xff] }
 0x1ca   : > { %7998 = vst [vmem:[#allocation124_spill] sm:$0xff] %v6040_v22  ;;  %v834_v57 = vmul.f32 %v8002_v41, %v6040_v22  ;;  %v1428_v41 = vrot.slane %v5507_v1, 1 }
 0x1cb   : > { %8000 = vst [vmem:[#allocation125_spill] sm:$0xff] %v6045_v33  ;;  %4828 = vmatmul.msk.bf16.gmra.mxu2 %vm1105_vm1, %v1718_v4 }
 0x1cc   : > { %4841 = vmatmul.msk.bf16.gmra.mxu3 %vm1105_vm1, %v2129_v63  ;;  %2800 = vperm.xlu2 %5058, %v2738_v26   ;;  %v855_v3 = vpack.c.bf16 %v834_v57, %v833_v53  ;;  %v1426_v63 = vrot.slane %v7983_v31, 1 }
 0x1cd   : > { %2795 = vperm.xlu1 %5057, %v2737_v54   ;;  %2790 = vperm.xlu0 %5056, %v2736_v7   ;;  %v1172_v54 = vpop.f32.mrf.mxu0 }
 0x1ce   : > { %v6053_v36 = vpop.permute.xlu2 %2380  ;;  %v6058_v20 = vpop.permute.xlu1 %2075  ;;  %v6071_v14 = vsel %vm1387_vm3, %v8006_v61, %v1426_v63  ;;  %v6075_v57 = vsel %vm1387_vm3, %v1426_v63, %v1428_v41  ;;  %v1310_v61 = vadd.f32 %v5962_v37, %v1169_v55  ;;  %v8013_v37 = vrot.slane %v5513_v52, 7 }
 0x1cf   : > { %8004 = vst [vmem:[#allocation19_spill] sm:$0xff] %v6058_v20  ;;  %v6060_v48 = vpop.permute.xlu0 %2070  ;;  %v1788_v4 = vpop.f32.mrf.mxu2  ;;  %v1696_v53 = vmul.f32 %v5703_v2, %v6071_v14  ;;  %v1697_v2 = vmul.f32 %v5635_v8, %v6075_v57 }
 0x1d0   : > { %8005 = vst [vmem:[#allocation10_spill] sm:$0xff] %v6060_v48  ;;  %v6064_v26 = vadd.f32 %v1788_v4, %v1308_v13  ;;  %v6066_v7 = vpop.f32.mrf.mxu1  ;;  %v2103_v13 = vmul.f32 %v5877_v25, %v5821_v50  ;;  %v6081_v4 = vpop.f32.mrf.mxu3  ;;  %v2104_v25 = vmul.f32 %v5810_v28, %v5818_v49  ;;  %v8016_v28 = vld [vmem:[#allocation18_spill] sm:$0xff] }
 0x1d1   : > { %8007 = vst [vmem:[#allocation127_spill] sm:$0xff] %v6071_v14  ;;  %v2743_v14 = vld [vmem:[#allocation4 + $0x560] sm:$0xff] }
 0x1d2   : > { %8008 = vst [vmem:[#allocation128_spill] sm:$0xff] %v6075_v57 }
 0x1d3   : > { %4813 = vmatmul.msk.bf16.gmra.mxu1 %vm1105_vm1, %v855_v3  ;;  %8009 = vst [vmem:[#allocation129_spill] sm:$0xff] %v6081_v4  ;;  %v1719_v4 = vpack.c.bf16 %v1697_v2, %v1696_v53  ;;  %v8018_v53 = vld [vmem:[#allocation11_spill] sm:$0xff]  ;;  %v1430_v2 = vrot.slane %v5513_v52, 1 }
 0x1d4   : > { %2815 = vperm.xlu2 %5058, %v2741_v5   ;;  %v571_v5 = vrot.slane %v5568_v27, 7 }
 0x1d5   : > { %2810 = vperm.xlu1 %5057, %v2740_v30   ;;  %2805 = vperm.xlu0 %5056, %v2739_v29   ;;  %v573_v30 = vrot.slane %v5570_v51, 7  ;;  %v1174_v57 = vpop.f32.mrf.mxu0 }
 0x1d6   : > { %v6083_v20 = vpop.permute.xlu2 %2395  ;;  %v6086_v3 = vpop.permute.xlu1 %2090  ;;  %v6103_v55 = vsel %vm494_vm2, %v8013_v37, %v571_v5 }
 0x1d7   : > { %8010 = vst [vmem:[#allocation130_spill] sm:$0xff] %v6083_v20  ;;  %v6088_v48 = vpop.permute.xlu0 %2085  ;;  %v1790_v63 = vpop.f32.mrf.mxu2  ;;  %v2742_v20 = vld [vmem:[#allocation4 + $0x558] sm:$0xff]  ;;  %v6106_v8 = vsel %vm494_vm2, %v571_v5, %v573_v30  ;;  %v1313_v5 = vadd.f32 %v6000_v40, %v1172_v54 }
 0x1d8   : > { %8011 = vst [vmem:[#allocation131_spill] sm:$0xff] %v6086_v3  ;;  %v6096_v29 = vadd.f32 %v1790_v63, %v1310_v61  ;;  %v6098_v50 = vpop.f32.mrf.mxu1  ;;  %v2744_v3 = vld [vmem:[#allocation4 + $0x568] sm:$0xff]  ;;  %v835_v61 = vmul.f32 %v8016_v28, %v6103_v55  ;;  %v7789_v28 = vrot.slane %v5568_v27, 1  ;;  %v2746_v40 = vld [vmem:[#allocation4 + $0x578] sm:$0xff] }
 0x1d9   : > { %8012 = vst [vmem:[#allocation132_spill] sm:$0xff] %v6088_v48  ;;  %v2130_v48 = vpack.c.bf16 %v2104_v25, %v2103_v13  ;;  %v836_v13 = vmul.f32 %v8018_v53, %v6106_v8 }
 0x1da   : > { %8014 = vst [vmem:[#allocation133_spill] sm:$0xff] %v6103_v55  ;;  %v2747_v55 = vld [vmem:[#allocation4 + $0x580] sm:$0xff]  ;;  %v6131_v54 = vsel %vm1387_vm3, %v1430_v2, %v7789_v28 }
 0x1db   : > { %8015 = vst [vmem:[#allocation134_spill] sm:$0xff] %v6106_v8  ;;  %4829 = vmatmul.msk.bf16.gmra.mxu2 %vm1105_vm1, %v1719_v4  ;;  %v6120_v4 = vpop.f32.mrf.mxu3 }
 0x1dc   : > { %4842 = vmatmul.msk.bf16.gmra.mxu3 %vm1105_vm1, %v2130_v48  ;;  %2830 = vperm.xlu2 %5058, %v2744_v3   ;;  %v2508_v48 = vmul.f32 %v5986_v0, %v5347_v34  ;;  %8019 = vst [vmem:[#allocation11_spill] sm:$0xff] %v6120_v4  ;;  %v6134_v0 = vsel %vm1387_vm3, %v1428_v41, %v1430_v2  ;;  %v2749_v4 = vld [vmem:[#allocation4 + $0x590] sm:$0xff] }
 0x1dd   : > { %2825 = vperm.xlu1 %5057, %v2743_v14   ;;  %2820 = vperm.xlu0 %5056, %v2742_v20   ;;  %v856_v20 = vpack.c.bf16 %v836_v13, %v835_v61  ;;  %8020 = vst [vmem:[#allocation135_spill] sm:$0xff] %v6131_v54  ;;  %v2745_v61 = vld [vmem:[#allocation4 + $0x570] sm:$0xff]  ;;  %v8022_v13 = vld [vmem:[#allocation47_spill] sm:$0xff]  ;;  %v2106_v41 = vmul.f32 %v5899_v39, %v5864_v23  ;;  %v2748_v23 = vld [vmem:[#allocation4 + $0x588] sm:$0xff] }
 0x1de   : > { %v6112_v63 = vpop.permute.xlu2 %2410  ;;  %v2361_v25 = vpop.permute.xlu1 %2360  ;;  %8021 = vst [vmem:[#allocation136_spill] sm:$0xff] %v6134_v0  ;;  %v2105_v2 = vmul.f32 %v5901_v35, %v5867_v42 }
 0x1df   : > { %8017 = vst [vmem:[#allocation18_spill] sm:$0xff] %v6112_v63  ;;  %v2356_v37 = vpop.permute.xlu0 %2355  ;;  %v1793_v14 = vpop.f32.mrf.mxu2 }
 0x1e0   : > { %v2509_v3 = vmul.f32 %v2356_v37, %v5354_v46  ;;  %v6124_v49 = vadd.f32 %v1793_v14, %v1313_v5  ;;  %v6126_v53 = vpop.f32.mrf.mxu1  ;;  %v575_v5 = vrot.slane %v8022_v13, 7  ;;  %v1699_v37 = vmul.f32 %v5720_v38, %v6131_v54  ;;  %v2750_v46 = vld [vmem:[#allocation4 + $0x598] sm:$0xff] }
 0x1e2   : > { %v2540_v63 = vpack.c.bf16 %v2509_v3, %v2508_v48  ;;  %v1698_v48 = vmul.f32 %v5722_v15, %v6134_v0  ;;  %v1177_v3 = vpop.f32.mrf.mxu0  ;;  %v6165_v35 = vsel %vm494_vm2, %v573_v30, %v575_v5  ;;  %v2510_v30 = vmul.f32 %v2361_v25, %v5382_v21 }
 0x1e3   : > { %4814 = vmatmul.msk.bf16.gmra.mxu1 %vm1105_vm1, %v856_v20  ;;  %v8023_v20 = vld [vmem:[#allocation46_spill] sm:$0xff]  ;;  %8025 = vst [vmem:[#allocation138_spill] sm:$0xff] %v6165_v35 }
 0x1e4   : > { %4854 = vmatmul.msk.bf16.vlgmr.msrb.gmra.mxu0 %vm1105_vm1, %v2540_v63  ;;  %2845 = vperm.xlu2 %5058, %v2747_v55   ;;  %v1315_v63 = vadd.f32 %v6035_v18, %v1174_v57  ;;  %v1720_v18 = vpack.c.bf16 %v1699_v37, %v1698_v48  ;;  %v2131_v57 = vpack.c.bf16 %v2106_v41, %v2105_v2 }
 0x1e5   : > { %2840 = vperm.xlu1 %5057, %v2746_v40   ;;  %2835 = vperm.xlu0 %5056, %v2745_v61   ;;  %v7793_v40 = vrot.slane %v8023_v20, 7  ;;  %v6167_v61 = vpop.f32.mrf.mxu3  ;;  %v1318_v37 = vadd.f32 %v6066_v7, %v1177_v3  ;;  %v2511_v2 = vmul.f32 %v6022_v58, %v5384_v6  ;;  %v2753_v7 = vld [vmem:[#allocation4 + $0x5b0] sm:$0xff]  ;;  %v2752_v3 = vld [vmem:[#allocation4 + $0x5a8] sm:$0xff]  ;;  %v2751_v58 = vld [vmem:[#allocation4 + $0x5a0] sm:$0xff] }
 0x1e6   : > { %v6148_v14 = vpop.permute.xlu2 %2425  ;;  %v6150_v55 = vpop.permute.xlu1 %2375  ;;  %8026 = vst [vmem:[#allocation139_spill] sm:$0xff] %v6167_v61  ;;  %v2756_v61 = vld [vmem:[#allocation4 + $0x5c8] sm:$0xff] }
 0x1e7   : > { %v6153_v38 = vpop.permute.xlu0 %2370  ;;  %v1795_v28 = vpop.f32.mrf.mxu2  ;;  %v6162_v39 = vsel %vm494_vm2, %v575_v5, %v7793_v40  ;;  %v8028_v40 = vld [vmem:[#allocation21_spill] sm:$0xff]  ;;  %v7797_v5 = vrot.slane %v8022_v13, 1 }
 0x1e8   : > { %v6155_v15 = vadd.f32 %v1795_v28, %v1315_v63  ;;  %v6157_v34 = vpop.f32.mrf.mxu1  ;;  %8024 = vst [vmem:[#allocation137_spill] sm:$0xff] %v6162_v39  ;;  %v8027_v28 = vld [vmem:[#allocation20_spill] sm:$0xff]  ;;  %v837_v42 = vmul.f32 %v8028_v40, %v6165_v35 }
 0x1e9   : > { %v838_v63 = vmul.f32 %v8027_v28, %v6162_v39  ;;  %v2541_v28 = vpack.c.bf16 %v2511_v2, %v2510_v30  ;;  %v2108_v2 = vmul.f32 %v5930_v10, %v5917_v16  ;;  %v2755_v16 = vld [vmem:[#allocation4 + $0x5c0] sm:$0xff] }
 0x1ea   : > { %v1179_v25 = vpop.f32.mrf.mxu0 }
 0x1eb   : > { %4830 = vmatmul.msk.bf16.gmra.mxu2 %vm1105_vm1, %v1720_v18  ;;  %v857_v40 = vpack.c.bf16 %v838_v63, %v837_v42  ;;  %v8031_v42 = vrot.slane %v5568_v27, 1 }
 0x1ec   : > { %4843 = vmatmul.msk.bf16.gmra.mxu3 %vm1105_vm1, %v2131_v57  ;;  %2860 = vperm.xlu2 %5058, %v2750_v46   ;;  %v1434_v46 = vrot.slane %v5570_v51, 1 }
 0x1ed   : > { %2855 = vperm.xlu1 %5057, %v2749_v4   ;;  %2850 = vperm.xlu0 %5056, %v2748_v23   ;;  %v6197_v6 = vpop.f32.mrf.mxu3 }
 0x1ee   : > { %v6178_v48 = vpop.permute.xlu2 %2440  ;;  %v6180_v41 = vpop.permute.xlu1 %2390  ;;  %v6194_v21 = vsel %vm1387_vm3, %v1434_v46, %v7797_v5  ;;  %8030 = vst [vmem:[#allocation21_spill] sm:$0xff] %v6197_v6  ;;  %v6203_v63 = vsel %vm1387_vm3, %v8031_v42, %v1434_v46  ;;  %v8033_v5 = vld [vmem:[#allocation53_spill] sm:$0xff] }
 0x1ef   : > { %v6184_v18 = vpop.permute.xlu0 %2385  ;;  %v1798_v57 = vpop.f32.mrf.mxu2  ;;  %8029 = vst [vmem:[#allocation20_spill] sm:$0xff] %v6194_v21  ;;  %v579_v46 = vrot.slane %v8033_v5, 7 }
 0x1f0   : > { %v6187_v4 = vadd.f32 %v1798_v57, %v1318_v37  ;;  %v6189_v23 = vpop.f32.mrf.mxu1  ;;  %8032 = vst [vmem:[#allocation140_spill] sm:$0xff] %v6203_v63  ;;  %v1701_v37 = vmul.f32 %v5746_v24, %v6194_v21  ;;  %v1320_v57 = vadd.f32 %v6098_v50, %v1179_v25  ;;  %v8035_v50 = vrot.slane %v5552_v19, 7 }
 0x1f2   : > { %v6229_v25 = vsel %vm494_vm2, %v579_v46, %v8035_v50 }
 0x1f3   : > { %4815 = vmatmul.msk.bf16.gmra.mxu1 %vm1105_vm1, %v857_v40  ;;  %8036 = vst [vmem:[#allocation142_spill] sm:$0xff] %v6229_v25 }
 0x1f4   : > { %4855 = vmatmul.msk.bf16.gmra.mxu0 %vm1105_vm1, %v2541_v28  ;;  %2875 = vperm.xlu2 %5058, %v2753_v7   ;;  %v1700_v7 = vmul.f32 %v5659_v60, %v6203_v63  ;;  %v2754_v60 = vld [vmem:[#allocation4 + $0x5b8] sm:$0xff]  ;;  %v8037_v63 = vrot.slane %v8023_v20, 7 }
 0x1f5   : > { %2870 = vperm.xlu1 %5057, %v2752_v3   ;;  %2865 = vperm.xlu0 %5056, %v2751_v58   ;;  %v2107_v3 = vmul.f32 %v5829_v43, %v5914_v32  ;;  %v1182_v32 = vpop.f32.mrf.mxu0 }
 0x1f6   : > { %v6211_v40 = vpop.permute.xlu2 %2455  ;;  %v6213_v28 = vpop.permute.xlu1 %2405  ;;  %v1721_v58 = vpack.c.bf16 %v1701_v37, %v1700_v7  ;;  %v6234_v43 = vsel %vm494_vm2, %v8037_v63, %v579_v46  ;;  %v2512_v7 = vmul.f32 %v6153_v38, %v5431_v44  ;;  %v8041_v63 = vld [vmem:[#allocation12_spill] sm:$0xff] }
 0x1f7   : > { %v6220_v42 = vpop.permute.xlu0 %2400  ;;  %v1800_v24 = vpop.f32.mrf.mxu2  ;;  %v2132_v6 = vpack.c.bf16 %v2108_v2, %v2107_v3  ;;  %8038 = vst [vmem:[#allocation143_spill] sm:$0xff] %v6234_v43  ;;  %v2513_v2 = vmul.f32 %v6150_v55, %v5423_v12  ;;  %v839_v46 = vmul.f32 %v8041_v63, %v6234_v43  ;;  %v1323_v3 = vadd.f32 %v6126_v53, %v1182_v32  ;;  %v2758_v12 = vld [vmem:[#allocation4 + $0x5d8] sm:$0xff] }
 0x1f8   : > { %v6222_v30 = vadd.f32 %v1800_v24, %v1320_v57  ;;  %v6224_v10 = vpop.f32.mrf.mxu1  ;;  %v8039_v57 = vld [vmem:[#allocation23_spill] sm:$0xff]  ;;  %v6240_v37 = vpop.f32.mrf.mxu3 }
 0x1f9   : > { %8034 = vst [vmem:[#allocation141_spill] sm:$0xff] %v6224_v10  ;;  %v840_v24 = vmul.f32 %v8039_v57, %v6229_v25  ;;  %v7806_v57 = vrot.slane %v8033_v5, 1  ;;  %v2542_v53 = vpack.c.bf16 %v2513_v2, %v2512_v7 }
 0x1fa   : > { %8040 = vst [vmem:[#allocation23_spill] sm:$0xff] %v6240_v37  ;;  %v8048_v37 = vrot.slane %v5552_v19, 7 }
 0x1fb   : > { %4831 = vmatmul.msk.bf16.gmra.mxu2 %vm1105_vm1, %v1721_v58  ;;  %v858_v38 = vpack.c.bf16 %v840_v24, %v839_v46  ;;  %v2757_v24 = vld [vmem:[#allocation4 + $0x5d0] sm:$0xff] }
 0x1fc   : > { %4844 = vmatmul.msk.bf16.gmra.mxu3 %vm1105_vm1, %v2132_v6  ;;  %2890 = vperm.xlu2 %5058, %v2756_v61  }
 0x1fd   : > { %2885 = vperm.xlu1 %5057, %v2755_v16   ;;  %2880 = vperm.xlu0 %5056, %v2754_v60   ;;  %v6253_v16 = vmul.f32 %v6148_v14, %v7968_v47  ;;  %v1438_v60 = vrot.slane %v8023_v20, 1  ;;  %v2759_v47 = vld [vmem:[#allocation4 + $0x5e0] sm:$0xff]  ;;  %v1184_v7 = vpop.f32.mrf.mxu0 }
 0x1fe   : > { %v6249_v6 = vpop.permute.xlu2 %2470 }
 0x1ff   : > { %v2421_v50 = vpop.permute.xlu1 %2420  ;;  %v6258_v55 = vpop.permute.xlu0 %2415  ;;  %v6278_v46 = vsel %vm1387_vm3, %v1438_v60, %v7806_v57 }
 0x200   : > { %v6256_v61 = vmul.f32 %v2421_v50, %v7967_v59  ;;  %v1803_v58 = vpop.f32.mrf.mxu2  ;;  %v6264_v32 = vpop.f32.mrf.mxu1  ;;  %v8042_v50 = vrot.slane %v8022_v13, 1  ;;  %8044 = vst [vmem:[#allocation144_spill] sm:$0xff] %v6278_v46 }
 0x201   : > { %v6262_v63 = vadd.f32 %v1803_v58, %v1323_v3  ;;  %v2109_v3 = vmul.f32 %v5928_v11, %v5970_v45  ;;  %v8045_v58 = vld [vmem:[#allocation59_spill] sm:$0xff] }
 0x202   : > { %v6271_v59 = vsel %vm1387_vm3, %v8042_v50, %v1438_v60  ;;  %v8046_v50 = vld [vmem:[#allocation60_spill] sm:$0xff] }
 0x203   : > { %8043 = vst [vmem:[#allocation12_spill] sm:$0xff] %v6271_v59  ;;  %4816 = vmatmul.msk.bf16.gmra.mxu1 %vm1105_vm1, %v858_v38  ;;  %v1702_v2 = vmul.f32 %v5744_v9, %v6271_v59  ;;  %v583_v38 = vrot.slane %v8045_v58, 7  ;;  %v2110_v9 = vmul.f32 %v5848_v62, %v5967_v56  ;;  %v8052_v10 = vrot.slane %v8046_v50, 7 }
 0x204   : > { %4856 = vmatmul.msk.bf16.gmra.mxu0 %vm1105_vm1, %v2542_v53  ;;  %2905 = vperm.xlu2 %5058, %v2759_v47   ;;  %v1325_v53 = vadd.f32 %v6157_v34, %v1184_v7  ;;  %v8047_v47 = vld [vmem:[#allocation68_spill] sm:$0xff]  ;;  %v6301_v34 = vpop.f32.mrf.mxu3 }
 0x205   : > { %2900 = vperm.xlu1 %5057, %v2758_v12   ;;  %2895 = vperm.xlu0 %5056, %v2757_v24   ;;  %v1703_v12 = vmul.f32 %v8047_v47, %v6278_v46  ;;  %v6299_v14 = vsel %vm494_vm2, %v8048_v37, %v583_v38  ;;  %8050 = vst [vmem:[#allocation145_spill] sm:$0xff] %v6301_v34  ;;  %v2760_v34 = vld [vmem:[#allocation4 + $0x5e8] sm:$0xff] }
 0x206   : > { %v6287_v44 = vpop.permute.xlu2 %2485  ;;  %8049 = vst [vmem:[#allocation68_spill] sm:$0xff] %v6299_v14  ;;  %v2133_v56 = vpack.c.bf16 %v2110_v9, %v2109_v3  ;;  %v6313_v46 = vsel %vm494_vm2, %v583_v38, %v8052_v10  ;;  %v1442_v38 = vrot.slane %v5552_v19, 1  ;;  %v8058_v37 = vld [vmem:[#allocation29_spill] sm:$0xff] }
 0x207   : > { %v2436_v60 = vpop.permute.xlu1 %2435  ;;  %v2431_v11 = vpop.permute.xlu0 %2430  ;;  %v1722_v62 = vpack.c.bf16 %v1703_v12, %v1702_v2  ;;  %8053 = vst [vmem:[#allocation147_spill] sm:$0xff] %v6313_v46  ;;  %v8055_v2 = vld [vmem:[#allocation15_spill] sm:$0xff]  ;;  %v8057_v12 = vld [vmem:[#allocation77_spill] sm:$0xff] }
 0x208   : > { %v6294_v57 = vmul.f32 %v2436_v60, %v7983_v31  ;;  %v1805_v24 = vpop.f32.mrf.mxu2  ;;  %v6304_v7 = vmul.f32 %v2431_v11, %v7979_v17  ;;  %v6308_v47 = vpop.f32.mrf.mxu1  ;;  %v2762_v60 = vld [vmem:[#allocation4 + $0x5f8] sm:$0xff]  ;;  %v2761_v31 = vld [vmem:[#allocation4 + $0x5f0] sm:$0xff]  ;;  %v842_v3 = vmul.f32 %v8055_v2, %v6313_v46  ;;  %v1328_v9 = vadd.f32 %v6189_v23, %v8057_v12 }
 0x209   : > { %v6306_v45 = vadd.f32 %v1805_v24, %v1325_v53  ;;  %8051 = vst [vmem:[#allocation146_spill] sm:$0xff] %v6308_v47  ;;  %v8054_v11 = vld [vmem:[#allocation22_spill] sm:$0xff]  ;;  %v6342_v23 = vmul.f32 %v6178_v48, %v5507_v1  ;;  %v8062_v48 = vrot.slane %v8045_v58, 1 }
 0x20a   : > { %v841_v17 = vmul.f32 %v8054_v11, %v6299_v14  ;;  %v8056_v53 = vld [vmem:[#allocation30_spill] sm:$0xff] }
 0x20b   : > { %4832 = vmatmul.msk.bf16.gmra.mxu2 %vm1105_vm1, %v1722_v62  ;;  %v2515_v10 = vmul.f32 %v6184_v18, %v8056_v53  ;;  %8061 = vst [vmem:[#allocation77_spill] sm:$0xff] %v6342_v23  ;;  %v3148_v2 = vld [vmem:[#allocation4 + $0x610] sm:$0xff]  ;;  %v6359_v1 = vsel %vm1387_vm3, %v1442_v38, %v8062_v48  ;;  %v3149_v23 = vld [vmem:[#allocation4 + $0x618] sm:$0xff] }
 0x20c   : > { %4845 = vmatmul.msk.bf16.gmra.mxu3 %vm1105_vm1, %v2133_v56  ;;  %2920 = vperm.xlu2 %5058, %v2762_v60   ;;  %v859_v62 = vpack.c.bf16 %v842_v3, %v841_v17  ;;  %v2514_v56 = vmul.f32 %v6053_v36, %v8058_v37  ;;  %8063 = vst [vmem:[#allocation148_spill] sm:$0xff] %v6359_v1 }
 0x20d   : > { %2915 = vperm.xlu1 %5057, %v2761_v31   ;;  %2910 = vperm.xlu0 %5056, %v2760_v34   ;;  %v6334_v31 = vmul.f32 %v6211_v40, %v5570_v51 }
 0x20e   : > { %v6328_v24 = vpop.permute.xlu2 %2500  ;;  %v2543_v40 = vpack.c.bf16 %v2515_v10, %v2514_v56  ;;  %v3146_v56 = vld [vmem:[#allocation4 + $0x600] sm:$0xff]  ;;  %v8070_v10 = vld [vmem:[#allocation113_spill] sm:$0xff] }
 0x20f   : > { %v2451_v11 = vpop.permute.xlu1 %2450  ;;  %8059 = vst [vmem:[#allocation22_spill] sm:$0xff] %v6334_v31  ;;  %v2446_v18 = vpop.permute.xlu0 %2445  ;;  %v2111_v37 = vmul.f32 %v8070_v10, %v6045_v33  ;;  %v3150_v31 = vld [vmem:[#allocation4 + $0x620] sm:$0xff] }
 0x210   : > { %v6337_v60 = vmul.f32 %v2451_v11, %v5568_v27  ;;  %v1808_v34 = vpop.f32.mrf.mxu2  ;;  %v6345_v17 = vmul.f32 %v2446_v18, %v5513_v52  ;;  %v2203_v36 = vpop.f32.mrf.mxu3  ;;  %v3147_v27 = vld [vmem:[#allocation4 + $0x608] sm:$0xff] }
 0x211   : > { %v6347_v3 = vadd.f32 %v1808_v34, %v1328_v9  ;;  %v6349_v12 = vpop.f32.mrf.mxu1  ;;  %v6354_v51 = vadd.f32 %v2203_v36, %v6064_v26  ;;  %v8064_v9 = vrot.slane %v8033_v5, 1  ;;  %v8066_v26 = vld [vmem:[#allocation65_spill] sm:$0xff]  ;;  %v8067_v36 = vld [vmem:[#allocation80_spill] sm:$0xff] }
 0x212   : > { %8060 = vst [vmem:[#allocation15_spill] sm:$0xff] %v6337_v60  ;;  %v587_v34 = vrot.slane %v8066_v26, 7  ;;  %v1705_v48 = vmul.f32 %v8067_v36, %v6359_v1  ;;  %v8068_v11 = vld [vmem:[#allocation81_spill] sm:$0xff]  ;;  %v8072_v36 = vld [vmem:[#allocation48_spill] sm:$0xff] }
 0x213   : > { %v6364_v18 = vsel %vm1387_vm3, %v8064_v9, %v1442_v38  ;;  %4817 = vmatmul.msk.bf16.gmra.mxu1 %vm1105_vm1, %v859_v62  ;;  %v8069_v38 = vld [vmem:[#allocation112_spill] sm:$0xff]  ;;  %v8073_v47 = vrot.slane %v8072_v36, 7  ;;  %v3151_v60 = vld [vmem:[#allocation4 + $0x628] sm:$0xff] }
 0x214   : > { %8065 = vst [vmem:[#allocation149_spill] sm:$0xff] %v6364_v18  ;;  %4857 = vmatmul.msk.bf16.gmra.mxu0 %vm1105_vm1, %v2543_v40  ;;  %3190 = vperm.xlu2 %5058, %v3148_v2   ;;  %v1704_v52 = vmul.f32 %v8068_v11, %v6364_v18  ;;  %v2112_v9 = vmul.f32 %v8069_v38, %v6040_v22  ;;  %v8075_v38 = vrot.slane %v8046_v50, 7 }
 0x215   : > { %3185 = vperm.xlu1 %5057, %v3147_v27   ;;  %3180 = vperm.xlu0 %5056, %v3146_v56   ;;  %v6389_v11 = vsel %vm494_vm2, %v587_v34, %v8073_v47 }
 0x216   : > { %v6379_v62 = vpop.permute.xlu2 %2770  ;;  %8074 = vst [vmem:[#allocation81_spill] sm:$0xff] %v6389_v11  ;;  %v6394_v22 = vsel %vm494_vm2, %v8075_v38, %v587_v34  ;;  %v8078_v34 = vld [vmem:[#allocation24_spill] sm:$0xff] }
 0x217   : > { %v2466_v40 = vpop.permute.xlu1 %2465  ;;  %v2461_v27 = vpop.permute.xlu0 %2460  ;;  %8076 = vst [vmem:[#allocation112_spill] sm:$0xff] %v6394_v22  ;;  %v844_v38 = vmul.f32 %v8078_v34, %v6389_v11 }
 0x218   : > { %v6382_v53 = vmul.f32 %v2466_v40, %v8023_v20  ;;  %v6384_v2 = vpop.f32.mrf.mxu2  ;;  %v6397_v10 = vmul.f32 %v2461_v27, %v8022_v13  ;;  %v2205_v56 = vpop.f32.mrf.mxu3  ;;  %v1723_v40 = vpack.c.bf16 %v1705_v48, %v1704_v52  ;;  %v2134_v20 = vpack.c.bf16 %v2112_v9, %v2111_v37  ;;  %v8079_v27 = vld [vmem:[#allocation25_spill] sm:$0xff]  ;;  %v8080_v52 = vld [vmem:[#allocation32_spill] sm:$0xff]  ;;  %v8081_v48 = vld [vmem:[#allocation87_spill] sm:$0xff] }
 0x219   : > { %8071 = vst [vmem:[#allocation80_spill] sm:$0xff] %v6384_v2  ;;  %v6399_v33 = vpop.f32.mrf.mxu1  ;;  %v6402_v2 = vadd.f32 %v2205_v56, %v6096_v29  ;;  %v843_v13 = vmul.f32 %v8079_v27, %v6394_v22  ;;  %v2516_v29 = vmul.f32 %v6180_v41, %v8080_v52  ;;  %v1333_v9 = vadd.f32 %v6264_v32, %v8081_v48  ;;  %v8082_v27 = vld [vmem:[#allocation33_spill] sm:$0xff] }
 0x21a   : > { %8077 = vst [vmem:[#allocation113_spill] sm:$0xff] %v6399_v33  ;;  %v8083_v33 = vld [vmem:[#allocation130_spill] sm:$0xff]  ;;  %v6431_v32 = vmul.f32 %v6249_v6, %v8033_v5  ;;  %v8086_v6 = vrot.slane %v8066_v26, 1 }
 0x21b   : > { %4833 = vmatmul.msk.bf16.gmra.mxu2 %vm1105_vm1, %v1723_v40  ;;  %v860_v47 = vpack.c.bf16 %v844_v38, %v843_v13  ;;  %v2517_v40 = vmul.f32 %v8083_v33, %v8082_v27  ;;  %v3153_v27 = vld [vmem:[#allocation4 + $0x638] sm:$0xff] }
 0x21c   : > { %4846 = vmatmul.msk.bf16.gmra.mxu3 %vm1105_vm1, %v2134_v20  ;;  %3205 = vperm.xlu2 %5058, %v3151_v60   ;;  %v6423_v20 = vmul.f32 %v6287_v44, %v8046_v50 }
 0x21d   : > { %3200 = vperm.xlu1 %5057, %v3150_v31   ;;  %3195 = vperm.xlu0 %5056, %v3149_v23   ;;  %v1446_v23 = vrot.slane %v8046_v50, 1  ;;  %v2544_v44 = vpack.c.bf16 %v2517_v40, %v2516_v29  ;;  %v3154_v50 = vld [vmem:[#allocation4 + $0x640] sm:$0xff]  ;;  %v8088_v29 = vrot.slane %v8045_v58, 1  ;;  %v8090_v40 = vld [vmem:[#allocation86_spill] sm:$0xff] }
 0x21e   : > { %v6417_v56 = vpop.permute.xlu2 %2785  ;;  %8084 = vst [vmem:[#allocation24_spill] sm:$0xff] %v6423_v20  ;;  %v3156_v20 = vld [vmem:[#allocation4 + $0x650] sm:$0xff] }
 0x21f   : > { %v2481_v34 = vpop.permute.xlu1 %2480  ;;  %v2476_v41 = vpop.permute.xlu0 %2475  ;;  %v6448_v5 = vsel %vm1387_vm3, %v1446_v23, %v8086_v6 }
 0x220   : > { %v6426_v31 = vmul.f32 %v2481_v34, %v8045_v58  ;;  %v1813_v60 = vpop.f32.mrf.mxu2  ;;  %v6434_v13 = vmul.f32 %v2476_v41, %v5552_v19  ;;  %v2208_v33 = vpop.f32.mrf.mxu3  ;;  %8087 = vst [vmem:[#allocation87_spill] sm:$0xff] %v6448_v5  ;;  %v3152_v41 = vld [vmem:[#allocation4 + $0x630] sm:$0xff]  ;;  %v8093_v19 = vld [vmem:[#allocation133_spill] sm:$0xff] }
 0x221   : > { %v6436_v38 = vadd.f32 %v1813_v60, %v1333_v9  ;;  %v6438_v48 = vpop.f32.mrf.mxu1  ;;  %v6443_v37 = vadd.f32 %v2208_v33, %v6124_v49  ;;  %v6457_v49 = vsel %vm1387_vm3, %v8088_v29, %v1446_v23  ;;  %v1707_v60 = vmul.f32 %v8090_v40, %v6448_v5  ;;  %v8091_v33 = vld [vmem:[#allocation17_spill] sm:$0xff]  ;;  %v8092_v9 = vld [vmem:[#allocation71_spill] sm:$0xff]  ;;  %v8094_v58 = vld [vmem:[#allocation14_spill] sm:$0xff] }
 0x222   : > { %8085 = vst [vmem:[#allocation25_spill] sm:$0xff] %v6426_v31  ;;  %v2114_v6 = vmul.f32 %v8091_v33, %v6106_v8  ;;  %v2113_v52 = vmul.f32 %v8094_v58, %v8093_v19  ;;  %v8102_v58 = vld [vmem:[#allocation66_spill] sm:$0xff] }
 0x223   : > { %4818 = vmatmul.msk.bf16.gmra.mxu1 %vm1105_vm1, %v860_v47  ;;  %8089 = vst [vmem:[#allocation130_spill] sm:$0xff] %v6457_v49 }
 0x224   : > { %4858 = vmatmul.msk.bf16.gmra.mxu0 %vm1105_vm1, %v2544_v44  ;;  %3220 = vperm.xlu2 %5058, %v3154_v50   ;;  %v1706_v44 = vmul.f32 %v8092_v9, %v6457_v49  ;;  %v2135_v8 = vpack.c.bf16 %v2114_v6, %v2113_v52  ;;  %v3157_v9 = vld [vmem:[#allocation4 + $0x658] sm:$0xff] }
 0x225   : > { %3215 = vperm.xlu1 %5057, %v3153_v27   ;;  %3210 = vperm.xlu0 %5056, %v3152_v41  }
 0x226   : > { %v6463_v34 = vpop.permute.xlu2 %2800  ;;  %v1724_v33 = vpack.c.bf16 %v1707_v60, %v1706_v44  ;;  %v8100_v60 = vld [vmem:[#allocation40_spill] sm:$0xff] }
 0x227   : > { %v2496_v47 = vpop.permute.xlu1 %2495  ;;  %v2491_v50 = vpop.permute.xlu0 %2490  ;;  %v2518_v52 = vmul.f32 %v6220_v42, %v8100_v60  ;;  %v8106_v42 = vld [vmem:[#allocation26_spill] sm:$0xff] }
 0x228   : > { %v6470_v23 = vmul.f32 %v2496_v47, %v8072_v36  ;;  %v6472_v27 = vpop.f32.mrf.mxu2  ;;  %v6475_v29 = vmul.f32 %v2491_v50, %v8066_v26  ;;  %v2210_v40 = vpop.f32.mrf.mxu3  ;;  %v3155_v47 = vld [vmem:[#allocation4 + $0x648] sm:$0xff]  ;;  %v8099_v50 = vld [vmem:[#allocation38_spill] sm:$0xff] }
 0x229   : > { %8096 = vst [vmem:[#allocation17_spill] sm:$0xff] %v6472_v27  ;;  %v6477_v41 = vpop.f32.mrf.mxu1  ;;  %v6480_v31 = vadd.f32 %v2210_v40, %v6155_v15  ;;  %v8101_v15 = vld [vmem:[#allocation94_spill] sm:$0xff] }
 0x22a   : > { %8095 = vst [vmem:[#allocation86_spill] sm:$0xff] %v6470_v23  ;;  %v1338_v6 = vadd.f32 %v6349_v12, %v8101_v15  ;;  %v1450_v23 = vrot.slane %v8072_v36, 1  ;;  %v8108_v36 = vrot.slane %v8066_v26, 1  ;;  %v3162_v26 = vld [vmem:[#allocation4 + $0x680] sm:$0xff] }
 0x22b   : > { %8097 = vst [vmem:[#allocation71_spill] sm:$0xff] %v6475_v29  ;;  %4834 = vmatmul.msk.bf16.gmra.mxu2 %vm1105_vm1, %v1724_v33  ;;  %v2924_v33 = vmul.f32 %v6379_v62, %v8102_v58  ;;  %v8103_v29 = vld [vmem:[#allocation67_spill] sm:$0xff]  ;;  %v3160_v58 = vld [vmem:[#allocation4 + $0x670] sm:$0xff] }
 0x22c   : > { %8098 = vst [vmem:[#allocation14_spill] sm:$0xff] %v6477_v41  ;;  %4847 = vmatmul.msk.bf16.gmra.mxu3 %vm1105_vm1, %v2135_v8  ;;  %3235 = vperm.xlu2 %5058, %v3157_v9   ;;  %v2519_v41 = vmul.f32 %v6213_v28, %v8099_v50  ;;  %v8104_v28 = vld [vmem:[#allocation27_spill] sm:$0xff] }
 0x22d   : > { %3230 = vperm.xlu1 %5057, %v3156_v20   ;;  %3225 = vperm.xlu0 %5056, %v3155_v47   ;;  %v6500_v50 = vmul.f32 %v6328_v24, %v8104_v28  ;;  %v6515_v24 = vsel %vm1387_vm3, %v8108_v36, %v1450_v23  ;;  %v8113_v36 = vld [vmem:[#allocation16_spill] sm:$0xff] }
 0x22e   : > { %v6492_v44 = vpop.permute.xlu2 %2815  ;;  %v2545_v19 = vpack.c.bf16 %v2519_v41, %v2518_v52  ;;  %8109 = vst [vmem:[#allocation151_spill] sm:$0xff] %v6515_v24  ;;  %v8110_v41 = vrot.slane %v8104_v28, 1  ;;  %v8112_v52 = vld [vmem:[#allocation85_spill] sm:$0xff] }
 0x22f   : > { %v2766_v40 = vpop.permute.xlu1 %2765  ;;  %v2506_v9 = vpop.permute.xlu0 %2505  ;;  %8105 = vst [vmem:[#allocation94_spill] sm:$0xff] %v6500_v50  ;;  %v3161_v50 = vld [vmem:[#allocation4 + $0x678] sm:$0xff] }
 0x230   : > { %v2923_v8 = vmul.f32 %v2766_v40, %v8103_v29  ;;  %v1818_v20 = vpop.f32.mrf.mxu2  ;;  %v6503_v47 = vmul.f32 %v2506_v9, %v8106_v42  ;;  %v2213_v15 = vpop.f32.mrf.mxu3  ;;  %v3159_v29 = vld [vmem:[#allocation4 + $0x668] sm:$0xff]  ;;  %v8115_v9 = vld [vmem:[#allocation104_spill] sm:$0xff] }
 0x231   : > { %v6505_v12 = vadd.f32 %v1818_v20, %v1338_v6  ;;  %v6507_v60 = vpop.f32.mrf.mxu1  ;;  %v6510_v40 = vadd.f32 %v2213_v15, %v6187_v4  ;;  %v3158_v6 = vld [vmem:[#allocation4 + $0x660] sm:$0xff]  ;;  %v6524_v4 = vsel %vm1387_vm3, %v1450_v23, %v8110_v41  ;;  %v2116_v28 = vmul.f32 %v8115_v9, %v6162_v39  ;;  %v8118_v9 = vld [vmem:[#allocation45_spill] sm:$0xff] }
 0x232   : > { %8107 = vst [vmem:[#allocation150_spill] sm:$0xff] %v6503_v47  ;;  %v2955_v62 = vpack.c.bf16 %v2924_v33, %v2923_v8  ;;  %v1708_v33 = vmul.f32 %v8112_v52, %v6515_v24  ;;  %v2115_v8 = vmul.f32 %v8113_v36, %v6165_v35  ;;  %v8119_v47 = vld [vmem:[#allocation72_spill] sm:$0xff] }
 0x233   : > { %8111 = vst [vmem:[#allocation152_spill] sm:$0xff] %v6524_v4 }
 0x234   : > { %4859 = vmatmul.msk.bf16.gmra.mxu0 %vm1105_vm1, %v2545_v19  ;;  %4871 = vmatmul.msk.bf16.vlgmr.msra.gmra.mxu1 %vm1105_vm1, %v2955_v62  ;;  %v8114_v19 = vld [vmem:[#allocation74_spill] sm:$0xff]  ;;  %v2136_v42 = vpack.c.bf16 %v2116_v28, %v2115_v8  ;;  %v8121_v28 = vld [vmem:[#allocation101_spill] sm:$0xff] }
 0x235   : > { %3250 = vperm.xlu2 %5058, %v3160_v58   ;;  %3245 = vperm.xlu1 %5057, %v3159_v29   ;;  %v1709_v62 = vmul.f32 %v8114_v19, %v6524_v4  ;;  %v2521_v19 = vmul.f32 %v6258_v55, %v8118_v9 }
 0x236   : > { %3240 = vperm.xlu0 %5056, %v3158_v6   ;;  %v6530_v20 = vpop.permute.xlu2 %2830  ;;  %v3163_v6 = vld [vmem:[#allocation4 + $0x688] sm:$0xff] }
 0x237   : > { %v2781_v15 = vpop.permute.xlu1 %2780  ;;  %v2776_v23 = vpop.permute.xlu0 %2775  ;;  %v1725_v52 = vpack.c.bf16 %v1709_v62, %v1708_v33 }
 0x238   : > { %v6536_v41 = vpop.f32.mrf.mxu2  ;;  %v2215_v29 = vpop.f32.mrf.mxu3 }
 0x239   : > { %8116 = vst [vmem:[#allocation85_spill] sm:$0xff] %v6536_v41  ;;  %v6538_v58 = vpop.f32.mrf.mxu1  ;;  %v6541_v36 = vadd.f32 %v2215_v29, %v6222_v30  ;;  %v2926_v41 = vmul.f32 %v2781_v15, %v8119_v47  ;;  %v1343_v30 = vadd.f32 %v6438_v48, %v8121_v28  ;;  %v8122_v29 = vld [vmem:[#allocation44_spill] sm:$0xff]  ;;  %v3165_v28 = vld [vmem:[#allocation4 + $0x698] sm:$0xff] }
 0x23a   : > { %8117 = vst [vmem:[#allocation16_spill] sm:$0xff] %v6538_v58  ;;  %v8120_v58 = vld [vmem:[#allocation73_spill] sm:$0xff]  ;;  %v3166_v48 = vld [vmem:[#allocation4 + $0x6a0] sm:$0xff] }
 0x23b   : > { %4835 = vmatmul.msk.bf16.gmra.mxu2 %vm1105_vm1, %v1725_v52  ;;  %v2925_v33 = vmul.f32 %v2776_v23, %v8120_v58  ;;  %v8123_v52 = vld [vmem:[#allocation18_spill] sm:$0xff] }
 0x23c   : > { %4848 = vmatmul.msk.bf16.gmra.mxu3 %vm1105_vm1, %v2136_v42  ;;  %v2520_v42 = vmul.f32 %v8123_v52, %v8122_v29  ;;  %v3164_v58 = vld [vmem:[#allocation4 + $0x690] sm:$0xff] }
 0x23d   : > { %3265 = vperm.xlu2 %5058, %v3163_v6   ;;  %3260 = vperm.xlu1 %5057, %v3162_v26   ;;  %v2956_v23 = vpack.c.bf16 %v2926_v41, %v2925_v33 }
 0x23e   : > { %3255 = vperm.xlu0 %5056, %v3161_v50   ;;  %v6551_v8 = vpop.permute.xlu2 %2845  ;;  %v2546_v15 = vpack.c.bf16 %v2521_v19, %v2520_v42 }
 0x23f   : > { %v6553_v62 = vpop.permute.xlu1 %2795  ;;  %v2791_v6 = vpop.permute.xlu0 %2790 }
 0x240   : > { %v1823_v26 = vpop.f32.mrf.mxu2  ;;  %v2218_v55 = vpop.f32.mrf.mxu3 }
 0x241   : > { %v6557_v39 = vadd.f32 %v1823_v26, %v1343_v30  ;;  %v6559_v9 = vpop.f32.mrf.mxu1  ;;  %v6562_v50 = vadd.f32 %v2218_v55, %v6262_v63  ;;  %v8124_v30 = vld [vmem:[#allocation121_spill] sm:$0xff]  ;;  %v8125_v26 = vld [vmem:[#allocation122_spill] sm:$0xff] }
 0x242   : > { %v2118_v52 = vmul.f32 %v8124_v30, %v6229_v25  ;;  %v2117_v29 = vmul.f32 %v8125_v26, %v6234_v43  ;;  %v3167_v30 = vld [vmem:[#allocation4 + $0x6a8] sm:$0xff] }
 0x243   : > { %v8129_v43 = vld [vmem:[#allocation93_spill] sm:$0xff] }
 0x244   : > { %4860 = vmatmul.msk.bf16.gmra.mxu0 %vm1105_vm1, %v2546_v15  ;;  %4872 = vmatmul.msk.bf16.gmra.mxu1 %vm1105_vm1, %v2956_v23  ;;  %v2137_v15 = vpack.c.bf16 %v2118_v52, %v2117_v29  ;;  %v1348_v25 = vadd.f32 %v6507_v60, %v8129_v43  ;;  %v8130_v29 = vld [vmem:[#allocation78_spill] sm:$0xff]  ;;  %v3977_v60 = vld [vmem:[#allocation4 + $0x808] sm:$0xff] }
 0x245   : > { %3280 = vperm.xlu2 %5058, %v3166_v48   ;;  %3275 = vperm.xlu1 %5057, %v3165_v28   ;;  %v3562_v48 = vld [vmem:[#allocation4 + $0x708] sm:$0xff]  ;;  %v3561_v28 = vld [vmem:[#allocation4 + $0x700] sm:$0xff]  ;;  %v3563_v43 = vld [vmem:[#allocation4 + $0x710] sm:$0xff] }
 0x246   : > { %3270 = vperm.xlu0 %5056, %v3164_v58   ;;  %v2861_v41 = vpop.permute.xlu2 %2860  ;;  %v8128_v58 = vld [vmem:[#allocation79_spill] sm:$0xff] }
 0x247   : > { %v6570_v19 = vpop.permute.xlu1 %2810  ;;  %v6572_v63 = vpop.permute.xlu0 %2805  ;;  %v2928_v26 = vmul.f32 %v2791_v6, %v8128_v58  ;;  %v8131_v58 = vpack.c.bf16 %v6253_v16, %v6256_v61  ;;  %v6635_v35 = vmul.f32 %v2861_v41, %v6131_v54  ;;  %v3980_v54 = vld [vmem:[#allocation4 + $0x820] sm:$0xff] }
 0x248   : > { %v6574_v33 = vpop.f32.mrf.mxu2  ;;  %v2220_v42 = vpop.f32.mrf.mxu3 }
 0x249   : > { %8126 = vst [vmem:[#allocation74_spill] sm:$0xff] %v6574_v33  ;;  %v6576_v55 = vpop.f32.mrf.mxu1  ;;  %v6579_v23 = vadd.f32 %v2220_v42, %v6306_v45  ;;  %v2927_v45 = vmul.f32 %v6417_v56, %v8130_v29 }
 0x24a   : > { %8127 = vst [vmem:[#allocation104_spill] sm:$0xff] %v6576_v55 }
 0x24b   : > { %v2957_v6 = vpack.c.bf16 %v2928_v26, %v2927_v45  ;;  %v8133_v45 = vld [vmem:[#allocation13_spill] sm:$0xff] }
 0x24c   : > { %4849 = vmatmul.msk.bf16.gmra.mxu3 %vm1105_vm1, %v2137_v15 }
 0x24d   : > { %3600 = vperm.xlu2 %5058, %v3562_v48   ;;  %3595 = vperm.xlu1 %5057, %v3561_v28  }
 0x24e   : > { %3285 = vperm.xlu0 %5056, %v3167_v30   ;;  %v6585_v47 = vpop.permute.xlu2 %2875  ;;  %v3976_v30 = vld [vmem:[#allocation4 + $0x800] sm:$0xff] }
 0x24f   : > { %v6587_v55 = vpop.permute.xlu1 %2825  ;;  %v6591_v52 = vpop.permute.xlu0 %2820 }
 0x250   : > { %v1828_v42 = vpop.f32.mrf.mxu2  ;;  %v2223_v15 = vpop.f32.mrf.mxu3 }
 0x251   : > { %v6593_v33 = vadd.f32 %v1828_v42, %v1348_v25  ;;  %v6595_v48 = vpop.f32.mrf.mxu1  ;;  %v6598_v28 = vadd.f32 %v2223_v15, %v6347_v3  ;;  %v8132_v25 = vld [vmem:[#allocation10_spill] sm:$0xff]  ;;  %v2119_v42 = vmul.f32 %v8133_v45, %v6299_v14  ;;  %v8134_v15 = vld [vmem:[#allocation119_spill] sm:$0xff] }
 0x252   : > { %v2120_v56 = vmul.f32 %v8132_v25, %v6313_v46  ;;  %v3979_v25 = vld [vmem:[#allocation4 + $0x818] sm:$0xff]  ;;  %v3978_v46 = vld [vmem:[#allocation4 + $0x810] sm:$0xff] }
 0x253   : > { %v3564_v45 = vld [vmem:[#allocation4 + $0x718] sm:$0xff] }
 0x254   : > { %4861 = vmatmul.msk.bf16.gmra.mxu0 %vm1105_vm1, %v8131_v58  ;;  %4873 = vmatmul.msk.bf16.gmra.mxu1 %vm1105_vm1, %v2957_v6  ;;  %v8136_v58 = vld [vmem:[#allocation120_spill] sm:$0xff] }
 0x255   : > { %3605 = vperm.xlu2 %5058, %v3563_v43   ;;  %4015 = vperm.xlu1 %5057, %v3977_v60  }
 0x256   : > { %4010 = vperm.xlu0 %5056, %v3976_v30   ;;  %v6607_v26 = vpop.permute.xlu2 %2890  ;;  %v2138_v30 = vpack.c.bf16 %v2120_v56, %v2119_v42  ;;  %v8140_v42 = vld [vmem:[#allocation88_spill] sm:$0xff] }
 0x257   : > { %v2841_v3 = vpop.permute.xlu1 %2840  ;;  %v2836_v16 = vpop.permute.xlu0 %2835 }
 0x258   : > { %v6612_v29 = vmul.f32 %v2841_v3, %v8134_v15  ;;  %v6614_v61 = vpop.f32.mrf.mxu2  ;;  %v6617_v6 = vmul.f32 %v2836_v16, %v8136_v58  ;;  %v6619_v43 = vpop.f32.mrf.mxu3  ;;  %v8138_v3 = vld [vmem:[#allocation89_spill] sm:$0xff]  ;;  %v8139_v16 = vld [vmem:[#allocation8_spill] sm:$0xff] }
 0x259   : > { %8135 = vst [vmem:[#allocation101_spill] sm:$0xff] %v6614_v61  ;;  %v6621_v60 = vpop.f32.mrf.mxu1  ;;  %v2929_v14 = vmul.f32 %v6553_v62, %v8138_v3  ;;  %v1353_v58 = vadd.f32 %v6559_v9, %v8139_v16  ;;  %v8141_v61 = vld [vmem:[#allocation127_spill] sm:$0xff] }
 0x25a   : > { %8137 = vst [vmem:[#allocation18_spill] sm:$0xff] %v6621_v60  ;;  %v2930_v60 = vmul.f32 %v6463_v34, %v8140_v42  ;;  %v6642_v62 = vmul.f32 %v6551_v8, %v8141_v61  ;;  %v3566_v42 = vld [vmem:[#allocation4 + $0x728] sm:$0xff]  ;;  %v3568_v8 = vld [vmem:[#allocation4 + $0x738] sm:$0xff]  ;;  %v8149_v61 = vld [vmem:[#allocation96_spill] sm:$0xff] }
 0x25c   : > { %4850 = vmatmul.msk.bf16.gmra.mxu3 %vm1105_vm1, %v2138_v30  ;;  %v2958_v34 = vpack.c.bf16 %v2930_v60, %v2929_v14  ;;  %v8144_v14 = vld [vmem:[#allocation19_spill] sm:$0xff] }
 0x25d   : > { %4025 = vperm.xlu2 %5058, %v3979_v25   ;;  %4020 = vperm.xlu1 %5057, %v3978_v46  }
 0x25e   : > { %3610 = vperm.xlu0 %5056, %v3564_v45   ;;  %v6630_v15 = vpop.permute.xlu2 %2905  ;;  %v8142_v45 = vld [vmem:[#allocation128_spill] sm:$0xff] }
 0x25f   : > { %v2856_v56 = vpop.permute.xlu1 %2855  ;;  %v2851_v46 = vpop.permute.xlu0 %2850 }
 0x260   : > { %v6638_v30 = vmul.f32 %v2856_v56, %v6134_v0  ;;  %v1833_v25 = vpop.f32.mrf.mxu2  ;;  %v6645_v9 = vmul.f32 %v2851_v46, %v8142_v45  ;;  %v2228_v3 = vpop.f32.mrf.mxu3 }
 0x261   : > { %v6647_v16 = vadd.f32 %v1833_v25, %v1353_v58  ;;  %v6649_v27 = vpop.f32.mrf.mxu1  ;;  %v6654_v56 = vadd.f32 %v2228_v3, %v6436_v38  ;;  %v2618_v0 = vpop.f32.mrf.mxu0  ;;  %v3565_v58 = vld [vmem:[#allocation4 + $0x720] sm:$0xff]  ;;  %v8143_v25 = vpack.c.bf16 %v6294_v57, %v6304_v7  ;;  %v2121_v38 = vmul.f32 %v8144_v14, %v6394_v22  ;;  %v3567_v22 = vld [vmem:[#allocation4 + $0x730] sm:$0xff] }
 0x262   : > { %v6659_v46 = vadd.f32 %v2618_v0, %v6354_v51  ;;  %v8145_v51 = vld [vmem:[#allocation111_spill] sm:$0xff] }
 0x263   : > { %v2122_v0 = vmul.f32 %v8145_v51, %v6389_v11  ;;  %v3981_v11 = vld [vmem:[#allocation4 + $0x828] sm:$0xff] }
 0x264   : > { %4862 = vmatmul.msk.bf16.gmra.mxu0 %vm1105_vm1, %v8143_v25  ;;  %4874 = vmatmul.msk.bf16.gmra.mxu1 %vm1105_vm1, %v2958_v34  ;;  %v8146_v25 = vld [vmem:[#allocation140_spill] sm:$0xff] }
 0x265   : > { %4030 = vperm.xlu2 %5058, %v3980_v54   ;;  %3620 = vperm.xlu1 %5057, %v3566_v42  }
 0x266   : > { %3615 = vperm.xlu0 %5056, %v3565_v58   ;;  %v6668_v60 = vpop.permute.xlu2 %2920  ;;  %v2139_v58 = vpack.c.bf16 %v2122_v0, %v2121_v38  ;;  %v2931_v38 = vmul.f32 %v6572_v63, %v8149_v61  ;;  %v8150_v0 = vld [vmem:[#allocation9_spill] sm:$0xff] }
 0x267   : > { %v2871_v3 = vpop.permute.xlu1 %2870  ;;  %v2866_v57 = vpop.permute.xlu0 %2865 }
 0x268   : > { %v6673_v41 = vmul.f32 %v2871_v3, %v6194_v21  ;;  %v6675_v7 = vpop.f32.mrf.mxu2  ;;  %v6678_v34 = vmul.f32 %v2866_v57, %v8146_v25  ;;  %v6680_v54 = vpop.f32.mrf.mxu3  ;;  %v8148_v57 = vld [vmem:[#allocation95_spill] sm:$0xff]  ;;  %v1358_v25 = vadd.f32 %v6595_v48, %v8150_v0 }
 0x269   : > { %v6682_v42 = vpop.f32.mrf.mxu1  ;;  %v2620_v14 = vpop.f32.mrf.mxu0  ;;  %v2932_v45 = vmul.f32 %v6570_v19, %v8148_v57  ;;  %v6705_v19 = vmul.f32 %v6585_v47, %v6271_v59  ;;  %v8157_v59 = vld [vmem:[#allocation132_spill] sm:$0xff] }
 0x26a   : > { %8147 = vst [vmem:[#allocation121_spill] sm:$0xff] %v6682_v42  ;;  %v6687_v3 = vadd.f32 %v2620_v14, %v6402_v2  ;;  %v6698_v2 = vmul.f32 %v6607_v26, %v6359_v1  ;;  %v3983_v42 = vld [vmem:[#allocation4 + $0x838] sm:$0xff] }
 0x26b   : > { %v2959_v51 = vpack.c.bf16 %v2932_v45, %v2931_v38  ;;  %v8152_v45 = vld [vmem:[#allocation77_spill] sm:$0xff] }
 0x26c   : > { %4851 = vmatmul.msk.bf16.gmra.mxu3 %vm1105_vm1, %v2139_v58  ;;  %v8151_v58 = vld [vmem:[#allocation144_spill] sm:$0xff]  ;;  %v8153_v38 = vpack.c.bf16 %v6345_v17, %v8152_v45 }
 0x26d   : > { %3630 = vperm.xlu2 %5058, %v3568_v8   ;;  %3625 = vperm.xlu1 %5057, %v3567_v22  }
 0x26e   : > { %4035 = vperm.xlu0 %5056, %v3981_v11   ;;  %v6719_v47 = vpop.permute.xlu2 %3190 }
 0x26f   : > { %v2886_v21 = vpop.permute.xlu1 %2885  ;;  %v2881_v8 = vpop.permute.xlu0 %2880 }
 0x270   : > { %v6701_v14 = vmul.f32 %v2886_v21, %v6364_v18  ;;  %v1838_v22 = vpop.f32.mrf.mxu2  ;;  %v6708_v63 = vmul.f32 %v2881_v8, %v8151_v58  ;;  %v2233_v48 = vpop.f32.mrf.mxu3  ;;  %v3569_v18 = vld [vmem:[#allocation4 + $0x740] sm:$0xff] }
 0x271   : > { %v6710_v11 = vadd.f32 %v1838_v22, %v1358_v25  ;;  %v6712_v0 = vpop.f32.mrf.mxu1  ;;  %v6717_v21 = vadd.f32 %v2233_v48, %v6505_v12  ;;  %v2623_v1 = vpop.f32.mrf.mxu0  ;;  %v3982_v22 = vld [vmem:[#allocation4 + $0x830] sm:$0xff]  ;;  %v8154_v12 = vld [vmem:[#allocation51_spill] sm:$0xff]  ;;  %v8156_v58 = vld [vmem:[#allocation52_spill] sm:$0xff] }
 0x272   : > { %v6724_v25 = vadd.f32 %v2623_v1, %v6443_v37  ;;  %v8155_v48 = vld [vmem:[#allocation131_spill] sm:$0xff]  ;;  %v2123_v61 = vmul.f32 %v8157_v59, %v8156_v58 }
 0x273   : > { %v2124_v26 = vmul.f32 %v8155_v48, %v8154_v12  ;;  %v3984_v48 = vld [vmem:[#allocation4 + $0x840] sm:$0xff]  ;;  %v8163_v12 = vld [vmem:[#allocation102_spill] sm:$0xff] }
 0x274   : > { %4863 = vmatmul.msk.bf16.gmra.mxu0 %vm1105_vm1, %v8153_v38  ;;  %4875 = vmatmul.msk.bf16.gmra.mxu1 %vm1105_vm1, %v2959_v51  ;;  %v3985_v38 = vld [vmem:[#allocation4 + $0x848] sm:$0xff]  ;;  %v2933_v59 = vmul.f32 %v6492_v44, %v8163_v12  ;;  %v3572_v12 = vld [vmem:[#allocation4 + $0x758] sm:$0xff] }
 0x275   : > { %3635 = vperm.xlu2 %5058, %v3569_v18   ;;  %4045 = vperm.xlu1 %5057, %v3983_v42   ;;  %v2140_v42 = vpack.c.bf16 %v2124_v26, %v2123_v61  ;;  %v8162_v61 = vld [vmem:[#allocation117_spill] sm:$0xff] }
 0x276   : > { %4040 = vperm.xlu0 %5056, %v3982_v22   ;;  %v3570_v22 = vld [vmem:[#allocation4 + $0x748] sm:$0xff]  ;;  %v1363_v26 = vadd.f32 %v6649_v27, %v8162_v61 }
 0x277   : > { %v2901_v8 = vpop.permute.xlu1 %2900  ;;  %v2896_v37 = vpop.permute.xlu0 %2895 }
 0x278   : > { %v6736_v1 = vmul.f32 %v2901_v8, %v6448_v5  ;;  %v6738_v57 = vpop.f32.mrf.mxu2  ;;  %v6741_v17 = vmul.f32 %v2896_v37, %v6457_v49  ;;  %v6743_v51 = vpop.f32.mrf.mxu3  ;;  %v8161_v37 = vld [vmem:[#allocation103_spill] sm:$0xff] }
 0x279   : > { %8158 = vst [vmem:[#allocation122_spill] sm:$0xff] %v6738_v57  ;;  %v6745_v18 = vpop.f32.mrf.mxu1  ;;  %v2625_v45 = vpop.f32.mrf.mxu0  ;;  %v2934_v49 = vmul.f32 %v6591_v52, %v8161_v37  ;;  %v6770_v52 = vmul.f32 %v6630_v15, %v6515_v24 }
 0x27a   : > { %8159 = vst [vmem:[#allocation93_spill] sm:$0xff] %v6741_v17  ;;  %v6750_v8 = vadd.f32 %v2625_v45, %v6480_v31  ;;  %v6753_v5 = vpop.permute.xlu2 %3205  ;;  %v8164_v31 = vld [vmem:[#allocation62_spill] sm:$0xff] }
 0x27b   : > { %8160 = vst [vmem:[#allocation10_spill] sm:$0xff] %v6745_v18  ;;  %v6763_v45 = vmul.f32 %v6668_v60, %v8164_v31  ;;  %v2960_v37 = vpack.c.bf16 %v2934_v49, %v2933_v59  ;;  %v8173_v59 = vld [vmem:[#allocation64_spill] sm:$0xff] }
 0x27c   : > { %4852 = vmatmul.msk.bf16.gmra.mxu3 %vm1105_vm1, %v2140_v42  ;;  %v8166_v42 = vld [vmem:[#allocation61_spill] sm:$0xff]  ;;  %8168 = vst [vmem:[#allocation19_spill] sm:$0xff] %v6770_v52 }
 0x27d   : > { %4055 = vperm.xlu2 %5058, %v3985_v38   ;;  %4050 = vperm.xlu1 %5057, %v3984_v48   ;;  %8165 = vst [vmem:[#allocation13_spill] sm:$0xff] %v6763_v45  ;;  %v8179_v45 = vld [vmem:[#allocation109_spill] sm:$0xff] }
 0x27e   : > { %3640 = vperm.xlu0 %5056, %v3570_v22  }
 0x27f   : > { %v2916_v58 = vpop.permute.xlu1 %2915  ;;  %v2911_v38 = vpop.permute.xlu0 %2910 }
 0x280   : > { %v6766_v18 = vmul.f32 %v2916_v58, %v8166_v42  ;;  %v1843_v48 = vpop.f32.mrf.mxu2  ;;  %v6773_v22 = vmul.f32 %v2911_v38, %v6524_v4  ;;  %v2238_v61 = vpop.f32.mrf.mxu3  ;;  %v3986_v42 = vld [vmem:[#allocation4 + $0x850] sm:$0xff]  ;;  %v8171_v4 = vld [vmem:[#allocation15_spill] sm:$0xff] }
 0x281   : > { %v6775_v27 = vadd.f32 %v1843_v48, %v1363_v26  ;;  %v6777_v44 = vpop.f32.mrf.mxu1  ;;  %v6782_v58 = vadd.f32 %v2238_v61, %v6557_v39  ;;  %v2628_v31 = vpop.f32.mrf.mxu0  ;;  %v3571_v26 = vld [vmem:[#allocation4 + $0x750] sm:$0xff] }
 0x282   : > { %8167 = vst [vmem:[#allocation8_spill] sm:$0xff] %v6766_v18  ;;  %v6787_v38 = vadd.f32 %v2628_v31, %v6510_v40  ;;  %v8170_v48 = vld [vmem:[#allocation22_spill] sm:$0xff]  ;;  %v6794_v39 = vpop.permute.xlu2 %3220  ;;  %v8175_v40 = vld [vmem:[#allocation63_spill] sm:$0xff] }
 0x283   : > { %8169 = vst [vmem:[#allocation111_spill] sm:$0xff] %v6773_v22  ;;  %v8172_v24 = vpack.c.bf16 %v8170_v48, %v8171_v4  ;;  %v3574_v48 = vld [vmem:[#allocation4 + $0x768] sm:$0xff] }
 0x284   : > { %4876 = vmatmul.msk.bf16.gmra.mxu1 %vm1105_vm1, %v2960_v37 }
 0x285   : > { %4864 = vmatmul.msk.bf16.gmra.mxu0 %vm1105_vm1, %v8172_v24  ;;  %4060 = vperm.xlu2 %5058, %v3986_v42   ;;  %v3573_v42 = vld [vmem:[#allocation4 + $0x760] sm:$0xff] }
 0x286   : > { %3650 = vperm.xlu1 %5057, %v3572_v12   ;;  %3645 = vperm.xlu0 %5056, %v3571_v26   ;;  %v3987_v26 = vld [vmem:[#allocation4 + $0x858] sm:$0xff] }
 0x287   : > { %v3186_v49 = vpop.permute.xlu1 %3185  ;;  %v3181_v60 = vpop.permute.xlu0 %3180 }
 0x288   : > { %v3339_v61 = vmul.f32 %v3186_v49, %v8173_v59  ;;  %v6797_v15 = vpop.f32.mrf.mxu2  ;;  %v3338_v31 = vmul.f32 %v3181_v60, %v8175_v40  ;;  %v6800_v18 = vpop.f32.mrf.mxu3  ;;  %v8177_v49 = vld [vmem:[#allocation110_spill] sm:$0xff] }
 0x289   : > { %8174 = vst [vmem:[#allocation9_spill] sm:$0xff] %v6797_v15  ;;  %v6802_v4 = vpop.f32.mrf.mxu1  ;;  %v2630_v24 = vpop.f32.mrf.mxu0  ;;  %v2935_v59 = vmul.f32 %v6587_v55, %v8177_v49  ;;  %v8178_v60 = vld [vmem:[#allocation118_spill] sm:$0xff] }
 0x28a   : > { %8176 = vst [vmem:[#allocation77_spill] sm:$0xff] %v6802_v4  ;;  %v3370_v37 = vpack.c.bf16 %v3339_v61, %v3338_v31  ;;  %v6805_v12 = vadd.f32 %v2630_v24, %v6541_v36  ;;  %v1368_v40 = vadd.f32 %v6712_v0, %v8178_v60  ;;  %v2936_v61 = vmul.f32 %v6530_v20, %v8179_v45  ;;  %v3989_v60 = vld [vmem:[#allocation4 + $0x868] sm:$0xff]  ;;  %v3988_v20 = vld [vmem:[#allocation4 + $0x860] sm:$0xff] }
 0x28c   : > { %4888 = vmatmul.msk.bf16.vlgmr.msra.gmra.mxu2 %vm1105_vm1, %v3370_v37 }
 0x28d   : > { %3660 = vperm.xlu2 %5058, %v3574_v48   ;;  %v2961_v48 = vpack.c.bf16 %v2936_v61, %v2935_v59 }
 0x28e   : > { %3655 = vperm.xlu1 %5057, %v3573_v42   ;;  %4065 = vperm.xlu0 %5056, %v3987_v26   ;;  %v3575_v42 = vld [vmem:[#allocation4 + $0x770] sm:$0xff]  ;;  %v6821_v26 = vpop.permute.xlu2 %3235 }
 0x28f   : > { %v3201_v4 = vpop.permute.xlu1 %3200  ;;  %v3196_v31 = vpop.permute.xlu0 %3195 }
 0x290   : > { %v1848_v36 = vpop.f32.mrf.mxu2  ;;  %v2243_v15 = vpop.f32.mrf.mxu3 }
 0x291   : > { %v6814_v24 = vadd.f32 %v1848_v36, %v1368_v40  ;;  %v6816_v52 = vpop.f32.mrf.mxu1  ;;  %v6819_v37 = vadd.f32 %v2243_v15, %v6593_v33  ;;  %v2633_v55 = vpop.f32.mrf.mxu0  ;;  %v8180_v40 = vpack.c.bf16 %v6382_v53, %v6397_v10  ;;  %v8181_v33 = vld [vmem:[#allocation69_spill] sm:$0xff]  ;;  %v8183_v36 = vld [vmem:[#allocation70_spill] sm:$0xff] }
 0x292   : > { %v6824_v0 = vadd.f32 %v2633_v55, %v6562_v50  ;;  %v3341_v15 = vmul.f32 %v3196_v31, %v8181_v33  ;;  %v3340_v55 = vmul.f32 %v6719_v47, %v8183_v36  ;;  %v3990_v31 = vld [vmem:[#allocation4 + $0x870] sm:$0xff]  ;;  %v8185_v33 = vld [vmem:[#allocation129_spill] sm:$0xff] }
 0x293   : > { %v1373_v47 = vadd.f32 %v6777_v44, %v8185_v33  ;;  %v3577_v44 = vld [vmem:[#allocation4 + $0x780] sm:$0xff]  ;;  %v8187_v33 = vpack.c.bf16 %v6434_v13, %v6431_v32 }
 0x294   : > { %4877 = vmatmul.msk.bf16.gmra.mxu1 %vm1105_vm1, %v2961_v48  ;;  %v3991_v48 = vld [vmem:[#allocation4 + $0x878] sm:$0xff]  ;;  %v8193_v32 = vld [vmem:[#allocation108_spill] sm:$0xff] }
 0x295   : > { %4865 = vmatmul.msk.bf16.gmra.mxu0 %vm1105_vm1, %v8180_v40  ;;  %3665 = vperm.xlu2 %5058, %v3575_v42   ;;  %v3371_v42 = vpack.c.bf16 %v3341_v15, %v3340_v55 }
 0x296   : > { %4075 = vperm.xlu1 %5057, %v3989_v60   ;;  %4070 = vperm.xlu0 %5056, %v3988_v20   ;;  %v3576_v20 = vld [vmem:[#allocation4 + $0x778] sm:$0xff]  ;;  %v3251_v40 = vpop.permute.xlu2 %3250 }
 0x297   : > { %v6832_v59 = vpop.permute.xlu1 %3215  ;;  %v6834_v61 = vpop.permute.xlu0 %3210 }
 0x298   : > { %v6836_v50 = vpop.f32.mrf.mxu2  ;;  %v6840_v49 = vpop.f32.mrf.mxu3 }
 0x299   : > { %8182 = vst [vmem:[#allocation131_spill] sm:$0xff] %v6836_v50  ;;  %v6842_v53 = vpop.f32.mrf.mxu1  ;;  %v2635_v10 = vpop.f32.mrf.mxu0 }
 0x29a   : > { %8184 = vst [vmem:[#allocation132_spill] sm:$0xff] %v6842_v53  ;;  %v6845_v60 = vadd.f32 %v2635_v10, %v6579_v23 }
 0x29c   : > { %4889 = vmatmul.msk.bf16.gmra.mxu2 %vm1105_vm1, %v3371_v42 }
 0x29d   : > { %4085 = vperm.xlu2 %5058, %v3991_v48   ;;  %v3992_v48 = vld [vmem:[#allocation4 + $0x880] sm:$0xff] }
 0x29e   : > { %4080 = vperm.xlu1 %5057, %v3990_v31   ;;  %3670 = vperm.xlu0 %5056, %v3576_v20   ;;  %v3578_v20 = vld [vmem:[#allocation4 + $0x788] sm:$0xff]  ;;  %v3266_v22 = vpop.permute.xlu2 %3265 }
 0x29f   : > { %v6850_v36 = vpop.permute.xlu1 %3230  ;;  %v6852_v53 = vpop.permute.xlu0 %3225 }
 0x2a0   : > { %v1853_v45 = vpop.f32.mrf.mxu2  ;;  %v2248_v23 = vpop.f32.mrf.mxu3 }
 0x2a1   : > { %v6854_v15 = vadd.f32 %v1853_v45, %v1373_v47  ;;  %v6856_v55 = vpop.f32.mrf.mxu1  ;;  %v6859_v10 = vadd.f32 %v2248_v23, %v6647_v16  ;;  %v2638_v42 = vpop.f32.mrf.mxu0  ;;  %v8188_v45 = vpack.c.bf16 %v6612_v29, %v6617_v6  ;;  %v8189_v47 = vld [vmem:[#allocation82_spill] sm:$0xff]  ;;  %v8190_v16 = vld [vmem:[#allocation141_spill] sm:$0xff]  ;;  %v8194_v6 = vld [vmem:[#allocation75_spill] sm:$0xff] }
 0x2a2   : > { %v6862_v31 = vadd.f32 %v2638_v42, %v6598_v28  ;;  %v1330_v23 = vadd.f32 %v8190_v16, %v8189_v47  ;;  %v8191_v28 = vld [vmem:[#allocation80_spill] sm:$0xff] }
 0x2a4   : > { %8186 = vst [vmem:[#allocation117_spill] sm:$0xff] %v6862_v31  ;;  %4878 = vmatmul.msk.bf16.gmra.mxu1 %vm1105_vm1, %v8188_v45  ;;  %v1877_v42 = vadd.f32 %v8191_v28, %v1330_v23  ;;  %v8192_v31 = vld [vmem:[#allocation76_spill] sm:$0xff]  ;;  %v3343_v45 = vmul.f32 %v6753_v5, %v8194_v6  ;;  %v3579_v28 = vld [vmem:[#allocation4 + $0x790] sm:$0xff]  ;;  %v8198_v5 = vld [vmem:[#allocation139_spill] sm:$0xff] }
 0x2a5   : > { %4866 = vmatmul.msk.bf16.gmra.mxu0 %vm1105_vm1, %v8187_v33  ;;  %4090 = vperm.xlu2 %5058, %v3992_v48   ;;  %v3342_v50 = vmul.f32 %v3201_v4, %v8192_v31  ;;  %v8195_v48 = vld [vmem:[#allocation107_spill] sm:$0xff] }
 0x2a6   : > { %3680 = vperm.xlu1 %5057, %v3578_v20   ;;  %3675 = vperm.xlu0 %5056, %v3577_v44   ;;  %v2292_v29 = vadd.f32 %v6619_v43, %v1877_v42  ;;  %v3580_v31 = vld [vmem:[#allocation4 + $0x798] sm:$0xff]  ;;  %v3993_v43 = vld [vmem:[#allocation4 + $0x888] sm:$0xff]  ;;  %v1378_v42 = vadd.f32 %v6816_v52, %v8198_v5 }
 0x2a7   : > { %v3246_v57 = vpop.permute.xlu1 %3245  ;;  %v3372_v16 = vpack.c.bf16 %v3343_v45, %v3342_v50  ;;  %v8200_v50 = vld [vmem:[#allocation125_spill] sm:$0xff] }
 0x2a8   : > { %v6877_v13 = vmul.f32 %v3246_v57, %v8193_v32  ;;  %v3241_v33 = vpop.permute.xlu0 %3240  ;;  %v6879_v17 = vpop.f32.mrf.mxu2 }
 0x2a9   : > { %v6885_v20 = vmul.f32 %v3241_v33, %v8195_v48  ;;  %v6887_v44 = vpop.f32.mrf.mxu3  ;;  %v6889_v47 = vpop.f32.mrf.mxu1  ;;  %v8199_v33 = vld [vmem:[#allocation124_spill] sm:$0xff] }
 0x2aa   : > { %8196 = vst [vmem:[#allocation22_spill] sm:$0xff] %v6889_v47  ;;  %v2640_v4 = vpop.f32.mrf.mxu0  ;;  %v6899_v6 = vmul.f32 %v3266_v22, %v8199_v33  ;;  %v3581_v33 = vld [vmem:[#allocation4 + $0x7a0] sm:$0xff] }
 0x2ab   : > { %v6893_v23 = vadd.f32 %v2640_v4, %v2292_v29  ;;  %v8201_v4 = vld [vmem:[#allocation116_spill] sm:$0xff] }
 0x2ac   : > { %4890 = vmatmul.msk.bf16.gmra.mxu2 %vm1105_vm1, %v3372_v16  ;;  %v6905_v57 = vmul.f32 %v3251_v40, %v8201_v4  ;;  %v3281_v40 = vpop.permute.xlu2 %3280  ;;  %v8206_v4 = vld [vmem:[#allocation25_spill] sm:$0xff] }
 0x2ad   : > { %8197 = vst [vmem:[#allocation15_spill] sm:$0xff] %v6893_v23  ;;  %3690 = vperm.xlu2 %5058, %v3580_v31   ;;  %v8202_v23 = vld [vmem:[#allocation115_spill] sm:$0xff] }
 0x2ae   : > { %3685 = vperm.xlu1 %5057, %v3579_v28   ;;  %4095 = vperm.xlu0 %5056, %v3993_v43  }
 0x2af   : > { %v3261_v32 = vpop.permute.xlu1 %3260 }
 0x2b0   : > { %v6902_v45 = vmul.f32 %v3261_v32, %v8200_v50  ;;  %v3256_v48 = vpop.permute.xlu0 %3255  ;;  %v1858_v29 = vpop.f32.mrf.mxu2  ;;  %v3995_v50 = vld [vmem:[#allocation4 + $0x898] sm:$0xff] }
 0x2b1   : > { %v6908_v16 = vmul.f32 %v3256_v48, %v8202_v23  ;;  %v6910_v31 = vadd.f32 %v1858_v29, %v1378_v42  ;;  %v2253_v28 = vpop.f32.mrf.mxu3  ;;  %v3033_v43 = vpop.f32.mrf.mxu1  ;;  %v3994_v48 = vld [vmem:[#allocation4 + $0x890] sm:$0xff]  ;;  %v8205_v29 = vld [vmem:[#allocation24_spill] sm:$0xff] }
 0x2b2   : > { %v6915_v22 = vadd.f32 %v2253_v28, %v6710_v11  ;;  %v2643_v5 = vpop.f32.mrf.mxu0  ;;  %v6918_v32 = vadd.f32 %v3033_v43, %v6659_v46  ;;  %v8207_v52 = vpack.c.bf16 %v8205_v29, %v8206_v4  ;;  %v8208_v11 = vpack.c.bf16 %v6645_v9, %v6642_v62  ;;  %v8209_v46 = vld [vmem:[#allocation90_spill] sm:$0xff]  ;;  %v8212_v23 = vld [vmem:[#allocation84_spill] sm:$0xff] }
 0x2b3   : > { %v6923_v42 = vadd.f32 %v2643_v5, %v6654_v56  ;;  %v8210_v28 = vld [vmem:[#allocation146_spill] sm:$0xff]  ;;  %v8211_v56 = vld [vmem:[#allocation17_spill] sm:$0xff] }
 0x2b4   : > { %8203 = vst [vmem:[#allocation64_spill] sm:$0xff] %v6918_v32  ;;  %4879 = vmatmul.msk.bf16.gmra.mxu1 %vm1105_vm1, %v8208_v11  ;;  %v1335_v43 = vadd.f32 %v8210_v28, %v8209_v46  ;;  %v8213_v32 = vld [vmem:[#allocation83_spill] sm:$0xff]  ;;  %v8214_v4 = vld [vmem:[#allocation134_spill] sm:$0xff] }
 0x2b5   : > { %8204 = vst [vmem:[#allocation63_spill] sm:$0xff] %v6923_v42  ;;  %4867 = vmatmul.msk.bf16.gmra.mxu0 %vm1105_vm1, %v8207_v52  ;;  %3695 = vperm.xlu2 %5058, %v3581_v33   ;;  %v3345_v42 = vmul.f32 %v6832_v59, %v8212_v23  ;;  %v3344_v29 = vmul.f32 %v6834_v61, %v8213_v32  ;;  %v8215_v33 = vld [vmem:[#allocation133_spill] sm:$0xff] }
 0x2b6   : > { %4105 = vperm.xlu1 %5057, %v3995_v50   ;;  %4100 = vperm.xlu0 %5056, %v3994_v48   ;;  %v1879_v5 = vadd.f32 %v8211_v56, %v1335_v43  ;;  %v3997_v61 = vld [vmem:[#allocation4 + $0x8a8] sm:$0xff]  ;;  %v3996_v56 = vld [vmem:[#allocation4 + $0x8a0] sm:$0xff] }
 0x2b7   : > { %v3276_v52 = vpop.permute.xlu1 %3275  ;;  %v3373_v32 = vpack.c.bf16 %v3345_v42, %v3344_v29  ;;  %v8220_v42 = vld [vmem:[#allocation34_spill] sm:$0xff] }
 0x2b8   : > { %v6941_v47 = vmul.f32 %v3276_v52, %v8214_v4  ;;  %v3271_v62 = vpop.permute.xlu0 %3270  ;;  %v6943_v9 = vpop.f32.mrf.mxu2  ;;  %v2294_v11 = vadd.f32 %v6680_v54, %v1879_v5  ;;  %v3582_v52 = vld [vmem:[#allocation4 + $0x7a8] sm:$0xff]  ;;  %v8218_v5 = vld [vmem:[#allocation23_spill] sm:$0xff] }
 0x2b9   : > { %v6947_v50 = vmul.f32 %v3271_v62, %v8215_v33  ;;  %v6949_v48 = vpop.f32.mrf.mxu3  ;;  %v3035_v46 = vpop.f32.mrf.mxu1  ;;  %v1383_v4 = vadd.f32 %v6856_v55, %v8218_v5  ;;  %v8219_v62 = vld [vmem:[#allocation35_spill] sm:$0xff] }
 0x2ba   : > { %v2645_v28 = vpop.f32.mrf.mxu0  ;;  %v6952_v59 = vadd.f32 %v3035_v46, %v6687_v3  ;;  %v3601_v54 = vpop.permute.xlu2 %3600 }
 0x2bb   : > { %v6956_v43 = vadd.f32 %v2645_v28, %v2294_v11  ;;  %v3754_v33 = vmul.f32 %v3601_v54, %v8219_v62  ;;  %v8221_v11 = vld [vmem:[#allocation138_spill] sm:$0xff] }
 0x2bc   : > { %8216 = vst [vmem:[#allocation118_spill] sm:$0xff] %v6952_v59  ;;  %4891 = vmatmul.msk.bf16.gmra.mxu2 %vm1105_vm1, %v3373_v32  ;;  %v6964_v28 = vmul.f32 %v3281_v40, %v8221_v11  ;;  %v8235_v40 = vld [vmem:[#allocation150_spill] sm:$0xff] }
 0x2bd   : > { %8217 = vst [vmem:[#allocation69_spill] sm:$0xff] %v6956_v43  ;;  %4115 = vperm.xlu2 %5058, %v3997_v61   ;;  %v8222_v43 = vld [vmem:[#allocation137_spill] sm:$0xff] }
 0x2be   : > { %4110 = vperm.xlu1 %5057, %v3996_v56   ;;  %3700 = vperm.xlu0 %5056, %v3582_v52  }
 0x2bf   : > { %v3596_v3 = vpop.permute.xlu1 %3595 }
 0x2c0   : > { %v3753_v29 = vmul.f32 %v3596_v3, %v8220_v42  ;;  %v3286_v46 = vpop.permute.xlu0 %3285  ;;  %v1863_v23 = vpop.f32.mrf.mxu2  ;;  %v3583_v3 = vld [vmem:[#allocation4 + $0x7b0] sm:$0xff]  ;;  %v8224_v42 = vld [vmem:[#allocation71_spill] sm:$0xff] }
 0x2c1   : > { %v6967_v59 = vmul.f32 %v3286_v46, %v8222_v43  ;;  %v6969_v32 = vadd.f32 %v1863_v23, %v1383_v4  ;;  %v2258_v61 = vpop.f32.mrf.mxu3  ;;  %v3038_v56 = vpop.f32.mrf.mxu1  ;;  %v3169_v43 = vld [vmem:[#allocation4 + $0x6b8] sm:$0xff]  ;;  %v3168_v23 = vld [vmem:[#allocation4 + $0x6b0] sm:$0xff] }
 0x2c2   : > { %v3785_v52 = vpack.c.bf16 %v3754_v33, %v3753_v29  ;;  %v6972_v55 = vadd.f32 %v2258_v61, %v6775_v27  ;;  %v2648_v5 = vpop.f32.mrf.mxu0  ;;  %v6975_v54 = vadd.f32 %v3038_v56, %v6724_v25  ;;  %v8223_v4 = vld [vmem:[#allocation86_spill] sm:$0xff]  ;;  %v8226_v27 = vpack.c.bf16 %v6635_v35, %v6638_v30  ;;  %v8228_v33 = vld [vmem:[#allocation113_spill] sm:$0xff]  ;;  %v8230_v61 = vld [vmem:[#allocation91_spill] sm:$0xff] }
 0x2c3   : > { %v6980_v62 = vadd.f32 %v2648_v5, %v6717_v21  ;;  %v8225_v46 = vpack.c.bf16 %v8223_v4, %v8224_v42  ;;  %v8227_v25 = vld [vmem:[#allocation98_spill] sm:$0xff]  ;;  %v8229_v21 = vld [vmem:[#allocation85_spill] sm:$0xff]  ;;  %v3347_v56 = vmul.f32 %v6852_v53, %v8230_v61  ;;  %v8231_v35 = vld [vmem:[#allocation92_spill] sm:$0xff] }
 0x2c4   : > { %4880 = vmatmul.msk.bf16.gmra.mxu1 %vm1105_vm1, %v8226_v27  ;;  %v1340_v29 = vadd.f32 %v8228_v33, %v8227_v25  ;;  %4905 = vmatmul.msk.bf16.vlgmr.msra.gmra.mxu3 %vm1105_vm1, %v3785_v52  ;;  %v3346_v30 = vmul.f32 %v6794_v39, %v8231_v35  ;;  %v3998_v33 = vld [vmem:[#allocation4 + $0x8b0] sm:$0xff]  ;;  %v3584_v53 = vld [vmem:[#allocation4 + $0x7b8] sm:$0xff] }
 0x2c5   : > { %4868 = vmatmul.msk.bf16.gmra.mxu0 %vm1105_vm1, %v8225_v46  ;;  %3705 = vperm.xlu2 %5058, %v3583_v3   ;;  %v3999_v3 = vld [vmem:[#allocation4 + $0x8b8] sm:$0xff] }
 0x2c6   : > { %3295 = vperm.xlu1 %5057, %v3169_v43   ;;  %3290 = vperm.xlu0 %5056, %v3168_v23   ;;  %v1881_v11 = vadd.f32 %v8229_v21, %v1340_v29  ;;  %v3374_v43 = vpack.c.bf16 %v3347_v56, %v3346_v30  ;;  %v8232_v21 = vld [vmem:[#allocation41_spill] sm:$0xff]  ;;  %v8233_v61 = vld [vmem:[#allocation39_spill] sm:$0xff] }
 0x2c7   : > { %v4016_v5 = vpop.permute.xlu1 %4015 }
 0x2c8   : > { %v4011_v4 = vpop.permute.xlu0 %4010  ;;  %v2296_v42 = vadd.f32 %v6743_v51, %v1881_v11  ;;  %v3606_v51 = vpop.permute.xlu2 %3605 }
 0x2c9   : > { %v6999_v46 = vpop.f32.mrf.mxu3  ;;  %v3040_v27 = vpop.f32.mrf.mxu1  ;;  %v3755_v11 = vmul.f32 %v3606_v51, %v8232_v21  ;;  %v8236_v51 = vld [vmem:[#allocation94_spill] sm:$0xff] }
 0x2ca   : > { %v2650_v25 = vpop.f32.mrf.mxu0  ;;  %v7002_v52 = vadd.f32 %v3040_v27, %v6750_v8  ;;  %v8237_v21 = vpack.c.bf16 %v8235_v40, %v8236_v51 }
 0x2cb   : > { %v7004_v23 = vadd.f32 %v2650_v25, %v2296_v42  ;;  %v3585_v25 = vld [vmem:[#allocation4 + $0x7c0] sm:$0xff] }
 0x2cc   : > { %4892 = vmatmul.msk.bf16.gmra.mxu2 %vm1105_vm1, %v3374_v43 }
 0x2cd   : > { %4125 = vperm.xlu2 %5058, %v3999_v3  }
 0x2ce   : > { %4120 = vperm.xlu1 %5057, %v3998_v33   ;;  %3710 = vperm.xlu0 %5056, %v3584_v53   ;;  %v3171_v33 = vld [vmem:[#allocation4 + $0x6c8] sm:$0xff]  ;;  %v3170_v53 = vld [vmem:[#allocation4 + $0x6c0] sm:$0xff] }
 0x2cf   : > { %v7007_v39 = vpop.permute.xlu1 %4020 }
 0x2d0   : > { %v3611_v29 = vpop.permute.xlu0 %3610 }
 0x2d1   : > { %v3756_v8 = vmul.f32 %v3611_v29, %v8233_v61  ;;  %v2263_v35 = vpop.f32.mrf.mxu3  ;;  %v3043_v27 = vpop.f32.mrf.mxu1  ;;  %v8239_v29 = vld [vmem:[#allocation106_spill] sm:$0xff] }
 0x2d2   : > { %v7012_v56 = vadd.f32 %v2263_v35, %v6814_v24  ;;  %v2653_v42 = vpop.f32.mrf.mxu0  ;;  %v7015_v30 = vadd.f32 %v3043_v27, %v6787_v38  ;;  %v8238_v24 = vpack.c.bf16 %v6673_v41, %v6678_v34  ;;  %v8240_v38 = vld [vmem:[#allocation14_spill] sm:$0xff] }
 0x2d3   : > { %v3786_v3 = vpack.c.bf16 %v3756_v8, %v3755_v11  ;;  %v7018_v43 = vadd.f32 %v2653_v42, %v6782_v58  ;;  %v1345_v61 = vadd.f32 %v8240_v38, %v8239_v29  ;;  %v8241_v58 = vld [vmem:[#allocation74_spill] sm:$0xff]  ;;  %v8242_v8 = vld [vmem:[#allocation100_spill] sm:$0xff]  ;;  %v8243_v42 = vld [vmem:[#allocation99_spill] sm:$0xff] }
 0x2d4   : > { %4881 = vmatmul.msk.bf16.gmra.mxu1 %vm1105_vm1, %v8238_v24  ;;  %v3348_v40 = vmul.f32 %v6850_v36, %v8242_v8  ;;  %v3349_v41 = vmul.f32 %v6821_v26, %v8243_v42  ;;  %v4026_v24 = vpop.permute.xlu2 %4025  ;;  %v4000_v36 = vld [vmem:[#allocation4 + $0x8c0] sm:$0xff]  ;;  %v3586_v38 = vld [vmem:[#allocation4 + $0x7c8] sm:$0xff] }
 0x2d5   : > { %8234 = vst [vmem:[#allocation70_spill] sm:$0xff] %v7018_v43  ;;  %4869 = vmatmul.msk.bf16.gmra.mxu0 %vm1105_vm1, %v8237_v21  ;;  %4906 = vmatmul.msk.bf16.gmra.mxu3 %vm1105_vm1, %v3786_v3  ;;  %v1883_v11 = vadd.f32 %v8241_v58, %v1345_v61  ;;  %v8244_v26 = vld [vmem:[#allocation72_spill] sm:$0xff]  ;;  %v8247_v42 = vld [vmem:[#allocation29_spill] sm:$0xff] }
 0x2d6   : > { %3715 = vperm.xlu2 %5058, %v3585_v25   ;;  %3305 = vperm.xlu1 %5057, %v3171_v33   ;;  %v4001_v33 = vld [vmem:[#allocation4 + $0x8c8] sm:$0xff]  ;;  %v4169_v61 = vmul.f32 %v4016_v5, %v8244_v26  ;;  %v8248_v26 = vpack.c.bf16 %v6708_v63, %v6705_v19 }
 0x2d7   : > { %3300 = vperm.xlu0 %5056, %v3170_v53   ;;  %v3621_v35 = vpop.permute.xlu1 %3620  ;;  %v2298_v34 = vadd.f32 %v6800_v18, %v1883_v11  ;;  %v3375_v53 = vpack.c.bf16 %v3349_v41, %v3348_v40  ;;  %v8245_v18 = vld [vmem:[#allocation73_spill] sm:$0xff]  ;;  %v8246_v11 = vld [vmem:[#allocation30_spill] sm:$0xff] }
 0x2d8   : > { %v3616_v27 = vpop.permute.xlu0 %3615  ;;  %v4168_v58 = vmul.f32 %v4011_v4, %v8245_v18  ;;  %v3758_v8 = vmul.f32 %v3621_v35, %v8246_v11  ;;  %v3587_v4 = vld [vmem:[#allocation4 + $0x7d0] sm:$0xff]  ;;  %v3173_v35 = vld [vmem:[#allocation4 + $0x6d8] sm:$0xff] }
 0x2d9   : > { %v7037_v51 = vpop.f32.mrf.mxu3  ;;  %v3045_v21 = vpop.f32.mrf.mxu1 }
 0x2da   : > { %v2655_v3 = vpop.f32.mrf.mxu0  ;;  %v7040_v25 = vadd.f32 %v3045_v21, %v6805_v12  ;;  %v3757_v12 = vmul.f32 %v3616_v27, %v8247_v42  ;;  %v3172_v27 = vld [vmem:[#allocation4 + $0x6d0] sm:$0xff] }
 0x2db   : > { %v7042_v29 = vadd.f32 %v2655_v3, %v2298_v34  ;;  %v4200_v34 = vpack.c.bf16 %v4169_v61, %v4168_v58  ;;  %v8250_v61 = vld [vmem:[#allocation16_spill] sm:$0xff] }
 0x2dc   : > { %4893 = vmatmul.msk.bf16.gmra.mxu2 %vm1105_vm1, %v3375_v53  ;;  %v3787_v53 = vpack.c.bf16 %v3758_v8, %v3757_v12 }
 0x2de   : > { %4135 = vperm.xlu2 %5058, %v4001_v33   ;;  %4130 = vperm.xlu1 %5057, %v4000_v36  }
 0x2df   : > { %3720 = vperm.xlu0 %5056, %v3586_v38   ;;  %v3626_v21 = vpop.permute.xlu1 %3625  ;;  %v7060_v38 = vpop.permute.xlu2 %4030 }
 0x2e0   : > { %v7049_v43 = vpop.permute.xlu0 %4035 }
 0x2e1   : > { %v2268_v40 = vpop.f32.mrf.mxu3  ;;  %v3048_v41 = vpop.f32.mrf.mxu1 }
 0x2e2   : > { %v7052_v3 = vadd.f32 %v2268_v40, %v6854_v15  ;;  %v2658_v33 = vpop.f32.mrf.mxu0  ;;  %v7055_v5 = vadd.f32 %v3048_v41, %v6824_v0  ;;  %v8249_v15 = vld [vmem:[#allocation97_spill] sm:$0xff]  ;;  %v4003_v40 = vld [vmem:[#allocation4 + $0x8d8] sm:$0xff] }
 0x2e3   : > { %v7058_v36 = vadd.f32 %v2658_v33, %v6819_v37  ;;  %v1350_v0 = vadd.f32 %v8250_v61, %v8249_v15  ;;  %v8251_v37 = vld [vmem:[#allocation101_spill] sm:$0xff]  ;;  %v3588_v33 = vld [vmem:[#allocation4 + $0x7d8] sm:$0xff] }
 0x2e4   : > { %4882 = vmatmul.msk.bf16.gmra.mxu1 %vm1105_vm1, %v8248_v26  ;;  %v8255_v15 = vld [vmem:[#allocation79_spill] sm:$0xff] }
 0x2e5   : > { %4922 = vmatmul.msk.bf16.vlgmr.msra.gmra.mxu0 %vm1105_vm1, %v4200_v34  ;;  %4907 = vmatmul.msk.bf16.gmra.mxu3 %vm1105_vm1, %v3787_v53  ;;  %v1885_v18 = vadd.f32 %v8251_v37, %v1350_v0  ;;  %v4002_v34 = vld [vmem:[#allocation4 + $0x8d0] sm:$0xff]  ;;  %v4171_v61 = vmul.f32 %v4026_v24, %v8255_v15  ;;  %v8256_v37 = vld [vmem:[#allocation33_spill] sm:$0xff] }
 0x2e6   : > { %3725 = vperm.xlu2 %5058, %v3587_v4   ;;  %3315 = vperm.xlu1 %5057, %v3173_v35   ;;  %v8252_v4 = vpack.c.bf16 %v6877_v13, %v6885_v20  ;;  %v8258_v24 = vld [vmem:[#allocation105_spill] sm:$0xff] }
 0x2e7   : > { %3310 = vperm.xlu0 %5056, %v3172_v27   ;;  %v7071_v58 = vpop.permute.xlu1 %4045  ;;  %v2300_v19 = vadd.f32 %v6840_v49, %v1885_v18  ;;  %v3631_v53 = vpop.permute.xlu2 %3630  ;;  %v8253_v49 = vld [vmem:[#allocation78_spill] sm:$0xff]  ;;  %v8254_v27 = vld [vmem:[#allocation32_spill] sm:$0xff] }
 0x2e8   : > { %v7073_v11 = vpop.permute.xlu0 %4040  ;;  %v4170_v35 = vmul.f32 %v7007_v39, %v8253_v49  ;;  %v3760_v18 = vmul.f32 %v3631_v53, %v8256_v37  ;;  %v3590_v37 = vld [vmem:[#allocation4 + $0x7e8] sm:$0xff] }
 0x2e9   : > { %v7076_v63 = vpop.f32.mrf.mxu3  ;;  %v3050_v8 = vpop.f32.mrf.mxu1 }
 0x2ea   : > { %v2660_v42 = vpop.f32.mrf.mxu0  ;;  %v7079_v12 = vadd.f32 %v3050_v8, %v6845_v60  ;;  %v3759_v60 = vmul.f32 %v3626_v21, %v8254_v27  ;;  %v4201_v13 = vpack.c.bf16 %v4171_v61, %v4170_v35  ;;  %v3174_v21 = vld [vmem:[#allocation4 + $0x6e0] sm:$0xff] }
 0x2eb   : > { %v7081_v41 = vadd.f32 %v2660_v42, %v2300_v19  ;;  %v3589_v42 = vld [vmem:[#allocation4 + $0x7e0] sm:$0xff] }
 0x2ec   : > { %4894 = vmatmul.msk.bf16.gmra.mxu2 %vm1105_vm1, %v8252_v4  ;;  %v8259_v4 = vld [vmem:[#allocation104_spill] sm:$0xff] }
 0x2ed   : > { %v1355_v53 = vadd.f32 %v8259_v4, %v8258_v24  ;;  %v4004_v61 = vld [vmem:[#allocation4 + $0x8e0] sm:$0xff] }
 0x2ee   : > { %4145 = vperm.xlu2 %5058, %v4003_v40   ;;  %4140 = vperm.xlu1 %5057, %v4002_v34   ;;  %v3788_v40 = vpack.c.bf16 %v3760_v18, %v3759_v60  ;;  %v3175_v34 = vld [vmem:[#allocation4 + $0x6e8] sm:$0xff]  ;;  %v8260_v18 = vpack.c.bf16 %v6908_v16, %v6905_v57 }
 0x2ef   : > { %3730 = vperm.xlu0 %5056, %v3588_v33   ;;  %v7090_v26 = vpop.permute.xlu1 %4050  ;;  %v8257_v33 = vpack.c.bf16 %v6698_v2, %v6701_v14  ;;  %v3636_v27 = vpop.permute.xlu2 %3635  ;;  %v4005_v60 = vld [vmem:[#allocation4 + $0x8e8] sm:$0xff] }
 0x2f0   : > { %v3641_v0 = vpop.permute.xlu0 %3640 }
 0x2f1   : > { %v2273_v19 = vpop.f32.mrf.mxu3 }
 0x2f2   : > { %v7095_v20 = vadd.f32 %v2273_v19, %v6910_v31  ;;  %v2663_v8 = vpop.f32.mrf.mxu0 }
 0x2f3   : > { %v7098_v39 = vadd.f32 %v2663_v8, %v6859_v10  ;;  %v1887_v10 = vadd.f32 %v6675_v7, %v1355_v53  ;;  %v8261_v7 = vld [vmem:[#allocation88_spill] sm:$0xff]  ;;  %v8263_v8 = vld [vmem:[#allocation89_spill] sm:$0xff]  ;;  %v3591_v53 = vld [vmem:[#allocation4 + $0x7f0] sm:$0xff] }
 0x2f4   : > { %4883 = vmatmul.msk.bf16.gmra.mxu1 %vm1105_vm1, %v8257_v33  ;;  %v4173_v19 = vmul.f32 %v7049_v43, %v8261_v7 }
 0x2f5   : > { %4923 = vmatmul.msk.bf16.gmra.mxu0 %vm1105_vm1, %v4201_v13  ;;  %4908 = vmatmul.msk.bf16.gmra.mxu3 %vm1105_vm1, %v3788_v40  ;;  %v2302_v35 = vadd.f32 %v6887_v44, %v1887_v10  ;;  %v8262_v44 = vld [vmem:[#allocation38_spill] sm:$0xff] }
 0x2f6   : > { %3735 = vperm.xlu2 %5058, %v3589_v42   ;;  %3325 = vperm.xlu1 %5057, %v3175_v34   ;;  %v3762_v13 = vmul.f32 %v3641_v0, %v8262_v44  ;;  %v4172_v42 = vmul.f32 %v7060_v38, %v8263_v8  ;;  %v3177_v0 = vld [vmem:[#allocation4 + $0x6f8] sm:$0xff]  ;;  %v8265_v38 = vld [vmem:[#allocation93_spill] sm:$0xff]  ;;  %v4006_v8 = vld [vmem:[#allocation4 + $0x8f0] sm:$0xff] }
 0x2f7   : > { %3320 = vperm.xlu0 %5056, %v3174_v21   ;;  %v8264_v21 = vld [vmem:[#allocation40_spill] sm:$0xff]  ;;  %v4056_v43 = vpop.permute.xlu2 %4055  ;;  %v4007_v44 = vld [vmem:[#allocation4 + $0x8f8] sm:$0xff] }
 0x2f8   : > { %v3651_v31 = vpop.permute.xlu1 %3650  ;;  %v3646_v49 = vpop.permute.xlu0 %3645  ;;  %v3761_v33 = vmul.f32 %v3636_v27, %v8264_v21  ;;  %v4202_v57 = vpack.c.bf16 %v4173_v19, %v4172_v42  ;;  %v8267_v27 = vld [vmem:[#allocation114_spill] sm:$0xff]  ;;  %v3592_v42 = vld [vmem:[#allocation4 + $0x7f8] sm:$0xff] }
 0x2f9   : > { %v7110_v2 = vpop.f32.mrf.mxu3 }
 0x2fa   : > { %v2665_v14 = vpop.f32.mrf.mxu0  ;;  %v3789_v10 = vpack.c.bf16 %v3762_v13, %v3761_v33  ;;  %v8270_v33 = vpack.c.bf16 %v6899_v6, %v6902_v45 }
 0x2fb   : > { %v7112_v15 = vadd.f32 %v2665_v14, %v2302_v35  ;;  %v3176_v14 = vld [vmem:[#allocation4 + $0x6f0] sm:$0xff] }
 0x2fc   : > { %4895 = vmatmul.msk.bf16.gmra.mxu2 %vm1105_vm1, %v8260_v18 }
 0x2fe   : > { %4155 = vperm.xlu2 %5058, %v4005_v60   ;;  %4150 = vperm.xlu1 %5057, %v4004_v61   ;;  %v8266_v60 = vpack.c.bf16 %v6736_v1, %v8265_v38  ;;  %v8268_v61 = vld [vmem:[#allocation18_spill] sm:$0xff] }
 0x2ff   : > { %3740 = vperm.xlu0 %5056, %v3590_v37   ;;  %v8269_v37 = vld [vmem:[#allocation122_spill] sm:$0xff]  ;;  %v4061_v21 = vpop.permute.xlu2 %4060 }
 0x300   : > { %v3656_v40 = vpop.permute.xlu1 %3655  ;;  %v7123_v34 = vpop.permute.xlu0 %4065 }
 0x301   : > { %v2278_v24 = vpop.f32.mrf.mxu3 }
 0x302   : > { %v7127_v16 = vadd.f32 %v2278_v24, %v6969_v32  ;;  %v2668_v4 = vpop.f32.mrf.mxu0  ;;  %v1360_v32 = vadd.f32 %v8268_v61, %v8267_v27  ;;  %v8271_v24 = vld [vmem:[#allocation95_spill] sm:$0xff] }
 0x303   : > { %v7130_v35 = vadd.f32 %v2668_v4, %v6915_v22  ;;  %v8272_v4 = vld [vmem:[#allocation96_spill] sm:$0xff] }
 0x304   : > { %4884 = vmatmul.msk.bf16.gmra.mxu1 %vm1105_vm1, %v8266_v60  ;;  %v1889_v22 = vadd.f32 %v8269_v37, %v1360_v32  ;;  %v8275_v32 = vld [vmem:[#allocation111_spill] sm:$0xff] }
 0x305   : > { %4924 = vmatmul.msk.bf16.gmra.mxu0 %vm1105_vm1, %v4202_v57  ;;  %4909 = vmatmul.msk.bf16.gmra.mxu3 %vm1105_vm1, %v3789_v10  ;;  %v4175_v57 = vmul.f32 %v7071_v58, %v8271_v24  ;;  %v8276_v58 = vld [vmem:[#allocation19_spill] sm:$0xff] }
 0x306   : > { %3745 = vperm.xlu2 %5058, %v3591_v53   ;;  %3335 = vperm.xlu1 %5057, %v3177_v0   ;;  %v2304_v1 = vadd.f32 %v6949_v48, %v1889_v22  ;;  %v4174_v53 = vmul.f32 %v7073_v11, %v8272_v4  ;;  %v8273_v48 = vld [vmem:[#allocation45_spill] sm:$0xff]  ;;  %v8274_v0 = vld [vmem:[#allocation44_spill] sm:$0xff]  ;;  %v8277_v37 = vpack.c.bf16 %v8275_v32, %v8276_v58  ;;  %v8278_v11 = vld [vmem:[#allocation123_spill] sm:$0xff] }
 0x307   : > { %3330 = vperm.xlu0 %5056, %v3176_v14   ;;  %v3764_v10 = vmul.f32 %v3651_v31, %v8273_v48  ;;  %v3763_v14 = vmul.f32 %v3646_v49, %v8274_v0  ;;  %v8279_v31 = vld [vmem:[#allocation121_spill] sm:$0xff]  ;;  %v7170_v49 = vpop.f32.mrf.mxu2  ;;  %v8281_v4 = vpack.c.bf16 %v6941_v47, %v6947_v50 }
 0x308   : > { %v7141_v18 = vpop.permute.xlu1 %4075  ;;  %v7143_v7 = vpop.permute.xlu0 %4070  ;;  %v4203_v27 = vpack.c.bf16 %v4175_v57, %v4174_v53  ;;  %v1365_v22 = vadd.f32 %v8279_v31, %v8278_v11  ;;  %v8282_v53 = vld [vmem:[#allocation102_spill] sm:$0xff]  ;;  %v8286_v50 = vld [vmem:[#allocation13_spill] sm:$0xff] }
 0x309   : > { %v3790_v45 = vpack.c.bf16 %v3764_v10, %v3763_v14  ;;  %v4176_v48 = vmul.f32 %v7090_v26, %v8282_v53  ;;  %v8283_v10 = vld [vmem:[#allocation37_spill] sm:$0xff]  ;;  %v8284_v14 = vld [vmem:[#allocation103_spill] sm:$0xff]  ;;  %v8292_v53 = vld [vmem:[#allocation20_spill] sm:$0xff] }
 0x30a   : > { %v2670_v19 = vpop.f32.mrf.mxu0  ;;  %v3765_v0 = vmul.f32 %v3656_v40, %v8283_v10  ;;  %v8289_v40 = vld [vmem:[#allocation126_spill] sm:$0xff]  ;;  %v8293_v10 = vld [vmem:[#allocation140_spill] sm:$0xff] }
 0x30b   : > { %v7146_v13 = vadd.f32 %v2670_v19, %v2304_v1  ;;  %v8280_v1 = vld [vmem:[#allocation9_spill] sm:$0xff] }
 0x30c   : > { %4896 = vmatmul.msk.bf16.gmra.mxu2 %vm1105_vm1, %v8270_v33  ;;  %v1891_v19 = vadd.f32 %v8280_v1, %v1365_v22  ;;  %v8287_v22 = vld [vmem:[#allocation8_spill] sm:$0xff] }
 0x30d   : > { %v8288_v26 = vpack.c.bf16 %v8286_v50, %v8287_v22  ;;  %v8297_v22 = vld [vmem:[#allocation110_spill] sm:$0xff] }
 0x30e   : > { %4165 = vperm.xlu2 %5058, %v4007_v44   ;;  %4160 = vperm.xlu1 %5057, %v4006_v8   ;;  %v3661_v44 = vpop.permute.xlu2 %3660 }
 0x30f   : > { %3750 = vperm.xlu0 %5056, %v3592_v42   ;;  %v2306_v42 = vadd.f32 %v6999_v46, %v1891_v19  ;;  %v7181_v57 = vpop.f32.mrf.mxu2  ;;  %v8291_v19 = vld [vmem:[#allocation131_spill] sm:$0xff] }
 0x310   : > { %v7158_v38 = vpop.permute.xlu1 %4080  ;;  %v3671_v60 = vpop.permute.xlu0 %3670 }
 0x312   : > { %v2673_v6 = vpop.f32.mrf.mxu0 }
 0x313   : > { %v7161_v61 = vadd.f32 %v2673_v6, %v6972_v55 }
 0x314   : > { %4885 = vmatmul.msk.bf16.gmra.mxu1 %vm1105_vm1, %v8277_v37 }
 0x315   : > { %4925 = vmatmul.msk.bf16.gmra.mxu0 %vm1105_vm1, %v4203_v27  ;;  %4910 = vmatmul.msk.bf16.gmra.mxu3 %vm1105_vm1, %v3790_v45  ;;  %v4177_v27 = vmul.f32 %v4056_v43, %v8284_v14  ;;  %v8285_v45 = vld [vmem:[#allocation36_spill] sm:$0xff]  ;;  %v8290_v43 = vld [vmem:[#allocation10_spill] sm:$0xff] }
 0x316   : > { %v3766_v32 = vmul.f32 %v3661_v44, %v8285_v45  ;;  %v3666_v58 = vpop.permute.xlu2 %3665  ;;  %v1370_v1 = vadd.f32 %v8290_v43, %v8289_v40 }
 0x317   : > { %v4204_v37 = vpack.c.bf16 %v4177_v27, %v4176_v48 }
 0x318   : > { %v7174_v8 = vpop.permute.xlu1 %3680  ;;  %v7176_v55 = vpop.permute.xlu0 %3675  ;;  %v3791_v31 = vpack.c.bf16 %v3766_v32, %v3765_v0  ;;  %v1893_v44 = vadd.f32 %v8291_v19, %v1370_v1  ;;  %v8298_v1 = vld [vmem:[#allocation43_spill] sm:$0xff] }
 0x319   : > { %v3767_v19 = vmul.f32 %v3666_v58, %v8298_v1  ;;  %v8303_v1 = vld [vmem:[#allocation119_spill] sm:$0xff] }
 0x31a   : > { %v2675_v33 = vpop.f32.mrf.mxu0 }
 0x31b   : > { %v7179_v24 = vadd.f32 %v2675_v33, %v2306_v42  ;;  %v7208_v42 = vpop.f32.mrf.mxu2 }
 0x31c   : > { %4897 = vmatmul.msk.bf16.gmra.mxu2 %vm1105_vm1, %v8281_v4 }
 0x31e   : > { %v4086_v27 = vpop.permute.xlu2 %4085 }
 0x320   : > { %v7191_v6 = vpop.permute.xlu1 %3685  ;;  %v7193_v46 = vpop.permute.xlu0 %4095 }
 0x322   : > { %v2678_v11 = vpop.f32.mrf.mxu0 }
 0x323   : > { %v7197_v47 = vadd.f32 %v2678_v11, %v7012_v56  ;;  %v2308_v56 = vadd.f32 %v7037_v51, %v1893_v44  ;;  %v8295_v11 = vld [vmem:[#allocation109_spill] sm:$0xff]  ;;  %v7234_v44 = vpop.f32.mrf.mxu2 }
 0x324   : > { %4886 = vmatmul.msk.bf16.gmra.mxu1 %vm1105_vm1, %v8288_v26  ;;  %v4179_v51 = vmul.f32 %v7123_v34, %v8295_v11  ;;  %v4178_v26 = vmul.f32 %v4061_v21, %v8297_v22  ;;  %v8299_v34 = vld [vmem:[#allocation11_spill] sm:$0xff] }
 0x325   : > { %4926 = vmatmul.msk.bf16.gmra.mxu0 %vm1105_vm1, %v4204_v37  ;;  %4911 = vmatmul.msk.bf16.gmra.mxu3 %vm1105_vm1, %v3791_v31  ;;  %v8294_v37 = vpack.c.bf16 %v6967_v59, %v6964_v28  ;;  %v8296_v31 = vld [vmem:[#allocation42_spill] sm:$0xff] }
 0x326   : > { %v3768_v50 = vmul.f32 %v3671_v60, %v8296_v31  ;;  %v8300_v60 = vld [vmem:[#allocation77_spill] sm:$0xff]  ;;  %v7242_v21 = vpop.permute.xlu2 %4090 }
 0x328   : > { %v4106_v33 = vpop.permute.xlu1 %4105  ;;  %v4101_v4 = vpop.permute.xlu0 %4100  ;;  %v3792_v59 = vpack.c.bf16 %v3768_v50, %v3767_v19  ;;  %v4181_v19 = vmul.f32 %v7141_v18, %v8303_v1 }
 0x329   : > { %v7212_v48 = vmul.f32 %v4106_v33, %v8292_v53  ;;  %v7215_v0 = vmul.f32 %v4101_v4, %v8293_v10  ;;  %v4205_v33 = vpack.c.bf16 %v4179_v51, %v4178_v26  ;;  %v8302_v51 = vld [vmem:[#allocation143_spill] sm:$0xff] }
 0x32a   : > { %v2680_v14 = vpop.f32.mrf.mxu0 }
 0x32b   : > { %v7219_v32 = vadd.f32 %v2680_v14, %v2308_v56  ;;  %v1375_v56 = vadd.f32 %v8300_v60, %v8299_v34  ;;  %v7249_v50 = vpop.f32.mrf.mxu2  ;;  %v8306_v34 = vld [vmem:[#allocation49_spill] sm:$0xff] }
 0x32c   : > { %4898 = vmatmul.msk.bf16.gmra.mxu2 %vm1105_vm1, %v8294_v37  ;;  %v8301_v37 = vld [vmem:[#allocation142_spill] sm:$0xff]  ;;  %v3769_v60 = vmul.f32 %v7176_v55, %v8306_v34 }
 0x32d   : > { %v1895_v53 = vadd.f32 %v6879_v17, %v1375_v56  ;;  %v8304_v17 = vld [vmem:[#allocation120_spill] sm:$0xff] }
 0x32f   : > { %v2310_v14 = vadd.f32 %v7076_v63, %v1895_v53  ;;  %v8305_v63 = vld [vmem:[#allocation50_spill] sm:$0xff] }
 0x330   : > { %v7229_v40 = vpop.permute.xlu1 %4110  ;;  %v7231_v43 = vpop.permute.xlu0 %3700 }
 0x332   : > { %v2683_v4 = vpop.f32.mrf.mxu0 }
 0x333   : > { %v7237_v28 = vadd.f32 %v2683_v4, %v7052_v3  ;;  %v3691_v4 = vpop.permute.xlu2 %3690 }
 0x335   : > { %4927 = vmatmul.msk.bf16.gmra.mxu0 %vm1105_vm1, %v4205_v33  ;;  %4912 = vmatmul.msk.bf16.gmra.mxu3 %vm1105_vm1, %v3792_v59  ;;  %v4180_v33 = vmul.f32 %v7143_v7, %v8304_v17  ;;  %v3770_v59 = vmul.f32 %v7174_v8, %v8305_v63  ;;  %v8308_v7 = vld [vmem:[#allocation21_spill] sm:$0xff]  ;;  %v7272_v8 = vpop.f32.mrf.mxu2 }
 0x338   : > { %v3296_v58 = vpop.permute.xlu1 %3295  ;;  %v3291_v10 = vpop.permute.xlu0 %3290 }
 0x339   : > { %v3361_v11 = vmul.f32 %v3296_v58, %v8301_v37  ;;  %v3360_v3 = vmul.f32 %v3291_v10, %v8302_v51  ;;  %v2280_v58 = vpop.f32.mrf.mxu3  ;;  %v4206_v10 = vpack.c.bf16 %v4181_v19, %v4180_v33  ;;  %v3793_v37 = vpack.c.bf16 %v3770_v59, %v3769_v60  ;;  %v8310_v19 = vld [vmem:[#allocation147_spill] sm:$0xff] }
 0x33a   : > { %v2685_v31 = vpop.f32.mrf.mxu0 }
 0x33b   : > { %v3381_v22 = vpack.c.bf16 %v3361_v11, %v3360_v3  ;;  %v7251_v26 = vadd.f32 %v2685_v31, %v2310_v14  ;;  %v8309_v11 = vld [vmem:[#allocation132_spill] sm:$0xff]  ;;  %v3696_v1 = vpop.permute.xlu2 %3695 }
 0x33c   : > { %v1380_v51 = vadd.f32 %v8309_v11, %v8308_v7 }
 0x33d   : > { %4899 = vmatmul.msk.bf16.gmra.mxu2 %vm1105_vm1, %v3381_v22  ;;  %v7286_v7 = vpop.f32.mrf.mxu2 }
 0x33e   : > { %v1897_v55 = vadd.f32 %v6943_v9, %v1380_v51  ;;  %v8314_v9 = vld [vmem:[#allocation55_spill] sm:$0xff] }
 0x340   : > { %v7262_v56 = vpop.permute.xlu1 %4120  ;;  %v7264_v53 = vpop.permute.xlu0 %3710  ;;  %v2312_v22 = vadd.f32 %v7110_v2, %v1897_v55  ;;  %v8315_v2 = vld [vmem:[#allocation128_spill] sm:$0xff] }
 0x341   : > { %v4183_v11 = vmul.f32 %v4086_v27, %v8315_v2  ;;  %v8320_v2 = vld [vmem:[#allocation81_spill] sm:$0xff] }
 0x342   : > { %v2688_v14 = vpop.f32.mrf.mxu0 }
 0x343   : > { %v7267_v18 = vadd.f32 %v2688_v14, %v7095_v20  ;;  %v8311_v20 = vld [vmem:[#allocation68_spill] sm:$0xff] }
 0x345   : > { %8307 = vst [vmem:[#allocation129_spill] sm:$0xff] %v7267_v18  ;;  %4928 = vmatmul.msk.bf16.gmra.mxu0 %vm1105_vm1, %v4206_v10  ;;  %4913 = vmatmul.msk.bf16.gmra.mxu3 %vm1105_vm1, %v3793_v37  ;;  %v8313_v10 = vld [vmem:[#allocation127_spill] sm:$0xff]  ;;  %v3771_v37 = vmul.f32 %v7191_v6, %v8314_v9  ;;  %v8318_v6 = vld [vmem:[#allocation145_spill] sm:$0xff] }
 0x346   : > { %v4182_v14 = vmul.f32 %v7158_v38, %v8313_v10 }
 0x347   : > { %v3863_v63 = vpop.f32.mrf.mxu3 }
 0x348   : > { %v3306_v3 = vpop.permute.xlu1 %3305 }
 0x349   : > { %v3301_v31 = vpop.permute.xlu0 %3300  ;;  %v3363_v17 = vmul.f32 %v3306_v3, %v8310_v19  ;;  %v8316_v3 = vld [vmem:[#allocation56_spill] sm:$0xff]  ;;  %v4207_v19 = vpack.c.bf16 %v4183_v11, %v4182_v14  ;;  %v7304_v14 = vpop.f32.mrf.mxu2 }
 0x34a   : > { %v3362_v33 = vmul.f32 %v3301_v31, %v8311_v20  ;;  %v2690_v59 = vpop.f32.mrf.mxu0  ;;  %v3772_v31 = vmul.f32 %v3691_v4, %v8316_v3  ;;  %v7294_v20 = vpop.permute.xlu2 %4115 }
 0x34b   : > { %v7279_v60 = vadd.f32 %v2690_v59, %v2312_v22  ;;  %v8319_v59 = vld [vmem:[#allocation22_spill] sm:$0xff] }
 0x34c   : > { %v3382_v34 = vpack.c.bf16 %v3363_v17, %v3362_v33  ;;  %v3794_v33 = vpack.c.bf16 %v3772_v31, %v3771_v37  ;;  %v1385_v27 = vadd.f32 %v8319_v59, %v8318_v6  ;;  %v8321_v37 = vld [vmem:[#allocation112_spill] sm:$0xff]  ;;  %v8325_v59 = vld [vmem:[#allocation46_spill] sm:$0xff] }
 0x34d   : > { %8312 = vst [vmem:[#allocation82_spill] sm:$0xff] %v7279_v60  ;;  %v8324_v6 = vld [vmem:[#allocation64_spill] sm:$0xff] }
 0x34e   : > { %4900 = vmatmul.msk.bf16.gmra.mxu2 %vm1105_vm1, %v3382_v34  ;;  %v1899_v34 = vadd.f32 %v7170_v49, %v1385_v27  ;;  %v3774_v27 = vmul.f32 %v7231_v43, %v8325_v59 }
 0x34f   : > { %v3865_v22 = vpop.f32.mrf.mxu3 }
 0x350   : > { %v7289_v51 = vpop.permute.xlu1 %4130  ;;  %v2314_v9 = vadd.f32 %v2280_v58, %v1899_v34  ;;  %v3528_v58 = vadd.f32 %v7181_v57, %v8324_v6  ;;  %v8326_v34 = vld [vmem:[#allocation136_spill] sm:$0xff] }
 0x351   : > { %v7291_v55 = vpop.permute.xlu0 %3720 }
 0x352   : > { %v2693_v17 = vpop.f32.mrf.mxu0  ;;  %v3706_v45 = vpop.permute.xlu2 %3705 }
 0x353   : > { %v7297_v38 = vadd.f32 %v2693_v17, %v7127_v16 }
 0x355   : > { %8317 = vst [vmem:[#allocation141_spill] sm:$0xff] %v7297_v38  ;;  %4929 = vmatmul.msk.bf16.gmra.mxu0 %vm1105_vm1, %v4207_v19  ;;  %4914 = vmatmul.msk.bf16.gmra.mxu3 %vm1105_vm1, %v3794_v33  ;;  %v8323_v33 = vld [vmem:[#allocation135_spill] sm:$0xff] }
 0x356   : > { %v4185_v49 = vmul.f32 %v7193_v46, %v8323_v33  ;;  %v7326_v33 = vpop.f32.mrf.mxu2 }
 0x358   : > { %v3316_v10 = vpop.permute.xlu1 %3315  ;;  %v3868_v16 = vpop.f32.mrf.mxu3 }
 0x359   : > { %v3311_v4 = vpop.permute.xlu0 %3310  ;;  %v3365_v11 = vmul.f32 %v3316_v10, %v8320_v2  ;;  %v4184_v10 = vmul.f32 %v7242_v21, %v8326_v34  ;;  %v8327_v2 = vld [vmem:[#allocation47_spill] sm:$0xff] }
 0x35a   : > { %v3364_v3 = vmul.f32 %v3311_v4, %v8321_v37  ;;  %v2695_v31 = vpop.f32.mrf.mxu0  ;;  %v3943_v37 = vadd.f32 %v3863_v63, %v3528_v58  ;;  %v8329_v34 = vld [vmem:[#allocation51_spill] sm:$0xff] }
 0x35b   : > { %v7308_v19 = vadd.f32 %v2695_v31, %v2314_v9  ;;  %v7324_v31 = vld [vmem:[#allocation2] ss:$0 sm:$0xff]  ;;  %v4208_v46 = vpack.c.bf16 %v4185_v49, %v4184_v10  ;;  %v7340_v49 = vpop.permute.xlu2 %4125 }
 0x35c   : > { %v3383_v17 = vpack.c.bf16 %v3365_v11, %v3364_v3  ;;  %v3773_v11 = vmul.f32 %v3696_v1, %v8327_v2  ;;  %v8328_v1 = vld [vmem:[#allocation118_spill] sm:$0xff]  ;;  %v8330_v2 = vld [vmem:[#allocation52_spill] sm:$0xff] }
 0x35d   : > { %8322 = vst [vmem:[#allocation80_spill] sm:$0xff] %v7308_v19  ;;  %v3529_v63 = vadd.f32 %v7208_v42, %v8328_v1 }
 0x35e   : > { %4901 = vmatmul.msk.bf16.gmra.mxu2 %vm1105_vm1, %v3383_v17  ;;  %v3795_v57 = vpack.c.bf16 %v3774_v27, %v3773_v11  ;;  %v7350_v42 = vpop.f32.mrf.mxu2 }
 0x35f   : > { %v3944_v27 = vadd.f32 %v3865_v22, %v3529_v63  ;;  %v3530_v22 = vadd.f32 %v7234_v44, %v6975_v54  ;;  %v8331_v63 = vld [vmem:[#allocation54_spill] sm:$0xff] }
 0x360   : > { %v7319_v4 = vpop.permute.xlu1 %4140  ;;  %v3870_v3 = vpop.f32.mrf.mxu3 }
 0x361   : > { %v7321_v9 = vpop.permute.xlu0 %3730 }
 0x362   : > { %v4278_v17 = vpop.f32.mrf.mxu0 }
 0x363   : > { %v4358_v43 = vadd.f32 %v4278_v17, %v3943_v37 }
 0x365   : > { %4930 = vmatmul.msk.bf16.gmra.mxu0 %vm1105_vm1, %v4208_v46  ;;  %v4394_v21 = vadd.f32 %v7324_v31, %v4358_v43  ;;  %4915 = vmatmul.msk.bf16.gmra.mxu3 %vm1105_vm1, %v3795_v57  ;;  %v7348_v43 = vpop.f32.mrf.mxu1 }
 0x367   : > { %v4426_v6 = vpack.c.bf16 %v4394_v21, %v4394_v21  ;;  %v4560_v1 = vmul.f32 %v4394_v21, %v4394_v21 }
 0x368   : > { %v3326_v58 = vpop.permute.xlu1 %3325  ;;  %v7346_v37 = vpop.f32.mrf.mxu3 }
 0x369   : > { %v3321_v59 = vpop.permute.xlu0 %3320  ;;  %4459 = vst.msk [vmem:[%s7336_s25] sm:$0xf] %vm4458_vm4, %v4426_v6  ;;  %v3367_v10 = vmul.f32 %v3326_v58, %v8329_v34  ;;  %v3776_v6 = vmul.f32 %v7264_v53, %v8331_v63  ;;  %v4491_v58 = vsel %vm1105_vm1, %v4394_v21, 0.0  ;;  %v4592_v38 = vsel %vm1105_vm1, %v4560_v1, 0.0  ;;  %v3716_v53 = vpop.permute.xlu2 %3715 }
 0x36a   : > { %v3366_v11 = vmul.f32 %v3321_v59, %v8330_v2  ;;  %v4280_v46 = vpop.f32.mrf.mxu0  ;;  %v3531_v1 = vadd.f32 %v7249_v50, %v7002_v52 }
 0x36b   : > { %v4359_v57 = vadd.f32 %v4280_v46, %v3944_v27  ;;  %v8332_v46 = vld [vmem:[#allocation53_spill] sm:$0xff] }
 0x36c   : > { %v3384_v17 = vpack.c.bf16 %v3367_v10, %v3366_v11 }
 0x36d   : > { %v4395_v19 = vadd.f32 %v7324_v31, %v4359_v57  ;;  %v3775_v57 = vmul.f32 %v3706_v45, %v8332_v46 }
 0x36e   : > { %4902 = vmatmul.msk.bf16.gmra.mxu2 %vm1105_vm1, %v3384_v17  ;;  %v3945_v17 = vadd.f32 %v3868_v16, %v3530_v22  ;;  %v7375_v16 = vpop.f32.mrf.mxu1  ;;  %v7379_v22 = vpop.f32.mrf.mxu2 }
 0x36f   : > { %v4427_v59 = vpack.c.bf16 %v4395_v19, %v4395_v19  ;;  %v4492_v27 = vsel %vm1105_vm1, %v4395_v19, 0.0  ;;  %v4561_v34 = vmul.f32 %v4395_v19, %v4395_v19  ;;  %v3796_v19 = vpack.c.bf16 %v3776_v6, %v3775_v57 }
 0x370   : > { %v4493_v10 = vadd.f32 %v4492_v27, %v4491_v58  ;;  %v7360_v2 = vpop.permute.xlu1 %4150  ;;  %v3875_v44 = vpop.f32.mrf.mxu3  ;;  %v8333_v27 = vpack.c.bf16 %v7212_v48, %v7215_v0  ;;  %v3946_v0 = vadd.f32 %v3870_v3, %v3531_v1  ;;  %v8336_v3 = vld [vmem:[#allocation12_spill] sm:$0xff]  ;;  %v3532_v1 = vadd.f32 %v7272_v8, %v7015_v30 }
 0x371   : > { %v7362_v11 = vpop.permute.xlu0 %3740  ;;  %4460 = vst.msk [vmem:[%s7336_s25 + $0x4] sm:$0xf] %vm4458_vm4, %v4427_v59  ;;  %v4593_v54 = vsel %vm1105_vm1, %v4561_v34, 0.0  ;;  %v7387_v18 = vpop.permute.xlu2 %4135 }
 0x372   : > { %v4594_v21 = vadd.f32 %v4593_v54, %v4592_v38  ;;  %v4283_v63 = vpop.f32.mrf.mxu0 }
 0x373   : > { %v4360_v58 = vadd.f32 %v4283_v63, %v3945_v17  ;;  %v8334_v17 = vld [vmem:[#allocation58_spill] sm:$0xff]  ;;  %v8335_v63 = vld [vmem:[#allocation57_spill] sm:$0xff] }
 0x375   : > { %4931 = vmatmul.msk.bf16.gmra.mxu0 %vm1105_vm1, %v8333_v27  ;;  %v4396_v45 = vadd.f32 %v7324_v31, %v4360_v58  ;;  %4916 = vmatmul.msk.bf16.gmra.mxu3 %vm1105_vm1, %v3796_v19 }
 0x377   : > { %v4428_v38 = vpack.c.bf16 %v4396_v45, %v4396_v45  ;;  %v4494_v6 = vsel %vm1105_vm1, %v4396_v45, 0.0  ;;  %v4562_v59 = vmul.f32 %v4396_v45, %v4396_v45  ;;  %v4188_v45 = vmul.f32 %v7229_v40, %v8336_v3 }
 0x378   : > { %v4495_v34 = vadd.f32 %v4494_v6, %v4493_v10  ;;  %v3336_v46 = vpop.permute.xlu1 %3335  ;;  %v3878_v58 = vpop.f32.mrf.mxu3  ;;  %v3947_v40 = vadd.f32 %v7346_v37, %v3532_v1 }
 0x379   : > { %v3331_v48 = vpop.permute.xlu0 %3330  ;;  %4461 = vst.msk [vmem:[%s7336_s25 + $0x8] sm:$0xf] %vm4458_vm4, %v4428_v38  ;;  %v4595_v57 = vsel %vm1105_vm1, %v4562_v59, 0.0  ;;  %v3369_v54 = vmul.f32 %v3336_v46, %v8334_v17  ;;  %v8337_v38 = vld [vmem:[#allocation60_spill] sm:$0xff]  ;;  %v8339_v17 = vld [vmem:[#allocation59_spill] sm:$0xff]  ;;  %v3726_v37 = vpop.permute.xlu2 %3725 }
 0x37a   : > { %v3368_v19 = vmul.f32 %v3331_v48, %v8335_v63  ;;  %v4596_v52 = vadd.f32 %v4595_v57, %v4594_v21  ;;  %v4285_v50 = vpop.f32.mrf.mxu0  ;;  %v3778_v6 = vmul.f32 %v7291_v55, %v8337_v38  ;;  %v7398_v48 = vpop.f32.mrf.mxu1 }
 0x37b   : > { %v4361_v60 = vadd.f32 %v4285_v50, %v3946_v0  ;;  %v8338_v0 = vld [vmem:[#allocation144_spill] sm:$0xff]  ;;  %v7407_v63 = vpop.f32.mrf.mxu2 }
 0x37c   : > { %v3385_v27 = vpack.c.bf16 %v3369_v54, %v3368_v19  ;;  %v3777_v54 = vmul.f32 %v3716_v53, %v8339_v17  ;;  %v3533_v53 = vadd.f32 %v7286_v7, %v7040_v25  ;;  %v8340_v7 = vld [vmem:[#allocation149_spill] sm:$0xff] }
 0x37d   : > { %v4397_v10 = vadd.f32 %v7324_v31, %v4361_v60  ;;  %v4189_v60 = vmul.f32 %v7294_v20, %v8338_v0  ;;  %v4190_v17 = vmul.f32 %v7262_v56, %v8340_v7 }
 0x37e   : > { %4903 = vmatmul.msk.bf16.gmra.mxu2 %vm1105_vm1, %v3385_v27  ;;  %v3797_v27 = vpack.c.bf16 %v3778_v6, %v3777_v54  ;;  %v3948_v38 = vadd.f32 %v3875_v44, %v3533_v53  ;;  %v3534_v44 = vadd.f32 %v7304_v14, %v7055_v5 }
 0x37f   : > { %v4429_v21 = vpack.c.bf16 %v4397_v10, %v4397_v10  ;;  %v4496_v59 = vsel %vm1105_vm1, %v4397_v10, 0.0  ;;  %v4563_v46 = vmul.f32 %v4397_v10, %v4397_v10  ;;  %v4210_v55 = vpack.c.bf16 %v4189_v60, %v4188_v45 }
 0x380   : > { %v4497_v57 = vadd.f32 %v4496_v59, %v4495_v34  ;;  %v3880_v8 = vpop.f32.mrf.mxu3 }
 0x381   : > { %4462 = vst.msk [vmem:[%s7336_s25 + $0xc] sm:$0xf] %vm4458_vm4, %v4429_v21  ;;  %v4597_v30 = vsel %vm1105_vm1, %v4563_v46, 0.0 }
 0x382   : > { %v4598_v19 = vadd.f32 %v4597_v30, %v4596_v52  ;;  %v4288_v50 = vpop.f32.mrf.mxu0  ;;  %v7418_v21 = vpop.f32.mrf.mxu1 }
 0x383   : > { %v4362_v10 = vadd.f32 %v4288_v50, %v3947_v40  ;;  %v7420_v60 = vpop.f32.mrf.mxu2 }
 0x385   : > { %4932 = vmatmul.msk.bf16.gmra.mxu0 %vm1105_vm1, %v4210_v55  ;;  %v4398_v20 = vadd.f32 %v7324_v31, %v4362_v10  ;;  %4917 = vmatmul.msk.bf16.gmra.mxu3 %vm1105_vm1, %v3797_v27  ;;  %v7432_v27 = vpop.permute.xlu2 %4145 }
 0x387   : > { %v4430_v34 = vpack.c.bf16 %v4398_v20, %v4398_v20  ;;  %v4498_v3 = vsel %vm1105_vm1, %v4398_v20, 0.0  ;;  %v4564_v45 = vmul.f32 %v4398_v20, %v4398_v20  ;;  %v8343_v20 = vld [vmem:[#allocation65_spill] sm:$0xff] }
 0x388   : > { %v4499_v1 = vadd.f32 %v4498_v3, %v4497_v57  ;;  %v3883_v6 = vpop.f32.mrf.mxu3  ;;  %v8341_v57 = vld [vmem:[#allocation48_spill] sm:$0xff]  ;;  %v3779_v53 = vmul.f32 %v3726_v37, %v8343_v20  ;;  %v3535_v37 = vadd.f32 %v7326_v33, %v7079_v12 }
 0x389   : > { %4463 = vst.msk [vmem:[%s7336_s25 + $0x10] sm:$0xf] %vm4458_vm4, %v4430_v34  ;;  %v4599_v52 = vsel %vm1105_vm1, %v4564_v45, 0.0  ;;  %v3780_v54 = vmul.f32 %v7321_v9, %v8341_v57  ;;  %v3949_v34 = vadd.f32 %v3878_v58, %v3534_v44 }
 0x38a   : > { %v4600_v59 = vadd.f32 %v4599_v52, %v4598_v19  ;;  %v4290_v46 = vpop.f32.mrf.mxu0  ;;  %v8342_v19 = vld [vmem:[#allocation148_spill] sm:$0xff]  ;;  %v7438_v52 = vpop.f32.mrf.mxu1 }
 0x38b   : > { %v4363_v0 = vadd.f32 %v4290_v46, %v3948_v38  ;;  %v4191_v50 = vmul.f32 %v7340_v49, %v8342_v19  ;;  %v3798_v45 = vpack.c.bf16 %v3780_v54, %v3779_v53  ;;  %v7443_v58 = vpop.f32.mrf.mxu2  ;;  %v8345_v19 = vld [vmem:[#allocation130_spill] sm:$0xff] }
 0x38d   : > { %v4399_v25 = vadd.f32 %v7324_v31, %v4363_v0  ;;  %v4211_v14 = vpack.c.bf16 %v4191_v50, %v4190_v17  ;;  %v3736_v44 = vpop.permute.xlu2 %3735 }
 0x38f   : > { %v4431_v40 = vpack.c.bf16 %v4399_v25, %v4399_v25  ;;  %v4500_v30 = vsel %vm1105_vm1, %v4399_v25, 0.0  ;;  %v4565_v55 = vmul.f32 %v4399_v25, %v4399_v25  ;;  %v3950_v25 = vadd.f32 %v3880_v8, %v3535_v37 }
 0x390   : > { %v4501_v10 = vadd.f32 %v4500_v30, %v4499_v1  ;;  %v3885_v56 = vpop.f32.mrf.mxu3  ;;  %v8344_v30 = vld [vmem:[#allocation117_spill] sm:$0xff]  ;;  %v4192_v8 = vmul.f32 %v7289_v51, %v8345_v19 }
 0x391   : > { %4464 = vst.msk [vmem:[%s7336_s25 + $0x14] sm:$0xf] %vm4458_vm4, %v4431_v40  ;;  %v4601_v5 = vsel %vm1105_vm1, %v4565_v55, 0.0  ;;  %v3121_v55 = vadd.f32 %v7348_v43, %v8344_v30 }
 0x392   : > { %v4602_v9 = vadd.f32 %v4601_v5, %v4600_v59  ;;  %v4293_v3 = vpop.f32.mrf.mxu0  ;;  %v7454_v33 = vpop.f32.mrf.mxu1 }
 0x393   : > { %v4364_v38 = vadd.f32 %v4293_v3, %v3949_v34  ;;  %v3536_v50 = vadd.f32 %v7350_v42, %v3121_v55  ;;  %v7464_v43 = vpop.f32.mrf.mxu2 }
 0x395   : > { %4933 = vmatmul.msk.bf16.gmra.mxu0 %vm1105_vm1, %v4211_v14  ;;  %v4400_v49 = vadd.f32 %v7324_v31, %v4364_v38  ;;  %4918 = vmatmul.msk.bf16.gmra.mxu3 %vm1105_vm1, %v3798_v45  ;;  %v8347_v14 = vld [vmem:[#allocation87_spill] sm:$0xff] }
 0x396   : > { %v8348_v45 = vld [vmem:[#allocation27_spill] sm:$0xff] }
 0x397   : > { %v4432_v1 = vpack.c.bf16 %v4400_v49, %v4400_v49  ;;  %v4502_v46 = vsel %vm1105_vm1, %v4400_v49, 0.0  ;;  %v4566_v59 = vmul.f32 %v4400_v49, %v4400_v49  ;;  %v3781_v38 = vmul.f32 %v3736_v44, %v8348_v45 }
 0x398   : > { %v4503_v0 = vadd.f32 %v4502_v46, %v4501_v10  ;;  %v3888_v17 = vpop.f32.mrf.mxu3  ;;  %v8346_v10 = vld [vmem:[#allocation26_spill] sm:$0xff]  ;;  %v3951_v49 = vadd.f32 %v3883_v6, %v3536_v50 }
 0x399   : > { %4465 = vst.msk [vmem:[%s7336_s25 + $0x18] sm:$0xf] %vm4458_vm4, %v4432_v1  ;;  %v4603_v7 = vsel %vm1105_vm1, %v4566_v59, 0.0  ;;  %v3782_v20 = vmul.f32 %v7362_v11, %v8346_v10 }
 0x39a   : > { %v4604_v57 = vadd.f32 %v4603_v7, %v4602_v9  ;;  %v4295_v54 = vpop.f32.mrf.mxu0  ;;  %v4193_v9 = vmul.f32 %v7387_v18, %v8347_v14  ;;  %v8349_v18 = vld [vmem:[#allocation15_spill] sm:$0xff] }
 0x39b   : > { %v4365_v40 = vadd.f32 %v4295_v54, %v3950_v25  ;;  %v3799_v46 = vpack.c.bf16 %v3782_v20, %v3781_v38  ;;  %v7470_v25 = vpop.permute.xlu2 %4155  ;;  %v8351_v14 = vld [vmem:[#allocation151_spill] sm:$0xff] }
 0x39c   : > { %v4212_v37 = vpack.c.bf16 %v4193_v9, %v4192_v8 }
 0x39d   : > { %v4401_v12 = vadd.f32 %v7324_v31, %v4365_v40  ;;  %v7479_v40 = vpop.f32.mrf.mxu1 }
 0x39f   : > { %v4433_v53 = vpack.c.bf16 %v4401_v12, %v4401_v12  ;;  %v4504_v34 = vsel %vm1105_vm1, %v4401_v12, 0.0  ;;  %v4567_v5 = vmul.f32 %v4401_v12, %v4401_v12 }
 0x3a0   : > { %v4505_v3 = vadd.f32 %v4504_v34, %v4503_v0  ;;  %v3890_v42 = vpop.f32.mrf.mxu3  ;;  %v3122_v0 = vadd.f32 %v7375_v16, %v8349_v18  ;;  %v7484_v16 = vpop.f32.mrf.mxu2 }
 0x3a1   : > { %4466 = vst.msk [vmem:[%s7336_s25 + $0x1c] sm:$0xf] %vm4458_vm4, %v4433_v53  ;;  %v4605_v51 = vsel %vm1105_vm1, %v4567_v5, 0.0  ;;  %v3751_v53 = vpop.permute.xlu0 %3750 }
 0x3a2   : > { %v4606_v11 = vadd.f32 %v4605_v51, %v4604_v57  ;;  %v4298_v1 = vpop.f32.mrf.mxu0  ;;  %v3537_v7 = vadd.f32 %v7379_v22, %v3122_v0  ;;  %v8350_v22 = vld [vmem:[#allocation63_spill] sm:$0xff] }
 0x3a3   : > { %v4366_v59 = vadd.f32 %v4298_v1, %v3951_v49  ;;  %v3123_v20 = vadd.f32 %v7398_v48, %v8350_v22  ;;  %v3746_v5 = vpop.permute.xlu2 %3745  ;;  %v8354_v48 = vld [vmem:[#allocation28_spill] sm:$0xff] }
 0x3a4   : > { %v3952_v55 = vadd.f32 %v3885_v56, %v3537_v7  ;;  %v4194_v56 = vmul.f32 %v7319_v4, %v8351_v14 }
 0x3a5   : > { %4934 = vmatmul.msk.bf16.gmra.mxu0 %vm1105_vm1, %v4212_v37  ;;  %v4402_v6 = vadd.f32 %v7324_v31, %v4366_v59  ;;  %4919 = vmatmul.msk.bf16.gmra.mxu3 %vm1105_vm1, %v3799_v46  ;;  %v3538_v9 = vadd.f32 %v7407_v63, %v3123_v20  ;;  %v8353_v37 = vld [vmem:[#allocation152_spill] sm:$0xff]  ;;  %v3783_v46 = vmul.f32 %v3746_v5, %v8354_v48  ;;  %v7500_v0 = vpop.f32.mrf.mxu1 }
 0x3a7   : > { %v4434_v44 = vpack.c.bf16 %v4402_v6, %v4402_v6  ;;  %v4506_v57 = vsel %vm1105_vm1, %v4402_v6, 0.0  ;;  %v4568_v54 = vmul.f32 %v4402_v6, %v4402_v6  ;;  %v3953_v59 = vadd.f32 %v3888_v17, %v3538_v9  ;;  %v8356_v9 = vld [vmem:[#allocation61_spill] sm:$0xff] }
 0x3a8   : > { %v4507_v30 = vadd.f32 %v4506_v57, %v4505_v3  ;;  %v3893_v19 = vpop.f32.mrf.mxu3  ;;  %v8352_v3 = vld [vmem:[#allocation31_spill] sm:$0xff] }
 0x3a9   : > { %4467 = vst.msk [vmem:[%s7336_s25 + $0x20] sm:$0xf] %vm4458_vm4, %v4434_v44  ;;  %v4607_v12 = vsel %vm1105_vm1, %v4568_v54, 0.0  ;;  %v3784_v45 = vmul.f32 %v3751_v53, %v8352_v3  ;;  %v7502_v54 = vpop.f32.mrf.mxu2  ;;  %v4196_v3 = vmul.f32 %v7360_v2, %v8356_v9  ;;  %v8360_v9 = vld [vmem:[#allocation66_spill] sm:$0xff] }
 0x3aa   : > { %v4608_v8 = vadd.f32 %v4607_v12, %v4606_v11  ;;  %v4300_v50 = vpop.f32.mrf.mxu0  ;;  %v4195_v11 = vmul.f32 %v7432_v27, %v8353_v37  ;;  %v8355_v27 = vld [vmem:[#allocation69_spill] sm:$0xff]  ;;  %v8357_v37 = vld [vmem:[#allocation62_spill] sm:$0xff] }
 0x3ab   : > { %v4367_v10 = vadd.f32 %v4300_v50, %v3952_v55  ;;  %v3800_v44 = vpack.c.bf16 %v3784_v45, %v3783_v46  ;;  %v3124_v17 = vadd.f32 %v7418_v21, %v8355_v27 }
 0x3ac   : > { %v4213_v63 = vpack.c.bf16 %v4195_v11, %v4194_v56  ;;  %v4197_v11 = vmul.f32 %v7470_v25, %v8357_v37 }
 0x3ad   : > { %v4403_v34 = vadd.f32 %v7324_v31, %v4367_v10  ;;  %v3539_v55 = vadd.f32 %v7420_v60, %v3124_v17  ;;  %v7514_v14 = vpop.f32.mrf.mxu1  ;;  %v3125_v60 = vadd.f32 %v7438_v52, %v6980_v62 }
 0x3ae   : > { %v4214_v2 = vpack.c.bf16 %v4197_v11, %v4196_v3 }
 0x3af   : > { %v4435_v38 = vpack.c.bf16 %v4403_v34, %v4403_v34  ;;  %v4508_v49 = vsel %vm1105_vm1, %v4403_v34, 0.0  ;;  %v4569_v51 = vmul.f32 %v4403_v34, %v4403_v34  ;;  %v3954_v22 = vadd.f32 %v3890_v42, %v3539_v55 }
 0x3b0   : > { %v4509_v1 = vadd.f32 %v4508_v49, %v4507_v30  ;;  %v3895_v4 = vpop.f32.mrf.mxu3  ;;  %v3540_v45 = vadd.f32 %v7443_v58, %v3125_v60  ;;  %v3126_v58 = vadd.f32 %v7454_v33, %v7004_v23 }
 0x3b1   : > { %4468 = vst.msk [vmem:[%s7336_s25 + $0x24] sm:$0xf] %vm4458_vm4, %v4435_v38  ;;  %v4609_v18 = vsel %vm1105_vm1, %v4569_v51, 0.0  ;;  %v7521_v42 = vpop.f32.mrf.mxu2 }
 0x3b2   : > { %v4610_v6 = vadd.f32 %v4609_v18, %v4608_v8  ;;  %v4303_v7 = vpop.f32.mrf.mxu0  ;;  %v3955_v48 = vadd.f32 %v3893_v19, %v3540_v45  ;;  %v3541_v19 = vadd.f32 %v7464_v43, %v3126_v58 }
 0x3b3   : > { %v4368_v57 = vadd.f32 %v4303_v7, %v3953_v59 }
 0x3b4   : > { %v3956_v17 = vadd.f32 %v3895_v4, %v3541_v19 }
 0x3b5   : > { %4935 = vmatmul.msk.bf16.gmra.mxu0 %vm1105_vm1, %v4213_v63  ;;  %v4404_v30 = vadd.f32 %v7324_v31, %v4368_v57  ;;  %4920 = vmatmul.msk.bf16.gmra.mxu3 %vm1105_vm1, %v3800_v44  ;;  %v7534_v25 = vpop.f32.mrf.mxu1 }
 0x3b7   : > { %v4436_v12 = vpack.c.bf16 %v4404_v30, %v4404_v30  ;;  %v4510_v50 = vsel %vm1105_vm1, %v4404_v30, 0.0  ;;  %v4570_v8 = vmul.f32 %v4404_v30, %v4404_v30 }
 0x3b8   : > { %v4511_v10 = vadd.f32 %v4510_v50, %v4509_v1  ;;  %v3898_v53 = vpop.f32.mrf.mxu3 }
 0x3b9   : > { %4469 = vst.msk [vmem:[%s7336_s25 + $0x28] sm:$0xf] %vm4458_vm4, %v4436_v12  ;;  %v4611_v20 = vsel %vm1105_vm1, %v4570_v8, 0.0  ;;  %v7538_v57 = vpop.f32.mrf.mxu2  ;;  %v4161_v12 = vpop.permute.xlu1 %4160  ;;  %v8358_v8 = vld [vmem:[#allocation70_spill] sm:$0xff] }
 0x3ba   : > { %v4612_v34 = vadd.f32 %v4611_v20, %v4610_v6  ;;  %v4305_v21 = vpop.f32.mrf.mxu0  ;;  %v3127_v43 = vadd.f32 %v7479_v40, %v8358_v8  ;;  %v8359_v20 = vld [vmem:[#allocation67_spill] sm:$0xff] }
 0x3bb   : > { %v4369_v5 = vadd.f32 %v4305_v21, %v3954_v22 }
 0x3bc   : > { %v3542_v4 = vadd.f32 %v7484_v16, %v3127_v43 }
 0x3bd   : > { %v4405_v56 = vadd.f32 %v7324_v31, %v4369_v5 }
 0x3bf   : > { %v4437_v38 = vpack.c.bf16 %v4405_v56, %v4405_v56  ;;  %v4512_v49 = vsel %vm1105_vm1, %v4405_v56, 0.0  ;;  %v4571_v51 = vmul.f32 %v4405_v56, %v4405_v56  ;;  %v3078_v56 = vpop.f32.mrf.mxu1 }
 0x3c0   : > { %v4513_v1 = vadd.f32 %v4512_v49, %v4511_v10  ;;  %v3900_v52 = vpop.f32.mrf.mxu3  ;;  %v4166_v10 = vpop.permute.xlu2 %4165 }
 0x3c1   : > { %4470 = vst.msk [vmem:[%s7336_s25 + $0x2c] sm:$0xf] %vm4458_vm4, %v4437_v38  ;;  %v4613_v62 = vsel %vm1105_vm1, %v4571_v51, 0.0  ;;  %v4199_v3 = vmul.f32 %v4166_v10, %v8360_v9  ;;  %v3957_v38 = vadd.f32 %v3898_v53, %v3542_v4  ;;  %v3493_v37 = vpop.f32.mrf.mxu2 }
 0x3c2   : > { %v4614_v46 = vadd.f32 %v4613_v62, %v4612_v34  ;;  %v4308_v59 = vpop.f32.mrf.mxu0  ;;  %v4198_v34 = vmul.f32 %v4161_v12, %v8359_v20 }
 0x3c3   : > { %v4370_v18 = vadd.f32 %v4308_v59, %v3955_v48  ;;  %v3128_v48 = vadd.f32 %v7500_v0, %v7042_v29 }
 0x3c4   : > { %v4215_v51 = vpack.c.bf16 %v4199_v3, %v4198_v34 }
 0x3c5   : > { %4936 = vmatmul.msk.bf16.gmra.mxu0 %vm1105_vm1, %v4214_v2  ;;  %v4406_v63 = vadd.f32 %v7324_v31, %v4370_v18  ;;  %v3543_v53 = vadd.f32 %v7502_v54, %v3128_v48  ;;  %v3129_v54 = vadd.f32 %v7514_v14, %v7058_v36  ;;  %v3130_v14 = vadd.f32 %v7534_v25, %v7081_v41 }
 0x3c6   : > { %v3131_v25 = vadd.f32 %v3078_v56, %v7098_v39 }
 0x3c7   : > { %v4438_v6 = vpack.c.bf16 %v4406_v63, %v4406_v63  ;;  %v4514_v7 = vsel %vm1105_vm1, %v4406_v63, 0.0  ;;  %v4572_v44 = vmul.f32 %v4406_v63, %v4406_v63  ;;  %v3958_v58 = vadd.f32 %v3900_v52, %v3543_v53 }
 0x3c8   : > { %v4515_v27 = vadd.f32 %v4514_v7, %v4513_v1  ;;  %v3903_v55 = vpop.f32.mrf.mxu3  ;;  %v3545_v34 = vadd.f32 %v7538_v57, %v3130_v14 }
 0x3c9   : > { %4471 = vst.msk [vmem:[%s7336_s25 + $0x30] sm:$0xf] %vm4458_vm4, %v4438_v6  ;;  %v4615_v30 = vsel %vm1105_vm1, %v4572_v44, 0.0  ;;  %v3080_v6 = vpop.f32.mrf.mxu1  ;;  %v3495_v0 = vpop.f32.mrf.mxu2 }
 0x3ca   : > { %v4616_v23 = vadd.f32 %v4615_v30, %v4614_v46  ;;  %v4310_v33 = vpop.f32.mrf.mxu0  ;;  %v3132_v56 = vadd.f32 %v3080_v6, %v7112_v15 }
 0x3cb   : > { %v4371_v50 = vadd.f32 %v4310_v33, %v3956_v17  ;;  %v3544_v17 = vadd.f32 %v7521_v42, %v3129_v54 }
 0x3cd   : > { %v4407_v22 = vadd.f32 %v7324_v31, %v4371_v50  ;;  %v3959_v12 = vadd.f32 %v3903_v55, %v3544_v17 }
 0x3cf   : > { %v4439_v21 = vpack.c.bf16 %v4407_v22, %v4407_v22  ;;  %v4516_v5 = vsel %vm1105_vm1, %v4407_v22, 0.0  ;;  %v4573_v60 = vmul.f32 %v4407_v22, %v4407_v22 }
 0x3d0   : > { %v4517_v45 = vadd.f32 %v4516_v5, %v4515_v27  ;;  %v3905_v49 = vpop.f32.mrf.mxu3 }
 0x3d1   : > { %4472 = vst.msk [vmem:[%s7336_s25 + $0x34] sm:$0xf] %vm4458_vm4, %v4439_v21  ;;  %v4617_v40 = vsel %vm1105_vm1, %v4573_v60, 0.0  ;;  %v3083_v36 = vpop.f32.mrf.mxu1  ;;  %v3498_v20 = vpop.f32.mrf.mxu2  ;;  %v3960_v60 = vadd.f32 %v3905_v49, %v3545_v34 }
 0x3d2   : > { %v4618_v11 = vadd.f32 %v4617_v40, %v4616_v23  ;;  %v4313_v1 = vpop.f32.mrf.mxu0  ;;  %v3133_v6 = vadd.f32 %v3083_v36, %v7130_v35 }
 0x3d3   : > { %v4372_v16 = vadd.f32 %v4313_v1, %v3957_v38 }
 0x3d5   : > { %4937 = vmatmul.msk.bf16.gmra.mxu0 %vm1105_vm1, %v4215_v51  ;;  %v4408_v62 = vadd.f32 %v7324_v31, %v4372_v16  ;;  %v3546_v51 = vadd.f32 %v3493_v37, %v3131_v25 }
 0x3d7   : > { %v4440_v2 = vpack.c.bf16 %v4408_v62, %v4408_v62  ;;  %v4518_v46 = vsel %vm1105_vm1, %v4408_v62, 0.0  ;;  %v4574_v59 = vmul.f32 %v4408_v62, %v4408_v62 }
 0x3d8   : > { %v4519_v18 = vadd.f32 %v4518_v46, %v4517_v45  ;;  %v3908_v19 = vpop.f32.mrf.mxu3 }
 0x3d9   : > { %4473 = vst.msk [vmem:[%s7336_s25 + $0x38] sm:$0xf] %vm4458_vm4, %v4440_v2  ;;  %v4619_v63 = vsel %vm1105_vm1, %v4574_v59, 0.0  ;;  %v3085_v57 = vpop.f32.mrf.mxu1  ;;  %v3500_v49 = vpop.f32.mrf.mxu2  ;;  %v3961_v62 = vadd.f32 %v3908_v19, %v3546_v51 }
 0x3da   : > { %v4620_v7 = vadd.f32 %v4619_v63, %v4618_v11  ;;  %v4315_v44 = vpop.f32.mrf.mxu0  ;;  %v3134_v35 = vadd.f32 %v3085_v57, %v7146_v13 }
 0x3db   : > { %v4373_v29 = vadd.f32 %v4315_v44, %v3958_v58 }
 0x3dd   : > { %v4409_v27 = vadd.f32 %v7324_v31, %v4373_v29 }
 0x3df   : > { %v4441_v30 = vpack.c.bf16 %v4409_v27, %v4409_v27  ;;  %v4520_v52 = vsel %vm1105_vm1, %v4409_v27, 0.0  ;;  %v4575_v23 = vmul.f32 %v4409_v27, %v4409_v27 }
 0x3e0   : > { %v4521_v33 = vadd.f32 %v4520_v52, %v4519_v18  ;;  %v3910_v8 = vpop.f32.mrf.mxu3  ;;  %v3547_v18 = vadd.f32 %v3495_v0, %v3132_v56 }
 0x3e1   : > { %4474 = vst.msk [vmem:[%s7336_s25 + $0x3c] sm:$0xf] %vm4458_vm4, %v4441_v30  ;;  %v4621_v50 = vsel %vm1105_vm1, %v4575_v23, 0.0  ;;  %v3088_v44 = vpop.f32.mrf.mxu1  ;;  %v3503_v27 = vpop.f32.mrf.mxu2  ;;  %v3548_v23 = vadd.f32 %v3498_v20, %v3133_v6 }
 0x3e2   : > { %v4622_v43 = vadd.f32 %v4621_v50, %v4620_v7  ;;  %v4318_v10 = vpop.f32.mrf.mxu0  ;;  %v3962_v29 = vadd.f32 %v3910_v8, %v3547_v18  ;;  %v3135_v13 = vadd.f32 %v3088_v44, %v7161_v61 }
 0x3e3   : > { %v4374_v22 = vadd.f32 %v4318_v10, %v3959_v12 }
 0x3e5   : > { %v4410_v42 = vadd.f32 %v7324_v31, %v4374_v22 }
 0x3e7   : > { %v4442_v4 = vpack.c.bf16 %v4410_v42, %v4410_v42  ;;  %v4522_v55 = vsel %vm1105_vm1, %v4410_v42, 0.0  ;;  %v4576_v21 = vmul.f32 %v4410_v42, %v4410_v42 }
 0x3e8   : > { %v4523_v5 = vadd.f32 %v4522_v55, %v4521_v33  ;;  %v3913_v3 = vpop.f32.mrf.mxu3  ;;  %v3549_v55 = vadd.f32 %v3500_v49, %v3134_v35 }
 0x3e9   : > { %4475 = vst.msk [vmem:[%s7336_s25 + $0x40] sm:$0xf] %vm4458_vm4, %v4442_v4  ;;  %v4623_v9 = vsel %vm1105_vm1, %v4576_v21, 0.0  ;;  %v3090_v22 = vpop.f32.mrf.mxu1  ;;  %v3505_v4 = vpop.f32.mrf.mxu2 }
 0x3ea   : > { %v4624_v45 = vadd.f32 %v4623_v9, %v4622_v43  ;;  %v4320_v38 = vpop.f32.mrf.mxu0  ;;  %v3963_v43 = vadd.f32 %v3913_v3, %v3548_v23  ;;  %v3136_v61 = vadd.f32 %v3090_v22, %v7179_v24 }
 0x3eb   : > { %v4375_v41 = vadd.f32 %v4320_v38, %v3960_v60 }
 0x3ec   : > { %v3551_v18 = vadd.f32 %v3505_v4, %v3136_v61 }
 0x3ed   : > { %v4411_v40 = vadd.f32 %v7324_v31, %v4375_v41 }
 0x3ef   : > { %v4443_v11 = vpack.c.bf16 %v4411_v40, %v4411_v40  ;;  %v4524_v1 = vsel %vm1105_vm1, %v4411_v40, 0.0  ;;  %v4577_v16 = vmul.f32 %v4411_v40, %v4411_v40 }
 0x3f0   : > { %v4525_v48 = vadd.f32 %v4524_v1, %v4523_v5  ;;  %v3915_v46 = vpop.f32.mrf.mxu3 }
 0x3f1   : > { %4476 = vst.msk [vmem:[%s7336_s25 + $0x44] sm:$0xf] %vm4458_vm4, %v4443_v11  ;;  %v4625_v53 = vsel %vm1105_vm1, %v4577_v16, 0.0  ;;  %v3964_v3 = vadd.f32 %v3915_v46, %v3549_v55  ;;  %v3093_v40 = vpop.f32.mrf.mxu1  ;;  %v3508_v51 = vpop.f32.mrf.mxu2  ;;  %v3550_v11 = vadd.f32 %v3503_v27, %v3135_v13 }
 0x3f2   : > { %v4626_v2 = vadd.f32 %v4625_v53, %v4624_v45  ;;  %v4323_v59 = vpop.f32.mrf.mxu0 }
 0x3f3   : > { %v4376_v39 = vadd.f32 %v4323_v59, %v3961_v62 }
 0x3f5   : > { %v4412_v37 = vadd.f32 %v7324_v31, %v4376_v39 }
 0x3f7   : > { %v4444_v58 = vpack.c.bf16 %v4412_v37, %v4412_v37  ;;  %v4526_v63 = vsel %vm1105_vm1, %v4412_v37, 0.0  ;;  %v4578_v7 = vmul.f32 %v4412_v37, %v4412_v37 }
 0x3f8   : > { %v4527_v19 = vadd.f32 %v4526_v63, %v4525_v48  ;;  %v3918_v15 = vpop.f32.mrf.mxu3 }
 0x3f9   : > { %4477 = vst.msk [vmem:[%s7336_s25 + $0x48] sm:$0xf] %vm4458_vm4, %v4444_v58  ;;  %v4627_v54 = vsel %vm1105_vm1, %v4578_v7, 0.0  ;;  %v3965_v53 = vadd.f32 %v3918_v15, %v3550_v11  ;;  %v3095_v37 = vpop.f32.mrf.mxu1  ;;  %v3510_v44 = vpop.f32.mrf.mxu2 }
 0x3fa   : > { %v4628_v17 = vadd.f32 %v4627_v54, %v4626_v2  ;;  %v4325_v30 = vpop.f32.mrf.mxu0 }
 0x3fb   : > { %v4377_v52 = vadd.f32 %v4325_v30, %v3962_v29 }
 0x3fd   : > { %v4413_v0 = vadd.f32 %v7324_v31, %v4377_v52  ;;  %v3137_v52 = vadd.f32 %v3093_v40, %v7197_v47 }
 0x3ff   : > { %v4445_v33 = vpack.c.bf16 %v4413_v0, %v4413_v0  ;;  %v4528_v12 = vsel %vm1105_vm1, %v4413_v0, 0.0  ;;  %v4579_v50 = vmul.f32 %v4413_v0, %v4413_v0  ;;  %v3552_v6 = vadd.f32 %v3508_v51, %v3137_v52 }
 0x400   : > { %v4529_v8 = vadd.f32 %v4528_v12, %v4527_v19  ;;  %v3920_v20 = vpop.f32.mrf.mxu3 }
 0x401   : > { %4478 = vst.msk [vmem:[%s7336_s25 + $0x4c] sm:$0xf] %vm4458_vm4, %v4445_v33  ;;  %v4629_v10 = vsel %vm1105_vm1, %v4579_v50, 0.0  ;;  %v3966_v29 = vadd.f32 %v3920_v20, %v3551_v18  ;;  %v3098_v12 = vpop.f32.mrf.mxu1 }
 0x402   : > { %v4630_v14 = vadd.f32 %v4629_v10, %v4628_v17  ;;  %v4328_v42 = vpop.f32.mrf.mxu0  ;;  %v3513_v10 = vpop.f32.mrf.mxu2 }
 0x403   : > { %v4378_v34 = vadd.f32 %v4328_v42, %v3963_v43 }
 0x405   : > { %v4414_v36 = vadd.f32 %v7324_v31, %v4378_v34  ;;  %v3138_v34 = vadd.f32 %v3095_v37, %v7219_v32  ;;  %v3139_v32 = vadd.f32 %v3098_v12, %v7237_v28 }
 0x407   : > { %v4446_v21 = vpack.c.bf16 %v4414_v36, %v4414_v36  ;;  %v4530_v5 = vsel %vm1105_vm1, %v4414_v36, 0.0  ;;  %v4580_v60 = vmul.f32 %v4414_v36, %v4414_v36  ;;  %v3553_v35 = vadd.f32 %v3510_v44, %v3138_v34 }
 0x408   : > { %v4531_v9 = vadd.f32 %v4530_v5, %v4529_v8  ;;  %v3923_v48 = vpop.f32.mrf.mxu3  ;;  %v3554_v13 = vadd.f32 %v3513_v10, %v3139_v32  ;;  %v8362_v10 = vld [vmem:[#allocation82_spill] sm:$0xff] }
 0x409   : > { %4479 = vst.msk [vmem:[%s7336_s25 + $0x50] sm:$0xf] %vm4458_vm4, %v4446_v21  ;;  %v4631_v45 = vsel %vm1105_vm1, %v4580_v60, 0.0  ;;  %v3967_v8 = vadd.f32 %v3923_v48, %v3552_v6 }
 0x40a   : > { %v4632_v38 = vadd.f32 %v4631_v45, %v4630_v14  ;;  %v4330_v41 = vpop.f32.mrf.mxu0 }
 0x40b   : > { %v4379_v25 = vadd.f32 %v4330_v41, %v3964_v3  ;;  %v3515_v41 = vpop.f32.mrf.mxu2 }
 0x40d   : > { %v4415_v57 = vadd.f32 %v7324_v31, %v4379_v25 }
 0x40f   : > { %v4447_v1 = vpack.c.bf16 %v4415_v57, %v4415_v57  ;;  %v4532_v16 = vsel %vm1105_vm1, %v4415_v57, 0.0  ;;  %v4581_v49 = vmul.f32 %v4415_v57, %v4415_v57 }
 0x410   : > { %v4533_v62 = vadd.f32 %v4532_v16, %v4531_v9  ;;  %v3925_v27 = vpop.f32.mrf.mxu3  ;;  %v3100_v9 = vpop.f32.mrf.mxu1 }
 0x411   : > { %4480 = vst.msk [vmem:[%s7336_s25 + $0x54] sm:$0xf] %vm4458_vm4, %v4447_v1  ;;  %v4633_v2 = vsel %vm1105_vm1, %v4581_v49, 0.0  ;;  %v3968_v5 = vadd.f32 %v3925_v27, %v3553_v35  ;;  %v3140_v28 = vadd.f32 %v3100_v9, %v7251_v26  ;;  %v8361_v26 = vld [vmem:[#allocation129_spill] sm:$0xff] }
 0x412   : > { %v4634_v46 = vadd.f32 %v4633_v2, %v4632_v38  ;;  %v4333_v59 = vpop.f32.mrf.mxu0 }
 0x413   : > { %v4380_v39 = vadd.f32 %v4333_v59, %v3965_v53  ;;  %v3518_v59 = vpop.f32.mrf.mxu2 }
 0x415   : > { %v4416_v56 = vadd.f32 %v7324_v31, %v4380_v39  ;;  %v3555_v39 = vadd.f32 %v3515_v41, %v3140_v28 }
 0x417   : > { %v4448_v58 = vpack.c.bf16 %v4416_v56, %v4416_v56  ;;  %v4534_v63 = vsel %vm1105_vm1, %v4416_v56, 0.0  ;;  %v4582_v7 = vmul.f32 %v4416_v56, %v4416_v56 }
 0x418   : > { %v4535_v19 = vadd.f32 %v4534_v63, %v4533_v62  ;;  %v3928_v47 = vpop.f32.mrf.mxu3  ;;  %v3103_v2 = vpop.f32.mrf.mxu1 }
 0x419   : > { %4481 = vst.msk [vmem:[%s7336_s25 + $0x58] sm:$0xf] %vm4458_vm4, %v4448_v58  ;;  %v4635_v54 = vsel %vm1105_vm1, %v4582_v7, 0.0  ;;  %v3969_v16 = vadd.f32 %v3928_v47, %v3554_v13 }
 0x41a   : > { %v4636_v17 = vadd.f32 %v4635_v54, %v4634_v46  ;;  %v4335_v30 = vpop.f32.mrf.mxu0  ;;  %v3141_v54 = vadd.f32 %v3103_v2, %v8361_v26 }
 0x41b   : > { %v4381_v24 = vadd.f32 %v4335_v30, %v3966_v29  ;;  %v3520_v6 = vpop.f32.mrf.mxu2 }
 0x41c   : > { %v3556_v30 = vadd.f32 %v3518_v59, %v3141_v54 }
 0x41d   : > { %v4417_v15 = vadd.f32 %v7324_v31, %v4381_v24 }
 0x41f   : > { %v4449_v0 = vpack.c.bf16 %v4417_v15, %v4417_v15  ;;  %v4536_v23 = vsel %vm1105_vm1, %v4417_v15, 0.0  ;;  %v4583_v33 = vmul.f32 %v4417_v15, %v4417_v15 }
 0x420   : > { %v4537_v50 = vadd.f32 %v4536_v23, %v4535_v19  ;;  %v3930_v40 = vpop.f32.mrf.mxu3 }
 0x421   : > { %4482 = vst.msk [vmem:[%s7336_s25 + $0x5c] sm:$0xf] %vm4458_vm4, %v4449_v0  ;;  %v4637_v43 = vsel %vm1105_vm1, %v4583_v33, 0.0  ;;  %v3970_v63 = vadd.f32 %v3930_v40, %v3555_v39 }
 0x422   : > { %v4638_v22 = vadd.f32 %v4637_v43, %v4636_v17  ;;  %v4338_v14 = vpop.f32.mrf.mxu0  ;;  %v3105_v17 = vpop.f32.mrf.mxu1 }
 0x423   : > { %v4382_v42 = vadd.f32 %v4338_v14, %v3967_v8 }
 0x425   : > { %v4418_v4 = vadd.f32 %v7324_v31, %v4382_v42 }
 0x427   : > { %v4450_v36 = vpack.c.bf16 %v4418_v4, %v4418_v4  ;;  %v4538_v20 = vsel %vm1105_vm1, %v4418_v4, 0.0  ;;  %v4584_v55 = vmul.f32 %v4418_v4, %v4418_v4 }
 0x428   : > { %v4539_v21 = vadd.f32 %v4538_v20, %v4537_v50  ;;  %v3933_v18 = vpop.f32.mrf.mxu3 }
 0x429   : > { %4483 = vst.msk [vmem:[%s7336_s25 + $0x60] sm:$0xf] %vm4458_vm4, %v4450_v36  ;;  %v4639_v60 = vsel %vm1105_vm1, %v4584_v55, 0.0  ;;  %v3971_v23 = vadd.f32 %v3933_v18, %v3556_v30 }
 0x42a   : > { %v4640_v3 = vadd.f32 %v4639_v60, %v4638_v22  ;;  %v4340_v45 = vpop.f32.mrf.mxu0  ;;  %v3142_v22 = vadd.f32 %v3105_v17, %v8362_v10  ;;  %v3108_v35 = vpop.f32.mrf.mxu1 }
 0x42b   : > { %v4383_v38 = vadd.f32 %v4340_v45, %v3968_v5  ;;  %v8363_v45 = vld [vmem:[#allocation141_spill] sm:$0xff] }
 0x42c   : > { %v3557_v42 = vadd.f32 %v3520_v6, %v3142_v22 }
 0x42d   : > { %v4419_v25 = vadd.f32 %v7324_v31, %v4383_v38  ;;  %v5062_v38 = vld [vmem:[#allocation2] ss:$0 sm:$0xff] }
 0x42f   : > { %v4451_v57 = vpack.c.bf16 %v4419_v25, %v4419_v25  ;;  %v4540_v51 = vsel %vm1105_vm1, %v4419_v25, 0.0  ;;  %v4585_v11 = vmul.f32 %v4419_v25, %v4419_v25 }
 0x430   : > { %v4541_v1 = vadd.f32 %v4540_v51, %v4539_v21  ;;  %v3935_v12 = vpop.f32.mrf.mxu3  ;;  %v3523_v21 = vpop.f32.mrf.mxu2 }
 0x431   : > { %4484 = vst.msk [vmem:[%s7336_s25 + $0x64] sm:$0xf] %vm4458_vm4, %v4451_v57  ;;  %v4641_v49 = vsel %vm1105_vm1, %v4585_v11, 0.0  ;;  %v3972_v20 = vadd.f32 %v3935_v12, %v3557_v42 }
 0x432   : > { %v4642_v48 = vadd.f32 %v4641_v49, %v4640_v3  ;;  %v4343_v62 = vpop.f32.mrf.mxu0 }
 0x433   : > { %v4384_v53 = vadd.f32 %v4343_v62, %v3969_v16 }
 0x435   : > { %v4420_v46 = vadd.f32 %v7324_v31, %v4384_v53  ;;  %v8364_v53 = vld [vmem:[#allocation80_spill] sm:$0xff] }
 0x437   : > { %v4452_v61 = vpack.c.bf16 %v4420_v46, %v4420_v46  ;;  %v4542_v56 = vsel %vm1105_vm1, %v4420_v46, 0.0  ;;  %v4586_v37 = vmul.f32 %v4420_v46, %v4420_v46 }
 0x438   : > { %v4543_v58 = vadd.f32 %v4542_v56, %v4541_v1  ;;  %v3938_v3 = vpop.f32.mrf.mxu3  ;;  %v3110_v1 = vpop.f32.mrf.mxu1 }
 0x439   : > { %4485 = vst.msk [vmem:[%s7336_s25 + $0x68] sm:$0xf] %vm4458_vm4, %v4452_v61  ;;  %v4643_v7 = vsel %vm1105_vm1, %v4586_v37, 0.0  ;;  %v3525_v62 = vpop.f32.mrf.mxu2  ;;  %v3144_v2 = vadd.f32 %v3110_v1, %v8364_v53 }
 0x43a   : > { %v4644_v44 = vadd.f32 %v4643_v7, %v4642_v48  ;;  %v4345_v19 = vpop.f32.mrf.mxu0 }
 0x43b   : > { %v4385_v29 = vadd.f32 %v4345_v19, %v3970_v63  ;;  %v3559_v59 = vadd.f32 %v3525_v62, %v3144_v2 }
 0x43d   : > { %v4421_v27 = vadd.f32 %v7324_v31, %v4385_v29 }
 0x43f   : > { %v4453_v24 = vpack.c.bf16 %v4421_v27, %v4421_v27  ;;  %v4544_v52 = vsel %vm1105_vm1, %v4421_v27, 0.0  ;;  %v4587_v15 = vmul.f32 %v4421_v27, %v4421_v27 }
 0x440   : > { %v4545_v0 = vadd.f32 %v4544_v52, %v4543_v58  ;;  %v3940_v46 = vpop.f32.mrf.mxu3 }
 0x441   : > { %4486 = vst.msk [vmem:[%s7336_s25 + $0x6c] sm:$0xf] %vm4458_vm4, %v4453_v24  ;;  %v4645_v33 = vsel %vm1105_vm1, %v4587_v15, 0.0  ;;  %v3974_v18 = vadd.f32 %v3940_v46, %v3559_v59 }
 0x442   : > { %v4646_v50 = vadd.f32 %v4645_v33, %v4644_v44  ;;  %v4348_v8 = vpop.f32.mrf.mxu0 }
 0x443   : > { %v4386_v43 = vadd.f32 %v4348_v8, %v3971_v23 }
 0x445   : > { %v4422_v14 = vadd.f32 %v7324_v31, %v4386_v43  ;;  %v3143_v31 = vadd.f32 %v3108_v35, %v8363_v45 }
 0x447   : > { %v4454_v47 = vpack.c.bf16 %v4422_v14, %v4422_v14  ;;  %v4546_v34 = vsel %vm1105_vm1, %v4422_v14, 0.0  ;;  %v4588_v4 = vmul.f32 %v4422_v14, %v4422_v14  ;;  %v3558_v32 = vadd.f32 %v3523_v21, %v3143_v31 }
 0x448   : > { %v4547_v36 = vadd.f32 %v4546_v34, %v4545_v0 }
 0x449   : > { %4487 = vst.msk [vmem:[%s7336_s25 + $0x70] sm:$0xf] %vm4458_vm4, %v4454_v47  ;;  %v4647_v55 = vsel %vm1105_vm1, %v4588_v4, 0.0  ;;  %v3973_v51 = vadd.f32 %v3938_v3, %v3558_v32 }
 0x44a   : > { %v4648_v5 = vadd.f32 %v4647_v55, %v4646_v50  ;;  %v4350_v60 = vpop.f32.mrf.mxu0 }
 0x44b   : > { %v4387_v9 = vadd.f32 %v4350_v60, %v3972_v20 }
 0x44d   : > { %v4423_v41 = vadd.f32 %v5062_v38, %v4387_v9 }
 0x44f   : > { %v4455_v25 = vpack.c.bf16 %v4423_v41, %v4423_v41  ;;  %v4548_v40 = vsel %vm1105_vm1, %v4423_v41, 0.0  ;;  %v4589_v13 = vmul.f32 %v4423_v41, %v4423_v41 }
 0x450   : > { %v4549_v57 = vadd.f32 %v4548_v40, %v4547_v36 }
 0x451   : > { %4488 = vst.msk [vmem:[%s7336_s25 + $0x74] sm:$0xf] %vm4458_vm4, %v4455_v25  ;;  %v4649_v11 = vsel %vm1105_vm1, %v4589_v13, 0.0 }
 0x452   : > { %v4650_v16 = vadd.f32 %v4649_v11, %v4648_v5  ;;  %v4353_v49 = vpop.f32.mrf.mxu0 }
 0x453   : > { %v4388_v48 = vadd.f32 %v4353_v49, %v3973_v51 }
 0x455   : > { %v4424_v28 = vadd.f32 %v5062_v38, %v4388_v48 }
 0x457   : > { %v4456_v39 = vpack.c.bf16 %v4424_v28, %v4424_v28  ;;  %v4550_v61 = vsel %vm1105_vm1, %v4424_v28, 0.0  ;;  %v4590_v56 = vmul.f32 %v4424_v28, %v4424_v28 }
 0x458   : > { %v4551_v37 = vadd.f32 %v4550_v61, %v4549_v57 }
 0x459   : > { %4489 = vst.msk [vmem:[%s7336_s25 + $0x78] sm:$0xf] %vm4458_vm4, %v4456_v39  ;;  %v4651_v58 = vsel %vm1105_vm1, %v4590_v56, 0.0 }
 0x45a   : > { %v4652_v63 = vadd.f32 %v4651_v58, %v4650_v16  ;;  %v4355_v7 = vpop.f32.mrf.mxu0 }
 0x45b   : > { %v4389_v44 = vadd.f32 %v4355_v7, %v3974_v18 }
 0x45d   : > { %v4425_v19 = vadd.f32 %v5062_v38, %v4389_v44 }
 0x45f   : > { %v4457_v29 = vpack.c.bf16 %v4425_v19, %v4425_v19  ;;  %v4552_v26 = vsel %vm1105_vm1, %v4425_v19, 0.0  ;;  %v4591_v54 = vmul.f32 %v4425_v19, %v4425_v19 }
 0x460   : > { %v4553_v27 = vadd.f32 %v4552_v26, %v4551_v37 }
 0x461   : > { %4490 = vst.msk [vmem:[%s7336_s25 + $0x7c] sm:$0xf] %vm4458_vm4, %v4457_v29  ;;  %v4653_v17 = vsel %vm1105_vm1, %v4591_v54, 0.0 }
 0x462   : > { %v4554_v30 = vrot.slane %v4553_v27, 4  ;;  %v4654_v24 = vadd.f32 %v4653_v17, %v4652_v63 }
 0x464   : > { %v4555_v52 = vadd.f32 %v4554_v30, %v4553_v27  ;;  %v4655_v15 = vrot.slane %v4654_v24, 4 }
 0x466   : > { %v4556_v6 = vrot.slane %v4555_v52, 2  ;;  %v4656_v0 = vadd.f32 %v4655_v15, %v4654_v24 }
 0x468   : > { %v4557_v23 = vadd.f32 %v4556_v6, %v4555_v52  ;;  %v4657_v33 = vrot.slane %v4656_v0, 2 }
 0x46a   : > { %v4558_v12 = vrot.slane %v4557_v23, 1  ;;  %v4658_v50 = vadd.f32 %v4657_v33, %v4656_v0 }
 0x46c   : > { %v4659_v8 = vrot.slane %v4658_v50, 1  ;;  %v4559_v43 = vadd.f32 %v4558_v12, %v4557_v23 }
 0x46e   : > { %v4660_v10 = vadd.f32 %v4659_v8, %v4658_v50 }
 0x470   : > { %v4661_v22 = vsel %vm494_vm2, %v4559_v43, %v4660_v10 }
 0x471   : > { %v4662_v14 = vsel %vm1154_vm0, %v4661_v22, 0.0 }
 0x472   : > { %4663 = vst.msk [vmem:[%s321_s29] sm:$0xff] %vm1105_vm1, %v4662_v14 }
 0x473 PF: > { %s20_s24 = sadd.s32 1, %s5137_s24  }
 0x474   : > { %p17_p7 = scmp.ge.s32.totalorder %s20_s24, 4  }
 0x476   :  { %19 = sbr.rel (!%p17_p7) target bundleno = 2 (0x2), region = 111 }
 0x47b   :  { %4699 = vsyncpa [#allocation3], 1 }
 0x47c   :  { %4701 = vsyncpa [#allocation3 + $0x1], 1 }
 0x47d   :  { %4702 = vsyncpa [#allocation5], 1 }

</bundles_post_ra>
